<compile_context>
chip_gen: v7x
topology: tpu7x:2x2x1
jax: 0.10.0
libtpu: 0.0.40
codegen_flags: <defaults>
</compile_context>

<pallas_src>
import numpy as np
import jax
import jax.numpy as jnp
from jax import lax
from jax.experimental import pallas as pl
from jax.experimental.pallas import tpu as pltpu

# Model hyper-parameters fixed by the PyTorch module definition.
IN_SIZE = 25          # GRU input_size
HID = 50              # GRU hidden_size
N_CLASS = 27          # fc out_features
HP = 56               # hidden padded to a multiple of 8 sublanes
G3 = 3 * HP           # fused r/z/n gate rows (8-aligned blocks at 0 / 56 / 112)
NCP = 32              # classes padded to a multiple of 8
NEG = -1e30           # "minus infinity" bias for padded class rows
BIG = 64.0            # saturation bias keeping the constant-1 hidden row at 1.0


def _round_up(a, m):
    return (a + m - 1) // m * m


def _sigmoid(x):
    # sigmoid(x) == 0.5 * tanh(x/2) + 0.5 : one EUP push instead of exp + recip.
    return jnp.tanh(x * 0.5) * 0.5 + 0.5


def _pad2d(a, rows, cols):
    a = jnp.asarray(a, jnp.float32)
    return jnp.zeros((rows, cols), jnp.float32).at[:a.shape[0], :a.shape[1]].set(a)


def _pack_layer(w_ih, w_hh, b_ih, b_hh):
    """PyTorch GRU layer params -> fused / padded layout with biases folded into
    the constant-1 channel (column HP-1)."""
    H = HID
    w_ih = jnp.asarray(w_ih, jnp.float32)
    w_hh = jnp.asarray(w_hh, jnp.float32)
    b_ih = jnp.asarray(b_ih, jnp.float32)
    b_hh = jnp.asarray(b_hh, jnp.float32)
    in_l = w_ih.shape[1]

    wih_p = jnp.zeros((G3, HP), jnp.float32)
    whh_p = jnp.zeros((G3, HP), jnp.float32)
    for g in range(3):                                # gate order: r, z, n
        wih_p = wih_p.at[g * HP:g * HP + H, :in_l].set(w_ih[g * H:(g + 1) * H])
        whh_p = whh_p.at[g * HP:g * HP + H, :HID].set(w_hh[g * H:(g + 1) * H])

    # Fold biases into the constant-1 input channel (wih column HP-1):
    #   r / z : b_i* + b_h* can be summed (both outside any gating product).
    #   n     : only b_in here; b_hn must stay inside r*(W_hn h + b_hn), so it is
    #           folded into the W_hh matmul via the constant-1 hidden row below.
    wih_p = wih_p.at[0 * HP:0 * HP + H, HP - 1].set(b_ih[0:H] + b_hh[0:H])
    wih_p = wih_p.at[1 * HP:1 * HP + H, HP - 1].set(b_ih[H:2 * H] + b_hh[H:2 * H])
    wih_p = wih_p.at[2 * HP:2 * HP + H, HP - 1].set(b_ih[2 * H:3 * H])
    whh_p = whh_p.at[2 * HP:2 * HP + H, HP - 1].set(b_hh[2 * H:3 * H])

    # Keep the constant-1 hidden row (index HP-1) pinned to exactly 1.0:
    #   n-gate row -> +BIG  => n_{HP-1} = tanh(BIG) == 1.0
    #   z-gate row -> -BIG  => z_{HP-1} = 0.0
    # so h_{HP-1} = n + z*(h - n) == 1.0 for every step (h0 row HP-1 is set to 1).
    wih_p = wih_p.at[2 * HP + (HP - 1), HP - 1].set(BIG)
    wih_p = wih_p.at[1 * HP + (HP - 1), HP - 1].set(-BIG)
    return wih_p, whh_p


def _pack_inputs(x, t_len, nt, n_tiles, dtype):
    """Relayout (N, T, in) -> (HP, n_tiles*T*nt): lanes ordered tile-major, then
    time, then batch-minor, with a constant-1 bias channel in row HP-1.
    NOTE: for repeated serving calls this relayout should be hoisted / done once
    upstream (it is an extra full pass over the input)."""
    n, _, in_size = x.shape
    n_pad = n_tiles * nt
    xt = jnp.transpose(jnp.asarray(x, jnp.float32), (2, 1, 0))        # (in, T, N)
    buf = jnp.zeros((HP, t_len, n_pad), jnp.float32)
    buf = buf.at[:in_size, :, :n].set(xt)
    buf = buf.at[HP - 1, :, :].set(1.0)                               # const-1 channel
    buf = buf.reshape(HP, t_len, n_tiles, nt).transpose(0, 2, 1, 3)   # (HP, tiles, T, nt)
    return buf.reshape(HP, n_tiles * t_len * nt).astype(dtype)


def gru_net(x, layer_params, w_fc, b_fc, *, lane_tile=256, use_bf16=True):
    """Forward pass. x: (N, T, 25) batch_first. Returns (N, 27) log-probs.

    lane_tile: batch lanes per grid step (sweep {128,256,512}; v5e prefers small,
    v6e can go to 1024 for big batches)."""
    assert lane_tile % 128 == 0 and lane_tile >= 128
    n, t_len, in_size = x.shape
    assert in_size < HP and HID < HP
    num_layers = len(layer_params)
    cdt = jnp.bfloat16 if use_bf16 else jnp.float32

    wih_l, whh_l = [], []
    for (w_ih, w_hh, b_ih, b_hh) in layer_params:
        a, b = _pack_layer(w_ih, w_hh, b_ih, b_hh)
        wih_l.append(a)
        whh_l.append(b)
    wih_all = jnp.stack(wih_l).astype(cdt)          # (L, 168, 56)
    whh_all = jnp.stack(whh_l).astype(cdt)          # (L, 168, 56)
    wfc_p = _pad2d(w_fc, NCP, HP)                   # (32, 56)  fc stays f32
    bfc_p = jnp.full((NCP, 1), NEG, jnp.float32).at[:N_CLASS, 0].set(
        jnp.asarray(b_fc, jnp.float32))

    # Batch tile: multiple of 128 lanes; force >=2 tiles whenever the batch allows
    # it so both v7x TensorCores get work from the single "parallel" axis.
    n128 = _round_up(n, 128)
    nt = 128 if n128 <= 128 else min(lane_tile, _round_up(n128 // 2, 128))
    n_tiles = _round_up(n128, nt) // nt
    x_wide = _pack_inputs(x, t_len, nt, n_tiles, cdt)

    # Explicit VMEM budget (v5e scoped default is only 16 MiB; v7x has 64 MiB
    # physical). gi/seq scratch scale with T*nt -> chunk T for long sequences.
    itm = jnp.dtype(cdt).itemsize
    vmem_est = (2 * HP * t_len * nt * itm            # x block (double-buffered)
                + 2 * NCP * nt * 4                   # out block (double-buffered)
                + G3 * t_len * nt * 4                # gi scratch (f32)
                + HP * t_len * nt * itm              # inter-layer seq scratch
                + 4 * num_layers * G3 * HP * itm     # weights
                + (2 << 20))                         # headroom (fc, biases, spill)
    if vmem_est > (56 << 20):
        raise ValueError("VMEM budget exceeded: reduce lane_tile or chunk the "
                         "time axis of the gi precompute.")
    vmem_limit = int(min(max(2 * vmem_est, 16 << 20), 64 << 20))

    def kernel(x_ref, wih_ref, whh_ref, wfc_ref, bfc_ref, out_ref, gi_scr, seq_scr):
        # Constant-1 channel: hidden row HP-1 == 1 at every step (it carries the
        # folded biases through both matmuls); rows HID..HP-2 stay exactly 0.
        h0 = jnp.where(
            lax.broadcasted_iota(jnp.int32, (HP, nt), 0) == HP - 1,
            jnp.float32(1.0), jnp.float32(0.0))
        h = h0
        for layer in range(num_layers):              # static unroll over layers
            wih = wih_ref[layer]                     # (3*HP, HP) compute dtype
            whh = whh_ref[layer]
            src = x_ref[...] if layer == 0 else seq_scr[...]
            # One wide matmul = input projection (incl. biases) for ALL T steps;
            # it is off the serial critical path.
            gi_scr[...] = jnp.dot(wih, src, preferred_element_type=jnp.float32)

            h = h0
            write_seq = (layer + 1) < num_layers
            for t in range(t_len):                   # short static unroll (T small)
                c0, c1 = t * nt, (t + 1) * nt        # aligned static lane slice
                gh = jnp.dot(whh, h.astype(cdt),
                             preferred_element_type=jnp.float32)       # (3*HP, nt)
                r = _sigmoid(gi_scr[0:HP, c0:c1] + gh[0:HP])
                z = _sigmoid(gi_scr[HP:2 * HP, c0:c1] + gh[HP:2 * HP])
                nn_ = jnp.tanh(gi_scr[2 * HP:3 * HP, c0:c1] + r * gh[2 * HP:3 * HP])
                h = nn_ + z * (h - nn_)              # == (1-z)*n + z*h
                if write_seq:
                    seq_scr[:, c0:c1] = h.astype(seq_scr.dtype)

        # Linear(50 -> 27) + log_softmax, kept in f32 (class axis is axis 0 here).
        logits = (jnp.dot(wfc_ref[...], h, preferred_element_type=jnp.float32)
                  + bfc_ref[...])                    # (32, nt)
        m = jnp.max(logits, axis=0, keepdims=True)
        shifted = logits - m
        out_ref[...] = shifted - jnp.log(
            jnp.sum(jnp.exp(shifted), axis=0, keepdims=True))

    out_t = pl.pallas_call(
        kernel,
        out_shape=jax.ShapeDtypeStruct((NCP, n_tiles * nt), jnp.float32),
        grid=(n_tiles,),
        in_specs=[
            pl.BlockSpec((HP, t_len * nt), lambda i: (0, i)),
            pl.BlockSpec((num_layers, G3, HP), lambda i: (0, 0, 0)),
            pl.BlockSpec((num_layers, G3, HP), lambda i: (0, 0, 0)),
            pl.BlockSpec((NCP, HP), lambda i: (0, 0)),
            pl.BlockSpec((NCP, 1), lambda i: (0, 0)),
        ],
        out_specs=pl.BlockSpec((NCP, nt), lambda i: (0, i)),
        scratch_shapes=[
            pltpu.VMEM((G3, t_len * nt), jnp.float32),   # all-steps input gates
            pltpu.VMEM((HP, t_len * nt), cdt),           # layer output sequence
        ],
        compiler_params=pltpu.CompilerParams(
            dimension_semantics=("parallel",),
            vmem_limit_bytes=vmem_limit),
    )(x_wide, wih_all, whh_all, wfc_p, bfc_p)
    return out_t[:N_CLASS, :n].T                         # (N, 27)


def reference(x, layer_params, w_fc, b_fc):
    """Pure-JAX reference matching the PyTorch forward (eval mode)."""
    H = HID
    seq = jnp.asarray(x, jnp.float32)                    # (N, T, in)
    for (w_ih, w_hh, b_ih, b_hh) in layer_params:
        def step(h, x_t):                                # x_t: (N, in)
            gi = x_t @ w_ih.T + b_ih
            gh = h @ w_hh.T + b_hh
            r = jax.nn.sigmoid(gi[:, :H] + gh[:, :H])
            z = jax.nn.sigmoid(gi[:, H:2 * H] + gh[:, H:2 * H])
            nn_ = jnp.tanh(gi[:, 2 * H:] + r * gh[:, 2 * H:])
            h_new = (1.0 - z) * nn_ + z * h
            return h_new, h_new
        h0 = jnp.zeros((seq.shape[0], H), jnp.float32)
        _, outs = lax.scan(step, h0, jnp.transpose(seq, (1, 0, 2)))
        seq = jnp.transpose(outs, (1, 0, 2))             # (N, T, H)
    logits = seq[:, -1, :] @ w_fc.T + b_fc
    return jax.nn.log_softmax(logits, axis=1)


if __name__ == "__main__":
    key = jax.random.PRNGKey(0)
    NUM_LAYERS = 2
    N = 4
    T = 8

    def u(k, shape, fan):
        s = 1.0 / np.sqrt(fan)
        return jax.random.uniform(k, shape, jnp.float32, -s, s)

    keys = iter(jax.random.split(key, 4 * NUM_LAYERS + 3))
    layer_params = []
    for layer in range(NUM_LAYERS):
        in_l = IN_SIZE if layer == 0 else HID
        w_ih = u(next(keys), (3 * HID, in_l), HID)
        w_hh = u(next(keys), (3 * HID, HID), HID)
        b_ih = u(next(keys), (3 * HID,), HID)
        b_hh = u(next(keys), (3 * HID,), HID)
        layer_params.append((w_ih, w_hh, b_ih, b_hh))
    w_fc = u(next(keys), (N_CLASS, HID), HID)
    b_fc = u(next(keys), (N_CLASS,), HID)
    x = jax.random.normal(next(keys), (N, T, IN_SIZE), jnp.float32)

    ref = jax.block_until_ready(reference(x, layer_params, w_fc, b_fc))

    # 1) exact-semantics check: f32 matmuls match the PyTorch forward tightly.
    out_f32 = jax.block_until_ready(
        gru_net(x, layer_params, w_fc, b_fc, use_bf16=False))
    assert out_f32.shape == (N, N_CLASS)
    np.testing.assert_allclose(np.asarray(out_f32), np.asarray(ref),
                               atol=1e-4, rtol=1e-3)

    # 2) fast path: bf16 matmul operands with f32 accumulation / f32 logits.
    #    Tolerance reflects the bf16 input-quantization band over the 2-layer,
    #    8-step recurrence (not an implementation error).
    out_bf16 = jax.block_until_ready(
        gru_net(x, layer_params, w_fc, b_fc, use_bf16=True))
    assert out_bf16.shape == (N, N_CLASS)
    np.testing.assert_allclose(np.asarray(out_bf16), np.asarray(ref),
                               atol=5e-2, rtol=1e-2)

    print("KERNEL_OK")
</pallas_src>

<mosaic_0001>
module attributes {stable_mosaic.version = 11 : i64} {
  func.func @kernel(%arg0: i32, %arg1: memref<56x1024xf32, #tpu.memory_space<vmem>>, %arg2: memref<2x168x56xf32, #tpu.memory_space<vmem>>, %arg3: memref<2x168x56xf32, #tpu.memory_space<vmem>>, %arg4: memref<32x56xf32, #tpu.memory_space<vmem>>, %arg5: memref<32x1xf32, #tpu.memory_space<vmem>>, %arg6: memref<32x128xf32, #tpu.memory_space<vmem>>, %arg7: memref<168x1024xf32, #tpu.memory_space<vmem>>, %arg8: memref<56x1024xf32, #tpu.memory_space<vmem>>) attributes {dimension_semantics = [#tpu.dimension_semantics<parallel>], iteration_bounds = array<i64: 1>, scalar_prefetch = 0 : i64, scratch_operands = 2 : i64, tpu.core_type = #tpu.core_type<tc>, window_params = [{transform_indices = @transform_0, window_bounds = array<i64: 56, 1024>}, {pipeline_mode = #tpu.pipeline_mode<synchronous>, transform_indices = @transform_1, window_bounds = array<i64: 2, 168, 56>}, {pipeline_mode = #tpu.pipeline_mode<synchronous>, transform_indices = @transform_2, window_bounds = array<i64: 2, 168, 56>}, {pipeline_mode = #tpu.pipeline_mode<synchronous>, transform_indices = @transform_3, window_bounds = array<i64: 32, 56>}, {pipeline_mode = #tpu.pipeline_mode<synchronous>, transform_indices = @transform_4, window_bounds = array<i64: 32, 1>}, {transform_indices = @transform_5, window_bounds = array<i64: 32, 128>}]} {
    %0 = tpu.iota {dimensions = array<i32: 0>} : vector<56x128xi32>
    %c55_i32 = arith.constant 55 : i32
    %1 = vector.broadcast %c55_i32 : i32 to vector<56x128xi32>
    %2 = arith.cmpi eq, %0, %1 : vector<56x128xi32>
    %cst = arith.constant 1.000000e+00 : f32
    %cst_0 = arith.constant 0.000000e+00 : f32
    %3 = vector.broadcast %cst : f32 to vector<56x128xf32>
    %4 = vector.broadcast %cst_0 : f32 to vector<56x128xf32>
    %5 = arith.select %2, %3, %4 : vector<56x128xi1>, vector<56x128xf32>
    %c0 = arith.constant 0 : index
    %c0_1 = arith.constant 0 : index
    %c0_2 = arith.constant 0 : index
    %6 = vector.load %arg2[%c0, %c0_1, %c0_2] : memref<2x168x56xf32, #tpu.memory_space<vmem>>, vector<1x168x56xf32>
    %7 = vector.shape_cast %6 : vector<1x168x56xf32> to vector<168x56xf32>
    %c0_3 = arith.constant 0 : index
    %c0_4 = arith.constant 0 : index
    %c0_5 = arith.constant 0 : index
    %8 = vector.load %arg3[%c0_3, %c0_4, %c0_5] : memref<2x168x56xf32, #tpu.memory_space<vmem>>, vector<1x168x56xf32>
    %9 = vector.shape_cast %8 : vector<1x168x56xf32> to vector<168x56xf32>
    %c0_6 = arith.constant 0 : index
    %c0_7 = arith.constant 0 : index
    %10 = vector.load %arg1[%c0_6, %c0_7] : memref<56x1024xf32, #tpu.memory_space<vmem>>, vector<56x1024xf32>
    %cst_8 = arith.constant dense<0.000000e+00> : vector<168x1024xf32>
    %11 = tpu.matmul %7, %10, %cst_8 {dimension_numbers = #tpu.dot_dimension_numbers<[1], [0], [0], [1], [0, 0, 1, 1], [], []>} : vector<168x56xf32>, vector<56x1024xf32>, vector<168x1024xf32> -> vector<168x1024xf32>
    %c0_9 = arith.constant 0 : index
    %c0_10 = arith.constant 0 : index
    %12 = vector.load %arg7[%c0_9, %c0_10] : memref<168x1024xf32, #tpu.memory_space<vmem>>, vector<168x1024xf32>
    tpu.vector_store %arg7[%c0_9, %c0_10], %11 {strides = array<i32>} : memref<168x1024xf32, #tpu.memory_space<vmem>>, vector<168x1024xf32>,
    %cst_11 = arith.constant dense<0.000000e+00> : vector<168x128xf32>
    %13 = tpu.matmul %9, %5, %cst_11 {dimension_numbers = #tpu.dot_dimension_numbers<[1], [0], [0], [1], [0, 0, 1, 1], [], []>} : vector<168x56xf32>, vector<56x128xf32>, vector<168x128xf32> -> vector<168x128xf32>
    %c0_12 = arith.constant 0 : index
    %c0_13 = arith.constant 0 : index
    %14 = vector.load %arg7[%c0_12, %c0_13] : memref<168x1024xf32, #tpu.memory_space<vmem>>, vector<56x128xf32>
    %15 = vector.extract_strided_slice %13 {offsets = [0, 0], sizes = [56, 128], strides = [1, 1]} : vector<168x128xf32> to vector<56x128xf32>
    %16 = arith.addf %14, %15 : vector<56x128xf32>
    %cst_14 = arith.constant 5.000000e-01 : f32
    %17 = vector.broadcast %cst_14 : f32 to vector<56x128xf32>
    %18 = arith.mulf %16, %17 : vector<56x128xf32>
    %19 = math.tanh %18 : vector<56x128xf32>
    %cst_15 = arith.constant 5.000000e-01 : f32
    %20 = vector.broadcast %cst_15 : f32 to vector<56x128xf32>
    %21 = arith.mulf %19, %20 : vector<56x128xf32>
    %cst_16 = arith.constant 5.000000e-01 : f32
    %22 = vector.broadcast %cst_16 : f32 to vector<56x128xf32>
    %23 = arith.addf %21, %22 : vector<56x128xf32>
    %c56 = arith.constant 56 : index
    %c0_17 = arith.constant 0 : index
    %24 = vector.load %arg7[%c56, %c0_17] : memref<168x1024xf32, #tpu.memory_space<vmem>>, vector<56x128xf32>
    %25 = vector.extract_strided_slice %13 {offsets = [56, 0], sizes = [56, 128], strides = [1, 1]} : vector<168x128xf32> to vector<56x128xf32>
    %26 = arith.addf %24, %25 : vector<56x128xf32>
    %cst_18 = arith.constant 5.000000e-01 : f32
    %27 = vector.broadcast %cst_18 : f32 to vector<56x128xf32>
    %28 = arith.mulf %26, %27 : vector<56x128xf32>
    %29 = math.tanh %28 : vector<56x128xf32>
    %cst_19 = arith.constant 5.000000e-01 : f32
    %30 = vector.broadcast %cst_19 : f32 to vector<56x128xf32>
    %31 = arith.mulf %29, %30 : vector<56x128xf32>
    %cst_20 = arith.constant 5.000000e-01 : f32
    %32 = vector.broadcast %cst_20 : f32 to vector<56x128xf32>
    %33 = arith.addf %31, %32 : vector<56x128xf32>
    %c112 = arith.constant 112 : index
    %c0_21 = arith.constant 0 : index
    %34 = vector.load %arg7[%c112, %c0_21] : memref<168x1024xf32, #tpu.memory_space<vmem>>, vector<56x128xf32>
    %35 = vector.extract_strided_slice %13 {offsets = [112, 0], sizes = [56, 128], strides = [1, 1]} : vector<168x128xf32> to vector<56x128xf32>
    %36 = arith.mulf %23, %35 : vector<56x128xf32>
    %37 = arith.addf %34, %36 : vector<56x128xf32>
    %38 = math.tanh %37 : vector<56x128xf32>
    %39 = arith.subf %5, %38 : vector<56x128xf32>
    %40 = arith.mulf %33, %39 : vector<56x128xf32>
    %41 = arith.addf %38, %40 : vector<56x128xf32>
    %c0_22 = arith.constant 0 : index
    %c0_23 = arith.constant 0 : index
    %42 = vector.load %arg8[%c0_22, %c0_23] : memref<56x1024xf32, #tpu.memory_space<vmem>>, vector<56x128xf32>
    tpu.vector_store %arg8[%c0_22, %c0_23], %41 {strides = array<i32>} : memref<56x1024xf32, #tpu.memory_space<vmem>>, vector<56x128xf32>,
    %cst_24 = arith.constant dense<0.000000e+00> : vector<168x128xf32>
    %43 = tpu.matmul %9, %41, %cst_24 {dimension_numbers = #tpu.dot_dimension_numbers<[1], [0], [0], [1], [0, 0, 1, 1], [], []>} : vector<168x56xf32>, vector<56x128xf32>, vector<168x128xf32> -> vector<168x128xf32>
    %c0_25 = arith.constant 0 : index
    %c128 = arith.constant 128 : index
    %44 = vector.load %arg7[%c0_25, %c128] : memref<168x1024xf32, #tpu.memory_space<vmem>>, vector<56x128xf32>
    %45 = vector.extract_strided_slice %43 {offsets = [0, 0], sizes = [56, 128], strides = [1, 1]} : vector<168x128xf32> to vector<56x128xf32>
    %46 = arith.addf %44, %45 : vector<56x128xf32>
    %cst_26 = arith.constant 5.000000e-01 : f32
    %47 = vector.broadcast %cst_26 : f32 to vector<56x128xf32>
    %48 = arith.mulf %46, %47 : vector<56x128xf32>
    %49 = math.tanh %48 : vector<56x128xf32>
    %cst_27 = arith.constant 5.000000e-01 : f32
    %50 = vector.broadcast %cst_27 : f32 to vector<56x128xf32>
    %51 = arith.mulf %49, %50 : vector<56x128xf32>
    %cst_28 = arith.constant 5.000000e-01 : f32
    %52 = vector.broadcast %cst_28 : f32 to vector<56x128xf32>
    %53 = arith.addf %51, %52 : vector<56x128xf32>
    %c56_29 = arith.constant 56 : index
    %c128_30 = arith.constant 128 : index
    %54 = vector.load %arg7[%c56_29, %c128_30] : memref<168x1024xf32, #tpu.memory_space<vmem>>, vector<56x128xf32>
    %55 = vector.extract_strided_slice %43 {offsets = [56, 0], sizes = [56, 128], strides = [1, 1]} : vector<168x128xf32> to vector<56x128xf32>
    %56 = arith.addf %54, %55 : vector<56x128xf32>
    %cst_31 = arith.constant 5.000000e-01 : f32
    %57 = vector.broadcast %cst_31 : f32 to vector<56x128xf32>
    %58 = arith.mulf %56, %57 : vector<56x128xf32>
    %59 = math.tanh %58 : vector<56x128xf32>
    %cst_32 = arith.constant 5.000000e-01 : f32
    %60 = vector.broadcast %cst_32 : f32 to vector<56x128xf32>
    %61 = arith.mulf %59, %60 : vector<56x128xf32>
    %cst_33 = arith.constant 5.000000e-01 : f32
    %62 = vector.broadcast %cst_33 : f32 to vector<56x128xf32>
    %63 = arith.addf %61, %62 : vector<56x128xf32>
    %c112_34 = arith.constant 112 : index
    %c128_35 = arith.constant 128 : index
    %64 = vector.load %arg7[%c112_34, %c128_35] : memref<168x1024xf32, #tpu.memory_space<vmem>>, vector<56x128xf32>
    %65 = vector.extract_strided_slice %43 {offsets = [112, 0], sizes = [56, 128], strides = [1, 1]} : vector<168x128xf32> to vector<56x128xf32>
    %66 = arith.mulf %53, %65 : vector<56x128xf32>
    %67 = arith.addf %64, %66 : vector<56x128xf32>
    %68 = math.tanh %67 : vector<56x128xf32>
    %69 = arith.subf %41, %68 : vector<56x128xf32>
    %70 = arith.mulf %63, %69 : vector<56x128xf32>
    %71 = arith.addf %68, %70 : vector<56x128xf32>
    %c0_36 = arith.constant 0 : index
    %c128_37 = arith.constant 128 : index
    %72 = vector.load %arg8[%c0_36, %c128_37] : memref<56x1024xf32, #tpu.memory_space<vmem>>, vector<56x128xf32>
    tpu.vector_store %arg8[%c0_36, %c128_37], %71 {strides = array<i32>} : memref<56x1024xf32, #tpu.memory_space<vmem>>, vector<56x128xf32>,
    %cst_38 = arith.constant dense<0.000000e+00> : vector<168x128xf32>
    %73 = tpu.matmul %9, %71, %cst_38 {dimension_numbers = #tpu.dot_dimension_numbers<[1], [0], [0], [1], [0, 0, 1, 1], [], []>} : vector<168x56xf32>, vector<56x128xf32>, vector<168x128xf32> -> vector<168x128xf32>
    %c0_39 = arith.constant 0 : index
    %c256 = arith.constant 256 : index
    %74 = vector.load %arg7[%c0_39, %c256] : memref<168x1024xf32, #tpu.memory_space<vmem>>, vector<56x128xf32>
    %75 = vector.extract_strided_slice %73 {offsets = [0, 0], sizes = [56, 128], strides = [1, 1]} : vector<168x128xf32> to vector<56x128xf32>
    %76 = arith.addf %74, %75 : vector<56x128xf32>
    %cst_40 = arith.constant 5.000000e-01 : f32
    %77 = vector.broadcast %cst_40 : f32 to vector<56x128xf32>
    %78 = arith.mulf %76, %77 : vector<56x128xf32>
    %79 = math.tanh %78 : vector<56x128xf32>
    %cst_41 = arith.constant 5.000000e-01 : f32
    %80 = vector.broadcast %cst_41 : f32 to vector<56x128xf32>
    %81 = arith.mulf %79, %80 : vector<56x128xf32>
    %cst_42 = arith.constant 5.000000e-01 : f32
    %82 = vector.broadcast %cst_42 : f32 to vector<56x128xf32>
    %83 = arith.addf %81, %82 : vector<56x128xf32>
    %c56_43 = arith.constant 56 : index
    %c256_44 = arith.constant 256 : index
    %84 = vector.load %arg7[%c56_43, %c256_44] : memref<168x1024xf32, #tpu.memory_space<vmem>>, vector<56x128xf32>
    %85 = vector.extract_strided_slice %73 {offsets = [56, 0], sizes = [56, 128], strides = [1, 1]} : vector<168x128xf32> to vector<56x128xf32>
    %86 = arith.addf %84, %85 : vector<56x128xf32>
    %cst_45 = arith.constant 5.000000e-01 : f32
    %87 = vector.broadcast %cst_45 : f32 to vector<56x128xf32>
    %88 = arith.mulf %86, %87 : vector<56x128xf32>
    %89 = math.tanh %88 : vector<56x128xf32>
    %cst_46 = arith.constant 5.000000e-01 : f32
    %90 = vector.broadcast %cst_46 : f32 to vector<56x128xf32>
    %91 = arith.mulf %89, %90 : vector<56x128xf32>
    %cst_47 = arith.constant 5.000000e-01 : f32
    %92 = vector.broadcast %cst_47 : f32 to vector<56x128xf32>
    %93 = arith.addf %91, %92 : vector<56x128xf32>
    %c112_48 = arith.constant 112 : index
    %c256_49 = arith.constant 256 : index
    %94 = vector.load %arg7[%c112_48, %c256_49] : memref<168x1024xf32, #tpu.memory_space<vmem>>, vector<56x128xf32>
    %95 = vector.extract_strided_slice %73 {offsets = [112, 0], sizes = [56, 128], strides = [1, 1]} : vector<168x128xf32> to vector<56x128xf32>
    %96 = arith.mulf %83, %95 : vector<56x128xf32>
    %97 = arith.addf %94, %96 : vector<56x128xf32>
    %98 = math.tanh %97 : vector<56x128xf32>
    %99 = arith.subf %71, %98 : vector<56x128xf32>
    %100 = arith.mulf %93, %99 : vector<56x128xf32>
    %101 = arith.addf %98, %100 : vector<56x128xf32>
    %c0_50 = arith.constant 0 : index
    %c256_51 = arith.constant 256 : index
    %102 = vector.load %arg8[%c0_50, %c256_51] : memref<56x1024xf32, #tpu.memory_space<vmem>>, vector<56x128xf32>
    tpu.vector_store %arg8[%c0_50, %c256_51], %101 {strides = array<i32>} : memref<56x1024xf32, #tpu.memory_space<vmem>>, vector<56x128xf32>,
    %cst_52 = arith.constant dense<0.000000e+00> : vector<168x128xf32>
    %103 = tpu.matmul %9, %101, %cst_52 {dimension_numbers = #tpu.dot_dimension_numbers<[1], [0], [0], [1], [0, 0, 1, 1], [], []>} : vector<168x56xf32>, vector<56x128xf32>, vector<168x128xf32> -> vector<168x128xf32>
    %c0_53 = arith.constant 0 : index
    %c384 = arith.constant 384 : index
    %104 = vector.load %arg7[%c0_53, %c384] : memref<168x1024xf32, #tpu.memory_space<vmem>>, vector<56x128xf32>
    %105 = vector.extract_strided_slice %103 {offsets = [0, 0], sizes = [56, 128], strides = [1, 1]} : vector<168x128xf32> to vector<56x128xf32>
    %106 = arith.addf %104, %105 : vector<56x128xf32>
    %cst_54 = arith.constant 5.000000e-01 : f32
    %107 = vector.broadcast %cst_54 : f32 to vector<56x128xf32>
    %108 = arith.mulf %106, %107 : vector<56x128xf32>
    %109 = math.tanh %108 : vector<56x128xf32>
    %cst_55 = arith.constant 5.000000e-01 : f32
    %110 = vector.broadcast %cst_55 : f32 to vector<56x128xf32>
    %111 = arith.mulf %109, %110 : vector<56x128xf32>
    %cst_56 = arith.constant 5.000000e-01 : f32
    %112 = vector.broadcast %cst_56 : f32 to vector<56x128xf32>
    %113 = arith.addf %111, %112 : vector<56x128xf32>
    %c56_57 = arith.constant 56 : index
    %c384_58 = arith.constant 384 : index
    %114 = vector.load %arg7[%c56_57, %c384_58] : memref<168x1024xf32, #tpu.memory_space<vmem>>, vector<56x128xf32>
    %115 = vector.extract_strided_slice %103 {offsets = [56, 0], sizes = [56, 128], strides = [1, 1]} : vector<168x128xf32> to vector<56x128xf32>
    %116 = arith.addf %114, %115 : vector<56x128xf32>
    %cst_59 = arith.constant 5.000000e-01 : f32
    %117 = vector.broadcast %cst_59 : f32 to vector<56x128xf32>
    %118 = arith.mulf %116, %117 : vector<56x128xf32>
    %119 = math.tanh %118 : vector<56x128xf32>
    %cst_60 = arith.constant 5.000000e-01 : f32
    %120 = vector.broadcast %cst_60 : f32 to vector<56x128xf32>
    %121 = arith.mulf %119, %120 : vector<56x128xf32>
    %cst_61 = arith.constant 5.000000e-01 : f32
    %122 = vector.broadcast %cst_61 : f32 to vector<56x128xf32>
    %123 = arith.addf %121, %122 : vector<56x128xf32>
    %c112_62 = arith.constant 112 : index
    %c384_63 = arith.constant 384 : index
    %124 = vector.load %arg7[%c112_62, %c384_63] : memref<168x1024xf32, #tpu.memory_space<vmem>>, vector<56x128xf32>
    %125 = vector.extract_strided_slice %103 {offsets = [112, 0], sizes = [56, 128], strides = [1, 1]} : vector<168x128xf32> to vector<56x128xf32>
    %126 = arith.mulf %113, %125 : vector<56x128xf32>
    %127 = arith.addf %124, %126 : vector<56x128xf32>
    %128 = math.tanh %127 : vector<56x128xf32>
    %129 = arith.subf %101, %128 : vector<56x128xf32>
    %130 = arith.mulf %123, %129 : vector<56x128xf32>
    %131 = arith.addf %128, %130 : vector<56x128xf32>
    %c0_64 = arith.constant 0 : index
    %c384_65 = arith.constant 384 : index
    %132 = vector.load %arg8[%c0_64, %c384_65] : memref<56x1024xf32, #tpu.memory_space<vmem>>, vector<56x128xf32>
    tpu.vector_store %arg8[%c0_64, %c384_65], %131 {strides = array<i32>} : memref<56x1024xf32, #tpu.memory_space<vmem>>, vector<56x128xf32>,
    %cst_66 = arith.constant dense<0.000000e+00> : vector<168x128xf32>
    %133 = tpu.matmul %9, %131, %cst_66 {dimension_numbers = #tpu.dot_dimension_numbers<[1], [0], [0], [1], [0, 0, 1, 1], [], []>} : vector<168x56xf32>, vector<56x128xf32>, vector<168x128xf32> -> vector<168x128xf32>
    %c0_67 = arith.constant 0 : index
    %c512 = arith.constant 512 : index
    %134 = vector.load %arg7[%c0_67, %c512] : memref<168x1024xf32, #tpu.memory_space<vmem>>, vector<56x128xf32>
    %135 = vector.extract_strided_slice %133 {offsets = [0, 0], sizes = [56, 128], strides = [1, 1]} : vector<168x128xf32> to vector<56x128xf32>
    %136 = arith.addf %134, %135 : vector<56x128xf32>
    %cst_68 = arith.constant 5.000000e-01 : f32
    %137 = vector.broadcast %cst_68 : f32 to vector<56x128xf32>
    %138 = arith.mulf %136, %137 : vector<56x128xf32>
    %139 = math.tanh %138 : vector<56x128xf32>
    %cst_69 = arith.constant 5.000000e-01 : f32
    %140 = vector.broadcast %cst_69 : f32 to vector<56x128xf32>
    %141 = arith.mulf %139, %140 : vector<56x128xf32>
    %cst_70 = arith.constant 5.000000e-01 : f32
    %142 = vector.broadcast %cst_70 : f32 to vector<56x128xf32>
    %143 = arith.addf %141, %142 : vector<56x128xf32>
    %c56_71 = arith.constant 56 : index
    %c512_72 = arith.constant 512 : index
    %144 = vector.load %arg7[%c56_71, %c512_72] : memref<168x1024xf32, #tpu.memory_space<vmem>>, vector<56x128xf32>
    %145 = vector.extract_strided_slice %133 {offsets = [56, 0], sizes = [56, 128], strides = [1, 1]} : vector<168x128xf32> to vector<56x128xf32>
    %146 = arith.addf %144, %145 : vector<56x128xf32>
    %cst_73 = arith.constant 5.000000e-01 : f32
    %147 = vector.broadcast %cst_73 : f32 to vector<56x128xf32>
    %148 = arith.mulf %146, %147 : vector<56x128xf32>
    %149 = math.tanh %148 : vector<56x128xf32>
    %cst_74 = arith.constant 5.000000e-01 : f32
    %150 = vector.broadcast %cst_74 : f32 to vector<56x128xf32>
    %151 = arith.mulf %149, %150 : vector<56x128xf32>
    %cst_75 = arith.constant 5.000000e-01 : f32
    %152 = vector.broadcast %cst_75 : f32 to vector<56x128xf32>
    %153 = arith.addf %151, %152 : vector<56x128xf32>
    %c112_76 = arith.constant 112 : index
    %c512_77 = arith.constant 512 : index
    %154 = vector.load %arg7[%c112_76, %c512_77] : memref<168x1024xf32, #tpu.memory_space<vmem>>, vector<56x128xf32>
    %155 = vector.extract_strided_slice %133 {offsets = [112, 0], sizes = [56, 128], strides = [1, 1]} : vector<168x128xf32> to vector<56x128xf32>
    %156 = arith.mulf %143, %155 : vector<56x128xf32>
    %157 = arith.addf %154, %156 : vector<56x128xf32>
    %158 = math.tanh %157 : vector<56x128xf32>
    %159 = arith.subf %131, %158 : vector<56x128xf32>
    %160 = arith.mulf %153, %159 : vector<56x128xf32>
    %161 = arith.addf %158, %160 : vector<56x128xf32>
    %c0_78 = arith.constant 0 : index
    %c512_79 = arith.constant 512 : index
    %162 = vector.load %arg8[%c0_78, %c512_79] : memref<56x1024xf32, #tpu.memory_space<vmem>>, vector<56x128xf32>
    tpu.vector_store %arg8[%c0_78, %c512_79], %161 {strides = array<i32>} : memref<56x1024xf32, #tpu.memory_space<vmem>>, vector<56x128xf32>,
    %cst_80 = arith.constant dense<0.000000e+00> : vector<168x128xf32>
    %163 = tpu.matmul %9, %161, %cst_80 {dimension_numbers = #tpu.dot_dimension_numbers<[1], [0], [0], [1], [0, 0, 1, 1], [], []>} : vector<168x56xf32>, vector<56x128xf32>, vector<168x128xf32> -> vector<168x128xf32>
    %c0_81 = arith.constant 0 : index
    %c640 = arith.constant 640 : index
    %164 = vector.load %arg7[%c0_81, %c640] : memref<168x1024xf32, #tpu.memory_space<vmem>>, vector<56x128xf32>
    %165 = vector.extract_strided_slice %163 {offsets = [0, 0], sizes = [56, 128], strides = [1, 1]} : vector<168x128xf32> to vector<56x128xf32>
    %166 = arith.addf %164, %165 : vector<56x128xf32>
    %cst_82 = arith.constant 5.000000e-01 : f32
    %167 = vector.broadcast %cst_82 : f32 to vector<56x128xf32>
    %168 = arith.mulf %166, %167 : vector<56x128xf32>
    %169 = math.tanh %168 : vector<56x128xf32>
    %cst_83 = arith.constant 5.000000e-01 : f32
    %170 = vector.broadcast %cst_83 : f32 to vector<56x128xf32>
    %171 = arith.mulf %169, %170 : vector<56x128xf32>
    %cst_84 = arith.constant 5.000000e-01 : f32
    %172 = vector.broadcast %cst_84 : f32 to vector<56x128xf32>
    %173 = arith.addf %171, %172 : vector<56x128xf32>
    %c56_85 = arith.constant 56 : index
    %c640_86 = arith.constant 640 : index
    %174 = vector.load %arg7[%c56_85, %c640_86] : memref<168x1024xf32, #tpu.memory_space<vmem>>, vector<56x128xf32>
    %175 = vector.extract_strided_slice %163 {offsets = [56, 0], sizes = [56, 128], strides = [1, 1]} : vector<168x128xf32> to vector<56x128xf32>
    %176 = arith.addf %174, %175 : vector<56x128xf32>
    %cst_87 = arith.constant 5.000000e-01 : f32
    %177 = vector.broadcast %cst_87 : f32 to vector<56x128xf32>
    %178 = arith.mulf %176, %177 : vector<56x128xf32>
    %179 = math.tanh %178 : vector<56x128xf32>
    %cst_88 = arith.constant 5.000000e-01 : f32
    %180 = vector.broadcast %cst_88 : f32 to vector<56x128xf32>
    %181 = arith.mulf %179, %180 : vector<56x128xf32>
    %cst_89 = arith.constant 5.000000e-01 : f32
    %182 = vector.broadcast %cst_89 : f32 to vector<56x128xf32>
    %183 = arith.addf %181, %182 : vector<56x128xf32>
    %c112_90 = arith.constant 112 : index
    %c640_91 = arith.constant 640 : index
    %184 = vector.load %arg7[%c112_90, %c640_91] : memref<168x1024xf32, #tpu.memory_space<vmem>>, vector<56x128xf32>
    %185 = vector.extract_strided_slice %163 {offsets = [112, 0], sizes = [56, 128], strides = [1, 1]} : vector<168x128xf32> to vector<56x128xf32>
    %186 = arith.mulf %173, %185 : vector<56x128xf32>
    %187 = arith.addf %184, %186 : vector<56x128xf32>
    %188 = math.tanh %187 : vector<56x128xf32>
    %189 = arith.subf %161, %188 : vector<56x128xf32>
    %190 = arith.mulf %183, %189 : vector<56x128xf32>
    %191 = arith.addf %188, %190 : vector<56x128xf32>
    %c0_92 = arith.constant 0 : index
    %c640_93 = arith.constant 640 : index
    %192 = vector.load %arg8[%c0_92, %c640_93] : memref<56x1024xf32, #tpu.memory_space<vmem>>, vector<56x128xf32>
    tpu.vector_store %arg8[%c0_92, %c640_93], %191 {strides = array<i32>} : memref<56x1024xf32, #tpu.memory_space<vmem>>, vector<56x128xf32>,
    %cst_94 = arith.constant dense<0.000000e+00> : vector<168x128xf32>
    %193 = tpu.matmul %9, %191, %cst_94 {dimension_numbers = #tpu.dot_dimension_numbers<[1], [0], [0], [1], [0, 0, 1, 1], [], []>} : vector<168x56xf32>, vector<56x128xf32>, vector<168x128xf32> -> vector<168x128xf32>
    %c0_95 = arith.constant 0 : index
    %c768 = arith.constant 768 : index
    %194 = vector.load %arg7[%c0_95, %c768] : memref<168x1024xf32, #tpu.memory_space<vmem>>, vector<56x128xf32>
    %195 = vector.extract_strided_slice %193 {offsets = [0, 0], sizes = [56, 128], strides = [1, 1]} : vector<168x128xf32> to vector<56x128xf32>
    %196 = arith.addf %194, %195 : vector<56x128xf32>
    %cst_96 = arith.constant 5.000000e-01 : f32
    %197 = vector.broadcast %cst_96 : f32 to vector<56x128xf32>
    %198 = arith.mulf %196, %197 : vector<56x128xf32>
    %199 = math.tanh %198 : vector<56x128xf32>
    %cst_97 = arith.constant 5.000000e-01 : f32
    %200 = vector.broadcast %cst_97 : f32 to vector<56x128xf32>
    %201 = arith.mulf %199, %200 : vector<56x128xf32>
    %cst_98 = arith.constant 5.000000e-01 : f32
    %202 = vector.broadcast %cst_98 : f32 to vector<56x128xf32>
    %203 = arith.addf %201, %202 : vector<56x128xf32>
    %c56_99 = arith.constant 56 : index
    %c768_100 = arith.constant 768 : index
    %204 = vector.load %arg7[%c56_99, %c768_100] : memref<168x1024xf32, #tpu.memory_space<vmem>>, vector<56x128xf32>
    %205 = vector.extract_strided_slice %193 {offsets = [56, 0], sizes = [56, 128], strides = [1, 1]} : vector<168x128xf32> to vector<56x128xf32>
    %206 = arith.addf %204, %205 : vector<56x128xf32>
    %cst_101 = arith.constant 5.000000e-01 : f32
    %207 = vector.broadcast %cst_101 : f32 to vector<56x128xf32>
    %208 = arith.mulf %206, %207 : vector<56x128xf32>
    %209 = math.tanh %208 : vector<56x128xf32>
    %cst_102 = arith.constant 5.000000e-01 : f32
    %210 = vector.broadcast %cst_102 : f32 to vector<56x128xf32>
    %211 = arith.mulf %209, %210 : vector<56x128xf32>
    %cst_103 = arith.constant 5.000000e-01 : f32
    %212 = vector.broadcast %cst_103 : f32 to vector<56x128xf32>
    %213 = arith.addf %211, %212 : vector<56x128xf32>
    %c112_104 = arith.constant 112 : index
    %c768_105 = arith.constant 768 : index
    %214 = vector.load %arg7[%c112_104, %c768_105] : memref<168x1024xf32, #tpu.memory_space<vmem>>, vector<56x128xf32>
    %215 = vector.extract_strided_slice %193 {offsets = [112, 0], sizes = [56, 128], strides = [1, 1]} : vector<168x128xf32> to vector<56x128xf32>
    %216 = arith.mulf %203, %215 : vector<56x128xf32>
    %217 = arith.addf %214, %216 : vector<56x128xf32>
    %218 = math.tanh %217 : vector<56x128xf32>
    %219 = arith.subf %191, %218 : vector<56x128xf32>
    %220 = arith.mulf %213, %219 : vector<56x128xf32>
    %221 = arith.addf %218, %220 : vector<56x128xf32>
    %c0_106 = arith.constant 0 : index
    %c768_107 = arith.constant 768 : index
    %222 = vector.load %arg8[%c0_106, %c768_107] : memref<56x1024xf32, #tpu.memory_space<vmem>>, vector<56x128xf32>
    tpu.vector_store %arg8[%c0_106, %c768_107], %221 {strides = array<i32>} : memref<56x1024xf32, #tpu.memory_space<vmem>>, vector<56x128xf32>,
    %cst_108 = arith.constant dense<0.000000e+00> : vector<168x128xf32>
    %223 = tpu.matmul %9, %221, %cst_108 {dimension_numbers = #tpu.dot_dimension_numbers<[1], [0], [0], [1], [0, 0, 1, 1], [], []>} : vector<168x56xf32>, vector<56x128xf32>, vector<168x128xf32> -> vector<168x128xf32>
    %c0_109 = arith.constant 0 : index
    %c896 = arith.constant 896 : index
    %224 = vector.load %arg7[%c0_109, %c896] : memref<168x1024xf32, #tpu.memory_space<vmem>>, vector<56x128xf32>
    %225 = vector.extract_strided_slice %223 {offsets = [0, 0], sizes = [56, 128], strides = [1, 1]} : vector<168x128xf32> to vector<56x128xf32>
    %226 = arith.addf %224, %225 : vector<56x128xf32>
    %cst_110 = arith.constant 5.000000e-01 : f32
    %227 = vector.broadcast %cst_110 : f32 to vector<56x128xf32>
    %228 = arith.mulf %226, %227 : vector<56x128xf32>
    %229 = math.tanh %228 : vector<56x128xf32>
    %cst_111 = arith.constant 5.000000e-01 : f32
    %230 = vector.broadcast %cst_111 : f32 to vector<56x128xf32>
    %231 = arith.mulf %229, %230 : vector<56x128xf32>
    %cst_112 = arith.constant 5.000000e-01 : f32
    %232 = vector.broadcast %cst_112 : f32 to vector<56x128xf32>
    %233 = arith.addf %231, %232 : vector<56x128xf32>
    %c56_113 = arith.constant 56 : index
    %c896_114 = arith.constant 896 : index
    %234 = vector.load %arg7[%c56_113, %c896_114] : memref<168x1024xf32, #tpu.memory_space<vmem>>, vector<56x128xf32>
    %235 = vector.extract_strided_slice %223 {offsets = [56, 0], sizes = [56, 128], strides = [1, 1]} : vector<168x128xf32> to vector<56x128xf32>
    %236 = arith.addf %234, %235 : vector<56x128xf32>
    %cst_115 = arith.constant 5.000000e-01 : f32
    %237 = vector.broadcast %cst_115 : f32 to vector<56x128xf32>
    %238 = arith.mulf %236, %237 : vector<56x128xf32>
    %239 = math.tanh %238 : vector<56x128xf32>
    %cst_116 = arith.constant 5.000000e-01 : f32
    %240 = vector.broadcast %cst_116 : f32 to vector<56x128xf32>
    %241 = arith.mulf %239, %240 : vector<56x128xf32>
    %cst_117 = arith.constant 5.000000e-01 : f32
    %242 = vector.broadcast %cst_117 : f32 to vector<56x128xf32>
    %243 = arith.addf %241, %242 : vector<56x128xf32>
    %c112_118 = arith.constant 112 : index
    %c896_119 = arith.constant 896 : index
    %244 = vector.load %arg7[%c112_118, %c896_119] : memref<168x1024xf32, #tpu.memory_space<vmem>>, vector<56x128xf32>
    %245 = vector.extract_strided_slice %223 {offsets = [112, 0], sizes = [56, 128], strides = [1, 1]} : vector<168x128xf32> to vector<56x128xf32>
    %246 = arith.mulf %233, %245 : vector<56x128xf32>
    %247 = arith.addf %244, %246 : vector<56x128xf32>
    %248 = math.tanh %247 : vector<56x128xf32>
    %249 = arith.subf %221, %248 : vector<56x128xf32>
    %250 = arith.mulf %243, %249 : vector<56x128xf32>
    %251 = arith.addf %248, %250 : vector<56x128xf32>
    %c0_120 = arith.constant 0 : index
    %c896_121 = arith.constant 896 : index
    %252 = vector.load %arg8[%c0_120, %c896_121] : memref<56x1024xf32, #tpu.memory_space<vmem>>, vector<56x128xf32>
    tpu.vector_store %arg8[%c0_120, %c896_121], %251 {strides = array<i32>} : memref<56x1024xf32, #tpu.memory_space<vmem>>, vector<56x128xf32>,
    %c1 = arith.constant 1 : index
    %c0_122 = arith.constant 0 : index
    %c0_123 = arith.constant 0 : index
    %253 = vector.load %arg2[%c1, %c0_122, %c0_123] : memref<2x168x56xf32, #tpu.memory_space<vmem>>, vector<1x168x56xf32>
    %254 = vector.shape_cast %253 : vector<1x168x56xf32> to vector<168x56xf32>
    %c1_124 = arith.constant 1 : index
    %c0_125 = arith.constant 0 : index
    %c0_126 = arith.constant 0 : index
    %255 = vector.load %arg3[%c1_124, %c0_125, %c0_126] : memref<2x168x56xf32, #tpu.memory_space<vmem>>, vector<1x168x56xf32>
    %256 = vector.shape_cast %255 : vector<1x168x56xf32> to vector<168x56xf32>
    %c0_127 = arith.constant 0 : index
    %c0_128 = arith.constant 0 : index
    %257 = vector.load %arg8[%c0_127, %c0_128] : memref<56x1024xf32, #tpu.memory_space<vmem>>, vector<56x1024xf32>
    %cst_129 = arith.constant dense<0.000000e+00> : vector<168x1024xf32>
    %258 = tpu.matmul %254, %257, %cst_129 {dimension_numbers = #tpu.dot_dimension_numbers<[1], [0], [0], [1], [0, 0, 1, 1], [], []>} : vector<168x56xf32>, vector<56x1024xf32>, vector<168x1024xf32> -> vector<168x1024xf32>
    %c0_130 = arith.constant 0 : index
    %c0_131 = arith.constant 0 : index
    %259 = vector.load %arg7[%c0_130, %c0_131] : memref<168x1024xf32, #tpu.memory_space<vmem>>, vector<168x1024xf32>
    tpu.vector_store %arg7[%c0_130, %c0_131], %258 {strides = array<i32>} : memref<168x1024xf32, #tpu.memory_space<vmem>>, vector<168x1024xf32>,
    %cst_132 = arith.constant dense<0.000000e+00> : vector<168x128xf32>
    %260 = tpu.matmul %256, %5, %cst_132 {dimension_numbers = #tpu.dot_dimension_numbers<[1], [0], [0], [1], [0, 0, 1, 1], [], []>} : vector<168x56xf32>, vector<56x128xf32>, vector<168x128xf32> -> vector<168x128xf32>
    %c0_133 = arith.constant 0 : index
    %c0_134 = arith.constant 0 : index
    %261 = vector.load %arg7[%c0_133, %c0_134] : memref<168x1024xf32, #tpu.memory_space<vmem>>, vector<56x128xf32>
    %262 = vector.extract_strided_slice %260 {offsets = [0, 0], sizes = [56, 128], strides = [1, 1]} : vector<168x128xf32> to vector<56x128xf32>
    %263 = arith.addf %261, %262 : vector<56x128xf32>
    %cst_135 = arith.constant 5.000000e-01 : f32
    %264 = vector.broadcast %cst_135 : f32 to vector<56x128xf32>
    %265 = arith.mulf %263, %264 : vector<56x128xf32>
    %266 = math.tanh %265 : vector<56x128xf32>
    %cst_136 = arith.constant 5.000000e-01 : f32
    %267 = vector.broadcast %cst_136 : f32 to vector<56x128xf32>
    %268 = arith.mulf %266, %267 : vector<56x128xf32>
    %cst_137 = arith.constant 5.000000e-01 : f32
    %269 = vector.broadcast %cst_137 : f32 to vector<56x128xf32>
    %270 = arith.addf %268, %269 : vector<56x128xf32>
    %c56_138 = arith.constant 56 : index
    %c0_139 = arith.constant 0 : index
    %271 = vector.load %arg7[%c56_138, %c0_139] : memref<168x1024xf32, #tpu.memory_space<vmem>>, vector<56x128xf32>
    %272 = vector.extract_strided_slice %260 {offsets = [56, 0], sizes = [56, 128], strides = [1, 1]} : vector<168x128xf32> to vector<56x128xf32>
    %273 = arith.addf %271, %272 : vector<56x128xf32>
    %cst_140 = arith.constant 5.000000e-01 : f32
    %274 = vector.broadcast %cst_140 : f32 to vector<56x128xf32>
    %275 = arith.mulf %273, %274 : vector<56x128xf32>
    %276 = math.tanh %275 : vector<56x128xf32>
    %cst_141 = arith.constant 5.000000e-01 : f32
    %277 = vector.broadcast %cst_141 : f32 to vector<56x128xf32>
    %278 = arith.mulf %276, %277 : vector<56x128xf32>
    %cst_142 = arith.constant 5.000000e-01 : f32
    %279 = vector.broadcast %cst_142 : f32 to vector<56x128xf32>
    %280 = arith.addf %278, %279 : vector<56x128xf32>
    %c112_143 = arith.constant 112 : index
    %c0_144 = arith.constant 0 : index
    %281 = vector.load %arg7[%c112_143, %c0_144] : memref<168x1024xf32, #tpu.memory_space<vmem>>, vector<56x128xf32>
    %282 = vector.extract_strided_slice %260 {offsets = [112, 0], sizes = [56, 128], strides = [1, 1]} : vector<168x128xf32> to vector<56x128xf32>
    %283 = arith.mulf %270, %282 : vector<56x128xf32>
    %284 = arith.addf %281, %283 : vector<56x128xf32>
    %285 = math.tanh %284 : vector<56x128xf32>
    %286 = arith.subf %5, %285 : vector<56x128xf32>
    %287 = arith.mulf %280, %286 : vector<56x128xf32>
    %288 = arith.addf %285, %287 : vector<56x128xf32>
    %cst_145 = arith.constant dense<0.000000e+00> : vector<168x128xf32>
    %289 = tpu.matmul %256, %288, %cst_145 {dimension_numbers = #tpu.dot_dimension_numbers<[1], [0], [0], [1], [0, 0, 1, 1], [], []>} : vector<168x56xf32>, vector<56x128xf32>, vector<168x128xf32> -> vector<168x128xf32>
    %c0_146 = arith.constant 0 : index
    %c128_147 = arith.constant 128 : index
    %290 = vector.load %arg7[%c0_146, %c128_147] : memref<168x1024xf32, #tpu.memory_space<vmem>>, vector<56x128xf32>
    %291 = vector.extract_strided_slice %289 {offsets = [0, 0], sizes = [56, 128], strides = [1, 1]} : vector<168x128xf32> to vector<56x128xf32>
    %292 = arith.addf %290, %291 : vector<56x128xf32>
    %cst_148 = arith.constant 5.000000e-01 : f32
    %293 = vector.broadcast %cst_148 : f32 to vector<56x128xf32>
    %294 = arith.mulf %292, %293 : vector<56x128xf32>
    %295 = math.tanh %294 : vector<56x128xf32>
    %cst_149 = arith.constant 5.000000e-01 : f32
    %296 = vector.broadcast %cst_149 : f32 to vector<56x128xf32>
    %297 = arith.mulf %295, %296 : vector<56x128xf32>
    %cst_150 = arith.constant 5.000000e-01 : f32
    %298 = vector.broadcast %cst_150 : f32 to vector<56x128xf32>
    %299 = arith.addf %297, %298 : vector<56x128xf32>
    %c56_151 = arith.constant 56 : index
    %c128_152 = arith.constant 128 : index
    %300 = vector.load %arg7[%c56_151, %c128_152] : memref<168x1024xf32, #tpu.memory_space<vmem>>, vector<56x128xf32>
    %301 = vector.extract_strided_slice %289 {offsets = [56, 0], sizes = [56, 128], strides = [1, 1]} : vector<168x128xf32> to vector<56x128xf32>
    %302 = arith.addf %300, %301 : vector<56x128xf32>
    %cst_153 = arith.constant 5.000000e-01 : f32
    %303 = vector.broadcast %cst_153 : f32 to vector<56x128xf32>
    %304 = arith.mulf %302, %303 : vector<56x128xf32>
    %305 = math.tanh %304 : vector<56x128xf32>
    %cst_154 = arith.constant 5.000000e-01 : f32
    %306 = vector.broadcast %cst_154 : f32 to vector<56x128xf32>
    %307 = arith.mulf %305, %306 : vector<56x128xf32>
    %cst_155 = arith.constant 5.000000e-01 : f32
    %308 = vector.broadcast %cst_155 : f32 to vector<56x128xf32>
    %309 = arith.addf %307, %308 : vector<56x128xf32>
    %c112_156 = arith.constant 112 : index
    %c128_157 = arith.constant 128 : index
    %310 = vector.load %arg7[%c112_156, %c128_157] : memref<168x1024xf32, #tpu.memory_space<vmem>>, vector<56x128xf32>
    %311 = vector.extract_strided_slice %289 {offsets = [112, 0], sizes = [56, 128], strides = [1, 1]} : vector<168x128xf32> to vector<56x128xf32>
    %312 = arith.mulf %299, %311 : vector<56x128xf32>
    %313 = arith.addf %310, %312 : vector<56x128xf32>
    %314 = math.tanh %313 : vector<56x128xf32>
    %315 = arith.subf %288, %314 : vector<56x128xf32>
    %316 = arith.mulf %309, %315 : vector<56x128xf32>
    %317 = arith.addf %314, %316 : vector<56x128xf32>
    %cst_158 = arith.constant dense<0.000000e+00> : vector<168x128xf32>
    %318 = tpu.matmul %256, %317, %cst_158 {dimension_numbers = #tpu.dot_dimension_numbers<[1], [0], [0], [1], [0, 0, 1, 1], [], []>} : vector<168x56xf32>, vector<56x128xf32>, vector<168x128xf32> -> vector<168x128xf32>
    %c0_159 = arith.constant 0 : index
    %c256_160 = arith.constant 256 : index
    %319 = vector.load %arg7[%c0_159, %c256_160] : memref<168x1024xf32, #tpu.memory_space<vmem>>, vector<56x128xf32>
    %320 = vector.extract_strided_slice %318 {offsets = [0, 0], sizes = [56, 128], strides = [1, 1]} : vector<168x128xf32> to vector<56x128xf32>
    %321 = arith.addf %319, %320 : vector<56x128xf32>
    %cst_161 = arith.constant 5.000000e-01 : f32
    %322 = vector.broadcast %cst_161 : f32 to vector<56x128xf32>
    %323 = arith.mulf %321, %322 : vector<56x128xf32>
    %324 = math.tanh %323 : vector<56x128xf32>
    %cst_162 = arith.constant 5.000000e-01 : f32
    %325 = vector.broadcast %cst_162 : f32 to vector<56x128xf32>
    %326 = arith.mulf %324, %325 : vector<56x128xf32>
    %cst_163 = arith.constant 5.000000e-01 : f32
    %327 = vector.broadcast %cst_163 : f32 to vector<56x128xf32>
    %328 = arith.addf %326, %327 : vector<56x128xf32>
    %c56_164 = arith.constant 56 : index
    %c256_165 = arith.constant 256 : index
    %329 = vector.load %arg7[%c56_164, %c256_165] : memref<168x1024xf32, #tpu.memory_space<vmem>>, vector<56x128xf32>
    %330 = vector.extract_strided_slice %318 {offsets = [56, 0], sizes = [56, 128], strides = [1, 1]} : vector<168x128xf32> to vector<56x128xf32>
    %331 = arith.addf %329, %330 : vector<56x128xf32>
    %cst_166 = arith.constant 5.000000e-01 : f32
    %332 = vector.broadcast %cst_166 : f32 to vector<56x128xf32>
    %333 = arith.mulf %331, %332 : vector<56x128xf32>
    %334 = math.tanh %333 : vector<56x128xf32>
    %cst_167 = arith.constant 5.000000e-01 : f32
    %335 = vector.broadcast %cst_167 : f32 to vector<56x128xf32>
    %336 = arith.mulf %334, %335 : vector<56x128xf32>
    %cst_168 = arith.constant 5.000000e-01 : f32
    %337 = vector.broadcast %cst_168 : f32 to vector<56x128xf32>
    %338 = arith.addf %336, %337 : vector<56x128xf32>
    %c112_169 = arith.constant 112 : index
    %c256_170 = arith.constant 256 : index
    %339 = vector.load %arg7[%c112_169, %c256_170] : memref<168x1024xf32, #tpu.memory_space<vmem>>, vector<56x128xf32>
    %340 = vector.extract_strided_slice %318 {offsets = [112, 0], sizes = [56, 128], strides = [1, 1]} : vector<168x128xf32> to vector<56x128xf32>
    %341 = arith.mulf %328, %340 : vector<56x128xf32>
    %342 = arith.addf %339, %341 : vector<56x128xf32>
    %343 = math.tanh %342 : vector<56x128xf32>
    %344 = arith.subf %317, %343 : vector<56x128xf32>
    %345 = arith.mulf %338, %344 : vector<56x128xf32>
    %346 = arith.addf %343, %345 : vector<56x128xf32>
    %cst_171 = arith.constant dense<0.000000e+00> : vector<168x128xf32>
    %347 = tpu.matmul %256, %346, %cst_171 {dimension_numbers = #tpu.dot_dimension_numbers<[1], [0], [0], [1], [0, 0, 1, 1], [], []>} : vector<168x56xf32>, vector<56x128xf32>, vector<168x128xf32> -> vector<168x128xf32>
    %c0_172 = arith.constant 0 : index
    %c384_173 = arith.constant 384 : index
    %348 = vector.load %arg7[%c0_172, %c384_173] : memref<168x1024xf32, #tpu.memory_space<vmem>>, vector<56x128xf32>
    %349 = vector.extract_strided_slice %347 {offsets = [0, 0], sizes = [56, 128], strides = [1, 1]} : vector<168x128xf32> to vector<56x128xf32>
    %350 = arith.addf %348, %349 : vector<56x128xf32>
    %cst_174 = arith.constant 5.000000e-01 : f32
    %351 = vector.broadcast %cst_174 : f32 to vector<56x128xf32>
    %352 = arith.mulf %350, %351 : vector<56x128xf32>
    %353 = math.tanh %352 : vector<56x128xf32>
    %cst_175 = arith.constant 5.000000e-01 : f32
    %354 = vector.broadcast %cst_175 : f32 to vector<56x128xf32>
    %355 = arith.mulf %353, %354 : vector<56x128xf32>
    %cst_176 = arith.constant 5.000000e-01 : f32
    %356 = vector.broadcast %cst_176 : f32 to vector<56x128xf32>
    %357 = arith.addf %355, %356 : vector<56x128xf32>
    %c56_177 = arith.constant 56 : index
    %c384_178 = arith.constant 384 : index
    %358 = vector.load %arg7[%c56_177, %c384_178] : memref<168x1024xf32, #tpu.memory_space<vmem>>, vector<56x128xf32>
    %359 = vector.extract_strided_slice %347 {offsets = [56, 0], sizes = [56, 128], strides = [1, 1]} : vector<168x128xf32> to vector<56x128xf32>
    %360 = arith.addf %358, %359 : vector<56x128xf32>
    %cst_179 = arith.constant 5.000000e-01 : f32
    %361 = vector.broadcast %cst_179 : f32 to vector<56x128xf32>
    %362 = arith.mulf %360, %361 : vector<56x128xf32>
    %363 = math.tanh %362 : vector<56x128xf32>
    %cst_180 = arith.constant 5.000000e-01 : f32
    %364 = vector.broadcast %cst_180 : f32 to vector<56x128xf32>
    %365 = arith.mulf %363, %364 : vector<56x128xf32>
    %cst_181 = arith.constant 5.000000e-01 : f32
    %366 = vector.broadcast %cst_181 : f32 to vector<56x128xf32>
    %367 = arith.addf %365, %366 : vector<56x128xf32>
    %c112_182 = arith.constant 112 : index
    %c384_183 = arith.constant 384 : index
    %368 = vector.load %arg7[%c112_182, %c384_183] : memref<168x1024xf32, #tpu.memory_space<vmem>>, vector<56x128xf32>
    %369 = vector.extract_strided_slice %347 {offsets = [112, 0], sizes = [56, 128], strides = [1, 1]} : vector<168x128xf32> to vector<56x128xf32>
    %370 = arith.mulf %357, %369 : vector<56x128xf32>
    %371 = arith.addf %368, %370 : vector<56x128xf32>
    %372 = math.tanh %371 : vector<56x128xf32>
    %373 = arith.subf %346, %372 : vector<56x128xf32>
    %374 = arith.mulf %367, %373 : vector<56x128xf32>
    %375 = arith.addf %372, %374 : vector<56x128xf32>
    %cst_184 = arith.constant dense<0.000000e+00> : vector<168x128xf32>
    %376 = tpu.matmul %256, %375, %cst_184 {dimension_numbers = #tpu.dot_dimension_numbers<[1], [0], [0], [1], [0, 0, 1, 1], [], []>} : vector<168x56xf32>, vector<56x128xf32>, vector<168x128xf32> -> vector<168x128xf32>
    %c0_185 = arith.constant 0 : index
    %c512_186 = arith.constant 512 : index
    %377 = vector.load %arg7[%c0_185, %c512_186] : memref<168x1024xf32, #tpu.memory_space<vmem>>, vector<56x128xf32>
    %378 = vector.extract_strided_slice %376 {offsets = [0, 0], sizes = [56, 128], strides = [1, 1]} : vector<168x128xf32> to vector<56x128xf32>
    %379 = arith.addf %377, %378 : vector<56x128xf32>
    %cst_187 = arith.constant 5.000000e-01 : f32
    %380 = vector.broadcast %cst_187 : f32 to vector<56x128xf32>
    %381 = arith.mulf %379, %380 : vector<56x128xf32>
    %382 = math.tanh %381 : vector<56x128xf32>
    %cst_188 = arith.constant 5.000000e-01 : f32
    %383 = vector.broadcast %cst_188 : f32 to vector<56x128xf32>
    %384 = arith.mulf %382, %383 : vector<56x128xf32>
    %cst_189 = arith.constant 5.000000e-01 : f32
    %385 = vector.broadcast %cst_189 : f32 to vector<56x128xf32>
    %386 = arith.addf %384, %385 : vector<56x128xf32>
    %c56_190 = arith.constant 56 : index
    %c512_191 = arith.constant 512 : index
    %387 = vector.load %arg7[%c56_190, %c512_191] : memref<168x1024xf32, #tpu.memory_space<vmem>>, vector<56x128xf32>
    %388 = vector.extract_strided_slice %376 {offsets = [56, 0], sizes = [56, 128], strides = [1, 1]} : vector<168x128xf32> to vector<56x128xf32>
    %389 = arith.addf %387, %388 : vector<56x128xf32>
    %cst_192 = arith.constant 5.000000e-01 : f32
    %390 = vector.broadcast %cst_192 : f32 to vector<56x128xf32>
    %391 = arith.mulf %389, %390 : vector<56x128xf32>
    %392 = math.tanh %391 : vector<56x128xf32>
    %cst_193 = arith.constant 5.000000e-01 : f32
    %393 = vector.broadcast %cst_193 : f32 to vector<56x128xf32>
    %394 = arith.mulf %392, %393 : vector<56x128xf32>
    %cst_194 = arith.constant 5.000000e-01 : f32
    %395 = vector.broadcast %cst_194 : f32 to vector<56x128xf32>
    %396 = arith.addf %394, %395 : vector<56x128xf32>
    %c112_195 = arith.constant 112 : index
    %c512_196 = arith.constant 512 : index
    %397 = vector.load %arg7[%c112_195, %c512_196] : memref<168x1024xf32, #tpu.memory_space<vmem>>, vector<56x128xf32>
    %398 = vector.extract_strided_slice %376 {offsets = [112, 0], sizes = [56, 128], strides = [1, 1]} : vector<168x128xf32> to vector<56x128xf32>
    %399 = arith.mulf %386, %398 : vector<56x128xf32>
    %400 = arith.addf %397, %399 : vector<56x128xf32>
    %401 = math.tanh %400 : vector<56x128xf32>
    %402 = arith.subf %375, %401 : vector<56x128xf32>
    %403 = arith.mulf %396, %402 : vector<56x128xf32>
    %404 = arith.addf %401, %403 : vector<56x128xf32>
    %cst_197 = arith.constant dense<0.000000e+00> : vector<168x128xf32>
    %405 = tpu.matmul %256, %404, %cst_197 {dimension_numbers = #tpu.dot_dimension_numbers<[1], [0], [0], [1], [0, 0, 1, 1], [], []>} : vector<168x56xf32>, vector<56x128xf32>, vector<168x128xf32> -> vector<168x128xf32>
    %c0_198 = arith.constant 0 : index
    %c640_199 = arith.constant 640 : index
    %406 = vector.load %arg7[%c0_198, %c640_199] : memref<168x1024xf32, #tpu.memory_space<vmem>>, vector<56x128xf32>
    %407 = vector.extract_strided_slice %405 {offsets = [0, 0], sizes = [56, 128], strides = [1, 1]} : vector<168x128xf32> to vector<56x128xf32>
    %408 = arith.addf %406, %407 : vector<56x128xf32>
    %cst_200 = arith.constant 5.000000e-01 : f32
    %409 = vector.broadcast %cst_200 : f32 to vector<56x128xf32>
    %410 = arith.mulf %408, %409 : vector<56x128xf32>
    %411 = math.tanh %410 : vector<56x128xf32>
    %cst_201 = arith.constant 5.000000e-01 : f32
    %412 = vector.broadcast %cst_201 : f32 to vector<56x128xf32>
    %413 = arith.mulf %411, %412 : vector<56x128xf32>
    %cst_202 = arith.constant 5.000000e-01 : f32
    %414 = vector.broadcast %cst_202 : f32 to vector<56x128xf32>
    %415 = arith.addf %413, %414 : vector<56x128xf32>
    %c56_203 = arith.constant 56 : index
    %c640_204 = arith.constant 640 : index
    %416 = vector.load %arg7[%c56_203, %c640_204] : memref<168x1024xf32, #tpu.memory_space<vmem>>, vector<56x128xf32>
    %417 = vector.extract_strided_slice %405 {offsets = [56, 0], sizes = [56, 128], strides = [1, 1]} : vector<168x128xf32> to vector<56x128xf32>
    %418 = arith.addf %416, %417 : vector<56x128xf32>
    %cst_205 = arith.constant 5.000000e-01 : f32
    %419 = vector.broadcast %cst_205 : f32 to vector<56x128xf32>
    %420 = arith.mulf %418, %419 : vector<56x128xf32>
    %421 = math.tanh %420 : vector<56x128xf32>
    %cst_206 = arith.constant 5.000000e-01 : f32
    %422 = vector.broadcast %cst_206 : f32 to vector<56x128xf32>
    %423 = arith.mulf %421, %422 : vector<56x128xf32>
    %cst_207 = arith.constant 5.000000e-01 : f32
    %424 = vector.broadcast %cst_207 : f32 to vector<56x128xf32>
    %425 = arith.addf %423, %424 : vector<56x128xf32>
    %c112_208 = arith.constant 112 : index
    %c640_209 = arith.constant 640 : index
    %426 = vector.load %arg7[%c112_208, %c640_209] : memref<168x1024xf32, #tpu.memory_space<vmem>>, vector<56x128xf32>
    %427 = vector.extract_strided_slice %405 {offsets = [112, 0], sizes = [56, 128], strides = [1, 1]} : vector<168x128xf32> to vector<56x128xf32>
    %428 = arith.mulf %415, %427 : vector<56x128xf32>
    %429 = arith.addf %426, %428 : vector<56x128xf32>
    %430 = math.tanh %429 : vector<56x128xf32>
    %431 = arith.subf %404, %430 : vector<56x128xf32>
    %432 = arith.mulf %425, %431 : vector<56x128xf32>
    %433 = arith.addf %430, %432 : vector<56x128xf32>
    %cst_210 = arith.constant dense<0.000000e+00> : vector<168x128xf32>
    %434 = tpu.matmul %256, %433, %cst_210 {dimension_numbers = #tpu.dot_dimension_numbers<[1], [0], [0], [1], [0, 0, 1, 1], [], []>} : vector<168x56xf32>, vector<56x128xf32>, vector<168x128xf32> -> vector<168x128xf32>
    %c0_211 = arith.constant 0 : index
    %c768_212 = arith.constant 768 : index
    %435 = vector.load %arg7[%c0_211, %c768_212] : memref<168x1024xf32, #tpu.memory_space<vmem>>, vector<56x128xf32>
    %436 = vector.extract_strided_slice %434 {offsets = [0, 0], sizes = [56, 128], strides = [1, 1]} : vector<168x128xf32> to vector<56x128xf32>
    %437 = arith.addf %435, %436 : vector<56x128xf32>
    %cst_213 = arith.constant 5.000000e-01 : f32
    %438 = vector.broadcast %cst_213 : f32 to vector<56x128xf32>
    %439 = arith.mulf %437, %438 : vector<56x128xf32>
    %440 = math.tanh %439 : vector<56x128xf32>
    %cst_214 = arith.constant 5.000000e-01 : f32
    %441 = vector.broadcast %cst_214 : f32 to vector<56x128xf32>
    %442 = arith.mulf %440, %441 : vector<56x128xf32>
    %cst_215 = arith.constant 5.000000e-01 : f32
    %443 = vector.broadcast %cst_215 : f32 to vector<56x128xf32>
    %444 = arith.addf %442, %443 : vector<56x128xf32>
    %c56_216 = arith.constant 56 : index
    %c768_217 = arith.constant 768 : index
    %445 = vector.load %arg7[%c56_216, %c768_217] : memref<168x1024xf32, #tpu.memory_space<vmem>>, vector<56x128xf32>
    %446 = vector.extract_strided_slice %434 {offsets = [56, 0], sizes = [56, 128], strides = [1, 1]} : vector<168x128xf32> to vector<56x128xf32>
    %447 = arith.addf %445, %446 : vector<56x128xf32>
    %cst_218 = arith.constant 5.000000e-01 : f32
    %448 = vector.broadcast %cst_218 : f32 to vector<56x128xf32>
    %449 = arith.mulf %447, %448 : vector<56x128xf32>
    %450 = math.tanh %449 : vector<56x128xf32>
    %cst_219 = arith.constant 5.000000e-01 : f32
    %451 = vector.broadcast %cst_219 : f32 to vector<56x128xf32>
    %452 = arith.mulf %450, %451 : vector<56x128xf32>
    %cst_220 = arith.constant 5.000000e-01 : f32
    %453 = vector.broadcast %cst_220 : f32 to vector<56x128xf32>
    %454 = arith.addf %452, %453 : vector<56x128xf32>
    %c112_221 = arith.constant 112 : index
    %c768_222 = arith.constant 768 : index
    %455 = vector.load %arg7[%c112_221, %c768_222] : memref<168x1024xf32, #tpu.memory_space<vmem>>, vector<56x128xf32>
    %456 = vector.extract_strided_slice %434 {offsets = [112, 0], sizes = [56, 128], strides = [1, 1]} : vector<168x128xf32> to vector<56x128xf32>
    %457 = arith.mulf %444, %456 : vector<56x128xf32>
    %458 = arith.addf %455, %457 : vector<56x128xf32>
    %459 = math.tanh %458 : vector<56x128xf32>
    %460 = arith.subf %433, %459 : vector<56x128xf32>
    %461 = arith.mulf %454, %460 : vector<56x128xf32>
    %462 = arith.addf %459, %461 : vector<56x128xf32>
    %cst_223 = arith.constant dense<0.000000e+00> : vector<168x128xf32>
    %463 = tpu.matmul %256, %462, %cst_223 {dimension_numbers = #tpu.dot_dimension_numbers<[1], [0], [0], [1], [0, 0, 1, 1], [], []>} : vector<168x56xf32>, vector<56x128xf32>, vector<168x128xf32> -> vector<168x128xf32>
    %c0_224 = arith.constant 0 : index
    %c896_225 = arith.constant 896 : index
    %464 = vector.load %arg7[%c0_224, %c896_225] : memref<168x1024xf32, #tpu.memory_space<vmem>>, vector<56x128xf32>
    %465 = vector.extract_strided_slice %463 {offsets = [0, 0], sizes = [56, 128], strides = [1, 1]} : vector<168x128xf32> to vector<56x128xf32>
    %466 = arith.addf %464, %465 : vector<56x128xf32>
    %cst_226 = arith.constant 5.000000e-01 : f32
    %467 = vector.broadcast %cst_226 : f32 to vector<56x128xf32>
    %468 = arith.mulf %466, %467 : vector<56x128xf32>
    %469 = math.tanh %468 : vector<56x128xf32>
    %cst_227 = arith.constant 5.000000e-01 : f32
    %470 = vector.broadcast %cst_227 : f32 to vector<56x128xf32>
    %471 = arith.mulf %469, %470 : vector<56x128xf32>
    %cst_228 = arith.constant 5.000000e-01 : f32
    %472 = vector.broadcast %cst_228 : f32 to vector<56x128xf32>
    %473 = arith.addf %471, %472 : vector<56x128xf32>
    %c56_229 = arith.constant 56 : index
    %c896_230 = arith.constant 896 : index
    %474 = vector.load %arg7[%c56_229, %c896_230] : memref<168x1024xf32, #tpu.memory_space<vmem>>, vector<56x128xf32>
    %475 = vector.extract_strided_slice %463 {offsets = [56, 0], sizes = [56, 128], strides = [1, 1]} : vector<168x128xf32> to vector<56x128xf32>
    %476 = arith.addf %474, %475 : vector<56x128xf32>
    %cst_231 = arith.constant 5.000000e-01 : f32
    %477 = vector.broadcast %cst_231 : f32 to vector<56x128xf32>
    %478 = arith.mulf %476, %477 : vector<56x128xf32>
    %479 = math.tanh %478 : vector<56x128xf32>
    %cst_232 = arith.constant 5.000000e-01 : f32
    %480 = vector.broadcast %cst_232 : f32 to vector<56x128xf32>
    %481 = arith.mulf %479, %480 : vector<56x128xf32>
    %cst_233 = arith.constant 5.000000e-01 : f32
    %482 = vector.broadcast %cst_233 : f32 to vector<56x128xf32>
    %483 = arith.addf %481, %482 : vector<56x128xf32>
    %c112_234 = arith.constant 112 : index
    %c896_235 = arith.constant 896 : index
    %484 = vector.load %arg7[%c112_234, %c896_235] : memref<168x1024xf32, #tpu.memory_space<vmem>>, vector<56x128xf32>
    %485 = vector.extract_strided_slice %463 {offsets = [112, 0], sizes = [56, 128], strides = [1, 1]} : vector<168x128xf32> to vector<56x128xf32>
    %486 = arith.mulf %473, %485 : vector<56x128xf32>
    %487 = arith.addf %484, %486 : vector<56x128xf32>
    %488 = math.tanh %487 : vector<56x128xf32>
    %489 = arith.subf %462, %488 : vector<56x128xf32>
    %490 = arith.mulf %483, %489 : vector<56x128xf32>
    %491 = arith.addf %488, %490 : vector<56x128xf32>
    %c0_236 = arith.constant 0 : index
    %c0_237 = arith.constant 0 : index
    %492 = vector.load %arg4[%c0_236, %c0_237] : memref<32x56xf32, #tpu.memory_space<vmem>>, vector<32x56xf32>
    %cst_238 = arith.constant dense<0.000000e+00> : vector<32x128xf32>
    %493 = tpu.matmul %492, %491, %cst_238 {dimension_numbers = #tpu.dot_dimension_numbers<[1], [0], [0], [1], [0, 0, 1, 1], [], []>} : vector<32x56xf32>, vector<56x128xf32>, vector<32x128xf32> -> vector<32x128xf32>
    %c0_239 = arith.constant 0 : index
    %c0_240 = arith.constant 0 : index
    %494 = vector.load %arg5[%c0_239, %c0_240] : memref<32x1xf32, #tpu.memory_space<vmem>>, vector<32x1xf32>
    %495 = vector.broadcast %494 : vector<32x1xf32> to vector<32x128xf32>
    %496 = arith.addf %493, %495 : vector<32x128xf32>
    %cst_241 = arith.constant dense<0xFF800000> : vector<128xf32>
    %497 = vector.multi_reduction <maximumf>, %496, %cst_241 [0] : vector<32x128xf32> to vector<128xf32>
    %498 = vector.shape_cast %497 : vector<128xf32> to vector<1x128xf32>
    %499 = vector.broadcast %498 : vector<1x128xf32> to vector<32x128xf32>
    %500 = arith.subf %496, %499 : vector<32x128xf32>
    %501 = math.exp %500 : vector<32x128xf32>
    %cst_242 = arith.constant dense<0.000000e+00> : vector<128xf32>
    %502 = vector.multi_reduction <add>, %501, %cst_242 [0] : vector<32x128xf32> to vector<128xf32>
    %503 = vector.shape_cast %502 : vector<128xf32> to vector<1x128xf32>
    %504 = math.log %503 : vector<1x128xf32>
    %505 = vector.broadcast %504 : vector<1x128xf32> to vector<32x128xf32>
    %506 = arith.subf %500, %505 : vector<32x128xf32>
    %c0_243 = arith.constant 0 : index
    %c0_244 = arith.constant 0 : index
    %507 = vector.load %arg6[%c0_243, %c0_244] : memref<32x128xf32, #tpu.memory_space<vmem>>, vector<32x128xf32>
    tpu.vector_store %arg6[%c0_243, %c0_244], %506 {strides = array<i32>} : memref<32x128xf32, #tpu.memory_space<vmem>>, vector<32x128xf32>,
    return
  }
  func.func @transform_0(%arg0: i32) -> (i32, i32) {
    %c0_i32 = arith.constant 0 : i32
    %c0_i32_0 = arith.constant 0 : i32
    return %c0_i32, %arg0 : i32, i32
  }
  func.func @transform_1(%arg0: i32) -> (i32, i32, i32) {
    %c0_i32 = arith.constant 0 : i32
    %c0_i32_0 = arith.constant 0 : i32
    %c0_i32_1 = arith.constant 0 : i32
    %c0_i32_2 = arith.constant 0 : i32
    return %c0_i32, %c0_i32_0, %c0_i32_1 : i32, i32, i32
  }
  func.func @transform_2(%arg0: i32) -> (i32, i32, i32) {
    %c0_i32 = arith.constant 0 : i32
    %c0_i32_0 = arith.constant 0 : i32
    %c0_i32_1 = arith.constant 0 : i32
    %c0_i32_2 = arith.constant 0 : i32
    return %c0_i32, %c0_i32_0, %c0_i32_1 : i32, i32, i32
  }
  func.func @transform_3(%arg0: i32) -> (i32, i32) {
    %c0_i32 = arith.constant 0 : i32
    %c0_i32_0 = arith.constant 0 : i32
    %c0_i32_1 = arith.constant 0 : i32
    return %c0_i32, %c0_i32_0 : i32, i32
  }
  func.func @transform_4(%arg0: i32) -> (i32, i32) {
    %c0_i32 = arith.constant 0 : i32
    %c0_i32_0 = arith.constant 0 : i32
    %c0_i32_1 = arith.constant 0 : i32
    return %c0_i32, %c0_i32_0 : i32, i32
  }
  func.func @transform_5(%arg0: i32) -> (i32, i32) {
    %c0_i32 = arith.constant 0 : i32
    %c0_i32_0 = arith.constant 0 : i32
    return %c0_i32, %arg0 : i32, i32
  }
}

</mosaic_0001>

<bundles_post_ra>
// kernel: tpu_custom_call.1
= control target key start
LH: loop header
LB: loop body
LE: loop exit
PB: predicated region body
PF: predicated region fallthrough
CT: control target
= control target key end

     0   :  { %v15471_v7 = vmov 0.0   ;;  %vm141_vm0 = vcmask 457728   ;;  %s15462_s0 = inlined_call_operand.vmem [shape: f32[56,1024], index: 0, kind: input, shape index: {}]   ;;  %s15463_s1 = inlined_call_operand.vmem [shape: f32[2,168,56], index: 1, kind: input, shape index: {}]   ;;  %s15464_s2 = inlined_call_operand.vmem [shape: f32[2,168,56], index: 2, kind: input, shape index: {}]   ;;  %s15465_s3 = inlined_call_operand.vmem [shape: f32[32,56], index: 3, kind: input, shape index: {}]   ;;  %s15466_s4 = inlined_call_operand.vmem [shape: f32[32,1], index: 4, kind: input, shape index: {}]   ;;  %s15467_s5 = inlined_call_operand.hbm [shape: f32[32,128], index: 5, kind: output, shape index: {}]  }
   0x1   :  { %v86_v0 = vld [vmem:[%s15462_s0 + $0x8] sm:$0xff]  ;;  %v85_v2 = vld [vmem:[%s15462_s0] sm:$0xff]  ;;  %269 = vmatprep.mubr.f32.mxu0 %v15471_v7  ;;  %460 = vmatprep.mubr.f32.mxu1 %v15471_v7 }
   0x2   :  { %v94_v1 = vld [vmem:[%s15462_s0 + $0x48] sm:$0xff]  ;;  %v93_v4 = vld [vmem:[%s15462_s0 + $0x40] sm:$0xff] }
   0x3   :  { %v9706_v3 = vpack.c.bf16 %v94_v1, %v86_v0  ;;  %v102_v5 = vld [vmem:[%s15462_s0 + $0x88] sm:$0xff]  ;;  %v9708_v8 = vpack.c.bf16 %v93_v4, %v85_v2  ;;  %v101_v10 = vld [vmem:[%s15462_s0 + $0x80] sm:$0xff] }
   0x4   :  { %v110_v6 = vld [vmem:[%s15462_s0 + $0xc8] sm:$0xff]  ;;  %v109_v11 = vld [vmem:[%s15462_s0 + $0xc0] sm:$0xff] }
   0x5   :  { %v9710_v9 = vpack.c.bf16 %v110_v6, %v102_v5  ;;  %v118_v12 = vld [vmem:[%s15462_s0 + $0x108] sm:$0xff]  ;;  %9707 = vmatprep.subr.bf16.mxu0 %v9706_v3  ;;  %v9712_v14 = vpack.c.bf16 %v109_v11, %v101_v10  ;;  %v117_v16 = vld [vmem:[%s15462_s0 + $0x100] sm:$0xff] }
   0x6   :  { %v126_v13 = vld [vmem:[%s15462_s0 + $0x148] sm:$0xff]  ;;  %9709 = vmatpush1.bf16.msra.mxu0 %v9708_v8  ;;  %v125_v17 = vld [vmem:[%s15462_s0 + $0x140] sm:$0xff] }
   0x7   :  { %9711 = vmatprep.subr.bf16.mxu0 %v9710_v9  ;;  %v9714_v15 = vpack.c.bf16 %v126_v13, %v118_v12  ;;  %v9716_v18 = vpack.c.bf16 %v125_v17, %v117_v16  ;;  %v134_v19 = vld [vmem:[%s15462_s0 + $0x188] sm:$0xff]  ;;  %v89_v22 = vld [vmem:[%s15462_s0 + $0x20] sm:$0xff] }
   0x8   :  { %v90_v20 = vld [vmem:[%s15462_s0 + $0x28] sm:$0xff]  ;;  %v97_v23 = vld [vmem:[%s15462_s0 + $0x60] sm:$0xff] }
   0x9   :  { %v98_v21 = vld [vmem:[%s15462_s0 + $0x68] sm:$0xff]  ;;  %v133_v26 = vld [vmem:[%s15462_s0 + $0x180] sm:$0xff]  ;;  %v9732_v29 = vpack.c.bf16 %v97_v23, %v89_v22 }
   0xa   :  { %9713 = vmatpush1.bf16.msra.mxu0 %v9712_v14  ;;  %v106_v24 = vld [vmem:[%s15462_s0 + $0xa8] sm:$0xff]  ;;  %v9730_v27 = vpack.c.bf16 %v98_v21, %v90_v20  ;;  %v10926_v28 = vld [vmem:[%s15463_s1] sm:$0xff] }
   0xb   :  { %9715 = vmatprep.subr.bf16.mxu0 %v9714_v15  ;;  %v114_v25 = vld [vmem:[%s15462_s0 + $0xe8] sm:$0xff]  ;;  %v105_v31 = vld [vmem:[%s15462_s0 + $0xa0] sm:$0xff] }
   0xc   :  { %v9734_v30 = vpack.c.bf16 %v114_v25, %v106_v24  ;;  %v113_v32 = vld [vmem:[%s15462_s0 + $0xe0] sm:$0xff]  ;;  %v122_v33 = vld [vmem:[%s15462_s0 + $0x128] sm:$0xff] }
   0xd   :  { %v130_v34 = vld [vmem:[%s15462_s0 + $0x168] sm:$0xff] }
   0xe   :  { %9717 = vmatpush1.bf16.msra.mxu0 %v9716_v18 }
   0xf   :  { %217 = vmatprep.subr.mxu0 %v134_v19 }
  0x12   :  { %218 = vmatpush1.msra.mxu0 %v133_v26 }
  0x13   :  { %10 = vsyncpa [#allocation5], 0  ;;  %7443 = vmatmul.mubr.msk.f32.vlgmr.msra.gmra.mrb[0].mxu0 %vm141_vm0, %v10926_v28  ;;  %9731 = vmatprep.subr.bf16.mxu0 %v9730_v27  ;;  %v10946_v35 = vld [vmem:[%s15463_s1 + $0x8] sm:$0xff]  ;;  %v9736_v36 = vpack.c.bf16 %v113_v32, %v105_v31  ;;  %v9738_v37 = vpack.c.bf16 %v130_v34, %v122_v33  ;;  %v121_v38 = vld [vmem:[%s15462_s0 + $0x120] sm:$0xff]  ;;  %v15469_v47 = vmov 0.0|0.0   ;;  %v21_v63 = vlaneseq }
  0x14   :  { %275 = vmatprep.mubr.f32.mxu0 %v15471_v7  ;;  %9733 = vmatpush1.bf16.msra.mxu0 %v9732_v29  ;;  %v129_v39 = vld [vmem:[%s15462_s0 + $0x160] sm:$0xff]  ;;  %v10960_v40 = vld [vmem:[%s15463_s1 + $0x10] sm:$0xff]  ;;  %v138_v42 = vld [vmem:[%s15462_s0 + $0x1a8] sm:$0xff]  ;;  %v15468_v2 = vmov 1.0   ;;  %vm10826_vm2 = vmmov 0  }
  0x15   :  { %9735 = vmatprep.subr.bf16.mxu0 %v9734_v30  ;;  %v9740_v41 = vpack.c.bf16 %v129_v39, %v121_v38  ;;  %v10971_v43 = vld [vmem:[%s15463_s1 + $0x18] sm:$0xff]  ;;  %v137_v44 = vld [vmem:[%s15462_s0 + $0x1a0] sm:$0xff]  ;;  %v10990_v46 = vld [vmem:[%s15463_s1 + $0x28] sm:$0xff]  ;;  %v22_v0 = vshrl.u32 %v21_v63, 7 }
  0x16   :  { %v10982_v45 = vld [vmem:[%s15463_s1 + $0x20] sm:$0xff]  ;;  %v10999_v48 = vld [vmem:[%s15463_s1 + $0x30] sm:$0xff]  ;;  %v11007_v49 = vld [vmem:[%s15463_s1 + $0x38] sm:$0xff] }
  0x17   :  { %7444 = vmatmul.mubr.msk.f32.gmra.mrb[2].mxu0 %vm141_vm0, %v10946_v35  ;;  %v11015_v50 = vld [vmem:[%s15463_s1 + $0x40] sm:$0xff]  ;;  %v11023_v51 = vld [vmem:[%s15463_s1 + $0x48] sm:$0xff]  ;;  %v11031_v52 = vld [vmem:[%s15463_s1 + $0x50] sm:$0xff]  ;;  %v11126_v1 = vadd.s32 48, %v22_v0 }
  0x18   :  { %281 = vmatprep.mubr.f32.mxu0 %v15471_v7  ;;  %9737 = vmatpush1.bf16.msra.mxu0 %v9736_v36  ;;  %v11039_v53 = vld [vmem:[%s15463_s1 + $0x58] sm:$0xff]  ;;  %v11047_v54 = vld [vmem:[%s15463_s1 + $0x60] sm:$0xff]  ;;  %v11055_v55 = vld [vmem:[%s15463_s1 + $0x68] sm:$0xff] }
  0x19   :  { %9739 = vmatprep.subr.bf16.mxu0 %v9738_v37  ;;  %v11063_v56 = vld [vmem:[%s15463_s1 + $0x70] sm:$0xff]  ;;  %v11071_v57 = vld [vmem:[%s15463_s1 + $0x78] sm:$0xff]  ;;  %v11079_v58 = vld [vmem:[%s15463_s1 + $0x80] sm:$0xff]  ;;  %15496 = vst [vmem:[#allocation7_spill] sm:$0xff] %v11126_v1  ;;  %vm35_vm1 = vcmp.eq.s32.totalorder %v11126_v1, 55 }
  0x1a   :  { %v11087_v59 = vld [vmem:[%s15463_s1 + $0x88] sm:$0xff]  ;;  %v11095_v60 = vld [vmem:[%s15463_s1 + $0x90] sm:$0xff]  ;;  %v11103_v61 = vld [vmem:[%s15463_s1 + $0x98] sm:$0xff] }
  0x1b   :  { %7445 = vmatmul.mubr.msk.f32.gmra.mrb[4].mxu0 %vm141_vm0, %v10960_v40  ;;  %v11111_v62 = vld [vmem:[%s15463_s1 + $0xa0] sm:$0xff]  ;;  %v65_v4 = vld [vmem:[%s15464_s2 + $0x8] sm:$0xff]  ;;  %v88_v5 = vld [vmem:[%s15462_s0 + $0x18] sm:$0xff] }
  0x1c   :  { %287 = vmatprep.mubr.f32.mxu0 %v15471_v7  ;;  %9741 = vmatpush1.bf16.msra.mxu0 %v9740_v41  ;;  %v64_v3 = vld [vmem:[%s15464_s2] sm:$0xff]  ;;  %v96_v6 = vld [vmem:[%s15462_s0 + $0x58] sm:$0xff]  ;;  %v87_v9 = vld [vmem:[%s15462_s0 + $0x10] sm:$0xff] }
  0x1d   :  { %599 = vmatprep.subr.mxu0 %v138_v42  ;;  %v9718_v8 = vpack.c.bf16 %v96_v6, %v88_v5  ;;  %v95_v10 = vld [vmem:[%s15462_s0 + $0x50] sm:$0xff]  ;;  %v104_v13 = vld [vmem:[%s15462_s0 + $0x98] sm:$0xff]  ;;  %v11259_v26 = vld [vmem:[%s15464_s2 + $0x20] sm:$0xff] }
  0x1e   :  { %v9720_v11 = vpack.c.bf16 %v95_v10, %v87_v9  ;;  %v66_v12 = vld [vmem:[%s15464_s2 + $0x10] sm:$0xff]  ;;  %v112_v14 = vld [vmem:[%s15462_s0 + $0xd8] sm:$0xff]  ;;  %v11274_v30 = vld [vmem:[%s15464_s2 + $0x28] sm:$0xff] }
  0x1f   :  { %7446 = vmatmul.mubr.msk.f32.gmra.mrb[6].mxu0 %vm141_vm0, %v10971_v43  ;;  %9719 = vmatprep.subr.bf16.mxu1 %v9718_v8  ;;  %v9722_v15 = vpack.c.bf16 %v112_v14, %v104_v13  ;;  %v103_v16 = vld [vmem:[%s15462_s0 + $0x90] sm:$0xff]  ;;  %v11238_v19 = vld [vmem:[%s15464_s2 + $0x18] sm:$0xff]  ;;  %v11310_v33 = vld [vmem:[%s15464_s2 + $0x40] sm:$0xff] }
  0x20   :  { %293 = vmatprep.mubr.f32.mxu0 %v15471_v7  ;;  %600 = vmatpush1.msra.mxu0 %v137_v44  ;;  %v111_v17 = vld [vmem:[%s15462_s0 + $0xd0] sm:$0xff]  ;;  %v120_v20 = vld [vmem:[%s15462_s0 + $0x118] sm:$0xff]  ;;  %v11322_v34 = vld [vmem:[%s15464_s2 + $0x48] sm:$0xff] }
  0x21   :  { %9754 = vmatprep.subr.bf16.mxu0 %v15469_v47  ;;  %9721 = vmatpush1.bf16.msra.mxu1 %v9720_v11  ;;  %v9724_v18 = vpack.c.bf16 %v111_v17, %v103_v16  ;;  %v128_v21 = vld [vmem:[%s15462_s0 + $0x158] sm:$0xff]  ;;  %v119_v23 = vld [vmem:[%s15462_s0 + $0x110] sm:$0xff]  ;;  %v11362_v41 = vld [vmem:[%s15464_s2 + $0x60] sm:$0xff] }
  0x22   :  { %9723 = vmatprep.subr.bf16.mxu1 %v9722_v15  ;;  %v9726_v22 = vpack.c.bf16 %v128_v21, %v120_v20  ;;  %v127_v24 = vld [vmem:[%s15462_s0 + $0x150] sm:$0xff]  ;;  %v136_v27 = vld [vmem:[%s15462_s0 + $0x198] sm:$0xff]  ;;  %v11378_v63 = vld [vmem:[%s15464_s2 + $0x68] sm:$0xff] }
  0x23   :  { %7447 = vmatmul.mubr.msk.f32.gmra.mrb[8].mxu0 %vm141_vm0, %v10982_v45  ;;  %v9728_v25 = vpack.c.bf16 %v127_v24, %v119_v23  ;;  %v135_v29 = vld [vmem:[%s15462_s0 + $0x190] sm:$0xff]  ;;  %v11298_v32 = vld [vmem:[%s15464_s2 + $0x38] sm:$0xff]  ;;  %v11426_v11 = vld [vmem:[%s15464_s2 + $0x80] sm:$0xff] }
  0x24   :  { %299 = vmatprep.mubr.f32.mxu0 %v15471_v7  ;;  %v11286_v31 = vld [vmem:[%s15464_s2 + $0x30] sm:$0xff]  ;;  %v11346_v37 = vld [vmem:[%s15464_s2 + $0x58] sm:$0xff]  ;;  %v11442_v14 = vld [vmem:[%s15464_s2 + $0x88] sm:$0xff] }
  0x25   :  { %9725 = vmatpush1.bf16.msra.mxu1 %v9724_v18  ;;  %v11334_v36 = vld [vmem:[%s15464_s2 + $0x50] sm:$0xff]  ;;  %v11410_v8 = vld [vmem:[%s15464_s2 + $0x78] sm:$0xff]  ;;  %v11490_v24 = vld [vmem:[%s15464_s2 + $0xa0] sm:$0xff] }
  0x26   :  { %9727 = vmatprep.subr.bf16.mxu1 %v9726_v22  ;;  %v11458_v17 = vld [vmem:[%s15464_s2 + $0x90] sm:$0xff]  ;;  %v11474_v21 = vld [vmem:[%s15464_s2 + $0x98] sm:$0xff] }
  0x27   :  { %7448 = vmatmul.mubr.msk.f32.gmra.mrb[10].mxu0 %vm141_vm0, %v10990_v46 }
  0x28   :  { %305 = vmatprep.mubr.f32.mxu0 %v15471_v7 }
  0x29   :  { %9729 = vmatpush1.bf16.msra.mxu1 %v9728_v25 }
  0x2a   :  { %408 = vmatprep.subr.mxu1 %v136_v27 }
  0x2b   :  { %7449 = vmatmul.mubr.msk.f32.gmra.mrb[12].mxu0 %vm141_vm0, %v10999_v48 }
  0x2c   :  { %311 = vmatprep.mubr.f32.mxu0 %v15471_v7 }
  0x2d   :  { %409 = vmatpush1.msra.mxu1 %v135_v29  ;;  %v92_v29 = vld [vmem:[%s15462_s0 + $0x38] sm:$0xff] }
  0x2e   :  { %7464 = vmatmul.mubr.msk.f32.vlgmr.msra.gmra.mrb[0].mxu1 %vm141_vm0, %v10926_v28 }
  0x2f   :  { %7450 = vmatmul.mubr.msk.f32.gmra.mrb[14].mxu0 %vm141_vm0, %v11007_v49  ;;  %466 = vmatprep.mubr.f32.mxu1 %v15471_v7 }
  0x30   :  { %317 = vmatprep.mubr.f32.mxu0 %v15471_v7 }
  0x32   :  { %7465 = vmatmul.mubr.msk.f32.gmra.mrb[2].mxu1 %vm141_vm0, %v10946_v35 }
  0x33   :  { %7451 = vmatmul.mubr.msk.f32.gmra.mrb[16].mxu0 %vm141_vm0, %v11015_v50  ;;  %472 = vmatprep.mubr.f32.mxu1 %v15471_v7 }
  0x34   :  { %323 = vmatprep.mubr.f32.mxu0 %v15471_v7 }
  0x36   :  { %7466 = vmatmul.mubr.msk.f32.gmra.mrb[4].mxu1 %vm141_vm0, %v10960_v40 }
  0x37   :  { %7452 = vmatmul.mubr.msk.f32.gmra.mrb[18].mxu0 %vm141_vm0, %v11023_v51  ;;  %478 = vmatprep.mubr.f32.mxu1 %v15471_v7 }
  0x38   :  { %329 = vmatprep.mubr.f32.mxu0 %v15471_v7 }
  0x3a   :  { %7467 = vmatmul.mubr.msk.f32.gmra.mrb[6].mxu1 %vm141_vm0, %v10971_v43 }
  0x3b   :  { %7453 = vmatmul.mubr.msk.f32.gmra.mrb[20].mxu0 %vm141_vm0, %v11031_v52  ;;  %484 = vmatprep.mubr.f32.mxu1 %v15471_v7 }
  0x3c   :  { %335 = vmatprep.mubr.f32.mxu0 %v15471_v7 }
  0x3e   :  { %7468 = vmatmul.mubr.msk.f32.gmra.mrb[8].mxu1 %vm141_vm0, %v10982_v45 }
  0x3f   :  { %7454 = vmatmul.mubr.msk.f32.gmra.mrb[22].mxu0 %vm141_vm0, %v11039_v53  ;;  %490 = vmatprep.mubr.f32.mxu1 %v15471_v7 }
  0x40   :  { %341 = vmatprep.mubr.f32.mxu0 %v15471_v7 }
  0x42   :  { %7469 = vmatmul.mubr.msk.f32.gmra.mrb[10].mxu1 %vm141_vm0, %v10990_v46 }
  0x43   :  { %7455 = vmatmul.mubr.msk.f32.gmra.mrb[24].mxu0 %vm141_vm0, %v11047_v54  ;;  %496 = vmatprep.mubr.f32.mxu1 %v15471_v7 }
  0x44   :  { %347 = vmatprep.mubr.f32.mxu0 %v15471_v7 }
  0x46   :  { %7470 = vmatmul.mubr.msk.f32.gmra.mrb[12].mxu1 %vm141_vm0, %v10999_v48 }
  0x47   :  { %7456 = vmatmul.mubr.msk.f32.gmra.mrb[26].mxu0 %vm141_vm0, %v11055_v55  ;;  %502 = vmatprep.mubr.f32.mxu1 %v15471_v7 }
  0x48   :  { %353 = vmatprep.mubr.f32.mxu0 %v15471_v7 }
  0x4a   :  { %7471 = vmatmul.mubr.msk.f32.gmra.mrb[14].mxu1 %vm141_vm0, %v11007_v49 }
  0x4b   :  { %7457 = vmatmul.mubr.msk.f32.gmra.mrb[28].mxu0 %vm141_vm0, %v11063_v56  ;;  %508 = vmatprep.mubr.f32.mxu1 %v15471_v7 }
  0x4c   :  { %359 = vmatprep.mubr.f32.mxu0 %v15471_v7 }
  0x4e   :  { %7472 = vmatmul.mubr.msk.f32.gmra.mrb[16].mxu1 %vm141_vm0, %v11015_v50 }
  0x4f   :  { %7458 = vmatmul.mubr.msk.f32.gmra.mrb[30].mxu0 %vm141_vm0, %v11071_v57  ;;  %514 = vmatprep.mubr.f32.mxu1 %v15471_v7 }
  0x50   :  { %365 = vmatprep.mubr.f32.mxu0 %v15471_v7 }
  0x52   :  { %7473 = vmatmul.mubr.msk.f32.gmra.mrb[18].mxu1 %vm141_vm0, %v11023_v51 }
  0x53   :  { %7459 = vmatmul.mubr.msk.f32.gmra.mrb[32].mxu0 %vm141_vm0, %v11079_v58  ;;  %520 = vmatprep.mubr.f32.mxu1 %v15471_v7 }
  0x54   :  { %371 = vmatprep.mubr.f32.mxu0 %v15471_v7 }
  0x56   :  { %7474 = vmatmul.mubr.msk.f32.gmra.mrb[20].mxu1 %vm141_vm0, %v11031_v52 }
  0x57   :  { %7460 = vmatmul.mubr.msk.f32.gmra.mrb[34].mxu0 %vm141_vm0, %v11087_v59  ;;  %526 = vmatprep.mubr.f32.mxu1 %v15471_v7 }
  0x58   :  { %377 = vmatprep.mubr.f32.mxu0 %v15471_v7 }
  0x5a   :  { %7475 = vmatmul.mubr.msk.f32.gmra.mrb[22].mxu1 %vm141_vm0, %v11039_v53 }
  0x5b   :  { %7461 = vmatmul.mubr.msk.f32.gmra.mrb[36].mxu0 %vm141_vm0, %v11095_v60  ;;  %532 = vmatprep.mubr.f32.mxu1 %v15471_v7 }
  0x5c   :  { %383 = vmatprep.mubr.f32.mxu0 %v15471_v7 }
  0x5e   :  { %7476 = vmatmul.mubr.msk.f32.gmra.mrb[24].mxu1 %vm141_vm0, %v11047_v54 }
  0x5f   :  { %7462 = vmatmul.mubr.msk.f32.gmra.mrb[38].mxu0 %vm141_vm0, %v11103_v61  ;;  %538 = vmatprep.mubr.f32.mxu1 %v15471_v7 }
  0x60   :  { %389 = vmatprep.mubr.f32.mxu0 %v15471_v7 }
  0x62   :  { %7477 = vmatmul.mubr.msk.f32.gmra.mrb[26].mxu1 %vm141_vm0, %v11055_v55 }
  0x63   :  { %7463 = vmatmul.mubr.msk.f32.gmra.mrb[40].mxu0 %vm141_vm0, %v11111_v62  ;;  %544 = vmatprep.mubr.f32.mxu1 %v15471_v7 }
  0x64   :  { %651 = vmatprep.mubr.f32.mxu0 %v15471_v7 }
  0x66   :  { %7478 = vmatmul.mubr.msk.f32.gmra.mrb[28].mxu1 %vm141_vm0, %v11063_v56 }
  0x67   :  { %7485 = vmatmul.mubr.msk.f32.vlgmr.msra.gmra.mrb[42].mxu0 %vm141_vm0, %v10926_v28  ;;  %550 = vmatprep.mubr.f32.mxu1 %v15471_v7 }
  0x68   :  { %657 = vmatprep.mubr.f32.mxu0 %v15471_v7  ;;  %9755 = vmatpush3.bf16.msra.mxu0 %v15469_v47 }
  0x69   :  { %9756 = vmatprep.subr.bf16.mxu0 %v15469_v47 }
  0x6a   :  { %7479 = vmatmul.mubr.msk.f32.gmra.mrb[30].mxu1 %vm141_vm0, %v11071_v57 }
  0x6b   :  { %7486 = vmatmul.mubr.msk.f32.gmra.mrb[44].mxu0 %vm141_vm0, %v10946_v35  ;;  %556 = vmatprep.mubr.f32.mxu1 %v15471_v7 }
  0x6c   :  { %663 = vmatprep.mubr.f32.mxu0 %v15471_v7  ;;  %9757 = vmatpush3.bf16.msra.mxu0 %v15469_v47 }
  0x6d   :  { %9758 = vmatprep.subr.bf16.mxu0 %v15469_v47 }
  0x6e   :  { %7480 = vmatmul.mubr.msk.f32.gmra.mrb[32].mxu1 %vm141_vm0, %v11079_v58 }
  0x6f   :  { %7487 = vmatmul.mubr.msk.f32.gmra.mrb[46].mxu0 %vm141_vm0, %v10960_v40  ;;  %562 = vmatprep.mubr.f32.mxu1 %v15471_v7 }
  0x70   :  { %669 = vmatprep.mubr.f32.mxu0 %v15471_v7  ;;  %9759 = vmatpush3.bf16.msra.mxu0 %v15469_v47 }
  0x71   :  { %8466 = vmatprep.subr.mxu0 %v15471_v7 }
  0x72   :  { %7481 = vmatmul.mubr.msk.f32.gmra.mrb[34].mxu1 %vm141_vm0, %v11087_v59 }
  0x73   :  { %7488 = vmatmul.mubr.msk.f32.gmra.mrb[48].mxu0 %vm141_vm0, %v10971_v43  ;;  %568 = vmatprep.mubr.f32.mxu1 %v15471_v7 }
  0x74   :  { %675 = vmatprep.mubr.f32.mxu0 %v15471_v7  ;;  %8467 = vmatpush3.msk.msra.mxu0 %vm35_vm1, %v15468_v2  ;;  %v100_v2 = vld [vmem:[%s15462_s0 + $0x78] sm:$0xff] }
  0x75   :  { %9769 = vmatprep.subr.bf16.mxu0 %v15469_v47  ;;  %v91_v47 = vld [vmem:[%s15462_s0 + $0x30] sm:$0xff] }
  0x76   :  { %7482 = vmatmul.mubr.msk.f32.gmra.mrb[36].mxu1 %vm141_vm0, %v11095_v60 }
  0x77   :  { %7489 = vmatmul.mubr.msk.f32.gmra.mrb[50].mxu0 %vm141_vm0, %v10982_v45 }
  0x78   :  { %681 = vmatprep.mubr.f32.mxu0 %v15471_v7 }
  0x7b   :  { %7490 = vmatmul.mubr.msk.f32.gmra.mrb[52].mxu0 %vm141_vm0, %v10990_v46 }
  0x7c   :  { %687 = vmatprep.mubr.f32.mxu0 %v15471_v7 }
  0x7f   :  { %7491 = vmatmul.mubr.msk.f32.gmra.mrb[54].mxu0 %vm141_vm0, %v10999_v48 }
  0x80   :  { %693 = vmatprep.mubr.f32.mxu0 %v15471_v7 }
  0x83   :  { %7492 = vmatmul.mubr.msk.f32.gmra.mrb[56].mxu0 %vm141_vm0, %v11007_v49 }
  0x84   :  { %699 = vmatprep.mubr.f32.mxu0 %v15471_v7 }
  0x87   :  { %7493 = vmatmul.mubr.msk.f32.gmra.mrb[58].mxu0 %vm141_vm0, %v11015_v50 }
  0x88   :  { %705 = vmatprep.mubr.f32.mxu0 %v15471_v7 }
  0x8b   :  { %7494 = vmatmul.mubr.msk.f32.gmra.mrb[60].mxu0 %vm141_vm0, %v11023_v51 }
  0x8c   :  { %711 = vmatprep.mubr.f32.mxu0 %v15471_v7 }
  0x8f   :  { %7495 = vmatmul.mubr.msk.f32.gmra.mrb[62].mxu0 %vm141_vm0, %v11031_v52 }
  0x90   :  { %717 = vmatprep.mubr.f32.mxu0 %v15471_v7 }
  0x93   :  { %7496 = vmatmul.mubr.msk.f32.gmra.mrb[64].mxu0 %vm141_vm0, %v11039_v53 }
  0x94   :  { %723 = vmatprep.mubr.f32.mxu0 %v15471_v7 }
  0x97   :  { %7497 = vmatmul.mubr.msk.f32.gmra.mrb[66].mxu0 %vm141_vm0, %v11047_v54 }
  0x98   :  { %729 = vmatprep.mubr.f32.mxu0 %v15471_v7 }
  0x9b   :  { %7498 = vmatmul.mubr.msk.f32.gmra.mrb[68].mxu0 %vm141_vm0, %v11055_v55 }
  0x9c   :  { %735 = vmatprep.mubr.f32.mxu0 %v15471_v7 }
  0x9f   :  { %7499 = vmatmul.mubr.msk.f32.gmra.mrb[70].mxu0 %vm141_vm0, %v11063_v56 }
  0xa0   :  { %741 = vmatprep.mubr.f32.mxu0 %v15471_v7 }
  0xa3   :  { %7500 = vmatmul.mubr.msk.f32.gmra.mrb[72].mxu0 %vm141_vm0, %v11071_v57 }
  0xa4   :  { %747 = vmatprep.mubr.f32.mxu0 %v15471_v7 }
  0xa7   :  { %7501 = vmatmul.mubr.msk.f32.gmra.mrb[74].mxu0 %vm141_vm0, %v11079_v58 }
  0xa8   :  { %753 = vmatprep.mubr.f32.mxu0 %v15471_v7 }
  0xab   :  { %7502 = vmatmul.mubr.msk.f32.gmra.mrb[76].mxu0 %vm141_vm0, %v11087_v59 }
  0xac   :  { %759 = vmatprep.mubr.f32.mxu0 %v15471_v7 }
  0xaf   :  { %7503 = vmatmul.mubr.msk.f32.gmra.mrb[78].mxu0 %vm141_vm0, %v11095_v60 }
  0xb0   :  { %765 = vmatprep.mubr.f32.mxu0 %v15471_v7 }
  0xb3   :  { %7504 = vmatmul.mubr.msk.f32.gmra.mrb[80].mxu0 %vm141_vm0, %v11103_v61 }
  0xb4   :  { %771 = vmatprep.mubr.f32.mxu0 %v15471_v7 }
  0xb7   :  { %7505 = vmatmul.mubr.msk.f32.gmra.mrb[82].mxu0 %vm141_vm0, %v11111_v62 }
  0xb8   :  { %8468 = vmatprep.mubr.msk.f32.mxu0 %vm10826_vm2, %v15471_v7 }
  0xbb   :  { %8469 = vmatmul.mubr.msk.f32.vlgmr.msra.gmra.mrb[84].mxu0 %vm141_vm0, %v64_v3 }
  0xbc   :  { %8471 = vmatprep.mubr.msk.f32.mxu0 %vm10826_vm2, %v15471_v7 }
  0xbf   :  { %8472 = vmatmul.mubr.msk.f32.gmra.mrb[86].mxu0 %vm141_vm0, %v65_v4  ;;  %v11394_v4 = vld [vmem:[%s15464_s2 + $0x70] sm:$0xff] }
  0xc0   :  { %8474 = vmatprep.mubr.msk.f32.mxu0 %vm10826_vm2, %v15471_v7 }
  0xc3   :  { %8475 = vmatmul.mubr.msk.f32.gmra.mrb[88].mxu0 %vm141_vm0, %v66_v12 }
  0xc4   :  { %8477 = vmatprep.mubr.msk.f32.mxu0 %vm10826_vm2, %v15471_v7 }
  0xc7   :  { %8478 = vmatmul.mubr.msk.f32.gmra.mrb[90].mxu0 %vm141_vm0, %v11238_v19 }
  0xc8   :  { %8480 = vmatprep.mubr.msk.f32.mxu0 %vm10826_vm2, %v15471_v7 }
  0xcb   :  { %8481 = vmatmul.mubr.msk.f32.gmra.mrb[92].mxu0 %vm141_vm0, %v11259_v26 }
  0xcc   :  { %8483 = vmatprep.mubr.msk.f32.mxu0 %vm10826_vm2, %v15471_v7 }
  0xcf   :  { %8484 = vmatmul.mubr.msk.f32.gmra.mrb[94].mxu0 %vm141_vm0, %v11274_v30 }
  0xd0   :  { %8486 = vmatprep.mubr.msk.f32.mxu0 %vm10826_vm2, %v15471_v7 }
  0xd3   :  { %8487 = vmatmul.mubr.msk.f32.gmra.mrb[96].mxu0 %vm141_vm0, %v11286_v31 }
  0xd4   :  { %8489 = vmatprep.mubr.msk.f32.mxu0 %vm10826_vm2, %v15471_v7 }
  0xd7   :  { %8490 = vmatmul.mubr.msk.f32.gmra.mrb[98].mxu0 %vm141_vm0, %v11298_v32 }
  0xd8   :  { %8492 = vmatprep.mubr.msk.f32.mxu0 %vm10826_vm2, %v15471_v7 }
  0xdb   :  { %8493 = vmatmul.mubr.msk.f32.gmra.mrb[100].mxu0 %vm141_vm0, %v11310_v33 }
  0xdc   :  { %8495 = vmatprep.mubr.msk.f32.mxu0 %vm10826_vm2, %v15471_v7 }
  0xdf   :  { %8496 = vmatmul.mubr.msk.f32.gmra.mrb[102].mxu0 %vm141_vm0, %v11322_v34 }
  0xe0   :  { %8498 = vmatprep.mubr.msk.f32.mxu0 %vm10826_vm2, %v15471_v7 }
  0xe3   :  { %8499 = vmatmul.mubr.msk.f32.gmra.mrb[104].mxu0 %vm141_vm0, %v11334_v36 }
  0xe4   :  { %8501 = vmatprep.mubr.msk.f32.mxu0 %vm10826_vm2, %v15471_v7 }
  0xe6   :  { %v11348_v38 = vpop.f32.mrb[0].mxu0 }
  0xe7   :  { %v11352_v39 = vpop.f32.mrb[1].mxu0  ;;  %8502 = vmatmul.mubr.msk.f32.gmra.mrb[106].mxu0 %vm141_vm0, %v11346_v37 }
  0xe8   :  { %8504 = vmatprep.mubr.msk.f32.mxu0 %vm10826_vm2, %v15471_v7 }
  0xea   :  { %v11364_v42 = vpop.f32.mrb[2].mxu0 }
  0xeb   :  { %v11368_v44 = vpop.f32.mrb[3].mxu0  ;;  %8505 = vmatmul.mubr.msk.f32.gmra.mrb[108].mxu0 %vm141_vm0, %v11362_v41 }
  0xec   :  { %15497 = vst [vmem:[#allocation8_spill] sm:$0xff] %v11368_v44  ;;  %8507 = vmatprep.mubr.msk.f32.mxu0 %vm10826_vm2, %v15471_v7 }
  0xee   :  { %v11380_v0 = vpop.f32.mrb[4].mxu0 }
  0xef   :  { %v11384_v3 = vpop.f32.mrb[5].mxu0  ;;  %8508 = vmatmul.mubr.msk.f32.gmra.mrb[110].mxu0 %vm141_vm0, %v11378_v63 }
  0xf0   :  { %15498 = vst [vmem:[#allocation9_spill] sm:$0xff] %v11384_v3  ;;  %8510 = vmatprep.mubr.msk.f32.mxu0 %vm10826_vm2, %v15471_v7  ;;  %v124_v3 = vld [vmem:[%s15462_s0 + $0x138] sm:$0xff] }
  0xf2   :  { %v11396_v5 = vpop.f32.mrb[6].mxu0 }
  0xf3   :  { %v11400_v6 = vpop.f32.mrb[7].mxu0  ;;  %8511 = vmatmul.mubr.msk.f32.gmra.mrb[112].mxu0 %vm141_vm0, %v11394_v4 }
  0xf4   :  { %15499 = vst [vmem:[#allocation10_spill] sm:$0xff] %v11400_v6  ;;  %8513 = vmatprep.mubr.msk.f32.mxu0 %vm10826_vm2, %v15471_v7 }
  0xf6   :  { %v11412_v9 = vpop.f32.mrb[8].mxu0 }
  0xf7   :  { %v11416_v10 = vpop.f32.mrb[9].mxu0  ;;  %8514 = vmatmul.mubr.msk.f32.gmra.mrb[114].mxu0 %vm141_vm0, %v11410_v8 }
  0xf8   :  { %15500 = vst [vmem:[#allocation11_spill] sm:$0xff] %v11416_v10  ;;  %8516 = vmatprep.mubr.msk.f32.mxu0 %vm10826_vm2, %v15471_v7  ;;  %v15509_v10 = vmov 0.0  }
  0xf9   :  { %574 = vmatprep.mubr.f32.mxu1 %v15509_v10 }
  0xfa   :  { %v11428_v12 = vpop.f32.mrb[10].mxu0  ;;  %7483 = vmatmul.mubr.msk.f32.gmra.mrb[38].mxu1 %vm141_vm0, %v11103_v61 }
  0xfb   :  { %v11432_v13 = vpop.f32.mrb[11].mxu0  ;;  %8517 = vmatmul.mubr.msk.f32.gmra.mrb[116].mxu0 %vm141_vm0, %v11426_v11  ;;  %580 = vmatprep.mubr.f32.mxu1 %v15509_v10 }
  0xfc   :  { %15501 = vst [vmem:[#allocation12_spill] sm:$0xff] %v11432_v13  ;;  %8519 = vmatprep.mubr.msk.f32.mxu0 %vm10826_vm2, %v15471_v7 }
  0xfe   :  { %v11444_v15 = vpop.f32.mrb[12].mxu0  ;;  %7484 = vmatmul.mubr.msk.f32.gmra.mrb[40].mxu1 %vm141_vm0, %v11111_v62 }
  0xff   :  { %v11448_v16 = vpop.f32.mrb[13].mxu0  ;;  %8520 = vmatmul.mubr.msk.f32.gmra.mrb[118].mxu0 %vm141_vm0, %v11442_v14  ;;  %842 = vmatprep.mubr.f32.mxu1 %v15509_v10 }
 0x100   :  { %15502 = vst [vmem:[#allocation13_spill] sm:$0xff] %v11448_v16  ;;  %8522 = vmatprep.mubr.msk.f32.mxu0 %vm10826_vm2, %v15471_v7 }
 0x102   :  { %v11460_v18 = vpop.f32.mrb[14].mxu0 }
 0x103   :  { %v11464_v20 = vpop.f32.mrb[15].mxu0  ;;  %8523 = vmatmul.mubr.msk.f32.gmra.mrb[120].mxu0 %vm141_vm0, %v11458_v17 }
 0x104   :  { %15503 = vst [vmem:[#allocation14_spill] sm:$0xff] %v11464_v20  ;;  %8525 = vmatprep.mubr.msk.f32.mxu0 %vm10826_vm2, %v15471_v7 }
 0x106   :  { %v11476_v22 = vpop.f32.mrb[16].mxu0 }
 0x107   :  { %v11480_v23 = vpop.f32.mrb[17].mxu0  ;;  %8526 = vmatmul.mubr.msk.f32.gmra.mrb[122].mxu0 %vm141_vm0, %v11474_v21 }
 0x108   :  { %15504 = vst [vmem:[#allocation15_spill] sm:$0xff] %v11480_v23  ;;  %8528 = vmatprep.mubr.msk.f32.mxu0 %vm10826_vm2, %v15471_v7  ;;  %v9742_v23 = vpack.c.bf16 %v100_v2, %v92_v29 }
 0x10a   :  { %v11492_v25 = vpop.f32.mrb[18].mxu0  ;;  %9743 = vmatprep.subr.bf16.mxu1 %v9742_v23  ;;  %v116_v23 = vld [vmem:[%s15462_s0 + $0xf8] sm:$0xff] }
 0x10b   :  { %v11496_v27 = vpop.f32.mrb[19].mxu0  ;;  %8529 = vmatmul.mubr.msk.f32.gmra.mrb[124].mxu0 %vm141_vm0, %v11490_v24 }
 0x10c   :  { %15505 = vst [vmem:[#allocation16_spill] sm:$0xff] %v11496_v27  ;;  %v99_v27 = vld [vmem:[%s15462_s0 + $0x70] sm:$0xff]  ;;  %8622 = vmatprep.mubr.msk.f32.mxu0 %vm10826_vm2, %v15471_v7 }
 0x10d   :  { %v9744_v20 = vpack.c.bf16 %v99_v27, %v91_v47  ;;  %v108_v47 = vld [vmem:[%s15462_s0 + $0xb8] sm:$0xff]  ;;  %v115_v7 = vld [vmem:[%s15462_s0 + $0xf0] sm:$0xff] }
 0x10e   :  { %v11515_v16 = vpop.f32.mrb[20].mxu0  ;;  %v9746_v27 = vpack.c.bf16 %v116_v23, %v108_v47  ;;  %v132_v47 = vld [vmem:[%s15462_s0 + $0x178] sm:$0xff] }
 0x10f   :  { %v11519_v13 = vpop.f32.mrb[21].mxu0  ;;  %9745 = vmatpush1.bf16.msra.mxu1 %v9744_v20  ;;  %v9750_v44 = vpack.c.bf16 %v132_v47, %v124_v3  ;;  %v140_v47 = vld [vmem:[%s15462_s0 + $0x1b8] sm:$0xff] }
 0x110   :  { %15506 = vst [vmem:[#allocation17_spill] sm:$0xff] %v11519_v13  ;;  %9747 = vmatprep.subr.bf16.mxu1 %v9746_v27 }
 0x112   :  { %v11522_v2 = vpop.f32.mrb[22].mxu0 }
 0x113   :  { %v11526_v29 = vpop.f32.mrb[23].mxu0 }
 0x114   :  { %15507 = vst [vmem:[#allocation18_spill] sm:$0xff] %v11526_v29  ;;  %v107_v29 = vld [vmem:[%s15462_s0 + $0xb0] sm:$0xff] }
 0x115   :  { %v9748_v6 = vpack.c.bf16 %v115_v7, %v107_v29  ;;  %v123_v7 = vld [vmem:[%s15462_s0 + $0x130] sm:$0xff] }
 0x116   :  { %v11535_v20 = vpop.f32.mrb[24].mxu0 }
 0x117   :  { %v11545_v13 = vpop.f32.mrb[25].mxu0  ;;  %9749 = vmatpush1.bf16.msra.mxu1 %v9748_v6  ;;  %v131_v6 = vld [vmem:[%s15462_s0 + $0x170] sm:$0xff] }
 0x118   :  { %15508 = vst [vmem:[#allocation19_spill] sm:$0xff] %v11545_v13  ;;  %v9752_v27 = vpack.c.bf16 %v131_v6, %v123_v7  ;;  %9751 = vmatprep.subr.bf16.mxu1 %v9750_v44  ;;  %v139_v7 = vld [vmem:[%s15462_s0 + $0x1b0] sm:$0xff]  ;;  %v15512_v6 = vmov 0.0|0.0  }
 0x11a   :  { %v11554_v23 = vpop.f32.mrb[26].mxu0 }
 0x11b   :  { %v11564_v29 = vpop.f32.mrb[27].mxu0  ;;  %9753 = vmatpush1.bf16.msra.mxu1 %v9752_v27 }
 0x11c   :  { %15510 = vst [vmem:[#allocation20_spill] sm:$0xff] %v11564_v29  ;;  %790 = vmatprep.subr.mxu1 %v140_v47 }
 0x11e   :  { %v11567_v13 = vpop.f32.mrb[28].mxu0 }
 0x11f   :  { %v11571_v3 = vpop.f32.mrb[29].mxu0  ;;  %791 = vmatpush1.msra.mxu1 %v139_v7 }
 0x120   :  { %15511 = vst [vmem:[#allocation21_spill] sm:$0xff] %v11571_v3  ;;  %7506 = vmatmul.mubr.msk.f32.vlgmr.msra.gmra.mrb[42].mxu1 %vm141_vm0, %v10926_v28  ;;  %9760 = vmatprep.subr.bf16.mxu1 %v15512_v6 }
 0x121   :  { %848 = vmatprep.mubr.f32.mxu1 %v15509_v10 }
 0x122   :  { %v11580_v44 = vpop.f32.mrb[30].mxu0 }
 0x123   :  { %v11585_v27 = vpop.f32.mrb[31].mxu0 }
 0x124   :  { %15513 = vst [vmem:[#allocation22_spill] sm:$0xff] %v11585_v27  ;;  %7507 = vmatmul.mubr.msk.f32.gmra.mrb[44].mxu1 %vm141_vm0, %v10946_v35 }
 0x125   :  { %854 = vmatprep.mubr.f32.mxu1 %v15509_v10 }
 0x126   :  { %v11588_v3 = vpop.f32.mrb[32].mxu0 }
 0x127   :  { %v11592_v47 = vpop.f32.mrb[33].mxu0 }
 0x128   :  { %15514 = vst [vmem:[#allocation23_spill] sm:$0xff] %v11592_v47  ;;  %7508 = vmatmul.mubr.msk.f32.gmra.mrb[46].mxu1 %vm141_vm0, %v10960_v40 }
 0x129   :  { %860 = vmatprep.mubr.f32.mxu1 %v15509_v10 }
 0x12a   :  { %v11595_v7 = vpop.f32.mrb[34].mxu0 }
 0x12b   :  { %v11599_v28 = vpop.f32.mrb[35].mxu0 }
 0x12c   :  { %15515 = vst [vmem:[#allocation24_spill] sm:$0xff] %v11599_v28  ;;  %7509 = vmatmul.mubr.msk.f32.gmra.mrb[48].mxu1 %vm141_vm0, %v10971_v43 }
 0x12d   :  { %866 = vmatprep.mubr.f32.mxu1 %v15509_v10 }
 0x12e   :  { %v11602_v27 = vpop.f32.mrb[36].mxu0 }
 0x12f   :  { %v11606_v29 = vpop.f32.mrb[37].mxu0 }
 0x130   :  { %15516 = vst [vmem:[#allocation25_spill] sm:$0xff] %v11606_v29  ;;  %7510 = vmatmul.mubr.msk.f32.gmra.mrb[50].mxu1 %vm141_vm0, %v10982_v45 }
 0x131   :  { %872 = vmatprep.mubr.f32.mxu1 %v15509_v10 }
 0x132   :  { %v11609_v35 = vpop.f32.mrb[38].mxu0 }
 0x133   :  { %v11613_v47 = vpop.f32.mrb[39].mxu0 }
 0x134   :  { %15517 = vst [vmem:[#allocation26_spill] sm:$0xff] %v11613_v47  ;;  %7511 = vmatmul.mubr.msk.f32.gmra.mrb[52].mxu1 %vm141_vm0, %v10990_v46 }
 0x135   :  { %878 = vmatprep.mubr.f32.mxu1 %v15509_v10 }
 0x136   :  { %v11616_v40 = vpop.f32.mrb[40].mxu0 }
 0x137   :  { %v11620_v28 = vpop.f32.mrb[41].mxu0 }
 0x138   :  { %7512 = vmatmul.mubr.msk.f32.gmra.mrb[54].mxu1 %vm141_vm0, %v10999_v48 }
 0x139   :  { %884 = vmatprep.mubr.f32.mxu1 %v15509_v10 }
 0x13a   :  { %v11623_v43 = vpop.f32.mrb[42].mxu0 }
 0x13b   :  { %15518 = vst [vmem:[#allocation27_spill] sm:$0xff] %v11623_v43  ;;  %v11627_v29 = vpop.f32.mrb[43].mxu0 }
 0x13c   :  { %15519 = vst [vmem:[#allocation28_spill] sm:$0xff] %v11627_v29  ;;  %7513 = vmatmul.mubr.msk.f32.gmra.mrb[56].mxu1 %vm141_vm0, %v11007_v49 }
 0x13d   :  { %890 = vmatprep.mubr.f32.mxu1 %v15509_v10 }
 0x13e   :  { %v11630_v45 = vpop.f32.mrb[44].mxu0 }
 0x13f   :  { %15520 = vst [vmem:[#allocation29_spill] sm:$0xff] %v11630_v45  ;;  %v11634_v47 = vpop.f32.mrb[45].mxu0 }
 0x140   :  { %15521 = vst [vmem:[#allocation30_spill] sm:$0xff] %v11634_v47  ;;  %7514 = vmatmul.mubr.msk.f32.gmra.mrb[58].mxu1 %vm141_vm0, %v11015_v50 }
 0x141   :  { %896 = vmatprep.mubr.f32.mxu1 %v15509_v10 }
 0x142   :  { %v11637_v46 = vpop.f32.mrb[46].mxu0 }
 0x143   :  { %15522 = vst [vmem:[#allocation31_spill] sm:$0xff] %v11637_v46  ;;  %v11641_v43 = vpop.f32.mrb[47].mxu0 }
 0x144   :  { %15523 = vst [vmem:[#allocation32_spill] sm:$0xff] %v11641_v43  ;;  %7515 = vmatmul.mubr.msk.f32.gmra.mrb[60].mxu1 %vm141_vm0, %v11023_v51 }
 0x145   :  { %902 = vmatprep.mubr.f32.mxu1 %v15509_v10 }
 0x146   :  { %v11644_v48 = vpop.f32.mrb[48].mxu0 }
 0x147   :  { %15524 = vst [vmem:[#allocation33_spill] sm:$0xff] %v11644_v48  ;;  %v11648_v29 = vpop.f32.mrb[49].mxu0 }
 0x148   :  { %15525 = vst [vmem:[#allocation34_spill] sm:$0xff] %v11648_v29  ;;  %7516 = vmatmul.mubr.msk.f32.gmra.mrb[62].mxu1 %vm141_vm0, %v11031_v52 }
 0x149   :  { %908 = vmatprep.mubr.f32.mxu1 %v15509_v10 }
 0x14a   :  { %v11651_v49 = vpop.f32.mrb[50].mxu0 }
 0x14b   :  { %15526 = vst [vmem:[#allocation35_spill] sm:$0xff] %v11651_v49  ;;  %v11655_v47 = vpop.f32.mrb[51].mxu0 }
 0x14c   :  { %15527 = vst [vmem:[#allocation36_spill] sm:$0xff] %v11655_v47  ;;  %7517 = vmatmul.mubr.msk.f32.gmra.mrb[64].mxu1 %vm141_vm0, %v11039_v53 }
 0x14d   :  { %914 = vmatprep.mubr.f32.mxu1 %v15509_v10 }
 0x14e   :  { %v11658_v50 = vpop.f32.mrb[52].mxu0 }
 0x14f   :  { %15528 = vst [vmem:[#allocation37_spill] sm:$0xff] %v11658_v50  ;;  %v11662_v43 = vpop.f32.mrb[53].mxu0  ;;  %v11758_v50 = vpop.f32.mrb[0].mxu1 }
 0x150   :  { %15529 = vst [vmem:[#allocation38_spill] sm:$0xff] %v11662_v43  ;;  %7518 = vmatmul.mubr.msk.f32.gmra.mrb[66].mxu1 %vm141_vm0, %v11047_v54 }
 0x151   :  { %920 = vmatprep.mubr.f32.mxu1 %v15509_v10 }
 0x152   :  { %v11665_v51 = vpop.f32.mrb[54].mxu0 }
 0x153   :  { %15530 = vst [vmem:[#allocation39_spill] sm:$0xff] %v11665_v51  ;;  %v11669_v29 = vpop.f32.mrb[55].mxu0 }
 0x154   :  { %15531 = vst [vmem:[#allocation40_spill] sm:$0xff] %v11669_v29  ;;  %7519 = vmatmul.mubr.msk.f32.gmra.mrb[68].mxu1 %vm141_vm0, %v11055_v55 }
 0x155   :  { %926 = vmatprep.mubr.f32.mxu1 %v15509_v10 }
 0x156   :  { %v11672_v52 = vpop.f32.mrb[56].mxu0 }
 0x157   :  { %15532 = vst [vmem:[#allocation41_spill] sm:$0xff] %v11672_v52  ;;  %v11676_v47 = vpop.f32.mrb[57].mxu0 }
 0x158   :  { %15533 = vst [vmem:[#allocation42_spill] sm:$0xff] %v11676_v47  ;;  %7520 = vmatmul.mubr.msk.f32.gmra.mrb[70].mxu1 %vm141_vm0, %v11063_v56 }
 0x159   :  { %932 = vmatprep.mubr.f32.mxu1 %v15509_v10 }
 0x15a   :  { %v11679_v53 = vpop.f32.mrb[58].mxu0 }
 0x15b   :  { %15534 = vst [vmem:[#allocation43_spill] sm:$0xff] %v11679_v53  ;;  %v11683_v43 = vpop.f32.mrb[59].mxu0 }
 0x15c   :  { %15535 = vst [vmem:[#allocation44_spill] sm:$0xff] %v11683_v43  ;;  %7521 = vmatmul.mubr.msk.f32.gmra.mrb[72].mxu1 %vm141_vm0, %v11071_v57 }
 0x15d   :  { %938 = vmatprep.mubr.f32.mxu1 %v15509_v10 }
 0x15e   :  { %v11686_v54 = vpop.f32.mrb[60].mxu0 }
 0x15f   :  { %15536 = vst [vmem:[#allocation45_spill] sm:$0xff] %v11686_v54  ;;  %v11690_v29 = vpop.f32.mrb[61].mxu0 }
 0x160   :  { %15537 = vst [vmem:[#allocation46_spill] sm:$0xff] %v11690_v29  ;;  %7522 = vmatmul.mubr.msk.f32.gmra.mrb[74].mxu1 %vm141_vm0, %v11079_v58 }
 0x161   :  { %944 = vmatprep.mubr.f32.mxu1 %v15509_v10 }
 0x162   :  { %v11693_v55 = vpop.f32.mrb[62].mxu0 }
 0x163   :  { %15538 = vst [vmem:[#allocation47_spill] sm:$0xff] %v11693_v55  ;;  %v11697_v47 = vpop.f32.mrb[63].mxu0 }
 0x164   :  { %15539 = vst [vmem:[#allocation48_spill] sm:$0xff] %v11697_v47  ;;  %7523 = vmatmul.mubr.msk.f32.gmra.mrb[76].mxu1 %vm141_vm0, %v11087_v59 }
 0x165   :  { %950 = vmatprep.mubr.f32.mxu1 %v15509_v10 }
 0x166   :  { %v11700_v56 = vpop.f32.mrb[64].mxu0 }
 0x167   :  { %15540 = vst [vmem:[#allocation49_spill] sm:$0xff] %v11700_v56  ;;  %v11704_v43 = vpop.f32.mrb[65].mxu0 }
 0x168   :  { %15541 = vst [vmem:[#allocation50_spill] sm:$0xff] %v11704_v43  ;;  %7524 = vmatmul.mubr.msk.f32.gmra.mrb[78].mxu1 %vm141_vm0, %v11095_v60 }
 0x169   :  { %956 = vmatprep.mubr.f32.mxu1 %v15509_v10 }
 0x16a   :  { %v11707_v57 = vpop.f32.mrb[66].mxu0 }
 0x16b   :  { %15542 = vst [vmem:[#allocation51_spill] sm:$0xff] %v11707_v57  ;;  %v11711_v29 = vpop.f32.mrb[67].mxu0 }
 0x16c   :  { %15543 = vst [vmem:[#allocation52_spill] sm:$0xff] %v11711_v29  ;;  %7525 = vmatmul.mubr.msk.f32.gmra.mrb[80].mxu1 %vm141_vm0, %v11103_v61 }
 0x16d   :  { %962 = vmatprep.mubr.f32.mxu1 %v15509_v10 }
 0x16e   :  { %v11714_v58 = vpop.f32.mrb[68].mxu0 }
 0x16f   :  { %15544 = vst [vmem:[#allocation53_spill] sm:$0xff] %v11714_v58  ;;  %v11718_v47 = vpop.f32.mrb[69].mxu0 }
 0x170   :  { %15545 = vst [vmem:[#allocation54_spill] sm:$0xff] %v11718_v47  ;;  %7526 = vmatmul.mubr.msk.f32.gmra.mrb[82].mxu1 %vm141_vm0, %v11111_v62 }
 0x171   :  { %8545 = vmatprep.mubr.msk.f32.mxu1 %vm10826_vm2, %v15509_v10 }
 0x172   :  { %v11721_v59 = vpop.f32.mrb[70].mxu0 }
 0x173   :  { %15546 = vst [vmem:[#allocation55_spill] sm:$0xff] %v11721_v59  ;;  %v11725_v43 = vpop.f32.mrb[71].mxu0 }
 0x174   :  { %15547 = vst [vmem:[#allocation56_spill] sm:$0xff] %v11725_v43 }
 0x176   :  { %v11729_v60 = vpop.f32.mrb[72].mxu0 }
 0x177   :  { %15548 = vst [vmem:[#allocation57_spill] sm:$0xff] %v11729_v60  ;;  %v11731_v29 = vpop.f32.mrb[73].mxu0 }
 0x178   :  { %15549 = vst [vmem:[#allocation58_spill] sm:$0xff] %v11731_v29 }
 0x17a   :  { %v11733_v58 = vpop.f32.mrb[74].mxu0 }
 0x17b   :  { %15550 = vst [vmem:[#allocation59_spill] sm:$0xff] %v11733_v58  ;;  %v11735_v61 = vpop.f32.mrb[75].mxu0 }
 0x17c   :  { %15551 = vst [vmem:[#allocation60_spill] sm:$0xff] %v11735_v61 }
 0x17e   :  { %v11737_v47 = vpop.f32.mrb[76].mxu0 }
 0x17f   :  { %15552 = vst [vmem:[#allocation61_spill] sm:$0xff] %v11737_v47  ;;  %v11739_v57 = vpop.f32.mrb[77].mxu0 }
 0x180   :  { %15553 = vst [vmem:[#allocation62_spill] sm:$0xff] %v11739_v57 }
 0x182   :  { %v11741_v59 = vpop.f32.mrb[78].mxu0 }
 0x183   :  { %15554 = vst [vmem:[#allocation63_spill] sm:$0xff] %v11741_v59  ;;  %v11743_v62 = vpop.f32.mrb[79].mxu0 }
 0x184   :  { %15555 = vst [vmem:[#allocation64_spill] sm:$0xff] %v11743_v62 }
 0x186   :  { %v11745_v43 = vpop.f32.mrb[80].mxu0 }
 0x187   :  { %15556 = vst [vmem:[#allocation65_spill] sm:$0xff] %v11745_v43  ;;  %v11747_v56 = vpop.f32.mrb[81].mxu0 }
 0x188   :  { %15557 = vst [vmem:[#allocation66_spill] sm:$0xff] %v11747_v56 }
 0x18a   :  { %v11749_v55 = vpop.f32.mrb[82].mxu0 }
 0x18b   :  { %15558 = vst [vmem:[#allocation67_spill] sm:$0xff] %v11749_v55  ;;  %v11751_v60 = vpop.f32.mrb[83].mxu0 }
 0x18c   :  { %15559 = vst [vmem:[#allocation68_spill] sm:$0xff] %v11751_v60 }
 0x18e   :  { %v1266_v29 = vpop.f32.mrb[84].mxu0 }
 0x18f   :  { %v1377_v58 = vadd.f32 %v1266_v29, %v11348_v38  ;;  %v8470_v61 = vpop.f32.mrb[85].mxu0  ;;  %v11760_v29 = vpop.f32.mrb[1].mxu1 }
 0x190   :  { %15560 = vst [vmem:[#allocation69_spill] sm:$0xff] %v11760_v29 }
 0x191   :  { %v1384_v48 = vmul.f32 0.5, %v1377_v58 }
 0x192   :  { %v1271_v54 = vpop.f32.mrb[86].mxu0 }
 0x193   :  { %v1378_v47 = vadd.f32 %v1271_v54, %v11364_v42  ;;  %v8473_v57 = vpop.f32.mrb[87].mxu0  ;;  %9970 = vtanh.f32 %v1384_v48 }
 0x194   :  { %v11763_v57 = vpop.f32.mrb[2].mxu1 }
 0x196   :  { %v1276_v53 = vpop.f32.mrb[88].mxu0 }
 0x197   :  { %v1379_v59 = vadd.f32 %v1276_v53, %v11380_v0  ;;  %v8476_v62 = vpop.f32.mrb[89].mxu0  ;;  %v11765_v53 = vpop.f32.mrb[3].mxu1 }
 0x198   :  { %15561 = vst [vmem:[#allocation70_spill] sm:$0xff] %v11765_v53 }
 0x199   :  { %v1386_v58 = vmul.f32 0.5, %v1379_v59 }
 0x19a   :  { %v1281_v52 = vpop.f32.mrb[90].mxu0 }
 0x19b   :  { %v1380_v43 = vadd.f32 %v1281_v52, %v11396_v5  ;;  %v8479_v56 = vpop.f32.mrb[91].mxu0 }
 0x19c   :  { %v11768_v56 = vpop.f32.mrb[4].mxu1 }
 0x19e   :  { %v1286_v51 = vpop.f32.mrb[92].mxu0 }
 0x19f   :  { %v1381_v55 = vadd.f32 %v1286_v51, %v11412_v9  ;;  %v8482_v60 = vpop.f32.mrb[93].mxu0  ;;  %v11770_v51 = vpop.f32.mrb[5].mxu1 }
 0x1a0   :  { %15562 = vst [vmem:[#allocation71_spill] sm:$0xff] %v11770_v51  ;;  %v11773_v62 = vpop.f32.mrb[6].mxu1 }
 0x1a2   :  { %v1291_v38 = vpop.f32.mrb[94].mxu0 }
 0x1a3   :  { %v1382_v42 = vadd.f32 %v1291_v38, %v11428_v12  ;;  %v8485_v54 = vpop.f32.mrb[95].mxu0  ;;  %v11775_v38 = vpop.f32.mrb[7].mxu1 }
 0x1a4   :  { %15563 = vst [vmem:[#allocation72_spill] sm:$0xff] %v11775_v38  ;;  %v11778_v46 = vpop.f32.mrb[8].mxu1 }
 0x1a6   :  { %v1296_v0 = vpop.f32.mrb[96].mxu0 }
 0x1a7   :  { %v1383_v5 = vadd.f32 %v1296_v0, %v11444_v15  ;;  %v8488_v52 = vpop.f32.mrb[97].mxu0  ;;  %v11780_v0 = vpop.f32.mrb[9].mxu1 }
 0x1a8   :  { %15564 = vst [vmem:[#allocation73_spill] sm:$0xff] %v11780_v0  ;;  %v1385_v52 = vmul.f32 0.5, %v1378_v47  ;;  %v1387_v47 = vmul.f32 0.5, %v1380_v43 }
 0x1aa   :  { %v1301_v9 = vpop.f32.mrb[98].mxu0  ;;  %9972 = vtanh.f32 %v1385_v52  ;;  %v1388_v52 = vmul.f32 0.5, %v1381_v55 }
 0x1ab   :  { %v1419_v60 = vadd.f32 %v1301_v9, %v11460_v18  ;;  %v8491_v61 = vpop.f32.mrb[99].mxu0  ;;  %v11783_v18 = vpop.f32.mrb[10].mxu1  ;;  %9974 = vtanh.f32 %v1386_v58  ;;  %v1389_v58 = vmul.f32 0.5, %v1382_v42 }
 0x1ac   :  { %v11785_v61 = vpop.f32.mrb[11].mxu1  ;;  %9976 = vtanh.f32 %v1387_v47 }
 0x1ad   :  { %15565 = vst [vmem:[#allocation74_spill] sm:$0xff] %v11785_v61  ;;  %9978 = vtanh.f32 %v1388_v52 }
 0x1ae   :  { %v1306_v12 = vpop.f32.mrb[100].mxu0 }
 0x1af   :  { %v1420_v54 = vadd.f32 %v1306_v12, %v11476_v22  ;;  %v8494_v49 = vpop.f32.mrb[101].mxu0  ;;  %v11788_v12 = vpop.f32.mrb[12].mxu1 }
 0x1b0   :  { %v11790_v53 = vpop.f32.mrb[13].mxu1 }
 0x1b1   :  { %15566 = vst [vmem:[#allocation75_spill] sm:$0xff] %v11790_v53  ;;  %v11793_v48 = vpop.f32.mrb[14].mxu1 }
 0x1b2   :  { %v1311_v15 = vpop.f32.mrb[102].mxu0  ;;  %15567 = vst [vmem:[#allocation76_spill] sm:$0xff] %v11793_v48  ;;  %v11795_v61 = vpop.f32.mrb[15].mxu1 }
 0x1b3   :  { %v1421_v45 = vadd.f32 %v1311_v15, %v11492_v25  ;;  %v8497_v51 = vpop.f32.mrb[103].mxu0  ;;  %v9971_v15 = vpop.eup %9970  ;;  %15568 = vst [vmem:[#allocation77_spill] sm:$0xff] %v11795_v61 }
 0x1b4   :  { %v1398_v53 = vmul.f32 0.5, %v9971_v15  ;;  %v11800_v43 = vpop.f32.mrb[16].mxu1 }
 0x1b5   :  { %15569 = vst [vmem:[#allocation78_spill] sm:$0xff] %v11800_v43 }
 0x1b6   :  { %v1316_v9 = vpop.f32.mrb[104].mxu0 }
 0x1b7   :  { %v1422_v22 = vadd.f32 %v1316_v9, %v11515_v16  ;;  %v8500_v49 = vpop.f32.mrb[105].mxu0  ;;  %v9973_v9 = vpop.eup %9972 }
 0x1b8   :  { %v1426_v49 = vmul.f32 0.5, %v1419_v60  ;;  %v1399_v47 = vmul.f32 0.5, %v9973_v9  ;;  %v9975_v55 = vpop.eup %9974 }
 0x1b9   :  { %v9977_v48 = vpop.eup %9976  ;;  %v1400_v52 = vmul.f32 0.5, %v9975_v55 }
 0x1ba   :  { %v1321_v38 = vpop.f32.mrb[106].mxu0  ;;  %9980 = vtanh.f32 %v1426_v49  ;;  %v1406_v42 = vadd.f32 0.5, %v1399_v47 }
 0x1bb   :  { %v1423_v25 = vadd.f32 %v1321_v38, %v11522_v2  ;;  %v8503_v51 = vpop.f32.mrb[107].mxu0  ;;  %v11802_v38 = vpop.f32.mrb[17].mxu1  ;;  %9982 = vtanh.f32 %v1389_v58  ;;  %v1401_v58 = vmul.f32 0.5, %v9977_v48  ;;  %v1407_v47 = vadd.f32 0.5, %v1400_v52 }
 0x1bc   :  { %15570 = vst [vmem:[#allocation79_spill] sm:$0xff] %v11802_v38  ;;  %v1390_v38 = vmul.f32 0.5, %v1383_v5 }
 0x1be   :  { %v1326_v0 = vpop.f32.mrb[108].mxu0 }
 0x1bf   :  { %v11798_v16 = vadd.f32 %v1326_v0, %v11535_v20  ;;  %v8506_v59 = vpop.f32.mrb[109].mxu0  ;;  %v1427_v20 = vmul.f32 0.5, %v1420_v54  ;;  %v1405_v0 = vadd.f32 0.5, %v1398_v53 }
 0x1c0   :  { %v11807_v59 = vpop.f32.mrb[18].mxu1 }
 0x1c1   :  { %v11809_v15 = vpop.f32.mrb[19].mxu1  ;;  %9984 = vtanh.f32 %v1427_v20 }
 0x1c2   :  { %v1331_v2 = vpop.f32.mrb[110].mxu0  ;;  %15571 = vst [vmem:[#allocation80_spill] sm:$0xff] %v11809_v15  ;;  %v11812_v9 = vpop.f32.mrb[20].mxu1 }
 0x1c3   :  { %v11805_v51 = vadd.f32 %v1331_v2, %v11554_v23  ;;  %v8509_v29 = vpop.f32.mrb[111].mxu0  ;;  %v1428_v23 = vmul.f32 0.5, %v1421_v45  ;;  %v11814_v54 = vpop.f32.mrb[21].mxu1 }
 0x1c4   :  { %15572 = vst [vmem:[#allocation81_spill] sm:$0xff] %v11814_v54  ;;  %v11817_v20 = vpop.f32.mrb[22].mxu1  ;;  %v9979_v45 = vpop.eup %9978 }
 0x1c6   :  { %v1336_v60 = vpop.f32.mrb[112].mxu0 }
 0x1c7   :  { %v1461_v61 = vmul.f32 %v1405_v0, %v1336_v60  ;;  %v8512_v43 = vpop.f32.mrb[113].mxu0  ;;  %v9981_v0 = vpop.eup %9980 }
 0x1c8   :  { %v1429_v43 = vmul.f32 0.5, %v1422_v22  ;;  %v1402_v22 = vmul.f32 0.5, %v9979_v45 }
 0x1c9   :  { %v1468_v29 = vadd.f32 %v1461_v61, %v11567_v13  ;;  %v11819_v61 = vpop.f32.mrb[23].mxu1 }
 0x1ca   :  { %v1341_v53 = vpop.f32.mrb[114].mxu0  ;;  %15573 = vst [vmem:[#allocation82_spill] sm:$0xff] %v11819_v61 }
 0x1cb   :  { %9986 = vtanh.f32 %v1468_v29  ;;  %v1462_v49 = vmul.f32 %v1406_v42, %v1341_v53  ;;  %v8515_v2 = vpop.f32.mrb[115].mxu0  ;;  %v1408_v29 = vadd.f32 0.5, %v1401_v58  ;;  %v9983_v42 = vpop.eup %9982  ;;  %v1431_v58 = vmul.f32 0.5, %v11798_v16 }
 0x1cc   :  { %9988 = vtanh.f32 %v1390_v38  ;;  %v1430_v38 = vmul.f32 0.5, %v1423_v25 }
 0x1cd   :  { %9990 = vtanh.f32 %v1428_v23  ;;  %v1469_v5 = vadd.f32 %v1462_v49, %v11580_v44  ;;  %v11822_v23 = vpop.f32.mrb[24].mxu1  ;;  %v1440_v44 = vmul.f32 0.5, %v9981_v0  ;;  %v9985_v49 = vpop.eup %9984 }
 0x1ce   :  { %v1346_v13 = vpop.f32.mrb[116].mxu0  ;;  %v11824_v53 = vpop.f32.mrb[25].mxu1  ;;  %v1441_v0 = vmul.f32 0.5, %v9985_v49 }
 0x1cf   :  { %9992 = vtanh.f32 %v1469_v5  ;;  %v1463_v55 = vmul.f32 %v1407_v47, %v1346_v13  ;;  %v8518_v60 = vpop.f32.mrb[117].mxu0  ;;  %15574 = vst [vmem:[#allocation83_spill] sm:$0xff] %v11824_v53  ;;  %v1403_v5 = vmul.f32 0.5, %v9983_v42  ;;  %v1447_v13 = vadd.f32 0.5, %v1440_v44 }
 0x1d0   :  { %9994 = vtanh.f32 %v1429_v43  ;;  %v1409_v43 = vadd.f32 0.5, %v1402_v22  ;;  %v1448_v44 = vadd.f32 0.5, %v1441_v0 }
 0x1d1   :  { %v1470_v48 = vadd.f32 %v1463_v55, %v11588_v3  ;;  %v11828_v3 = vpop.f32.mrb[26].mxu1  ;;  %v1410_v42 = vadd.f32 0.5, %v1403_v5 }
 0x1d2   :  { %v1351_v52 = vpop.f32.mrb[118].mxu0  ;;  %v11830_v53 = vpop.f32.mrb[27].mxu1 }
 0x1d3   :  { %9996 = vtanh.f32 %v1470_v48  ;;  %v1464_v2 = vmul.f32 %v1408_v29, %v1351_v52  ;;  %v8521_v61 = vpop.f32.mrb[119].mxu0  ;;  %15575 = vst [vmem:[#allocation84_spill] sm:$0xff] %v11830_v53 }
 0x1d4   :  { %9998 = vtanh.f32 %v1430_v38 }
 0x1d5   :  { %v9987_v47 = vpop.eup %9986  ;;  %v1471_v25 = vadd.f32 %v1464_v2, %v11595_v7  ;;  %v1432_v7 = vmul.f32 0.5, %v11805_v51  ;;  %v11834_v2 = vpop.f32.mrb[28].mxu1 }
 0x1d6   :  { %v9989_v45 = vpop.eup %9988  ;;  %v1356_v55 = vpop.f32.mrb[120].mxu0  ;;  %v1482_v60 = vsub.f32 0.0, %v9987_v47 }
 0x1d7   :  { %v9991_v48 = vpop.eup %9990  ;;  %10000 = vtanh.f32 %v1471_v25  ;;  %v1465_v61 = vmul.f32 %v1409_v43, %v1356_v55  ;;  %v8524_v29 = vpop.f32.mrb[121].mxu0  ;;  %v1404_v22 = vmul.f32 0.5, %v9989_v45 }
 0x1d8   :  { %v1489_v38 = vmul.f32 %v1482_v60, %v1447_v13  ;;  %10002 = vtanh.f32 %v1431_v58  ;;  %v1442_v49 = vmul.f32 0.5, %v9991_v48  ;;  %v11838_v25 = vpop.f32.mrb[29].mxu1 }
 0x1d9   :  { %v9993_v52 = vpop.eup %9992  ;;  %v1472_v16 = vadd.f32 %v1465_v61, %v11602_v27  ;;  %15576 = vst [vmem:[#allocation85_spill] sm:$0xff] %v11838_v25  ;;  %v1411_v51 = vadd.f32 0.5, %v1404_v22  ;;  %v11841_v45 = vpop.f32.mrb[30].mxu1 }
 0x1da   :  { %v1361_v54 = vpop.f32.mrb[122].mxu0  ;;  %v1483_v15 = vsub.f32 0.0, %v9993_v52  ;;  %v11836_v53 = vadd.f32 %v9987_v47, %v1489_v38  ;;  %v9995_v43 = vpop.eup %9994  ;;  %v1449_v0 = vadd.f32 0.5, %v1442_v49 }
 0x1db   :  { %10004 = vtanh.f32 %v1472_v16  ;;  %v1466_v5 = vmul.f32 %v1410_v42, %v1361_v54  ;;  %v8527_v13 = vpop.f32.mrb[123].mxu0  ;;  %v1443_v60 = vmul.f32 0.5, %v9995_v43  ;;  %v11845_v29 = vpop.f32.mrb[31].mxu1 }
 0x1dc   :  { %v1490_v58 = vmul.f32 %v1483_v15, %v1448_v44  ;;  %10006 = vtanh.f32 %v1432_v7  ;;  %15577 = vst [vmem:[#allocation86_spill] sm:$0xff] %v11845_v29  ;;  %v11852_v22 = vpop.f32.mrb[32].mxu1 }
 0x1dd   :  { %v9997_v55 = vpop.eup %9996  ;;  %v1473_v27 = vadd.f32 %v1466_v5, %v11609_v35  ;;  %v1450_v44 = vadd.f32 0.5, %v1443_v60  ;;  %v11857_v5 = vpop.f32.mrb[33].mxu1 }
 0x1de   :  { %v1366_v48 = vpop.f32.mrb[124].mxu0  ;;  %v11843_v61 = vadd.f32 %v9993_v52, %v1490_v58  ;;  %v1484_v47 = vsub.f32 0.0, %v9997_v55  ;;  %v9999_v38 = vpop.eup %9998  ;;  %15579 = vst [vmem:[#allocation88_spill] sm:$0xff] %v11857_v5 }
 0x1df   :  { %10008 = vtanh.f32 %v1473_v27  ;;  %v1467_v54 = vmul.f32 %v1411_v51, %v1366_v48  ;;  %v8530_v42 = vpop.f32.mrb[125].mxu0  ;;  %v1444_v52 = vmul.f32 0.5, %v9999_v38  ;;  %v11860_v51 = vpop.f32.mrb[34].mxu1 }
 0x1e0   :  { %v11849_v15 = vpack.c.bf16 %v11843_v61, %v11836_v53  ;;  %v1491_v35 = vmul.f32 %v1484_v47, %v1449_v0  ;;  %v11864_v47 = vpop.f32.mrb[35].mxu1 }
 0x1e1   :  { %v10001_v7 = vpop.eup %10000  ;;  %v1474_v16 = vadd.f32 %v1467_v54, %v11616_v40  ;;  %v1451_v40 = vadd.f32 0.5, %v1444_v52  ;;  %15580 = vst [vmem:[#allocation89_spill] sm:$0xff] %v11864_v47 }
 0x1e2   :  { %15578 = vst [vmem:[#allocation87_spill] sm:$0xff] %v11849_v15  ;;  %9762 = vmatpush3.bf16.msra.mxu1 %v11849_v15  ;;  %v1485_v49 = vsub.f32 0.0, %v10001_v7  ;;  %v11855_v43 = vadd.f32 %v9997_v55, %v1491_v35  ;;  %v10003_v13 = vpop.eup %10002  ;;  %v11870_v35 = vpop.f32.mrb[36].mxu1 }
 0x1e3   :  { %10010 = vtanh.f32 %v1474_v16  ;;  %9763 = vmatprep.subr.bf16.mxu1 %v15512_v6  ;;  %v1445_v0 = vmul.f32 0.5, %v10003_v13  ;;  %v11880_v13 = vsel %vm35_vm1, 1.0, %v15509_v10 }
 0x1e4   :  { %v1492_v58 = vmul.f32 %v1485_v49, %v1450_v44  ;;  %15583 = vst [vmem:[#allocation92_spill] sm:$0xff] %v11880_v13 }
 0x1e5   :  { %v10005_v27 = vpop.eup %10004  ;;  %v1452_v16 = vadd.f32 0.5, %v1445_v0 }
 0x1e6   :  { %v11862_v48 = vadd.f32 %v10001_v7, %v1492_v58  ;;  %v1486_v60 = vsub.f32 0.0, %v10005_v27  ;;  %v10007_v38 = vpop.eup %10006  ;;  %v11875_v7 = vpop.f32.mrb[37].mxu1 }
 0x1e7   :  { %v1446_v44 = vmul.f32 0.5, %v10007_v38  ;;  %15582 = vst [vmem:[#allocation91_spill] sm:$0xff] %v11875_v7 }
 0x1e8   :  { %v11868_v55 = vpack.c.bf16 %v11862_v48, %v11855_v43  ;;  %v1493_v54 = vmul.f32 %v1486_v60, %v1451_v40  ;;  %v11883_v60 = vpop.f32.mrb[38].mxu1 }
 0x1e9   :  { %v10009_v42 = vpop.eup %10008  ;;  %v1453_v0 = vadd.f32 0.5, %v1446_v44 }
 0x1ea   :  { %15581 = vst [vmem:[#allocation90_spill] sm:$0xff] %v11868_v55  ;;  %9765 = vmatpush3.bf16.msra.mxu1 %v11868_v55  ;;  %v1487_v52 = vsub.f32 0.0, %v10009_v42  ;;  %v11873_v49 = vadd.f32 %v10005_v27, %v1493_v54  ;;  %v11888_v27 = vpop.f32.mrb[39].mxu1 }
 0x1eb   :  { %9766 = vmatprep.subr.bf16.mxu1 %v15512_v6  ;;  %15584 = vst [vmem:[#allocation93_spill] sm:$0xff] %v11888_v27  ;;  %v11894_v15 = vpop.f32.mrb[40].mxu1 }
 0x1ec   :  { %v1494_v58 = vmul.f32 %v1487_v52, %v1452_v16  ;;  %v11899_v52 = vpop.f32.mrb[41].mxu1 }
 0x1ed   :  { %v10011_v40 = vpop.eup %10010  ;;  %15587 = vst [vmem:[#allocation96_spill] sm:$0xff] %v11899_v52 }
 0x1ee   :  { %v11885_v38 = vadd.f32 %v10009_v42, %v1494_v58  ;;  %v1488_v55 = vsub.f32 %v11880_v13, %v10011_v40 }
 0x1f0   :  { %v11892_v54 = vpack.c.bf16 %v11885_v38, %v11873_v49  ;;  %v1495_v1 = vmul.f32 %v1488_v55, %v1453_v0  ;;  %v11910_v55 = vld [vmem:[%s15464_s2] sm:$0xff] }
 0x1f2   :  { %15585 = vst [vmem:[#allocation94_spill] sm:$0xff] %v11892_v54  ;;  %9768 = vmatpush3.bf16.msra.mxu1 %v11892_v54  ;;  %v11897_v16 = vadd.f32 %v10011_v40, %v1495_v1  ;;  %v11924_v40 = vld [vmem:[%s15464_s2 + $0x8] sm:$0xff]  ;;  %v15637_v54 = vld [vmem:[#allocation15_spill] sm:$0xff] }
 0x1f3   :  { %8543 = vmatprep.subr.mxu1 %v15509_v10  ;;  %v11902_v42 = vpop.f32.mrb[42].mxu1 }
 0x1f4   :  { %15586 = vst [vmem:[#allocation95_spill] sm:$0xff] %v11897_v16  ;;  %15588 = vst [vmem:[#allocation97_spill] sm:$0xff] %v11902_v42  ;;  %v11905_v44 = vpop.f32.mrb[43].mxu1 }
 0x1f5   :  { %15589 = vst [vmem:[#allocation98_spill] sm:$0xff] %v11905_v44  ;;  %v11937_v44 = vld [vmem:[%s15464_s2 + $0x10] sm:$0xff] }
 0x1f6   :  { %8544 = vmatpush3.msra.mxu1 %v11897_v16 }
 0x1f7   :  { %8546 = vmatmul.mubr.msk.f32.vlgmr.msra.gmra.mrb[84].mxu1 %vm141_vm0, %v11910_v55  ;;  %9778 = vmatprep.subr.bf16.mxu1 %v15512_v6  ;;  %v11917_v1 = vpop.f32.mrb[44].mxu1 }
 0x1f8   :  { %8548 = vmatprep.mubr.msk.f32.mxu1 %vm10826_vm2, %v15509_v10  ;;  %15590 = vst [vmem:[#allocation99_spill] sm:$0xff] %v11917_v1  ;;  %v11919_v58 = vpop.f32.mrb[45].mxu1 }
 0x1f9   :  { %15591 = vst [vmem:[#allocation100_spill] sm:$0xff] %v11919_v58 }
 0x1fb   :  { %8549 = vmatmul.mubr.msk.f32.gmra.mrb[86].mxu1 %vm141_vm0, %v11924_v40  ;;  %v11930_v0 = vpop.f32.mrb[46].mxu1 }
 0x1fc   :  { %8551 = vmatprep.mubr.msk.f32.mxu1 %vm10826_vm2, %v15509_v10  ;;  %15592 = vst [vmem:[#allocation101_spill] sm:$0xff] %v11930_v0  ;;  %v11932_v13 = vpop.f32.mrb[47].mxu1 }
 0x1fd   :  { %15593 = vst [vmem:[#allocation102_spill] sm:$0xff] %v11932_v13 }
 0x1ff   :  { %8552 = vmatmul.mubr.msk.f32.gmra.mrb[88].mxu1 %vm141_vm0, %v11937_v44  ;;  %v11943_v58 = vpop.f32.mrb[48].mxu1 }
 0x200   :  { %8554 = vmatprep.mubr.msk.f32.mxu1 %vm10826_vm2, %v15509_v10  ;;  %15594 = vst [vmem:[#allocation103_spill] sm:$0xff] %v11943_v58  ;;  %v11945_v1 = vpop.f32.mrb[49].mxu1 }
 0x201   :  { %15595 = vst [vmem:[#allocation104_spill] sm:$0xff] %v11945_v1 }
 0x203   :  { %8555 = vmatmul.mubr.msk.f32.gmra.mrb[90].mxu1 %vm141_vm0, %v11238_v19  ;;  %v11951_v13 = vpop.f32.mrb[50].mxu1 }
 0x204   :  { %8557 = vmatprep.mubr.msk.f32.mxu1 %vm10826_vm2, %v15509_v10  ;;  %15596 = vst [vmem:[#allocation105_spill] sm:$0xff] %v11951_v13  ;;  %v11953_v0 = vpop.f32.mrb[51].mxu1  ;;  %v15636_v13 = vld [vmem:[#allocation14_spill] sm:$0xff] }
 0x205   :  { %15597 = vst [vmem:[#allocation106_spill] sm:$0xff] %v11953_v0 }
 0x207   :  { %8558 = vmatmul.mubr.msk.f32.gmra.mrb[92].mxu1 %vm141_vm0, %v11259_v26  ;;  %v11959_v42 = vpop.f32.mrb[52].mxu1 }
 0x208   :  { %8560 = vmatprep.mubr.msk.f32.mxu1 %vm10826_vm2, %v15509_v10  ;;  %15598 = vst [vmem:[#allocation107_spill] sm:$0xff] %v11959_v42  ;;  %v11961_v58 = vpop.f32.mrb[53].mxu1  ;;  %v15635_v42 = vld [vmem:[#allocation13_spill] sm:$0xff] }
 0x209   :  { %15599 = vst [vmem:[#allocation108_spill] sm:$0xff] %v11961_v58 }
 0x20b   :  { %8561 = vmatmul.mubr.msk.f32.gmra.mrb[94].mxu1 %vm141_vm0, %v11274_v30  ;;  %v11967_v19 = vpop.f32.mrb[54].mxu1 }
 0x20c   :  { %8563 = vmatprep.mubr.msk.f32.mxu1 %vm10826_vm2, %v15509_v10  ;;  %15600 = vst [vmem:[#allocation109_spill] sm:$0xff] %v11967_v19  ;;  %v11969_v1 = vpop.f32.mrb[55].mxu1  ;;  %v15634_v19 = vld [vmem:[#allocation12_spill] sm:$0xff] }
 0x20d   :  { %15601 = vst [vmem:[#allocation110_spill] sm:$0xff] %v11969_v1 }
 0x20f   :  { %8564 = vmatmul.mubr.msk.f32.gmra.mrb[96].mxu1 %vm141_vm0, %v11286_v31  ;;  %v11975_v26 = vpop.f32.mrb[56].mxu1 }
 0x210   :  { %8566 = vmatprep.mubr.msk.f32.mxu1 %vm10826_vm2, %v15509_v10  ;;  %15602 = vst [vmem:[#allocation111_spill] sm:$0xff] %v11975_v26  ;;  %v11977_v0 = vpop.f32.mrb[57].mxu1 }
 0x211   :  { %15603 = vst [vmem:[#allocation112_spill] sm:$0xff] %v11977_v0 }
 0x213   :  { %8567 = vmatmul.mubr.msk.f32.gmra.mrb[98].mxu1 %vm141_vm0, %v11298_v32  ;;  %v11983_v30 = vpop.f32.mrb[58].mxu1 }
 0x214   :  { %8569 = vmatprep.mubr.msk.f32.mxu1 %vm10826_vm2, %v15509_v10  ;;  %15604 = vst [vmem:[#allocation113_spill] sm:$0xff] %v11983_v30  ;;  %v11985_v58 = vpop.f32.mrb[59].mxu1 }
 0x215   :  { %15605 = vst [vmem:[#allocation114_spill] sm:$0xff] %v11985_v58 }
 0x217   :  { %8570 = vmatmul.mubr.msk.f32.gmra.mrb[100].mxu1 %vm141_vm0, %v11310_v33  ;;  %v11991_v31 = vpop.f32.mrb[60].mxu1 }
 0x218   :  { %8572 = vmatprep.mubr.msk.f32.mxu1 %vm10826_vm2, %v15509_v10  ;;  %15606 = vst [vmem:[#allocation115_spill] sm:$0xff] %v11991_v31  ;;  %v11993_v1 = vpop.f32.mrb[61].mxu1 }
 0x219   :  { %15607 = vst [vmem:[#allocation116_spill] sm:$0xff] %v11993_v1 }
 0x21b   :  { %8573 = vmatmul.mubr.msk.f32.gmra.mrb[102].mxu1 %vm141_vm0, %v11322_v34  ;;  %v11999_v32 = vpop.f32.mrb[62].mxu1 }
 0x21c   :  { %8575 = vmatprep.mubr.msk.f32.mxu1 %vm10826_vm2, %v15509_v10  ;;  %15608 = vst [vmem:[#allocation117_spill] sm:$0xff] %v11999_v32  ;;  %v12001_v0 = vpop.f32.mrb[63].mxu1  ;;  %v15633_v32 = vld [vmem:[#allocation11_spill] sm:$0xff] }
 0x21d   :  { %15609 = vst [vmem:[#allocation118_spill] sm:$0xff] %v12001_v0 }
 0x21f   :  { %8576 = vmatmul.mubr.msk.f32.gmra.mrb[104].mxu1 %vm141_vm0, %v11334_v36  ;;  %v12007_v33 = vpop.f32.mrb[64].mxu1 }
 0x220   :  { %8578 = vmatprep.mubr.msk.f32.mxu1 %vm10826_vm2, %v15509_v10  ;;  %15610 = vst [vmem:[#allocation119_spill] sm:$0xff] %v12007_v33  ;;  %v12009_v58 = vpop.f32.mrb[65].mxu1 }
 0x221   :  { %15611 = vst [vmem:[#allocation120_spill] sm:$0xff] %v12009_v58 }
 0x223   :  { %8579 = vmatmul.mubr.msk.f32.gmra.mrb[106].mxu1 %vm141_vm0, %v11346_v37  ;;  %v12015_v34 = vpop.f32.mrb[66].mxu1 }
 0x224   :  { %8581 = vmatprep.mubr.msk.f32.mxu1 %vm10826_vm2, %v15509_v10  ;;  %15612 = vst [vmem:[#allocation121_spill] sm:$0xff] %v12015_v34  ;;  %v12017_v1 = vpop.f32.mrb[67].mxu1 }
 0x225   :  { %15613 = vst [vmem:[#allocation122_spill] sm:$0xff] %v12017_v1 }
 0x227   :  { %8582 = vmatmul.mubr.msk.f32.gmra.mrb[108].mxu1 %vm141_vm0, %v11362_v41  ;;  %v12023_v36 = vpop.f32.mrb[68].mxu1 }
 0x228   :  { %8584 = vmatprep.mubr.msk.f32.mxu1 %vm10826_vm2, %v15509_v10  ;;  %15614 = vst [vmem:[#allocation123_spill] sm:$0xff] %v12023_v36  ;;  %v12025_v0 = vpop.f32.mrb[69].mxu1 }
 0x229   :  { %15615 = vst [vmem:[#allocation124_spill] sm:$0xff] %v12025_v0 }
 0x22b   :  { %8585 = vmatmul.mubr.msk.f32.gmra.mrb[110].mxu1 %vm141_vm0, %v11378_v63  ;;  %v12031_v37 = vpop.f32.mrb[70].mxu1 }
 0x22c   :  { %8587 = vmatprep.mubr.msk.f32.mxu1 %vm10826_vm2, %v15509_v10  ;;  %15616 = vst [vmem:[#allocation125_spill] sm:$0xff] %v12031_v37  ;;  %v12033_v58 = vpop.f32.mrb[71].mxu1 }
 0x22d   :  { %15617 = vst [vmem:[#allocation126_spill] sm:$0xff] %v12033_v58 }
 0x22f   :  { %8588 = vmatmul.mubr.msk.f32.gmra.mrb[112].mxu1 %vm141_vm0, %v11394_v4  ;;  %v12039_v41 = vpop.f32.mrb[72].mxu1 }
 0x230   :  { %8590 = vmatprep.mubr.msk.f32.mxu1 %vm10826_vm2, %v15509_v10  ;;  %15618 = vst [vmem:[#allocation127_spill] sm:$0xff] %v12039_v41  ;;  %v12041_v1 = vpop.f32.mrb[73].mxu1  ;;  %v15631_v41 = vld [vmem:[#allocation9_spill] sm:$0xff] }
 0x231   :  { %15619 = vst [vmem:[#allocation128_spill] sm:$0xff] %v12041_v1 }
 0x233   :  { %8591 = vmatmul.mubr.msk.f32.gmra.mrb[114].mxu1 %vm141_vm0, %v11410_v8  ;;  %v12047_v63 = vpop.f32.mrb[74].mxu1 }
 0x234   :  { %8593 = vmatprep.mubr.msk.f32.mxu1 %vm10826_vm2, %v15509_v10  ;;  %15620 = vst [vmem:[#allocation129_spill] sm:$0xff] %v12047_v63  ;;  %v12049_v0 = vpop.f32.mrb[75].mxu1 }
 0x235   :  { %15621 = vst [vmem:[#allocation130_spill] sm:$0xff] %v12049_v0 }
 0x237   :  { %8594 = vmatmul.mubr.msk.f32.gmra.mrb[116].mxu1 %vm141_vm0, %v11426_v11  ;;  %v12055_v4 = vpop.f32.mrb[76].mxu1 }
 0x238   :  { %8596 = vmatprep.mubr.msk.f32.mxu1 %vm10826_vm2, %v15509_v10  ;;  %15622 = vst [vmem:[#allocation131_spill] sm:$0xff] %v12055_v4  ;;  %v12057_v58 = vpop.f32.mrb[77].mxu1 }
 0x239   :  { %15623 = vst [vmem:[#allocation132_spill] sm:$0xff] %v12057_v58 }
 0x23b   :  { %8597 = vmatmul.mubr.msk.f32.gmra.mrb[118].mxu1 %vm141_vm0, %v11442_v14  ;;  %v12063_v8 = vpop.f32.mrb[78].mxu1 }
 0x23c   :  { %8599 = vmatprep.mubr.msk.f32.mxu1 %vm10826_vm2, %v15509_v10  ;;  %15624 = vst [vmem:[#allocation133_spill] sm:$0xff] %v12063_v8  ;;  %v12065_v1 = vpop.f32.mrb[79].mxu1  ;;  %v15630_v8 = vld [vmem:[#allocation8_spill] sm:$0xff] }
 0x23d   :  { %15625 = vst [vmem:[#allocation134_spill] sm:$0xff] %v12065_v1 }
 0x23f   :  { %8600 = vmatmul.mubr.msk.f32.gmra.mrb[120].mxu1 %vm141_vm0, %v11458_v17  ;;  %v12071_v11 = vpop.f32.mrb[80].mxu1 }
 0x240   :  { %8602 = vmatprep.mubr.msk.f32.mxu1 %vm10826_vm2, %v15509_v10  ;;  %15626 = vst [vmem:[#allocation135_spill] sm:$0xff] %v12071_v11  ;;  %v12073_v0 = vpop.f32.mrb[81].mxu1 }
 0x241   :  { %15627 = vst [vmem:[#allocation136_spill] sm:$0xff] %v12073_v0 }
 0x243   :  { %8603 = vmatmul.mubr.msk.f32.gmra.mrb[122].mxu1 %vm141_vm0, %v11474_v21  ;;  %v12079_v14 = vpop.f32.mrb[82].mxu1 }
 0x244   :  { %8605 = vmatprep.mubr.msk.f32.mxu1 %vm10826_vm2, %v15509_v10  ;;  %15628 = vst [vmem:[#allocation137_spill] sm:$0xff] %v12079_v14  ;;  %v12081_v58 = vpop.f32.mrb[83].mxu1 }
 0x245   :  { %15629 = vst [vmem:[#allocation138_spill] sm:$0xff] %v12081_v58  ;;  %v15632_v58 = vld [vmem:[#allocation10_spill] sm:$0xff] }
 0x247   :  { %8606 = vmatmul.mubr.msk.f32.gmra.mrb[124].mxu1 %vm141_vm0, %v11490_v24 }
 0x248   :  { %8699 = vmatprep.mubr.msk.f32.mxu1 %vm10826_vm2, %v15509_v10 }
 0x2ca   :  { %v1576_v17 = vpop.f32.mrb[84].mxu1 }
 0x2cb   :  { %v1687_v1 = vadd.f32 %v1576_v17, %v11352_v39  ;;  %v8547_v0 = vpop.f32.mrb[85].mxu1 }
 0x2ce   :  { %v1581_v11 = vpop.f32.mrb[86].mxu1 }
 0x2cf   :  { %v1688_v21 = vadd.f32 %v1581_v11, %v15630_v8  ;;  %v8550_v4 = vpop.f32.mrb[87].mxu1 }
 0x2d2   :  { %v1586_v63 = vpop.f32.mrb[88].mxu1 }
 0x2d3   :  { %v1689_v37 = vadd.f32 %v1586_v63, %v15631_v41  ;;  %v8553_v14 = vpop.f32.mrb[89].mxu1 }
 0x2d6   :  { %v1591_v36 = vpop.f32.mrb[90].mxu1 }
 0x2d7   :  { %v1690_v34 = vadd.f32 %v1591_v36, %v15632_v58  ;;  %v8556_v33 = vpop.f32.mrb[91].mxu1  ;;  %v1694_v36 = vmul.f32 0.5, %v1687_v1 }
 0x2d9   :  { %10012 = vtanh.f32 %v1694_v36 }
 0x2da   :  { %v1596_v24 = vpop.f32.mrb[92].mxu1 }
 0x2db   :  { %v1691_v31 = vadd.f32 %v1596_v24, %v15633_v32  ;;  %v8559_v30 = vpop.f32.mrb[93].mxu1  ;;  %v1695_v32 = vmul.f32 0.5, %v1688_v21  ;;  %v15641_v21 = vld [vmem:[#allocation19_spill] sm:$0xff] }
 0x2dc   :  { %v15638_v30 = vld [vmem:[#allocation16_spill] sm:$0xff] }
 0x2dd   :  { %10014 = vtanh.f32 %v1695_v32 }
 0x2de   :  { %v1601_v26 = vpop.f32.mrb[94].mxu1 }
 0x2df   :  { %v1692_v39 = vadd.f32 %v1601_v26, %v15634_v19  ;;  %v8562_v0 = vpop.f32.mrb[95].mxu1  ;;  %v15639_v26 = vld [vmem:[#allocation17_spill] sm:$0xff] }
 0x2e2   :  { %v1606_v17 = vpop.f32.mrb[96].mxu1 }
 0x2e3   :  { %v1693_v8 = vadd.f32 %v1606_v17, %v15635_v42  ;;  %v8565_v4 = vpop.f32.mrb[97].mxu1  ;;  %v1696_v17 = vmul.f32 0.5, %v1689_v37 }
 0x2e5   :  { %10016 = vtanh.f32 %v1696_v17 }
 0x2e6   :  { %v1611_v11 = vpop.f32.mrb[98].mxu1 }
 0x2e7   :  { %v1729_v41 = vadd.f32 %v1611_v11, %v15636_v13  ;;  %v8568_v63 = vpop.f32.mrb[99].mxu1  ;;  %v1697_v13 = vmul.f32 0.5, %v1690_v34  ;;  %v15640_v11 = vld [vmem:[#allocation18_spill] sm:$0xff] }
 0x2e9   :  { %10018 = vtanh.f32 %v1697_v13  ;;  %v1736_v36 = vmul.f32 0.5, %v1729_v41 }
 0x2ea   :  { %v1616_v14 = vpop.f32.mrb[100].mxu1 }
 0x2eb   :  { %v1730_v58 = vadd.f32 %v1616_v14, %v15637_v54  ;;  %v8571_v33 = vpop.f32.mrb[101].mxu1  ;;  %v10013_v54 = vpop.eup %10012 }
 0x2ec   :  { %v10015_v33 = vpop.eup %10014  ;;  %v1708_v32 = vmul.f32 0.5, %v10013_v54 }
 0x2ee   :  { %v1621_v52 = vpop.f32.mrb[102].mxu1  ;;  %v1715_v17 = vadd.f32 0.5, %v1708_v32  ;;  %v15644_v32 = vld [vmem:[#allocation22_spill] sm:$0xff] }
 0x2ef   :  { %v1731_v24 = vadd.f32 %v1621_v52, %v15638_v30  ;;  %v8574_v27 = vpop.f32.mrb[103].mxu1 }
 0x2f0   :  { %v1698_v27 = vmul.f32 0.5, %v1691_v31  ;;  %v1700_v31 = vmul.f32 0.5, %v1693_v8 }
 0x2f1   :  { %v1738_v54 = vmul.f32 0.5, %v1731_v24 }
 0x2f2   :  { %v1626_v19 = vpop.f32.mrb[104].mxu1  ;;  %10020 = vtanh.f32 %v1698_v27 }
 0x2f3   :  { %v1732_v42 = vadd.f32 %v1626_v19, %v15639_v26  ;;  %v8577_v0 = vpop.f32.mrb[105].mxu1  ;;  %v1699_v19 = vmul.f32 0.5, %v1692_v39  ;;  %v15642_v26 = vld [vmem:[#allocation20_spill] sm:$0xff]  ;;  %10022 = vtanh.f32 %v1736_v36  ;;  %v15643_v39 = vld [vmem:[#allocation21_spill] sm:$0xff] }
 0x2f4   :  { %v1709_v0 = vmul.f32 0.5, %v10015_v33 }
 0x2f5   :  { %10024 = vtanh.f32 %v1699_v19  ;;  %v1739_v36 = vmul.f32 0.5, %v1732_v42 }
 0x2f6   :  { %v1631_v4 = vpop.f32.mrb[106].mxu1 }
 0x2f7   :  { %v1733_v63 = vadd.f32 %v1631_v4, %v15640_v11  ;;  %v8580_v7 = vpop.f32.mrb[107].mxu1  ;;  %v10017_v4 = vpop.eup %10016 }
 0x2f8   :  { %v1737_v7 = vmul.f32 0.5, %v1730_v58  ;;  %v10019_v41 = vpop.eup %10018 }
 0x2f9   :  { %v1711_v58 = vmul.f32 0.5, %v10019_v41 }
 0x2fa   :  { %v1636_v1 = vpop.f32.mrb[108].mxu1  ;;  %10026 = vtanh.f32 %v1737_v7 }
 0x2fb   :  { %v1734_v14 = vadd.f32 %v1636_v1, %v15641_v21  ;;  %v8583_v52 = vpop.f32.mrb[109].mxu1  ;;  %v1716_v21 = vadd.f32 0.5, %v1709_v0 }
 0x2fe   :  { %v1641_v30 = vpop.f32.mrb[110].mxu1 }
 0x2ff   :  { %v12101_v37 = vadd.f32 %v1641_v30, %v15642_v26  ;;  %v8586_v34 = vpop.f32.mrb[111].mxu1  ;;  %v1710_v30 = vmul.f32 0.5, %v10017_v4  ;;  %v1740_v4 = vmul.f32 0.5, %v1733_v63 }
 0x301   :  { %v1717_v34 = vadd.f32 0.5, %v1710_v30 }
 0x302   :  { %v1646_v13 = vpop.f32.mrb[112].mxu1 }
 0x303   :  { %v1771_v11 = vmul.f32 %v1715_v17, %v1646_v13  ;;  %v8589_v1 = vpop.f32.mrb[113].mxu1  ;;  %v10021_v17 = vpop.eup %10020  ;;  %v1718_v13 = vadd.f32 0.5, %v1711_v58 }
 0x304   :  { %v10023_v0 = vpop.eup %10022  ;;  %v15645_v1 = vld [vmem:[#allocation23_spill] sm:$0xff] }
 0x305   :  { %v1778_v52 = vadd.f32 %v1771_v11, %v15643_v39  ;;  %v10025_v11 = vpop.eup %10024  ;;  %v1712_v39 = vmul.f32 0.5, %v10021_v17 }
 0x306   :  { %v1651_v26 = vpop.f32.mrb[114].mxu1  ;;  %v1713_v30 = vmul.f32 0.5, %v10025_v11  ;;  %v1742_v11 = vmul.f32 0.5, %v12101_v37 }
 0x307   :  { %10028 = vtanh.f32 %v1778_v52  ;;  %v1772_v27 = vmul.f32 %v1716_v21, %v1651_v26  ;;  %v8592_v33 = vpop.f32.mrb[115].mxu1 }
 0x308   :  { %10030 = vtanh.f32 %v1700_v31  ;;  %v1750_v31 = vmul.f32 0.5, %v10023_v0  ;;  %v15646_v33 = vld [vmem:[#allocation24_spill] sm:$0xff] }
 0x309   :  { %10032 = vtanh.f32 %v1738_v54  ;;  %v1779_v19 = vadd.f32 %v1772_v27, %v15644_v32  ;;  %v10027_v54 = vpop.eup %10026  ;;  %v1741_v27 = vmul.f32 0.5, %v1734_v14  ;;  %v15647_v14 = vld [vmem:[#allocation25_spill] sm:$0xff] }
 0x30a   :  { %v1656_v8 = vpop.f32.mrb[116].mxu1 }
 0x30b   :  { %10034 = vtanh.f32 %v1779_v19  ;;  %v1773_v7 = vmul.f32 %v1717_v34, %v1656_v8  ;;  %v8595_v24 = vpop.f32.mrb[117].mxu1  ;;  %v1719_v19 = vadd.f32 0.5, %v1712_v39  ;;  %v1757_v34 = vadd.f32 0.5, %v1750_v31 }
 0x30c   :  { %10036 = vtanh.f32 %v1739_v36  ;;  %v1751_v36 = vmul.f32 0.5, %v10027_v54  ;;  %v1720_v24 = vadd.f32 0.5, %v1713_v30 }
 0x30d   :  { %v1780_v21 = vadd.f32 %v1773_v7, %v15645_v1 }
 0x30e   :  { %v1661_v41 = vpop.f32.mrb[118].mxu1  ;;  %v1758_v39 = vadd.f32 0.5, %v1751_v36 }
 0x30f   :  { %10038 = vtanh.f32 %v1780_v21  ;;  %v1774_v42 = vmul.f32 %v1718_v13, %v1661_v41  ;;  %v8598_v52 = vpop.f32.mrb[119].mxu1 }
 0x310   :  { %10040 = vtanh.f32 %v1740_v4 }
 0x311   :  { %v10029_v26 = vpop.eup %10028  ;;  %v1781_v32 = vadd.f32 %v1774_v42, %v15646_v33 }
 0x312   :  { %v10031_v58 = vpop.eup %10030  ;;  %v1666_v63 = vpop.f32.mrb[120].mxu1  ;;  %v1792_v8 = vsub.f32 %v11836_v53, %v10029_v26 }
 0x313   :  { %v10033_v17 = vpop.eup %10032  ;;  %10042 = vtanh.f32 %v1781_v32  ;;  %v1775_v0 = vmul.f32 %v1719_v19, %v1666_v63  ;;  %v8601_v7 = vpop.f32.mrb[121].mxu1  ;;  %v1714_v21 = vmul.f32 0.5, %v10031_v58 }
 0x314   :  { %v1799_v13 = vmul.f32 %v1792_v8, %v1757_v34  ;;  %10044 = vtanh.f32 %v1741_v27  ;;  %v1752_v41 = vmul.f32 0.5, %v10033_v17  ;;  %v15648_v27 = vld [vmem:[#allocation26_spill] sm:$0xff] }
 0x315   :  { %v10035_v1 = vpop.eup %10034  ;;  %v1782_v4 = vadd.f32 %v1775_v0, %v15647_v14  ;;  %v1721_v37 = vadd.f32 0.5, %v1714_v21 }
 0x316   :  { %v1671_v31 = vpop.f32.mrb[122].mxu1  ;;  %v1793_v54 = vsub.f32 %v11843_v61, %v10035_v1  ;;  %v12111_v42 = vadd.f32 %v10029_v26, %v1799_v13  ;;  %v10037_v53 = vpop.eup %10036  ;;  %v1759_v34 = vadd.f32 0.5, %v1752_v41 }
 0x317   :  { %10046 = vtanh.f32 %v1782_v4  ;;  %v1776_v52 = vmul.f32 %v1720_v24, %v1671_v31  ;;  %v8604_v33 = vpop.f32.mrb[123].mxu1  ;;  %v1753_v63 = vmul.f32 0.5, %v10037_v53 }
 0x318   :  { %v1800_v30 = vmul.f32 %v1793_v54, %v1758_v39  ;;  %10048 = vtanh.f32 %v1742_v11 }
 0x319   :  { %v10039_v32 = vpop.eup %10038  ;;  %v1783_v19 = vadd.f32 %v1776_v52, %v15648_v27  ;;  %v1760_v11 = vadd.f32 0.5, %v1753_v63 }
 0x31a   :  { %v1676_v58 = vpop.f32.mrb[124].mxu1  ;;  %v12114_v36 = vadd.f32 %v10035_v1, %v1800_v30  ;;  %v1794_v8 = vsub.f32 %v11855_v43, %v10039_v32  ;;  %v10041_v61 = vpop.eup %10040 }
 0x31b   :  { %10050 = vtanh.f32 %v1783_v19  ;;  %v1777_v26 = vmul.f32 %v1721_v37, %v1676_v58  ;;  %v8607_v17 = vpop.f32.mrb[125].mxu1  ;;  %v1754_v14 = vmul.f32 0.5, %v10041_v61 }
 0x31c   :  { %v12119_v0 = vpack.c.bf16 %v12114_v36, %v12111_v42  ;;  %v1801_v7 = vmul.f32 %v1794_v8, %v1759_v34  ;;  %v12176_v17 = vld [vmem:[%s15464_s2 + $0x20] sm:$0xff] }
 0x31d   :  { %v10043_v24 = vpop.eup %10042  ;;  %v1784_v13 = vadd.f32 %v1777_v26, %v11620_v28  ;;  %v1761_v41 = vadd.f32 0.5, %v1754_v14  ;;  %v12221_v14 = vld [vmem:[%s15464_s2 + $0x48] sm:$0xff] }
 0x31e   :  { %15649 = vst [vmem:[#allocation8_spill] sm:$0xff] %v12119_v0  ;;  %9771 = vmatpush3.bf16.msra.mxu0 %v12119_v0  ;;  %v1795_v1 = vsub.f32 %v11862_v48, %v10043_v24  ;;  %v12124_v4 = vadd.f32 %v10039_v32, %v1801_v7  ;;  %v10045_v43 = vpop.eup %10044  ;;  %v12185_v7 = vld [vmem:[%s15464_s2 + $0x28] sm:$0xff] }
 0x31f   :  { %10052 = vtanh.f32 %v1784_v13  ;;  %9772 = vmatprep.subr.bf16.mxu0 %v15512_v6  ;;  %v1755_v31 = vmul.f32 0.5, %v10045_v43  ;;  %v12203_v13 = vld [vmem:[%s15464_s2 + $0x38] sm:$0xff] }
 0x320   :  { %v1802_v21 = vmul.f32 %v1795_v1, %v1760_v11  ;;  %v12212_v11 = vld [vmem:[%s15464_s2 + $0x40] sm:$0xff]  ;;  %v12230_v1 = vld [vmem:[%s15464_s2 + $0x50] sm:$0xff]  ;;  %v12239_v43 = vld [vmem:[%s15464_s2 + $0x58] sm:$0xff] }
 0x321   :  { %v10047_v39 = vpop.eup %10046  ;;  %v1762_v30 = vadd.f32 0.5, %v1755_v31  ;;  %v12275_v31 = vld [vmem:[%s15464_s2 + $0x78] sm:$0xff] }
 0x322   :  { %v12127_v54 = vadd.f32 %v10043_v24, %v1802_v21  ;;  %v1796_v28 = vsub.f32 %v11873_v49, %v10047_v39  ;;  %v10049_v53 = vpop.eup %10048  ;;  %v12194_v24 = vld [vmem:[%s15464_s2 + $0x30] sm:$0xff]  ;;  %v12248_v21 = vld [vmem:[%s15464_s2 + $0x60] sm:$0xff] }
 0x323   :  { %v1756_v32 = vmul.f32 0.5, %v10049_v53  ;;  %v12293_v53 = vld [vmem:[%s15464_s2 + $0x88] sm:$0xff] }
 0x324   :  { %v12132_v52 = vpack.c.bf16 %v12127_v54, %v12124_v4  ;;  %v1803_v48 = vmul.f32 %v1796_v28, %v1761_v41  ;;  %v12266_v41 = vld [vmem:[%s15464_s2 + $0x70] sm:$0xff]  ;;  %v12284_v28 = vld [vmem:[%s15464_s2 + $0x80] sm:$0xff]  ;;  %15652 = vst [vmem:[#allocation11_spill] sm:$0xff] %v12293_v53 }
 0x325   :  { %v10051_v33 = vpop.eup %10050  ;;  %v1763_v49 = vadd.f32 0.5, %v1756_v32 }
 0x326   :  { %15650 = vst [vmem:[#allocation9_spill] sm:$0xff] %v12132_v52  ;;  %9774 = vmatpush3.bf16.msra.mxu0 %v12132_v52  ;;  %v1797_v27 = vsub.f32 %v11885_v38, %v10051_v33  ;;  %v12136_v19 = vadd.f32 %v10047_v39, %v1803_v48  ;;  %v12167_v38 = vld [vmem:[%s15464_s2 + $0x18] sm:$0xff]  ;;  %v12257_v39 = vld [vmem:[%s15464_s2 + $0x68] sm:$0xff]  ;;  %v12302_v48 = vld [vmem:[%s15464_s2 + $0x90] sm:$0xff] }
 0x327   :  { %9775 = vmatprep.subr.bf16.mxu0 %v15512_v6  ;;  %15653 = vst [vmem:[#allocation12_spill] sm:$0xff] %v12302_v48 }
 0x328   :  { %v1804_v37 = vmul.f32 %v1797_v27, %v1762_v30  ;;  %v12320_v30 = vld [vmem:[%s15464_s2 + $0xa0] sm:$0xff] }
 0x329   :  { %v10053_v34 = vpop.eup %10052  ;;  %15655 = vst [vmem:[#allocation14_spill] sm:$0xff] %v12320_v30 }
 0x32a   :  { %v12139_v63 = vadd.f32 %v10051_v33, %v1804_v37  ;;  %v1798_v58 = vsub.f32 %v11897_v16, %v10053_v34  ;;  %v12311_v33 = vld [vmem:[%s15464_s2 + $0x98] sm:$0xff] }
 0x32b   :  { %15654 = vst [vmem:[#allocation13_spill] sm:$0xff] %v12311_v33 }
 0x32c   :  { %v12144_v8 = vpack.c.bf16 %v12139_v63, %v12136_v19  ;;  %v1805_v61 = vmul.f32 %v1798_v58, %v1763_v49 }
 0x32e   :  { %15651 = vst [vmem:[#allocation10_spill] sm:$0xff] %v12144_v8  ;;  %9777 = vmatpush3.bf16.msra.mxu0 %v12144_v8  ;;  %v12147_v26 = vadd.f32 %v10053_v34, %v1805_v61 }
 0x32f   :  { %8620 = vmatprep.subr.mxu0 %v15509_v10 }
 0x332   :  { %8621 = vmatpush3.msra.mxu0 %v12147_v26 }
 0x333   :  { %8623 = vmatmul.mubr.msk.f32.vlgmr.msra.gmra.mrb[126].mxu0 %vm141_vm0, %v11910_v55  ;;  %9787 = vmatprep.subr.bf16.mxu0 %v15512_v6 }
 0x334   :  { %8625 = vmatprep.mubr.msk.f32.mxu0 %vm10826_vm2, %v15509_v10 }
 0x337   :  { %8626 = vmatmul.mubr.msk.f32.gmra.mrb[128].mxu0 %vm141_vm0, %v11924_v40 }
 0x338   :  { %8628 = vmatprep.mubr.msk.f32.mxu0 %vm10826_vm2, %v15509_v10 }
 0x33b   :  { %8629 = vmatmul.mubr.msk.f32.gmra.mrb[130].mxu0 %vm141_vm0, %v11937_v44 }
 0x33c   :  { %8631 = vmatprep.mubr.msk.f32.mxu0 %vm10826_vm2, %v15509_v10 }
 0x33f   :  { %8632 = vmatmul.mubr.msk.f32.gmra.mrb[132].mxu0 %vm141_vm0, %v12167_v38 }
 0x340   :  { %8634 = vmatprep.mubr.msk.f32.mxu0 %vm10826_vm2, %v15509_v10 }
 0x343   :  { %8635 = vmatmul.mubr.msk.f32.gmra.mrb[134].mxu0 %vm141_vm0, %v12176_v17 }
 0x344   :  { %8637 = vmatprep.mubr.msk.f32.mxu0 %vm10826_vm2, %v15509_v10 }
 0x347   :  { %8638 = vmatmul.mubr.msk.f32.gmra.mrb[136].mxu0 %vm141_vm0, %v12185_v7 }
 0x348   :  { %8640 = vmatprep.mubr.msk.f32.mxu0 %vm10826_vm2, %v15509_v10 }
 0x34b   :  { %8641 = vmatmul.mubr.msk.f32.gmra.mrb[138].mxu0 %vm141_vm0, %v12194_v24 }
 0x34c   :  { %8643 = vmatprep.mubr.msk.f32.mxu0 %vm10826_vm2, %v15509_v10 }
 0x34f   :  { %8644 = vmatmul.mubr.msk.f32.gmra.mrb[140].mxu0 %vm141_vm0, %v12203_v13 }
 0x350   :  { %8646 = vmatprep.mubr.msk.f32.mxu0 %vm10826_vm2, %v15509_v10 }
 0x353   :  { %8647 = vmatmul.mubr.msk.f32.gmra.mrb[142].mxu0 %vm141_vm0, %v12212_v11 }
 0x354   :  { %8649 = vmatprep.mubr.msk.f32.mxu0 %vm10826_vm2, %v15509_v10 }
 0x357   :  { %8650 = vmatmul.mubr.msk.f32.gmra.mrb[144].mxu0 %vm141_vm0, %v12221_v14 }
 0x358   :  { %8652 = vmatprep.mubr.msk.f32.mxu0 %vm10826_vm2, %v15509_v10 }
 0x35b   :  { %8653 = vmatmul.mubr.msk.f32.gmra.mrb[146].mxu0 %vm141_vm0, %v12230_v1 }
 0x35c   :  { %8655 = vmatprep.mubr.msk.f32.mxu0 %vm10826_vm2, %v15509_v10 }
 0x35f   :  { %8656 = vmatmul.mubr.msk.f32.gmra.mrb[148].mxu0 %vm141_vm0, %v12239_v43 }
 0x360   :  { %8658 = vmatprep.mubr.msk.f32.mxu0 %vm10826_vm2, %v15509_v10 }
 0x363   :  { %8659 = vmatmul.mubr.msk.f32.gmra.mrb[150].mxu0 %vm141_vm0, %v12248_v21 }
 0x364   :  { %8661 = vmatprep.mubr.msk.f32.mxu0 %vm10826_vm2, %v15509_v10 }
 0x367   :  { %8662 = vmatmul.mubr.msk.f32.gmra.mrb[152].mxu0 %vm141_vm0, %v12257_v39 }
 0x368   :  { %8664 = vmatprep.mubr.msk.f32.mxu0 %vm10826_vm2, %v15509_v10 }
 0x36b   :  { %8665 = vmatmul.mubr.msk.f32.gmra.mrb[154].mxu0 %vm141_vm0, %v12266_v41 }
 0x36c   :  { %8667 = vmatprep.mubr.msk.f32.mxu0 %vm10826_vm2, %v15509_v10 }
 0x36f   :  { %8668 = vmatmul.mubr.msk.f32.gmra.mrb[156].mxu0 %vm141_vm0, %v12275_v31 }
 0x370   :  { %8670 = vmatprep.mubr.msk.f32.mxu0 %vm10826_vm2, %v15509_v10 }
 0x373   :  { %8671 = vmatmul.mubr.msk.f32.gmra.mrb[158].mxu0 %vm141_vm0, %v12284_v28 }
 0x374   :  { %8673 = vmatprep.mubr.msk.f32.mxu0 %vm10826_vm2, %v15509_v10 }
 0x377   :  { %8674 = vmatmul.mubr.msk.f32.gmra.mrb[160].mxu0 %vm141_vm0, %v12293_v53 }
 0x378   :  { %8676 = vmatprep.mubr.msk.f32.mxu0 %vm10826_vm2, %v15509_v10 }
 0x37b   :  { %8677 = vmatmul.mubr.msk.f32.gmra.mrb[162].mxu0 %vm141_vm0, %v12302_v48  ;;  %v15657_v48 = vld [vmem:[#allocation78_spill] sm:$0xff] }
 0x37c   :  { %8679 = vmatprep.mubr.msk.f32.mxu0 %vm10826_vm2, %v15509_v10 }
 0x37f   :  { %8680 = vmatmul.mubr.msk.f32.gmra.mrb[164].mxu0 %vm141_vm0, %v12311_v33  ;;  %v15656_v33 = vld [vmem:[#allocation76_spill] sm:$0xff] }
 0x380   :  { %8682 = vmatprep.mubr.msk.f32.mxu0 %vm10826_vm2, %v15509_v10 }
 0x383   :  { %8683 = vmatmul.mubr.msk.f32.gmra.mrb[166].mxu0 %vm141_vm0, %v12320_v30 }
 0x384   :  { %8776 = vmatprep.mubr.msk.f32.mxu0 %vm10826_vm2, %v15509_v10 }
 0x406   :  { %v1886_v32 = vpop.f32.mrb[126].mxu0 }
 0x407   :  { %v1997_v27 = vadd.f32 %v1886_v32, %v11758_v50  ;;  %v8624_v37 = vpop.f32.mrb[127].mxu0 }
 0x40a   :  { %v1891_v34 = vpop.f32.mrb[128].mxu0 }
 0x40b   :  { %v1998_v49 = vadd.f32 %v1891_v34, %v11763_v57  ;;  %v8627_v58 = vpop.f32.mrb[129].mxu0 }
 0x40e   :  { %v1896_v61 = vpop.f32.mrb[130].mxu0 }
 0x40f   :  { %v1999_v16 = vadd.f32 %v1896_v61, %v11768_v56  ;;  %v8630_v8 = vpop.f32.mrb[131].mxu0 }
 0x412   :  { %v1901_v52 = vpop.f32.mrb[132].mxu0 }
 0x413   :  { %v2000_v0 = vadd.f32 %v1901_v52, %v11773_v62  ;;  %v8633_v47 = vpop.f32.mrb[133].mxu0  ;;  %v2004_v52 = vmul.f32 0.5, %v1997_v27 }
 0x415   :  { %10054 = vtanh.f32 %v2004_v52 }
 0x416   :  { %v1906_v5 = vpop.f32.mrb[134].mxu0 }
 0x417   :  { %v2001_v29 = vadd.f32 %v1906_v5, %v11778_v46  ;;  %v8636_v25 = vpop.f32.mrb[135].mxu0  ;;  %v2005_v46 = vmul.f32 0.5, %v1998_v49 }
 0x419   :  { %10056 = vtanh.f32 %v2005_v46 }
 0x41a   :  { %v1911_v30 = vpop.f32.mrb[136].mxu0 }
 0x41b   :  { %v2002_v50 = vadd.f32 %v1911_v30, %v11783_v18  ;;  %v8639_v32 = vpop.f32.mrb[137].mxu0 }
 0x41c   :  { %v2006_v32 = vmul.f32 0.5, %v1999_v16 }
 0x41e   :  { %v1916_v37 = vpop.f32.mrb[138].mxu0  ;;  %10058 = vtanh.f32 %v2006_v32 }
 0x41f   :  { %v2003_v57 = vadd.f32 %v1916_v37, %v11788_v12  ;;  %v8642_v34 = vpop.f32.mrb[139].mxu0 }
 0x422   :  { %v1921_v58 = vpop.f32.mrb[140].mxu0 }
 0x423   :  { %v2039_v56 = vadd.f32 %v1921_v58, %v15656_v33  ;;  %v8645_v8 = vpop.f32.mrb[141].mxu0  ;;  %v2007_v33 = vmul.f32 0.5, %v2000_v0 }
 0x425   :  { %10060 = vtanh.f32 %v2007_v33 }
 0x426   :  { %v1926_v61 = vpop.f32.mrb[142].mxu0 }
 0x427   :  { %v2040_v62 = vadd.f32 %v1926_v61, %v15657_v48  ;;  %v8648_v47 = vpop.f32.mrb[143].mxu0  ;;  %v10055_v48 = vpop.eup %10054  ;;  %v2046_v61 = vmul.f32 0.5, %v2039_v56 }
 0x428   :  { %v10057_v8 = vpop.eup %10056  ;;  %v2018_v47 = vmul.f32 0.5, %v10055_v48 }
 0x429   :  { %v2047_v46 = vmul.f32 0.5, %v2040_v62 }
 0x42a   :  { %v1931_v53 = vpop.f32.mrb[144].mxu0 }
 0x42b   :  { %v2041_v25 = vadd.f32 %v1931_v53, %v11807_v59  ;;  %v8651_v5 = vpop.f32.mrb[145].mxu0  ;;  %v2008_v53 = vmul.f32 0.5, %v2001_v29  ;;  %v2010_v29 = vmul.f32 0.5, %v2003_v57 }
 0x42c   :  { %v2025_v5 = vadd.f32 0.5, %v2018_v47 }
 0x42d   :  { %10062 = vtanh.f32 %v2008_v53  ;;  %v2048_v33 = vmul.f32 0.5, %v2041_v25 }
 0x42e   :  { %v1936_v18 = vpop.f32.mrb[146].mxu0  ;;  %10064 = vtanh.f32 %v2046_v61 }
 0x42f   :  { %v2042_v12 = vadd.f32 %v1936_v18, %v11812_v9  ;;  %v8654_v30 = vpop.f32.mrb[147].mxu0  ;;  %v2009_v9 = vmul.f32 0.5, %v2002_v50  ;;  %v10059_v18 = vpop.eup %10058 }
 0x430   :  { %v10061_v56 = vpop.eup %10060 }
 0x431   :  { %10066 = vtanh.f32 %v2009_v9  ;;  %v2021_v62 = vmul.f32 0.5, %v10061_v56 }
 0x432   :  { %v1941_v37 = vpop.f32.mrb[148].mxu0  ;;  %10068 = vtanh.f32 %v2047_v46 }
 0x433   :  { %v2043_v34 = vadd.f32 %v1941_v37, %v11817_v20  ;;  %v8657_v58 = vpop.f32.mrb[149].mxu0  ;;  %v2019_v20 = vmul.f32 0.5, %v10057_v8  ;;  %v2028_v9 = vadd.f32 0.5, %v2021_v62 }
 0x435   :  { %v2026_v37 = vadd.f32 0.5, %v2019_v20 }
 0x436   :  { %v1946_v27 = vpop.f32.mrb[150].mxu0 }
 0x437   :  { %v2044_v49 = vadd.f32 %v1946_v27, %v11822_v23  ;;  %v8660_v59 = vpop.f32.mrb[151].mxu0  ;;  %v10063_v61 = vpop.eup %10062 }
 0x438   :  { %v2049_v59 = vmul.f32 0.5, %v2042_v12  ;;  %v10065_v47 = vpop.eup %10064  ;;  %v2022_v46 = vmul.f32 0.5, %v10063_v61 }
 0x43a   :  { %v1951_v52 = vpop.f32.mrb[152].mxu0  ;;  %v2029_v56 = vadd.f32 0.5, %v2022_v46 }
 0x43b   :  { %v12340_v16 = vadd.f32 %v1951_v52, %v11828_v3  ;;  %v8663_v0 = vpop.f32.mrb[153].mxu0  ;;  %v2020_v3 = vmul.f32 0.5, %v10059_v18 }
 0x43c   :  { %v2050_v0 = vmul.f32 0.5, %v2043_v34 }
 0x43d   :  { %v2027_v8 = vadd.f32 0.5, %v2020_v3 }
 0x43e   :  { %v1956_v30 = vpop.f32.mrb[154].mxu0 }
 0x43f   :  { %v2081_v23 = vmul.f32 %v2025_v5, %v1956_v30  ;;  %v8666_v32 = vpop.f32.mrb[155].mxu0  ;;  %v2060_v5 = vmul.f32 0.5, %v10065_v47 }
 0x441   :  { %v2088_v50 = vadd.f32 %v2081_v23, %v11834_v2  ;;  %v10067_v2 = vpop.eup %10066 }
 0x442   :  { %v1961_v58 = vpop.f32.mrb[156].mxu0  ;;  %v10069_v30 = vpop.eup %10068  ;;  %v2023_v23 = vmul.f32 0.5, %v10067_v2 }
 0x443   :  { %10070 = vtanh.f32 %v2088_v50  ;;  %v2082_v48 = vmul.f32 %v2026_v37, %v1961_v58  ;;  %v8669_v27 = vpop.f32.mrb[157].mxu0  ;;  %v2067_v50 = vadd.f32 0.5, %v2060_v5  ;;  %v2061_v3 = vmul.f32 0.5, %v10069_v30 }
 0x444   :  { %10072 = vtanh.f32 %v2010_v29  ;;  %v2051_v29 = vmul.f32 0.5, %v2044_v49  ;;  %v2030_v62 = vadd.f32 0.5, %v2023_v23 }
 0x445   :  { %10074 = vtanh.f32 %v2048_v33  ;;  %v2089_v53 = vadd.f32 %v2082_v48, %v11841_v45  ;;  %v2068_v61 = vadd.f32 0.5, %v2061_v3 }
 0x446   :  { %v1966_v57 = vpop.f32.mrb[158].mxu0 }
 0x447   :  { %10076 = vtanh.f32 %v2089_v53  ;;  %v2083_v52 = vmul.f32 %v2027_v8, %v1966_v57  ;;  %v8672_v25 = vpop.f32.mrb[159].mxu0  ;;  %v2052_v8 = vmul.f32 0.5, %v12340_v16 }
 0x448   :  { %10078 = vtanh.f32 %v2049_v59 }
 0x449   :  { %v2090_v20 = vadd.f32 %v2083_v52, %v11852_v22 }
 0x44a   :  { %v1971_v18 = vpop.f32.mrb[160].mxu0 }
 0x44b   :  { %10080 = vtanh.f32 %v2090_v20  ;;  %v2084_v12 = vmul.f32 %v2028_v9, %v1971_v18  ;;  %v8675_v45 = vpop.f32.mrb[161].mxu0 }
 0x44c   :  { %10082 = vtanh.f32 %v2050_v0 }
 0x44d   :  { %v10071_v32 = vpop.eup %10070  ;;  %v2091_v37 = vadd.f32 %v2084_v12, %v11860_v51 }
 0x44e   :  { %v10073_v33 = vpop.eup %10072  ;;  %v1976_v34 = vpop.f32.mrb[162].mxu0  ;;  %v2102_v22 = vsub.f32 %v12111_v42, %v10071_v32 }
 0x44f   :  { %v10075_v58 = vpop.eup %10074  ;;  %10084 = vtanh.f32 %v2091_v37  ;;  %v2085_v48 = vmul.f32 %v2029_v56, %v1976_v34  ;;  %v8678_v27 = vpop.f32.mrb[163].mxu0  ;;  %v2024_v51 = vmul.f32 0.5, %v10073_v33 }
 0x450   :  { %v2109_v59 = vmul.f32 %v2102_v22, %v2067_v50  ;;  %10086 = vtanh.f32 %v2051_v29  ;;  %v2062_v57 = vmul.f32 0.5, %v10075_v58 }
 0x451   :  { %v10077_v53 = vpop.eup %10076  ;;  %v2092_v49 = vadd.f32 %v2085_v48, %v11870_v35  ;;  %v2031_v16 = vadd.f32 0.5, %v2024_v51 }
 0x452   :  { %v1981_v47 = vpop.f32.mrb[164].mxu0  ;;  %v2103_v52 = vsub.f32 %v12114_v36, %v10077_v53  ;;  %v12350_v25 = vadd.f32 %v10071_v32, %v2109_v59  ;;  %v10079_v42 = vpop.eup %10078  ;;  %v2069_v5 = vadd.f32 0.5, %v2062_v57 }
 0x453   :  { %10088 = vtanh.f32 %v2092_v49  ;;  %v2086_v9 = vmul.f32 %v2030_v62, %v1981_v47  ;;  %v8681_v2 = vpop.f32.mrb[165].mxu0  ;;  %v2063_v35 = vmul.f32 0.5, %v10079_v42 }
 0x454   :  { %v2110_v0 = vmul.f32 %v2103_v52, %v2068_v61  ;;  %10090 = vtanh.f32 %v2052_v8 }
 0x455   :  { %v10081_v20 = vpop.eup %10080  ;;  %v2093_v46 = vadd.f32 %v2086_v9, %v11883_v60  ;;  %v2070_v56 = vadd.f32 0.5, %v2063_v35 }
 0x456   :  { %v1986_v18 = vpop.f32.mrb[166].mxu0  ;;  %v12353_v30 = vadd.f32 %v10077_v53, %v2110_v0  ;;  %v2104_v12 = vsub.f32 %v12124_v4, %v10081_v20  ;;  %v10083_v36 = vpop.eup %10082 }
 0x457   :  { %10092 = vtanh.f32 %v2093_v46  ;;  %v2087_v45 = vmul.f32 %v2031_v16, %v1986_v18  ;;  %v8684_v23 = vpop.f32.mrb[167].mxu0  ;;  %v2064_v33 = vmul.f32 0.5, %v10083_v36  ;;  %v15665_v46 = vld [vmem:[#allocation69_spill] sm:$0xff]  ;;  %v15666_v18 = vld [vmem:[#allocation70_spill] sm:$0xff] }
 0x458   :  { %v12358_v32 = vpack.c.bf16 %v12353_v30, %v12350_v25  ;;  %v2111_v29 = vmul.f32 %v2104_v12, %v2069_v5  ;;  %v15667_v23 = vld [vmem:[#allocation71_spill] sm:$0xff] }
 0x459   :  { %v10085_v37 = vpop.eup %10084  ;;  %v2094_v60 = vadd.f32 %v2087_v45, %v11894_v15  ;;  %v2071_v58 = vadd.f32 0.5, %v2064_v33 }
 0x45a   :  { %9780 = vmatpush3.bf16.msra.mxu1 %v12358_v32  ;;  %v2105_v50 = vsub.f32 %v12127_v54, %v10085_v37  ;;  %v12363_v3 = vadd.f32 %v10081_v20, %v2111_v29  ;;  %v10087_v4 = vpop.eup %10086 }
 0x45b   :  { %10094 = vtanh.f32 %v2094_v60  ;;  %9781 = vmatprep.subr.bf16.mxu1 %v15512_v6  ;;  %v2065_v48 = vmul.f32 0.5, %v10087_v4 }
 0x45c   :  { %v2112_v34 = vmul.f32 %v2105_v50, %v2070_v56  ;;  %v15668_v56 = vld [vmem:[#allocation72_spill] sm:$0xff] }
 0x45d   :  { %v10089_v22 = vpop.eup %10088  ;;  %v2072_v8 = vadd.f32 0.5, %v2065_v48 }
 0x45e   :  { %v12366_v27 = vadd.f32 %v10085_v37, %v2112_v34  ;;  %v2106_v15 = vsub.f32 %v12136_v19, %v10089_v22  ;;  %v10091_v62 = vpop.eup %10090  ;;  %v15669_v34 = vld [vmem:[#allocation73_spill] sm:$0xff] }
 0x45f   :  { %v2066_v49 = vmul.f32 0.5, %v10091_v62 }
 0x460   :  { %v12371_v59 = vpack.c.bf16 %v12366_v27, %v12363_v3  ;;  %v2113_v54 = vmul.f32 %v2106_v15, %v2071_v58  ;;  %v15670_v15 = vld [vmem:[#allocation74_spill] sm:$0xff] }
 0x461   :  { %v10093_v53 = vpop.eup %10092  ;;  %v2073_v19 = vadd.f32 0.5, %v2066_v49 }
 0x462   :  { %15658 = vst [vmem:[#allocation15_spill] sm:$0xff] %v12371_v59  ;;  %9783 = vmatpush3.bf16.msra.mxu1 %v12371_v59  ;;  %v2107_v51 = vsub.f32 %v12139_v63, %v10093_v53  ;;  %v12375_v61 = vadd.f32 %v10089_v22, %v2113_v54  ;;  %v15664_v63 = vld [vmem:[#allocation14_spill] sm:$0xff] }
 0x463   :  { %9784 = vmatprep.subr.bf16.mxu1 %v15512_v6 }
 0x464   :  { %v2114_v57 = vmul.f32 %v2107_v51, %v2072_v8  ;;  %v15671_v8 = vld [vmem:[#allocation75_spill] sm:$0xff] }
 0x465   :  { %v10095_v47 = vpop.eup %10094 }
 0x466   :  { %v12378_v52 = vadd.f32 %v10093_v53, %v2114_v57  ;;  %v2108_v42 = vsub.f32 %v12147_v26, %v10095_v47 }
 0x468   :  { %v12383_v9 = vpack.c.bf16 %v12378_v52, %v12375_v61  ;;  %v2115_v2 = vmul.f32 %v2108_v42, %v2073_v19 }
 0x46a   :  { %15659 = vst [vmem:[#allocation16_spill] sm:$0xff] %v12383_v9  ;;  %9786 = vmatpush3.bf16.msra.mxu1 %v12383_v9  ;;  %v12386_v0 = vadd.f32 %v10095_v47, %v2115_v2  ;;  %v15672_v47 = vld [vmem:[#allocation77_spill] sm:$0xff]  ;;  %v15718_v9 = vld [vmem:[#allocation44_spill] sm:$0xff] }
 0x46b   :  { %8697 = vmatprep.subr.mxu1 %v15509_v10 }
 0x46c   :  { %15660 = vst [vmem:[#allocation17_spill] sm:$0xff] %v12386_v0 }
 0x46e   :  { %8698 = vmatpush3.msra.mxu1 %v12386_v0 }
 0x46f   :  { %8700 = vmatmul.mubr.msk.f32.vlgmr.msra.gmra.mrb[126].mxu1 %vm141_vm0, %v11910_v55  ;;  %9796 = vmatprep.subr.bf16.mxu1 %v15512_v6  ;;  %v15662_v55 = vld [vmem:[#allocation12_spill] sm:$0xff] }
 0x470   :  { %8702 = vmatprep.mubr.msk.f32.mxu1 %vm10826_vm2, %v15509_v10 }
 0x473   :  { %8703 = vmatmul.mubr.msk.f32.gmra.mrb[128].mxu1 %vm141_vm0, %v11924_v40  ;;  %v15663_v40 = vld [vmem:[#allocation13_spill] sm:$0xff] }
 0x474   :  { %8705 = vmatprep.mubr.msk.f32.mxu1 %vm10826_vm2, %v15509_v10 }
 0x477   :  { %8706 = vmatmul.mubr.msk.f32.gmra.mrb[130].mxu1 %vm141_vm0, %v11937_v44  ;;  %v15661_v44 = vld [vmem:[#allocation11_spill] sm:$0xff] }
 0x478   :  { %8708 = vmatprep.mubr.msk.f32.mxu1 %vm10826_vm2, %v15509_v10 }
 0x47b   :  { %8709 = vmatmul.mubr.msk.f32.gmra.mrb[132].mxu1 %vm141_vm0, %v12167_v38 }
 0x47c   :  { %8711 = vmatprep.mubr.msk.f32.mxu1 %vm10826_vm2, %v15509_v10 }
 0x47f   :  { %8712 = vmatmul.mubr.msk.f32.gmra.mrb[134].mxu1 %vm141_vm0, %v12176_v17 }
 0x480   :  { %8714 = vmatprep.mubr.msk.f32.mxu1 %vm10826_vm2, %v15509_v10 }
 0x483   :  { %8715 = vmatmul.mubr.msk.f32.gmra.mrb[136].mxu1 %vm141_vm0, %v12185_v7 }
 0x484   :  { %8717 = vmatprep.mubr.msk.f32.mxu1 %vm10826_vm2, %v15509_v10 }
 0x487   :  { %8718 = vmatmul.mubr.msk.f32.gmra.mrb[138].mxu1 %vm141_vm0, %v12194_v24 }
 0x488   :  { %8720 = vmatprep.mubr.msk.f32.mxu1 %vm10826_vm2, %v15509_v10 }
 0x48b   :  { %8721 = vmatmul.mubr.msk.f32.gmra.mrb[140].mxu1 %vm141_vm0, %v12203_v13 }
 0x48c   :  { %8723 = vmatprep.mubr.msk.f32.mxu1 %vm10826_vm2, %v15509_v10 }
 0x48f   :  { %8724 = vmatmul.mubr.msk.f32.gmra.mrb[142].mxu1 %vm141_vm0, %v12212_v11 }
 0x490   :  { %8726 = vmatprep.mubr.msk.f32.mxu1 %vm10826_vm2, %v15509_v10 }
 0x493   :  { %8727 = vmatmul.mubr.msk.f32.gmra.mrb[144].mxu1 %vm141_vm0, %v12221_v14 }
 0x494   :  { %8729 = vmatprep.mubr.msk.f32.mxu1 %vm10826_vm2, %v15509_v10 }
 0x497   :  { %8730 = vmatmul.mubr.msk.f32.gmra.mrb[146].mxu1 %vm141_vm0, %v12230_v1 }
 0x498   :  { %8732 = vmatprep.mubr.msk.f32.mxu1 %vm10826_vm2, %v15509_v10 }
 0x49b   :  { %8733 = vmatmul.mubr.msk.f32.gmra.mrb[148].mxu1 %vm141_vm0, %v12239_v43 }
 0x49c   :  { %8735 = vmatprep.mubr.msk.f32.mxu1 %vm10826_vm2, %v15509_v10 }
 0x49f   :  { %8736 = vmatmul.mubr.msk.f32.gmra.mrb[150].mxu1 %vm141_vm0, %v12248_v21 }
 0x4a0   :  { %8738 = vmatprep.mubr.msk.f32.mxu1 %vm10826_vm2, %v15509_v10 }
 0x4a3   :  { %8739 = vmatmul.mubr.msk.f32.gmra.mrb[152].mxu1 %vm141_vm0, %v12257_v39 }
 0x4a4   :  { %8741 = vmatprep.mubr.msk.f32.mxu1 %vm10826_vm2, %v15509_v10 }
 0x4a7   :  { %8742 = vmatmul.mubr.msk.f32.gmra.mrb[154].mxu1 %vm141_vm0, %v12266_v41 }
 0x4a8   :  { %8744 = vmatprep.mubr.msk.f32.mxu1 %vm10826_vm2, %v15509_v10 }
 0x4ab   :  { %8745 = vmatmul.mubr.msk.f32.gmra.mrb[156].mxu1 %vm141_vm0, %v12275_v31 }
 0x4ac   :  { %8747 = vmatprep.mubr.msk.f32.mxu1 %vm10826_vm2, %v15509_v10 }
 0x4af   :  { %8748 = vmatmul.mubr.msk.f32.gmra.mrb[158].mxu1 %vm141_vm0, %v12284_v28 }
 0x4b0   :  { %8750 = vmatprep.mubr.msk.f32.mxu1 %vm10826_vm2, %v15509_v10 }
 0x4b3   :  { %8751 = vmatmul.mubr.msk.f32.gmra.mrb[160].mxu1 %vm141_vm0, %v15661_v44 }
 0x4b4   :  { %8753 = vmatprep.mubr.msk.f32.mxu1 %vm10826_vm2, %v15509_v10 }
 0x4b7   :  { %8754 = vmatmul.mubr.msk.f32.gmra.mrb[162].mxu1 %vm141_vm0, %v15662_v55 }
 0x4b8   :  { %8756 = vmatprep.mubr.msk.f32.mxu1 %vm10826_vm2, %v15509_v10 }
 0x4bb   :  { %8757 = vmatmul.mubr.msk.f32.gmra.mrb[164].mxu1 %vm141_vm0, %v15663_v40 }
 0x4bc   :  { %8759 = vmatprep.mubr.msk.f32.mxu1 %vm10826_vm2, %v15509_v10 }
 0x4bf   :  { %8760 = vmatmul.mubr.msk.f32.gmra.mrb[166].mxu1 %vm141_vm0, %v15664_v63 }
 0x4c0   :  { %8853 = vmatprep.mubr.msk.f32.mxu1 %vm10826_vm2, %v15509_v10 }
 0x542   :  { %v2196_v20 = vpop.f32.mrb[126].mxu1 }
 0x543   :  { %v2307_v16 = vadd.f32 %v2196_v20, %v15665_v46  ;;  %v8701_v5 = vpop.f32.mrb[127].mxu1  ;;  %v15673_v20 = vld [vmem:[#allocation79_spill] sm:$0xff] }
 0x546   :  { %v2201_v35 = vpop.f32.mrb[128].mxu1 }
 0x547   :  { %v2308_v12 = vadd.f32 %v2201_v35, %v15666_v18  ;;  %v8704_v36 = vpop.f32.mrb[129].mxu1  ;;  %v2314_v35 = vmul.f32 0.5, %v2307_v16 }
 0x549   :  { %v2315_v36 = vmul.f32 0.5, %v2308_v12  ;;  %10096 = vtanh.f32 %v2314_v35  ;;  %v15677_v12 = vld [vmem:[#allocation83_spill] sm:$0xff] }
 0x54a   :  { %v2206_v45 = vpop.f32.mrb[130].mxu1 }
 0x54b   :  { %v2309_v29 = vadd.f32 %v2206_v45, %v15667_v23  ;;  %v8707_v37 = vpop.f32.mrb[131].mxu1  ;;  %v15674_v45 = vld [vmem:[#allocation80_spill] sm:$0xff]  ;;  %10098 = vtanh.f32 %v2315_v36 }
 0x54e   :  { %v2211_v60 = vpop.f32.mrb[132].mxu1 }
 0x54f   :  { %v2310_v33 = vadd.f32 %v2211_v60, %v15668_v56  ;;  %v8710_v50 = vpop.f32.mrb[133].mxu1  ;;  %v15675_v56 = vld [vmem:[#allocation81_spill] sm:$0xff] }
 0x552   :  { %v2216_v4 = vpop.f32.mrb[134].mxu1 }
 0x553   :  { %v2311_v22 = vadd.f32 %v2216_v4, %v15669_v34  ;;  %v8713_v58 = vpop.f32.mrb[135].mxu1  ;;  %v2316_v34 = vmul.f32 0.5, %v2309_v29 }
 0x555   :  { %10100 = vtanh.f32 %v2316_v34 }
 0x556   :  { %v2221_v48 = vpop.f32.mrb[136].mxu1 }
 0x557   :  { %v2312_v62 = vadd.f32 %v2221_v48, %v15670_v15  ;;  %v8716_v54 = vpop.f32.mrb[137].mxu1  ;;  %v2317_v48 = vmul.f32 0.5, %v2310_v33  ;;  %v15676_v15 = vld [vmem:[#allocation82_spill] sm:$0xff] }
 0x559   :  { %10102 = vtanh.f32 %v2317_v48  ;;  %v2319_v35 = vmul.f32 0.5, %v2312_v62  ;;  %v15679_v62 = vld [vmem:[#allocation85_spill] sm:$0xff] }
 0x55a   :  { %v2226_v53 = vpop.f32.mrb[138].mxu1 }
 0x55b   :  { %v2313_v49 = vadd.f32 %v2226_v53, %v15671_v8  ;;  %v8719_v51 = vpop.f32.mrb[139].mxu1  ;;  %v10097_v8 = vpop.eup %10096 }
 0x55e   :  { %v2231_v57 = vpop.f32.mrb[140].mxu1 }
 0x55f   :  { %v2349_v19 = vadd.f32 %v2231_v57, %v15672_v47  ;;  %v8722_v42 = vpop.f32.mrb[141].mxu1  ;;  %v2318_v47 = vmul.f32 0.5, %v2311_v22  ;;  %v2320_v22 = vmul.f32 0.5, %v2313_v49 }
 0x560   :  { %v10099_v42 = vpop.eup %10098 }
 0x561   :  { %10104 = vtanh.f32 %v2318_v47  ;;  %v2329_v36 = vmul.f32 0.5, %v10099_v42  ;;  %v15680_v47 = vld [vmem:[#allocation86_spill] sm:$0xff] }
 0x562   :  { %v2236_v2 = vpop.f32.mrb[142].mxu1 }
 0x563   :  { %v2350_v46 = vadd.f32 %v2236_v2, %v15673_v20  ;;  %v8725_v5 = vpop.f32.mrb[143].mxu1  ;;  %v2356_v2 = vmul.f32 0.5, %v2349_v19  ;;  %v2328_v20 = vmul.f32 0.5, %v10097_v8 }
 0x565   :  { %10106 = vtanh.f32 %v2356_v2 }
 0x566   :  { %v2241_v18 = vpop.f32.mrb[144].mxu1  ;;  %10108 = vtanh.f32 %v2319_v35 }
 0x567   :  { %v2351_v23 = vadd.f32 %v2241_v18, %v15674_v45  ;;  %v8728_v37 = vpop.f32.mrb[145].mxu1  ;;  %v15678_v18 = vld [vmem:[#allocation84_spill] sm:$0xff]  ;;  %v2357_v45 = vmul.f32 0.5, %v2350_v46 }
 0x568   :  { %v2335_v37 = vadd.f32 0.5, %v2328_v20 }
 0x569   :  { %10110 = vtanh.f32 %v2357_v45  ;;  %v2358_v48 = vmul.f32 0.5, %v2351_v23  ;;  %v15681_v45 = vld [vmem:[#allocation88_spill] sm:$0xff] }
 0x56a   :  { %v2246_v60 = vpop.f32.mrb[146].mxu1 }
 0x56b   :  { %v2352_v50 = vadd.f32 %v2246_v60, %v15675_v56  ;;  %v8731_v4 = vpop.f32.mrb[147].mxu1  ;;  %v10101_v60 = vpop.eup %10100 }
 0x56c   :  { %v10103_v19 = vpop.eup %10102 }
 0x56d   :  { %v2331_v46 = vmul.f32 0.5, %v10103_v19  ;;  %v10105_v20 = vpop.eup %10104 }
 0x56e   :  { %v2251_v58 = vpop.f32.mrb[148].mxu1 }
 0x56f   :  { %v2353_v54 = vadd.f32 %v2251_v58, %v15676_v15  ;;  %v8734_v53 = vpop.f32.mrb[149].mxu1  ;;  %v2336_v58 = vadd.f32 0.5, %v2329_v36 }
 0x570   :  { %v2330_v53 = vmul.f32 0.5, %v10101_v60  ;;  %v2332_v60 = vmul.f32 0.5, %v10105_v20 }
 0x571   :  { %v2360_v36 = vmul.f32 0.5, %v2353_v54 }
 0x572   :  { %v2256_v16 = vpop.f32.mrb[150].mxu1  ;;  %v2337_v2 = vadd.f32 0.5, %v2330_v53  ;;  %v2339_v53 = vadd.f32 0.5, %v2332_v60 }
 0x573   :  { %v2354_v51 = vadd.f32 %v2256_v16, %v15677_v12  ;;  %v8737_v57 = vpop.f32.mrb[151].mxu1 }
 0x574   :  { %v2359_v57 = vmul.f32 0.5, %v2352_v50 }
 0x576   :  { %v2261_v5 = vpop.f32.mrb[152].mxu1 }
 0x577   :  { %v12489_v29 = vadd.f32 %v2261_v5, %v15678_v18  ;;  %v8740_v33 = vpop.f32.mrb[153].mxu1  ;;  %v10107_v5 = vpop.eup %10106  ;;  %v2338_v18 = vadd.f32 0.5, %v2331_v46 }
 0x578   :  { %v10109_v33 = vpop.eup %10108 }
 0x57a   :  { %v2266_v56 = vpop.f32.mrb[154].mxu1 }
 0x57b   :  { %v2391_v4 = vmul.f32 %v2335_v37, %v2266_v56  ;;  %v8743_v34 = vpop.f32.mrb[155].mxu1  ;;  %v2370_v56 = vmul.f32 0.5, %v10107_v5  ;;  %v2362_v5 = vmul.f32 0.5, %v12489_v29 }
 0x57c   :  { %v10111_v34 = vpop.eup %10110 }
 0x57d   :  { %v2398_v15 = vadd.f32 %v2391_v4, %v15679_v62  ;;  %v15682_v62 = vld [vmem:[#allocation89_spill] sm:$0xff] }
 0x57e   :  { %v2271_v8 = vpop.f32.mrb[156].mxu1 }
 0x57f   :  { %10112 = vtanh.f32 %v2398_v15  ;;  %v2392_v16 = vmul.f32 %v2336_v58, %v2271_v8  ;;  %v8746_v12 = vpop.f32.mrb[157].mxu1  ;;  %v2333_v58 = vmul.f32 0.5, %v10109_v33 }
 0x580   :  { %10114 = vtanh.f32 %v2320_v22  ;;  %v2371_v12 = vmul.f32 0.5, %v10111_v34 }
 0x581   :  { %10116 = vtanh.f32 %v2358_v48  ;;  %v2399_v42 = vadd.f32 %v2392_v16, %v15680_v47  ;;  %v2361_v48 = vmul.f32 0.5, %v2354_v51  ;;  %v2377_v16 = vadd.f32 0.5, %v2370_v56  ;;  %v15683_v51 = vld [vmem:[#allocation91_spill] sm:$0xff] }
 0x582   :  { %v2276_v49 = vpop.f32.mrb[158].mxu1 }
 0x583   :  { %10118 = vtanh.f32 %v2399_v42  ;;  %v2393_v35 = vmul.f32 %v2337_v2, %v2276_v49  ;;  %v8749_v23 = vpop.f32.mrb[159].mxu1  ;;  %v2340_v2 = vadd.f32 0.5, %v2333_v58 }
 0x584   :  { %10120 = vtanh.f32 %v2359_v57 }
 0x585   :  { %v2400_v37 = vadd.f32 %v2393_v35, %v15681_v45 }
 0x586   :  { %v2281_v4 = vpop.f32.mrb[160].mxu1 }
 0x587   :  { %10122 = vtanh.f32 %v2400_v37  ;;  %v2394_v50 = vmul.f32 %v2338_v18, %v2281_v4  ;;  %v8752_v22 = vpop.f32.mrb[161].mxu1  ;;  %v2378_v18 = vadd.f32 0.5, %v2371_v12 }
 0x588   :  { %10124 = vtanh.f32 %v2360_v36 }
 0x589   :  { %v10113_v19 = vpop.eup %10112  ;;  %v2401_v15 = vadd.f32 %v2394_v50, %v15682_v62  ;;  %v15684_v50 = vld [vmem:[#allocation93_spill] sm:$0xff] }
 0x58a   :  { %v10115_v8 = vpop.eup %10114  ;;  %v2286_v54 = vpop.f32.mrb[162].mxu1  ;;  %v2412_v46 = vsub.f32 %v12350_v25, %v10113_v19 }
 0x58b   :  { %v10117_v57 = vpop.eup %10116  ;;  %10126 = vtanh.f32 %v2401_v15  ;;  %v2395_v47 = vmul.f32 %v2339_v53, %v2286_v54  ;;  %v8755_v42 = vpop.f32.mrb[163].mxu1  ;;  %v2334_v23 = vmul.f32 0.5, %v10115_v8 }
 0x58c   :  { %v2419_v20 = vmul.f32 %v2412_v46, %v2377_v16  ;;  %10128 = vtanh.f32 %v2361_v48  ;;  %v2372_v33 = vmul.f32 0.5, %v10117_v57  ;;  %v15685_v46 = vld [vmem:[#allocation96_spill] sm:$0xff] }
 0x58d   :  { %v10119_v49 = vpop.eup %10118  ;;  %v2402_v35 = vadd.f32 %v2395_v47, %v15683_v51  ;;  %v2341_v29 = vadd.f32 0.5, %v2334_v23 }
 0x58e   :  { %v2291_v36 = vpop.f32.mrb[164].mxu1  ;;  %v2413_v45 = vsub.f32 %v12353_v30, %v10119_v49  ;;  %v12499_v37 = vadd.f32 %v10113_v19, %v2419_v20  ;;  %v10121_v25 = vpop.eup %10120  ;;  %v2379_v58 = vadd.f32 0.5, %v2372_v33 }
 0x58f   :  { %10130 = vtanh.f32 %v2402_v35  ;;  %v2396_v60 = vmul.f32 %v2340_v2, %v2291_v36  ;;  %v8758_v56 = vpop.f32.mrb[165].mxu1  ;;  %v2373_v48 = vmul.f32 0.5, %v10121_v25 }
 0x590   :  { %v2420_v4 = vmul.f32 %v2413_v45, %v2378_v18  ;;  %10132 = vtanh.f32 %v2362_v5 }
 0x591   :  { %v10123_v34 = vpop.eup %10122  ;;  %v2403_v22 = vadd.f32 %v2396_v60, %v15684_v50  ;;  %v2380_v47 = vadd.f32 0.5, %v2373_v48 }
 0x592   :  { %v2296_v62 = vpop.f32.mrb[166].mxu1  ;;  %v12502_v15 = vadd.f32 %v10119_v49, %v2420_v4  ;;  %v2414_v53 = vsub.f32 %v12363_v3, %v10123_v34  ;;  %v10125_v30 = vpop.eup %10124 }
 0x593   :  { %10134 = vtanh.f32 %v2403_v22  ;;  %v2397_v19 = vmul.f32 %v2341_v29, %v2296_v62  ;;  %v8761_v8 = vpop.f32.mrb[167].mxu1  ;;  %v2374_v42 = vmul.f32 0.5, %v10125_v30  ;;  %v12561_v30 = vld [vmem:[%s15464_s2 + $0x10] sm:$0xff] }
 0x594   :  { %v12507_v16 = vpack.c.bf16 %v12502_v15, %v12499_v37  ;;  %v2421_v12 = vmul.f32 %v2414_v53, %v2379_v58  ;;  %v12552_v53 = vld [vmem:[%s15464_s2 + $0x8] sm:$0xff] }
 0x595   :  { %v10127_v54 = vpop.eup %10126  ;;  %v2404_v57 = vadd.f32 %v2397_v19, %v15685_v46  ;;  %v2381_v51 = vadd.f32 0.5, %v2374_v42  ;;  %v15695_v42 = vld [vmem:[#allocation39_spill] sm:$0xff] }
 0x596   :  { %9789 = vmatpush3.bf16.msra.mxu0 %v12507_v16  ;;  %v2415_v2 = vsub.f32 %v12366_v27, %v10127_v54  ;;  %v12512_v20 = vadd.f32 %v10123_v34, %v2421_v12  ;;  %v10129_v3 = vpop.eup %10128 }
 0x597   :  { %10136 = vtanh.f32 %v2404_v57  ;;  %9790 = vmatprep.subr.bf16.mxu0 %v15512_v6  ;;  %v2375_v35 = vmul.f32 0.5, %v10129_v3 }
 0x598   :  { %v2422_v49 = vmul.f32 %v2415_v2, %v2380_v47 }
 0x599   :  { %v10131_v5 = vpop.eup %10130  ;;  %v2382_v25 = vadd.f32 0.5, %v2375_v35 }
 0x59a   :  { %v12515_v23 = vadd.f32 %v10127_v54, %v2422_v49  ;;  %v2416_v18 = vsub.f32 %v12375_v61, %v10131_v5  ;;  %v10133_v33 = vpop.eup %10132  ;;  %v15694_v54 = vld [vmem:[#allocation37_spill] sm:$0xff] }
 0x59b   :  { %v2376_v60 = vmul.f32 0.5, %v10133_v33  ;;  %v15697_v33 = vld [vmem:[#allocation43_spill] sm:$0xff] }
 0x59c   :  { %v12520_v36 = vpack.c.bf16 %v12515_v23, %v12512_v20  ;;  %v2423_v27 = vmul.f32 %v2416_v18, %v2381_v51 }
 0x59d   :  { %v10135_v45 = vpop.eup %10134  ;;  %v2383_v61 = vadd.f32 0.5, %v2376_v60 }
 0x59e   :  { %15686 = vst [vmem:[#allocation18_spill] sm:$0xff] %v12520_v36  ;;  %9792 = vmatpush3.bf16.msra.mxu0 %v12520_v36  ;;  %v2417_v56 = vsub.f32 %v12378_v52, %v10135_v45  ;;  %v12524_v4 = vadd.f32 %v10131_v5, %v2423_v27  ;;  %v12542_v52 = vld [vmem:[%s15464_s2] sm:$0xff]  ;;  %v15696_v5 = vld [vmem:[#allocation41_spill] sm:$0xff] }
 0x59f   :  { %9793 = vmatprep.subr.bf16.mxu0 %v15512_v6 }
 0x5a0   :  { %v2424_v34 = vmul.f32 %v2417_v56, %v2382_v25 }
 0x5a1   :  { %v10137_v50 = vpop.eup %10136 }
 0x5a2   :  { %v12527_v22 = vadd.f32 %v10135_v45, %v2424_v34  ;;  %v2418_v29 = vsub.f32 %v12386_v0, %v10137_v50  ;;  %v15698_v34 = vld [vmem:[#allocation45_spill] sm:$0xff]  ;;  %v15716_v0 = vld [vmem:[#allocation40_spill] sm:$0xff] }
 0x5a4   :  { %v12532_v58 = vpack.c.bf16 %v12527_v22, %v12524_v4  ;;  %v2425_v48 = vmul.f32 %v2418_v29, %v2383_v61 }
 0x5a6   :  { %15687 = vst [vmem:[#allocation19_spill] sm:$0xff] %v12532_v58  ;;  %9795 = vmatpush3.bf16.msra.mxu0 %v12532_v58  ;;  %v12535_v62 = vadd.f32 %v10137_v50, %v2425_v48  ;;  %v15699_v48 = vld [vmem:[#allocation47_spill] sm:$0xff] }
 0x5a7   :  { %8774 = vmatprep.subr.mxu0 %v15509_v10 }
 0x5a8   :  { %15688 = vst [vmem:[#allocation20_spill] sm:$0xff] %v12535_v62 }
 0x5aa   :  { %8775 = vmatpush3.msra.mxu0 %v12535_v62 }
 0x5ab   :  { %8777 = vmatmul.mubr.msk.f32.vlgmr.msra.gmra.mrb[168].mxu0 %vm141_vm0, %v12542_v52  ;;  %9805 = vmatprep.subr.bf16.mxu0 %v15512_v6 }
 0x5ac   :  { %8779 = vmatprep.mubr.msk.f32.mxu0 %vm10826_vm2, %v15509_v10 }
 0x5af   :  { %8780 = vmatmul.mubr.msk.f32.gmra.mrb[170].mxu0 %vm141_vm0, %v12552_v53 }
 0x5b0   :  { %8782 = vmatprep.mubr.msk.f32.mxu0 %vm10826_vm2, %v15509_v10 }
 0x5b3   :  { %8783 = vmatmul.mubr.msk.f32.gmra.mrb[172].mxu0 %vm141_vm0, %v12561_v30 }
 0x5b4   :  { %8785 = vmatprep.mubr.msk.f32.mxu0 %vm10826_vm2, %v15509_v10 }
 0x5b7   :  { %8786 = vmatmul.mubr.msk.f32.gmra.mrb[174].mxu0 %vm141_vm0, %v12167_v38 }
 0x5b8   :  { %8788 = vmatprep.mubr.msk.f32.mxu0 %vm10826_vm2, %v15509_v10 }
 0x5bb   :  { %8789 = vmatmul.mubr.msk.f32.gmra.mrb[176].mxu0 %vm141_vm0, %v12176_v17  ;;  %v15689_v17 = vld [vmem:[#allocation27_spill] sm:$0xff] }
 0x5bc   :  { %8791 = vmatprep.mubr.msk.f32.mxu0 %vm10826_vm2, %v15509_v10 }
 0x5bf   :  { %8792 = vmatmul.mubr.msk.f32.gmra.mrb[178].mxu0 %vm141_vm0, %v12185_v7 }
 0x5c0   :  { %8794 = vmatprep.mubr.msk.f32.mxu0 %vm10826_vm2, %v15509_v10 }
 0x5c3   :  { %8795 = vmatmul.mubr.msk.f32.gmra.mrb[180].mxu0 %vm141_vm0, %v12194_v24 }
 0x5c4   :  { %8797 = vmatprep.mubr.msk.f32.mxu0 %vm10826_vm2, %v15509_v10 }
 0x5c7   :  { %8798 = vmatmul.mubr.msk.f32.gmra.mrb[182].mxu0 %vm141_vm0, %v12203_v13 }
 0x5c8   :  { %8800 = vmatprep.mubr.msk.f32.mxu0 %vm10826_vm2, %v15509_v10 }
 0x5cb   :  { %8801 = vmatmul.mubr.msk.f32.gmra.mrb[184].mxu0 %vm141_vm0, %v12212_v11  ;;  %v15690_v11 = vld [vmem:[#allocation29_spill] sm:$0xff] }
 0x5cc   :  { %8803 = vmatprep.mubr.msk.f32.mxu0 %vm10826_vm2, %v15509_v10 }
 0x5cf   :  { %8804 = vmatmul.mubr.msk.f32.gmra.mrb[186].mxu0 %vm141_vm0, %v12221_v14 }
 0x5d0   :  { %8806 = vmatprep.mubr.msk.f32.mxu0 %vm10826_vm2, %v15509_v10 }
 0x5d3   :  { %8807 = vmatmul.mubr.msk.f32.gmra.mrb[188].mxu0 %vm141_vm0, %v12230_v1 }
 0x5d4   :  { %8809 = vmatprep.mubr.msk.f32.mxu0 %vm10826_vm2, %v15509_v10 }
 0x5d7   :  { %8810 = vmatmul.mubr.msk.f32.gmra.mrb[190].mxu0 %vm141_vm0, %v12239_v43 }
 0x5d8   :  { %8812 = vmatprep.mubr.msk.f32.mxu0 %vm10826_vm2, %v15509_v10 }
 0x5db   :  { %8813 = vmatmul.mubr.msk.f32.gmra.mrb[192].mxu0 %vm141_vm0, %v12248_v21  ;;  %v15691_v21 = vld [vmem:[#allocation31_spill] sm:$0xff] }
 0x5dc   :  { %8815 = vmatprep.mubr.msk.f32.mxu0 %vm10826_vm2, %v15509_v10 }
 0x5df   :  { %8816 = vmatmul.mubr.msk.f32.gmra.mrb[194].mxu0 %vm141_vm0, %v12257_v39 }
 0x5e0   :  { %8818 = vmatprep.mubr.msk.f32.mxu0 %vm10826_vm2, %v15509_v10 }
 0x5e3   :  { %8819 = vmatmul.mubr.msk.f32.gmra.mrb[196].mxu0 %vm141_vm0, %v12266_v41 }
 0x5e4   :  { %8821 = vmatprep.mubr.msk.f32.mxu0 %vm10826_vm2, %v15509_v10 }
 0x5e7   :  { %8822 = vmatmul.mubr.msk.f32.gmra.mrb[198].mxu0 %vm141_vm0, %v12275_v31 }
 0x5e8   :  { %8824 = vmatprep.mubr.msk.f32.mxu0 %vm10826_vm2, %v15509_v10 }
 0x5eb   :  { %8825 = vmatmul.mubr.msk.f32.gmra.mrb[200].mxu0 %vm141_vm0, %v12284_v28  ;;  %v15692_v28 = vld [vmem:[#allocation33_spill] sm:$0xff] }
 0x5ec   :  { %8827 = vmatprep.mubr.msk.f32.mxu0 %vm10826_vm2, %v15509_v10 }
 0x5ef   :  { %8828 = vmatmul.mubr.msk.f32.gmra.mrb[202].mxu0 %vm141_vm0, %v15661_v44 }
 0x5f0   :  { %8830 = vmatprep.mubr.msk.f32.mxu0 %vm10826_vm2, %v15509_v10 }
 0x5f3   :  { %8831 = vmatmul.mubr.msk.f32.gmra.mrb[204].mxu0 %vm141_vm0, %v15662_v55 }
 0x5f4   :  { %8833 = vmatprep.mubr.msk.f32.mxu0 %vm10826_vm2, %v15509_v10 }
 0x5f7   :  { %8834 = vmatmul.mubr.msk.f32.gmra.mrb[206].mxu0 %vm141_vm0, %v15663_v40 }
 0x5f8   :  { %8836 = vmatprep.mubr.msk.f32.mxu0 %vm10826_vm2, %v15509_v10 }
 0x5fb   :  { %8837 = vmatmul.mubr.msk.f32.gmra.mrb[208].mxu0 %vm141_vm0, %v15664_v63  ;;  %v15693_v63 = vld [vmem:[#allocation35_spill] sm:$0xff] }
 0x5fc   :  { %8930 = vmatprep.mubr.msk.f32.mxu0 %vm10826_vm2, %v15509_v10 }
 0x67e   :  { %v2506_v38 = vpop.f32.mrb[168].mxu0 }
 0x67f   :  { %v2617_v7 = vadd.f32 %v2506_v38, %v15689_v17  ;;  %v8778_v24 = vpop.f32.mrb[169].mxu0 }
 0x681   :  { %v2624_v25 = vmul.f32 0.5, %v2617_v7 }
 0x682   :  { %v2511_v13 = vpop.f32.mrb[170].mxu0 }
 0x683   :  { %v2618_v14 = vadd.f32 %v2511_v13, %v15690_v11  ;;  %v8781_v1 = vpop.f32.mrb[171].mxu0  ;;  %10138 = vtanh.f32 %v2624_v25 }
 0x684   :  { %v15700_v1 = vld [vmem:[#allocation49_spill] sm:$0xff] }
 0x685   :  { %v2625_v56 = vmul.f32 0.5, %v2618_v14  ;;  %v15701_v14 = vld [vmem:[#allocation51_spill] sm:$0xff] }
 0x686   :  { %v2516_v43 = vpop.f32.mrb[172].mxu0 }
 0x687   :  { %v2619_v39 = vadd.f32 %v2516_v43, %v15691_v21  ;;  %v8784_v41 = vpop.f32.mrb[173].mxu0  ;;  %10140 = vtanh.f32 %v2625_v56 }
 0x689   :  { %v2626_v24 = vmul.f32 0.5, %v2619_v39 }
 0x68a   :  { %v2521_v31 = vpop.f32.mrb[174].mxu0 }
 0x68b   :  { %v2620_v44 = vadd.f32 %v2521_v31, %v15692_v28  ;;  %v8787_v55 = vpop.f32.mrb[175].mxu0  ;;  %10142 = vtanh.f32 %v2626_v24 }
 0x68d   :  { %v2627_v11 = vmul.f32 0.5, %v2620_v44  ;;  %v10139_v41 = vpop.eup %10138 }
 0x68e   :  { %v2526_v40 = vpop.f32.mrb[176].mxu0 }
 0x68f   :  { %v2621_v19 = vadd.f32 %v2526_v40, %v15693_v63  ;;  %v8790_v8 = vpop.f32.mrb[177].mxu0  ;;  %10144 = vtanh.f32 %v2627_v11 }
 0x690   :  { %v2638_v8 = vmul.f32 0.5, %v10139_v41 }
 0x691   :  { %v2628_v55 = vmul.f32 0.5, %v2621_v19  ;;  %v10141_v40 = vpop.eup %10140 }
 0x692   :  { %v2531_v12 = vpop.f32.mrb[178].mxu0 }
 0x693   :  { %v2622_v46 = vadd.f32 %v2531_v12, %v15694_v54  ;;  %v8793_v57 = vpop.f32.mrb[179].mxu0  ;;  %10146 = vtanh.f32 %v2628_v55 }
 0x694   :  { %v15702_v57 = vld [vmem:[#allocation53_spill] sm:$0xff] }
 0x695   :  { %v2629_v54 = vmul.f32 0.5, %v2622_v46  ;;  %v15703_v46 = vld [vmem:[#allocation55_spill] sm:$0xff] }
 0x696   :  { %v2536_v47 = vpop.f32.mrb[180].mxu0 }
 0x697   :  { %v2623_v2 = vadd.f32 %v2536_v47, %v15695_v42  ;;  %v8796_v3 = vpop.f32.mrb[181].mxu0  ;;  %v2639_v47 = vmul.f32 0.5, %v10141_v40 }
 0x698   :  { %v2645_v3 = vadd.f32 0.5, %v2638_v8 }
 0x699   :  { %v2630_v19 = vmul.f32 0.5, %v2623_v2 }
 0x69a   :  { %v2541_v49 = vpop.f32.mrb[182].mxu0 }
 0x69b   :  { %v2659_v51 = vadd.f32 %v2541_v49, %v15696_v5  ;;  %v8799_v35 = vpop.f32.mrb[183].mxu0  ;;  %v10143_v49 = vpop.eup %10142 }
 0x69d   :  { %v2666_v63 = vmul.f32 0.5, %v2659_v51  ;;  %v10145_v51 = vpop.eup %10144 }
 0x69e   :  { %v2546_v18 = vpop.f32.mrb[184].mxu0 }
 0x69f   :  { %v2660_v27 = vadd.f32 %v2546_v18, %v15697_v33  ;;  %v8802_v45 = vpop.f32.mrb[185].mxu0  ;;  %10148 = vtanh.f32 %v2666_v63  ;;  %v2646_v33 = vadd.f32 0.5, %v2639_v47  ;;  %v15706_v47 = vld [vmem:[#allocation61_spill] sm:$0xff] }
 0x6a0   :  { %10150 = vtanh.f32 %v2629_v54 }
 0x6a1   :  { %v2667_v42 = vmul.f32 0.5, %v2660_v27  ;;  %v2641_v27 = vmul.f32 0.5, %v10145_v51 }
 0x6a2   :  { %v2551_v60 = vpop.f32.mrb[186].mxu0 }
 0x6a3   :  { %v2661_v50 = vadd.f32 %v2551_v60, %v15698_v34  ;;  %v8805_v61 = vpop.f32.mrb[187].mxu0  ;;  %10152 = vtanh.f32 %v2667_v42  ;;  %v2640_v60 = vmul.f32 0.5, %v10143_v49 }
 0x6a5   :  { %v2668_v45 = vmul.f32 0.5, %v2661_v50  ;;  %v2647_v24 = vadd.f32 0.5, %v2640_v60 }
 0x6a6   :  { %v2556_v29 = vpop.f32.mrb[188].mxu0 }
 0x6a7   :  { %v2662_v38 = vadd.f32 %v2556_v29, %v15699_v48  ;;  %v8808_v17 = vpop.f32.mrb[189].mxu0  ;;  %v15704_v48 = vld [vmem:[#allocation57_spill] sm:$0xff] }
 0x6a9   :  { %v2669_v29 = vmul.f32 0.5, %v2662_v38 }
 0x6aa   :  { %v2561_v13 = vpop.f32.mrb[190].mxu0 }
 0x6ab   :  { %v2663_v43 = vadd.f32 %v2561_v13, %v15700_v1  ;;  %v8811_v21 = vpop.f32.mrb[191].mxu0  ;;  %v10147_v13 = vpop.eup %10146 }
 0x6ac   :  { %v10149_v11 = vpop.eup %10148  ;;  %v2648_v21 = vadd.f32 0.5, %v2641_v27  ;;  %v2642_v55 = vmul.f32 0.5, %v10147_v13 }
 0x6ad   :  { %v10151_v41 = vpop.eup %10150  ;;  %v2680_v40 = vmul.f32 0.5, %v10149_v11 }
 0x6ae   :  { %v2566_v7 = vpop.f32.mrb[192].mxu0  ;;  %v10153_v8 = vpop.eup %10152  ;;  %v2643_v54 = vmul.f32 0.5, %v10151_v41 }
 0x6af   :  { %v2664_v31 = vadd.f32 %v2566_v7, %v15701_v14  ;;  %v8814_v28 = vpop.f32.mrb[193].mxu0  ;;  %v2670_v7 = vmul.f32 0.5, %v2663_v43  ;;  %v15705_v14 = vld [vmem:[#allocation59_spill] sm:$0xff] }
 0x6b2   :  { %v2571_v12 = vpop.f32.mrb[194].mxu0 }
 0x6b3   :  { %v12653_v39 = vadd.f32 %v2571_v12, %v15702_v57  ;;  %v8817_v44 = vpop.f32.mrb[195].mxu0 }
 0x6b4   :  { %v2671_v44 = vmul.f32 0.5, %v2664_v31  ;;  %v15707_v31 = vld [vmem:[#allocation63_spill] sm:$0xff] }
 0x6b5   :  { %v2672_v60 = vmul.f32 0.5, %v12653_v39 }
 0x6b6   :  { %v2576_v5 = vpop.f32.mrb[196].mxu0 }
 0x6b7   :  { %v2701_v35 = vmul.f32 %v2645_v3, %v2576_v5  ;;  %v8820_v18 = vpop.f32.mrb[197].mxu0  ;;  %v2649_v3 = vadd.f32 0.5, %v2642_v55  ;;  %v2687_v5 = vadd.f32 0.5, %v2680_v40 }
 0x6b9   :  { %v2708_v25 = vadd.f32 %v2701_v35, %v15703_v46  ;;  %v2681_v35 = vmul.f32 0.5, %v10153_v8 }
 0x6ba   :  { %v2581_v56 = vpop.f32.mrb[198].mxu0 }
 0x6bb   :  { %10154 = vtanh.f32 %v2708_v25  ;;  %v2702_v34 = vmul.f32 %v2646_v33, %v2581_v56  ;;  %v8823_v61 = vpop.f32.mrb[199].mxu0 }
 0x6bc   :  { %10156 = vtanh.f32 %v2630_v19  ;;  %v2688_v61 = vadd.f32 0.5, %v2681_v35 }
 0x6bd   :  { %10158 = vtanh.f32 %v2668_v45  ;;  %v2709_v17 = vadd.f32 %v2702_v34, %v15704_v48  ;;  %v2650_v45 = vadd.f32 0.5, %v2643_v54 }
 0x6be   :  { %v2586_v2 = vpop.f32.mrb[200].mxu0 }
 0x6bf   :  { %10160 = vtanh.f32 %v2709_v17  ;;  %v2703_v1 = vmul.f32 %v2647_v24, %v2586_v2  ;;  %v8826_v50 = vpop.f32.mrb[201].mxu0 }
 0x6c0   :  { %10162 = vtanh.f32 %v2669_v29 }
 0x6c1   :  { %v2710_v28 = vadd.f32 %v2703_v1, %v15705_v14  ;;  %v15708_v1 = vld [vmem:[#allocation65_spill] sm:$0xff] }
 0x6c2   :  { %v2591_v63 = vpop.f32.mrb[202].mxu0 }
 0x6c3   :  { %10164 = vtanh.f32 %v2710_v28  ;;  %v2704_v38 = vmul.f32 %v2648_v21, %v2591_v63  ;;  %v8829_v12 = vpop.f32.mrb[203].mxu0 }
 0x6c4   :  { %10166 = vtanh.f32 %v2670_v7  ;;  %v15709_v12 = vld [vmem:[#allocation67_spill] sm:$0xff] }
 0x6c5   :  { %v10155_v57 = vpop.eup %10154  ;;  %v2711_v42 = vadd.f32 %v2704_v38, %v15706_v47 }
 0x6c6   :  { %v10157_v49 = vpop.eup %10156  ;;  %v2596_v43 = vpop.f32.mrb[204].mxu0  ;;  %v2722_v18 = vsub.f32 %v12499_v37, %v10155_v57 }
 0x6c7   :  { %v10159_v19 = vpop.eup %10158  ;;  %10168 = vtanh.f32 %v2711_v42  ;;  %v2705_v33 = vmul.f32 %v2649_v3, %v2596_v43  ;;  %v8832_v51 = vpop.f32.mrb[205].mxu0  ;;  %v2644_v34 = vmul.f32 0.5, %v10157_v49 }
 0x6c8   :  { %v2729_v46 = vmul.f32 %v2722_v18, %v2687_v5  ;;  %10170 = vtanh.f32 %v2671_v44  ;;  %v2682_v27 = vmul.f32 0.5, %v10159_v19 }
 0x6c9   :  { %v10161_v25 = vpop.eup %10160  ;;  %v2712_v56 = vadd.f32 %v2705_v33, %v15707_v31  ;;  %v2651_v39 = vadd.f32 0.5, %v2644_v34 }
 0x6ca   :  { %v2601_v29 = vpop.f32.mrb[206].mxu0  ;;  %v2723_v48 = vsub.f32 %v12502_v15, %v10161_v25  ;;  %v12663_v17 = vadd.f32 %v10155_v57, %v2729_v46  ;;  %v10163_v37 = vpop.eup %10162  ;;  %v2689_v21 = vadd.f32 0.5, %v2682_v27 }
 0x6cb   :  { %10172 = vtanh.f32 %v2712_v56  ;;  %v2706_v24 = vmul.f32 %v2650_v45, %v2601_v29  ;;  %v8835_v13 = vpop.f32.mrb[207].mxu0  ;;  %v2683_v41 = vmul.f32 0.5, %v10163_v37  ;;  %v12728_v37 = vld [vmem:[%s15464_s2 + $0x20] sm:$0xff] }
 0x6cc   :  { %v2730_v2 = vmul.f32 %v2723_v48, %v2688_v61  ;;  %10174 = vtanh.f32 %v2672_v60  ;;  %v12746_v13 = vld [vmem:[%s15464_s2 + $0x30] sm:$0xff] }
 0x6cd   :  { %v10165_v11 = vpop.eup %10164  ;;  %v2713_v50 = vadd.f32 %v2706_v24, %v15708_v1  ;;  %v2690_v57 = vadd.f32 0.5, %v2683_v41  ;;  %v12737_v24 = vld [vmem:[%s15464_s2 + $0x28] sm:$0xff] }
 0x6ce   :  { %v2606_v7 = vpop.f32.mrb[208].mxu0  ;;  %v12666_v14 = vadd.f32 %v10161_v25, %v2730_v2  ;;  %v2724_v28 = vsub.f32 %v12512_v20, %v10165_v11  ;;  %v10167_v15 = vpop.eup %10166  ;;  %v12755_v2 = vld [vmem:[%s15464_s2 + $0x38] sm:$0xff]  ;;  %v12773_v1 = vld [vmem:[%s15464_s2 + $0x48] sm:$0xff] }
 0x6cf   :  { %10176 = vtanh.f32 %v2713_v50  ;;  %v2707_v55 = vmul.f32 %v2651_v39, %v2606_v7  ;;  %v8838_v40 = vpop.f32.mrb[209].mxu0  ;;  %v2684_v44 = vmul.f32 0.5, %v10167_v15  ;;  %v12782_v50 = vld [vmem:[%s15464_s2 + $0x50] sm:$0xff]  ;;  %v12791_v39 = vld [vmem:[%s15464_s2 + $0x58] sm:$0xff]  ;;  %v12809_v41 = vld [vmem:[%s15464_s2 + $0x68] sm:$0xff] }
 0x6d0   :  { %v12671_v63 = vpack.c.bf16 %v12666_v14, %v12663_v17  ;;  %v2731_v8 = vmul.f32 %v2724_v28, %v2689_v21  ;;  %v12800_v21 = vld [vmem:[%s15464_s2 + $0x60] sm:$0xff]  ;;  %v12818_v7 = vld [vmem:[%s15464_s2 + $0x70] sm:$0xff]  ;;  %v12827_v28 = vld [vmem:[%s15464_s2 + $0x78] sm:$0xff] }
 0x6d1   :  { %v10169_v38 = vpop.eup %10168  ;;  %v2714_v54 = vadd.f32 %v2707_v55, %v15709_v12  ;;  %v2691_v5 = vadd.f32 0.5, %v2684_v44  ;;  %v12836_v15 = vld [vmem:[%s15464_s2 + $0x80] sm:$0xff]  ;;  %v12845_v55 = vld [vmem:[%s15464_s2 + $0x88] sm:$0xff]  ;;  %v12854_v40 = vld [vmem:[%s15464_s2 + $0x90] sm:$0xff] }
 0x6d2   :  { %9798 = vmatpush3.bf16.msra.mxu1 %v12671_v63  ;;  %v2725_v47 = vsub.f32 %v12515_v23, %v10169_v38  ;;  %v12676_v42 = vadd.f32 %v10165_v11, %v2731_v8  ;;  %v10171_v20 = vpop.eup %10170  ;;  %v12764_v11 = vld [vmem:[%s15464_s2 + $0x40] sm:$0xff]  ;;  %v12863_v8 = vld [vmem:[%s15464_s2 + $0x98] sm:$0xff] }
 0x6d3   :  { %10178 = vtanh.f32 %v2714_v54  ;;  %9799 = vmatprep.subr.bf16.mxu1 %v15512_v6  ;;  %v2685_v35 = vmul.f32 0.5, %v10171_v20  ;;  %v15710_v54 = vld [vmem:[#allocation28_spill] sm:$0xff]  ;;  %v15711_v20 = vld [vmem:[#allocation30_spill] sm:$0xff] }
 0x6d4   :  { %v2732_v3 = vmul.f32 %v2725_v47, %v2690_v57 }
 0x6d5   :  { %v10173_v49 = vpop.eup %10172  ;;  %v2692_v45 = vadd.f32 0.5, %v2685_v35  ;;  %v15712_v35 = vld [vmem:[#allocation32_spill] sm:$0xff] }
 0x6d6   :  { %v12679_v43 = vadd.f32 %v10169_v38, %v2732_v3  ;;  %v2726_v18 = vsub.f32 %v12524_v4, %v10173_v49  ;;  %v10175_v19 = vpop.eup %10174  ;;  %v12872_v38 = vld [vmem:[%s15464_s2 + $0xa0] sm:$0xff] }
 0x6d7   :  { %v2686_v46 = vmul.f32 0.5, %v10175_v19 }
 0x6d8   :  { %v12684_v33 = vpack.c.bf16 %v12679_v43, %v12676_v42  ;;  %v2733_v23 = vmul.f32 %v2726_v18, %v2691_v5 }
 0x6d9   :  { %v10177_v51 = vpop.eup %10176  ;;  %v2693_v4 = vadd.f32 0.5, %v2686_v46 }
 0x6da   :  { %9801 = vmatpush3.bf16.msra.mxu1 %v12684_v33  ;;  %v2727_v25 = vsub.f32 %v12527_v22, %v10177_v51  ;;  %v12688_v60 = vadd.f32 %v10173_v49, %v2733_v23  ;;  %v12719_v22 = vld [vmem:[%s15464_s2 + $0x18] sm:$0xff] }
 0x6db   :  { %9802 = vmatprep.subr.bf16.mxu1 %v15512_v6 }
 0x6dc   :  { %v2734_v31 = vmul.f32 %v2727_v25, %v2692_v45 }
 0x6dd   :  { %v10179_v56 = vpop.eup %10178 }
 0x6de   :  { %v12691_v34 = vadd.f32 %v10177_v51, %v2734_v31  ;;  %v2728_v61 = vsub.f32 %v12535_v62, %v10179_v56  ;;  %v15713_v51 = vld [vmem:[#allocation34_spill] sm:$0xff]  ;;  %v15714_v31 = vld [vmem:[#allocation36_spill] sm:$0xff] }
 0x6df   :  { %v15717_v62 = vld [vmem:[#allocation42_spill] sm:$0xff] }
 0x6e0   :  { %v12696_v27 = vpack.c.bf16 %v12691_v34, %v12688_v60  ;;  %v2735_v29 = vmul.f32 %v2728_v61, %v2693_v4 }
 0x6e2   :  { %9804 = vmatpush3.bf16.msra.mxu1 %v12696_v27  ;;  %v12699_v48 = vadd.f32 %v10179_v56, %v2735_v29  ;;  %v15715_v29 = vld [vmem:[#allocation38_spill] sm:$0xff] }
 0x6e3   :  { %8851 = vmatprep.subr.mxu1 %v15509_v10 }
 0x6e6   :  { %8852 = vmatpush3.msra.mxu1 %v12699_v48 }
 0x6e7   :  { %8854 = vmatmul.mubr.msk.f32.vlgmr.msra.gmra.mrb[168].mxu1 %vm141_vm0, %v12542_v52  ;;  %9814 = vmatprep.subr.bf16.mxu1 %v15512_v6 }
 0x6e8   :  { %8856 = vmatprep.mubr.msk.f32.mxu1 %vm10826_vm2, %v15509_v10 }
 0x6eb   :  { %8857 = vmatmul.mubr.msk.f32.gmra.mrb[170].mxu1 %vm141_vm0, %v12552_v53 }
 0x6ec   :  { %8859 = vmatprep.mubr.msk.f32.mxu1 %vm10826_vm2, %v15509_v10 }
 0x6ef   :  { %8860 = vmatmul.mubr.msk.f32.gmra.mrb[172].mxu1 %vm141_vm0, %v12561_v30 }
 0x6f0   :  { %8862 = vmatprep.mubr.msk.f32.mxu1 %vm10826_vm2, %v15509_v10 }
 0x6f3   :  { %8863 = vmatmul.mubr.msk.f32.gmra.mrb[174].mxu1 %vm141_vm0, %v12719_v22 }
 0x6f4   :  { %8865 = vmatprep.mubr.msk.f32.mxu1 %vm10826_vm2, %v15509_v10 }
 0x6f7   :  { %8866 = vmatmul.mubr.msk.f32.gmra.mrb[176].mxu1 %vm141_vm0, %v12728_v37 }
 0x6f8   :  { %8868 = vmatprep.mubr.msk.f32.mxu1 %vm10826_vm2, %v15509_v10 }
 0x6fb   :  { %8869 = vmatmul.mubr.msk.f32.gmra.mrb[178].mxu1 %vm141_vm0, %v12737_v24 }
 0x6fc   :  { %8871 = vmatprep.mubr.msk.f32.mxu1 %vm10826_vm2, %v15509_v10 }
 0x6ff   :  { %8872 = vmatmul.mubr.msk.f32.gmra.mrb[180].mxu1 %vm141_vm0, %v12746_v13 }
 0x700   :  { %8874 = vmatprep.mubr.msk.f32.mxu1 %vm10826_vm2, %v15509_v10 }
 0x703   :  { %8875 = vmatmul.mubr.msk.f32.gmra.mrb[182].mxu1 %vm141_vm0, %v12755_v2 }
 0x704   :  { %8877 = vmatprep.mubr.msk.f32.mxu1 %vm10826_vm2, %v15509_v10 }
 0x707   :  { %8878 = vmatmul.mubr.msk.f32.gmra.mrb[184].mxu1 %vm141_vm0, %v12764_v11 }
 0x708   :  { %8880 = vmatprep.mubr.msk.f32.mxu1 %vm10826_vm2, %v15509_v10 }
 0x70b   :  { %8881 = vmatmul.mubr.msk.f32.gmra.mrb[186].mxu1 %vm141_vm0, %v12773_v1 }
 0x70c   :  { %8883 = vmatprep.mubr.msk.f32.mxu1 %vm10826_vm2, %v15509_v10 }
 0x70f   :  { %8884 = vmatmul.mubr.msk.f32.gmra.mrb[188].mxu1 %vm141_vm0, %v12782_v50 }
 0x710   :  { %8886 = vmatprep.mubr.msk.f32.mxu1 %vm10826_vm2, %v15509_v10 }
 0x713   :  { %8887 = vmatmul.mubr.msk.f32.gmra.mrb[190].mxu1 %vm141_vm0, %v12791_v39 }
 0x714   :  { %8889 = vmatprep.mubr.msk.f32.mxu1 %vm10826_vm2, %v15509_v10 }
 0x717   :  { %8890 = vmatmul.mubr.msk.f32.gmra.mrb[192].mxu1 %vm141_vm0, %v12800_v21 }
 0x718   :  { %8892 = vmatprep.mubr.msk.f32.mxu1 %vm10826_vm2, %v15509_v10 }
 0x71b   :  { %8893 = vmatmul.mubr.msk.f32.gmra.mrb[194].mxu1 %vm141_vm0, %v12809_v41 }
 0x71c   :  { %8895 = vmatprep.mubr.msk.f32.mxu1 %vm10826_vm2, %v15509_v10 }
 0x71f   :  { %8896 = vmatmul.mubr.msk.f32.gmra.mrb[196].mxu1 %vm141_vm0, %v12818_v7 }
 0x720   :  { %8898 = vmatprep.mubr.msk.f32.mxu1 %vm10826_vm2, %v15509_v10 }
 0x723   :  { %8899 = vmatmul.mubr.msk.f32.gmra.mrb[198].mxu1 %vm141_vm0, %v12827_v28 }
 0x724   :  { %8901 = vmatprep.mubr.msk.f32.mxu1 %vm10826_vm2, %v15509_v10 }
 0x727   :  { %8902 = vmatmul.mubr.msk.f32.gmra.mrb[200].mxu1 %vm141_vm0, %v12836_v15 }
 0x728   :  { %8904 = vmatprep.mubr.msk.f32.mxu1 %vm10826_vm2, %v15509_v10 }
 0x72b   :  { %8905 = vmatmul.mubr.msk.f32.gmra.mrb[202].mxu1 %vm141_vm0, %v12845_v55 }
 0x72c   :  { %8907 = vmatprep.mubr.msk.f32.mxu1 %vm10826_vm2, %v15509_v10 }
 0x72f   :  { %8908 = vmatmul.mubr.msk.f32.gmra.mrb[204].mxu1 %vm141_vm0, %v12854_v40 }
 0x730   :  { %8910 = vmatprep.mubr.msk.f32.mxu1 %vm10826_vm2, %v15509_v10 }
 0x733   :  { %8911 = vmatmul.mubr.msk.f32.gmra.mrb[206].mxu1 %vm141_vm0, %v12863_v8 }
 0x734   :  { %8913 = vmatprep.mubr.msk.f32.mxu1 %vm10826_vm2, %v15509_v10 }
 0x737   :  { %8914 = vmatmul.mubr.msk.f32.gmra.mrb[208].mxu1 %vm141_vm0, %v12872_v38 }
 0x738   :  { %9007 = vmatprep.mubr.msk.f32.mxu1 %vm10826_vm2, %v15509_v10 }
 0x7ba   :  { %v2816_v12 = vpop.f32.mrb[168].mxu1 }
 0x7bb   :  { %v2927_v57 = vadd.f32 %v2816_v12, %v15710_v54  ;;  %v8855_v44 = vpop.f32.mrb[169].mxu1 }
 0x7be   :  { %v2821_v47 = vpop.f32.mrb[170].mxu1 }
 0x7bf   :  { %v2928_v3 = vadd.f32 %v2821_v47, %v15711_v20  ;;  %v8858_v49 = vpop.f32.mrb[171].mxu1 }
 0x7c2   :  { %v2826_v5 = vpop.f32.mrb[172].mxu1 }
 0x7c3   :  { %v2929_v18 = vadd.f32 %v2826_v5, %v15712_v35  ;;  %v8861_v19 = vpop.f32.mrb[173].mxu1 }
 0x7c6   :  { %v2831_v23 = vpop.f32.mrb[174].mxu1 }
 0x7c7   :  { %v2930_v45 = vadd.f32 %v2831_v23, %v15713_v51  ;;  %v8864_v46 = vpop.f32.mrb[175].mxu1 }
 0x7c8   :  { %v2934_v46 = vmul.f32 0.5, %v2927_v57 }
 0x7ca   :  { %v2836_v25 = vpop.f32.mrb[176].mxu1  ;;  %10180 = vtanh.f32 %v2934_v46 }
 0x7cb   :  { %v2931_v56 = vadd.f32 %v2836_v25, %v15714_v31  ;;  %v8867_v4 = vpop.f32.mrb[177].mxu1  ;;  %v2935_v25 = vmul.f32 0.5, %v2928_v3  ;;  %v15719_v31 = vld [vmem:[#allocation46_spill] sm:$0xff]  ;;  %v15722_v3 = vld [vmem:[#allocation52_spill] sm:$0xff] }
 0x7cd   :  { %10182 = vtanh.f32 %v2935_v25 }
 0x7ce   :  { %v2841_v61 = vpop.f32.mrb[178].mxu1 }
 0x7cf   :  { %v2932_v12 = vadd.f32 %v2841_v61, %v15715_v29  ;;  %v8870_v54 = vpop.f32.mrb[179].mxu1  ;;  %v15720_v29 = vld [vmem:[#allocation48_spill] sm:$0xff] }
 0x7d2   :  { %v2846_v44 = vpop.f32.mrb[180].mxu1 }
 0x7d3   :  { %v2933_v47 = vadd.f32 %v2846_v44, %v15716_v0  ;;  %v8873_v20 = vpop.f32.mrb[181].mxu1  ;;  %v2936_v44 = vmul.f32 0.5, %v2929_v18 }
 0x7d5   :  { %10184 = vtanh.f32 %v2936_v44 }
 0x7d6   :  { %v2851_v49 = vpop.f32.mrb[182].mxu1 }
 0x7d7   :  { %v2969_v5 = vadd.f32 %v2851_v49, %v15717_v62  ;;  %v8876_v35 = vpop.f32.mrb[183].mxu1  ;;  %v2937_v62 = vmul.f32 0.5, %v2930_v45  ;;  %v15721_v49 = vld [vmem:[#allocation50_spill] sm:$0xff] }
 0x7d9   :  { %10186 = vtanh.f32 %v2937_v62  ;;  %v2976_v46 = vmul.f32 0.5, %v2969_v5 }
 0x7da   :  { %v2856_v19 = vpop.f32.mrb[184].mxu1 }
 0x7db   :  { %v2970_v23 = vadd.f32 %v2856_v19, %v15718_v9  ;;  %v8879_v51 = vpop.f32.mrb[185].mxu1  ;;  %v10181_v9 = vpop.eup %10180 }
 0x7dc   :  { %v10183_v51 = vpop.eup %10182  ;;  %v2948_v25 = vmul.f32 0.5, %v10181_v9 }
 0x7de   :  { %v2861_v58 = vpop.f32.mrb[186].mxu1  ;;  %v2955_v44 = vadd.f32 0.5, %v2948_v25  ;;  %v15725_v25 = vld [vmem:[#allocation58_spill] sm:$0xff] }
 0x7df   :  { %v2971_v4 = vadd.f32 %v2861_v58, %v15719_v31  ;;  %v8882_v59 = vpop.f32.mrb[187].mxu1 }
 0x7e0   :  { %v2938_v59 = vmul.f32 0.5, %v2931_v56  ;;  %v2940_v56 = vmul.f32 0.5, %v2933_v47 }
 0x7e1   :  { %v2978_v9 = vmul.f32 0.5, %v2971_v4 }
 0x7e2   :  { %v2866_v61 = vpop.f32.mrb[188].mxu1  ;;  %10188 = vtanh.f32 %v2938_v59 }
 0x7e3   :  { %v2972_v0 = vadd.f32 %v2866_v61, %v15720_v29  ;;  %v8885_v54 = vpop.f32.mrb[189].mxu1  ;;  %v2939_v61 = vmul.f32 0.5, %v2932_v12  ;;  %v15723_v29 = vld [vmem:[#allocation54_spill] sm:$0xff]  ;;  %10190 = vtanh.f32 %v2976_v46  ;;  %v15724_v12 = vld [vmem:[#allocation56_spill] sm:$0xff] }
 0x7e4   :  { %v2949_v54 = vmul.f32 0.5, %v10183_v51 }
 0x7e5   :  { %10192 = vtanh.f32 %v2939_v61  ;;  %v2979_v46 = vmul.f32 0.5, %v2972_v0 }
 0x7e6   :  { %v2871_v20 = vpop.f32.mrb[190].mxu1 }
 0x7e7   :  { %v2973_v35 = vadd.f32 %v2871_v20, %v15721_v49  ;;  %v8888_v36 = vpop.f32.mrb[191].mxu1  ;;  %v10185_v20 = vpop.eup %10184 }
 0x7e8   :  { %v2977_v36 = vmul.f32 0.5, %v2970_v23  ;;  %v10187_v5 = vpop.eup %10186 }
 0x7e9   :  { %v2951_v23 = vmul.f32 0.5, %v10187_v5 }
 0x7ea   :  { %v2876_v57 = vpop.f32.mrb[192].mxu1  ;;  %10194 = vtanh.f32 %v2977_v36 }
 0x7eb   :  { %v2974_v19 = vadd.f32 %v2876_v57, %v15722_v3  ;;  %v8891_v58 = vpop.f32.mrb[193].mxu1  ;;  %v2956_v3 = vadd.f32 0.5, %v2949_v54 }
 0x7ee   :  { %v2881_v31 = vpop.f32.mrb[194].mxu1 }
 0x7ef   :  { %v12892_v18 = vadd.f32 %v2881_v31, %v15723_v29  ;;  %v8894_v45 = vpop.f32.mrb[195].mxu1  ;;  %v2950_v31 = vmul.f32 0.5, %v10185_v20  ;;  %v2980_v20 = vmul.f32 0.5, %v2973_v35 }
 0x7f1   :  { %v2957_v45 = vadd.f32 0.5, %v2950_v31 }
 0x7f2   :  { %v2886_v62 = vpop.f32.mrb[196].mxu1 }
 0x7f3   :  { %v3011_v49 = vmul.f32 %v2955_v44, %v2886_v62  ;;  %v8897_v57 = vpop.f32.mrb[197].mxu1  ;;  %v10189_v44 = vpop.eup %10188  ;;  %v2958_v62 = vadd.f32 0.5, %v2951_v23 }
 0x7f4   :  { %v10191_v54 = vpop.eup %10190  ;;  %v15726_v57 = vld [vmem:[#allocation60_spill] sm:$0xff] }
 0x7f5   :  { %v3018_v58 = vadd.f32 %v3011_v49, %v15724_v12  ;;  %v10193_v49 = vpop.eup %10192  ;;  %v2952_v12 = vmul.f32 0.5, %v10189_v44 }
 0x7f6   :  { %v2891_v29 = vpop.f32.mrb[198].mxu1  ;;  %v2953_v31 = vmul.f32 0.5, %v10193_v49  ;;  %v2982_v49 = vmul.f32 0.5, %v12892_v18 }
 0x7f7   :  { %10196 = vtanh.f32 %v3018_v58  ;;  %v3012_v59 = vmul.f32 %v2956_v3, %v2891_v29  ;;  %v8900_v51 = vpop.f32.mrb[199].mxu1 }
 0x7f8   :  { %10198 = vtanh.f32 %v2940_v56  ;;  %v2990_v56 = vmul.f32 0.5, %v10191_v54  ;;  %v15727_v51 = vld [vmem:[#allocation62_spill] sm:$0xff] }
 0x7f9   :  { %10200 = vtanh.f32 %v2978_v9  ;;  %v3019_v61 = vadd.f32 %v3012_v59, %v15725_v25  ;;  %v10195_v9 = vpop.eup %10194  ;;  %v2981_v59 = vmul.f32 0.5, %v2974_v19  ;;  %v15728_v19 = vld [vmem:[#allocation64_spill] sm:$0xff] }
 0x7fa   :  { %v2896_v47 = vpop.f32.mrb[200].mxu1 }
 0x7fb   :  { %10202 = vtanh.f32 %v3019_v61  ;;  %v3013_v36 = vmul.f32 %v2957_v45, %v2896_v47  ;;  %v8903_v4 = vpop.f32.mrb[201].mxu1  ;;  %v2959_v61 = vadd.f32 0.5, %v2952_v12  ;;  %v2997_v45 = vadd.f32 0.5, %v2990_v56 }
 0x7fc   :  { %10204 = vtanh.f32 %v2979_v46  ;;  %v2991_v46 = vmul.f32 0.5, %v10195_v9  ;;  %v2960_v4 = vadd.f32 0.5, %v2953_v31 }
 0x7fd   :  { %v3020_v3 = vadd.f32 %v3013_v36, %v15726_v57 }
 0x7fe   :  { %v2901_v5 = vpop.f32.mrb[202].mxu1  ;;  %v2998_v12 = vadd.f32 0.5, %v2991_v46 }
 0x7ff   :  { %10206 = vtanh.f32 %v3020_v3  ;;  %v3014_v0 = vmul.f32 %v2958_v62, %v2901_v5  ;;  %v8906_v58 = vpop.f32.mrb[203].mxu1 }
 0x800   :  { %10208 = vtanh.f32 %v2980_v20 }
 0x801   :  { %v10197_v29 = vpop.eup %10196  ;;  %v3021_v25 = vadd.f32 %v3014_v0, %v15727_v51 }
 0x802   :  { %v10199_v23 = vpop.eup %10198  ;;  %v2906_v35 = vpop.f32.mrb[204].mxu1  ;;  %v3032_v47 = vsub.f32 %v12663_v17, %v10197_v29 }
 0x803   :  { %v10201_v44 = vpop.eup %10200  ;;  %10210 = vtanh.f32 %v3021_v25  ;;  %v3015_v54 = vmul.f32 %v2959_v61, %v2906_v35  ;;  %v8909_v36 = vpop.f32.mrb[205].mxu1  ;;  %v2954_v3 = vmul.f32 0.5, %v10199_v23 }
 0x804   :  { %v3039_v62 = vmul.f32 %v3032_v47, %v2997_v45  ;;  %10212 = vtanh.f32 %v2981_v59  ;;  %v2992_v5 = vmul.f32 0.5, %v10201_v44  ;;  %v15729_v59 = vld [vmem:[#allocation66_spill] sm:$0xff] }
 0x805   :  { %v10203_v57 = vpop.eup %10202  ;;  %v3022_v20 = vadd.f32 %v3015_v54, %v15728_v19  ;;  %v2961_v18 = vadd.f32 0.5, %v2954_v3 }
 0x806   :  { %v2911_v56 = vpop.f32.mrb[206].mxu1  ;;  %v3033_v9 = vsub.f32 %v12666_v14, %v10203_v57  ;;  %v12902_v0 = vadd.f32 %v10197_v29, %v3039_v62  ;;  %v10205_v17 = vpop.eup %10204  ;;  %v2999_v45 = vadd.f32 0.5, %v2992_v5  ;;  %v15730_v62 = vld [vmem:[#allocation68_spill] sm:$0xff] }
 0x807   :  { %10214 = vtanh.f32 %v3022_v20  ;;  %v3016_v58 = vmul.f32 %v2960_v4, %v2911_v56  ;;  %v8912_v51 = vpop.f32.mrb[207].mxu1  ;;  %v2993_v35 = vmul.f32 0.5, %v10205_v17 }
 0x808   :  { %v3040_v31 = vmul.f32 %v3033_v9, %v2998_v12  ;;  %10216 = vtanh.f32 %v2982_v49 }
 0x809   :  { %v10207_v25 = vpop.eup %10206  ;;  %v3023_v61 = vadd.f32 %v3016_v58, %v15729_v59  ;;  %v3000_v19 = vadd.f32 0.5, %v2993_v35 }
 0x80a   :  { %v2916_v23 = vpop.f32.mrb[208].mxu1  ;;  %v12905_v46 = vadd.f32 %v10203_v57, %v3040_v31  ;;  %v3034_v47 = vsub.f32 %v12676_v42, %v10207_v25  ;;  %v10209_v14 = vpop.eup %10208 }
 0x80b   :  { %10218 = vtanh.f32 %v3023_v61  ;;  %v3017_v29 = vmul.f32 %v2961_v18, %v2916_v23  ;;  %v8915_v44 = vpop.f32.mrb[209].mxu1  ;;  %v2994_v20 = vmul.f32 0.5, %v10209_v14 }
 0x80c   :  { %v9806_v54 = vpack.c.bf16 %v12905_v46, %v12902_v0  ;;  %v3041_v36 = vmul.f32 %v3034_v47, %v2999_v45 }
 0x80d   :  { %v10211_v4 = vpop.eup %10210  ;;  %v3024_v49 = vadd.f32 %v3017_v29, %v15730_v62  ;;  %v3001_v56 = vadd.f32 0.5, %v2994_v20  ;;  %v15733_v62 = vld [vmem:[#allocation9_spill] sm:$0xff] }
 0x80e   :  { %9807 = vmatpush3.bf16.msra.mxu0 %v9806_v54  ;;  %v3035_v3 = vsub.f32 %v12679_v43, %v10211_v4  ;;  %v12912_v57 = vadd.f32 %v10207_v25, %v3041_v36  ;;  %v10213_v12 = vpop.eup %10212 }
 0x80f   :  { %10220 = vtanh.f32 %v3024_v49  ;;  %9808 = vmatprep.subr.bf16.mxu0 %v15512_v6  ;;  %v2995_v9 = vmul.f32 0.5, %v10213_v12  ;;  %v15734_v49 = vld [vmem:[#allocation90_spill] sm:$0xff] }
 0x810   :  { %v3042_v42 = vmul.f32 %v3035_v3, %v3000_v19  ;;  %v15735_v19 = vld [vmem:[#allocation10_spill] sm:$0xff] }
 0x811   :  { %v10215_v5 = vpop.eup %10214  ;;  %v3002_v59 = vadd.f32 0.5, %v2995_v9 }
 0x812   :  { %v12915_v17 = vadd.f32 %v10211_v4, %v3042_v42  ;;  %v3036_v58 = vsub.f32 %v12688_v60, %v10215_v5  ;;  %v10217_v51 = vpop.eup %10216  ;;  %v15732_v4 = vld [vmem:[#allocation87_spill] sm:$0xff] }
 0x813   :  { %v2996_v61 = vmul.f32 0.5, %v10217_v51  ;;  %v15741_v42 = vld [vmem:[#allocation99_spill] sm:$0xff] }
 0x814   :  { %v12920_v31 = vpack.c.bf16 %v12915_v17, %v12912_v57  ;;  %v3043_v43 = vmul.f32 %v3036_v58, %v3001_v56  ;;  %v15742_v58 = vld [vmem:[#allocation101_spill] sm:$0xff] }
 0x815   :  { %v10219_v25 = vpop.eup %10218  ;;  %v3003_v60 = vadd.f32 0.5, %v2996_v61 }
 0x816   :  { %9810 = vmatpush3.bf16.msra.mxu0 %v12920_v31  ;;  %v3037_v18 = vsub.f32 %v12691_v34, %v10219_v25  ;;  %v12924_v45 = vadd.f32 %v10215_v5, %v3043_v43  ;;  %v15731_v34 = vld [vmem:[#allocation8_spill] sm:$0xff] }
 0x817   :  { %9811 = vmatprep.subr.bf16.mxu0 %v15512_v6 }
 0x818   :  { %v3044_v35 = vmul.f32 %v3037_v18, %v3002_v59 }
 0x819   :  { %v10221_v23 = vpop.eup %10220 }
 0x81a   :  { %v12927_v47 = vadd.f32 %v10219_v25, %v3044_v35  ;;  %v3038_v14 = vsub.f32 %v12699_v48, %v10221_v23  ;;  %v15743_v25 = vld [vmem:[#allocation103_spill] sm:$0xff]  ;;  %v15744_v35 = vld [vmem:[#allocation105_spill] sm:$0xff] }
 0x81c   :  { %v12932_v29 = vpack.c.bf16 %v12927_v47, %v12924_v45  ;;  %v3045_v44 = vmul.f32 %v3038_v14, %v3003_v60 }
 0x81e   :  { %9813 = vmatpush3.bf16.msra.mxu0 %v12932_v29  ;;  %v12935_v36 = vadd.f32 %v10221_v23, %v3045_v44 }
 0x81f   :  { %8928 = vmatprep.subr.mxu0 %v15509_v10 }
 0x822   :  { %8929 = vmatpush3.msra.mxu0 %v12935_v36 }
 0x823   :  { %8931 = vmatmul.mubr.msk.f32.vlgmr.msra.gmra.mrb[210].mxu0 %vm141_vm0, %v12542_v52  ;;  %9824 = vmatprep.subr.bf16.mxu0 %v15731_v34  ;;  %v15736_v52 = vld [vmem:[#allocation94_spill] sm:$0xff] }
 0x824   :  { %9826 = vmatpush1.bf16.msra.mxu0 %v15732_v4  ;;  %8933 = vmatprep.mubr.msk.f32.mxu0 %vm10826_vm2, %v15509_v10 }
 0x825   :  { %9828 = vmatprep.subr.bf16.mxu0 %v15733_v62  ;;  %v15746_v62 = vld [vmem:[#allocation109_spill] sm:$0xff] }
 0x827   :  { %8934 = vmatmul.mubr.msk.f32.gmra.mrb[212].mxu0 %vm141_vm0, %v12552_v53  ;;  %v15737_v53 = vld [vmem:[#allocation95_spill] sm:$0xff] }
 0x828   :  { %9830 = vmatpush1.bf16.msra.mxu0 %v15734_v49  ;;  %8936 = vmatprep.mubr.msk.f32.mxu0 %vm10826_vm2, %v15509_v10 }
 0x829   :  { %9832 = vmatprep.subr.bf16.mxu0 %v15735_v19 }
 0x82b   :  { %8937 = vmatmul.mubr.msk.f32.gmra.mrb[214].mxu0 %vm141_vm0, %v12561_v30  ;;  %v13042_v30 = vld [vmem:[%s15463_s1 + $0xb0] sm:$0xff] }
 0x82c   :  { %9834 = vmatpush1.bf16.msra.mxu0 %v15736_v52  ;;  %8939 = vmatprep.mubr.msk.f32.mxu0 %vm10826_vm2, %v15509_v10 }
 0x82d   :  { %3855 = vmatprep.subr.mxu0 %v12147_v26  ;;  %v13033_v26 = vld [vmem:[%s15463_s1 + $0xa8] sm:$0xff] }
 0x82f   :  { %8940 = vmatmul.mubr.msk.f32.gmra.mrb[216].mxu0 %vm141_vm0, %v12719_v22  ;;  %v13081_v22 = vld [vmem:[%s15463_s1 + $0xd0] sm:$0xff] }
 0x830   :  { %3856 = vmatpush1.msra.mxu0 %v15737_v53  ;;  %8942 = vmatprep.mubr.msk.f32.mxu0 %vm10826_vm2, %v15509_v10  ;;  %v15747_v53 = vld [vmem:[#allocation111_spill] sm:$0xff] }
 0x831   :  { %9848 = vmatprep.subr.bf16.mxu0 %v9806_v54  ;;  %v15740_v54 = vld [vmem:[#allocation97_spill] sm:$0xff] }
 0x833   :  { %8943 = vmatmul.mubr.msk.f32.gmra.mrb[218].mxu0 %vm141_vm0, %v12728_v37  ;;  %v13097_v37 = vld [vmem:[%s15463_s1 + $0xe0] sm:$0xff] }
 0x834   :  { %8945 = vmatprep.mubr.msk.f32.mxu0 %vm10826_vm2, %v15509_v10 }
 0x837   :  { %8946 = vmatmul.mubr.msk.f32.gmra.mrb[220].mxu0 %vm141_vm0, %v12737_v24  ;;  %v13105_v24 = vld [vmem:[%s15463_s1 + $0xe8] sm:$0xff] }
 0x838   :  { %8948 = vmatprep.mubr.msk.f32.mxu0 %vm10826_vm2, %v15509_v10 }
 0x83b   :  { %8949 = vmatmul.mubr.msk.f32.gmra.mrb[222].mxu0 %vm141_vm0, %v12746_v13  ;;  %v13113_v13 = vld [vmem:[%s15463_s1 + $0xf0] sm:$0xff] }
 0x83c   :  { %8951 = vmatprep.mubr.msk.f32.mxu0 %vm10826_vm2, %v15509_v10 }
 0x83f   :  { %8952 = vmatmul.mubr.msk.f32.gmra.mrb[224].mxu0 %vm141_vm0, %v12755_v2  ;;  %v13121_v2 = vld [vmem:[%s15463_s1 + $0xf8] sm:$0xff] }
 0x840   :  { %8954 = vmatprep.mubr.msk.f32.mxu0 %vm10826_vm2, %v15509_v10 }
 0x843   :  { %8955 = vmatmul.mubr.msk.f32.gmra.mrb[226].mxu0 %vm141_vm0, %v12764_v11  ;;  %v13129_v11 = vld [vmem:[%s15463_s1 + $0x100] sm:$0xff] }
 0x844   :  { %8957 = vmatprep.mubr.msk.f32.mxu0 %vm10826_vm2, %v15509_v10 }
 0x847   :  { %8958 = vmatmul.mubr.msk.f32.gmra.mrb[228].mxu0 %vm141_vm0, %v12773_v1  ;;  %v13137_v1 = vld [vmem:[%s15463_s1 + $0x108] sm:$0xff] }
 0x848   :  { %8960 = vmatprep.mubr.msk.f32.mxu0 %vm10826_vm2, %v15509_v10 }
 0x84b   :  { %8961 = vmatmul.mubr.msk.f32.gmra.mrb[230].mxu0 %vm141_vm0, %v12782_v50  ;;  %v13145_v50 = vld [vmem:[%s15463_s1 + $0x110] sm:$0xff] }
 0x84c   :  { %8963 = vmatprep.mubr.msk.f32.mxu0 %vm10826_vm2, %v15509_v10 }
 0x84f   :  { %8964 = vmatmul.mubr.msk.f32.gmra.mrb[232].mxu0 %vm141_vm0, %v12791_v39  ;;  %v13153_v39 = vld [vmem:[%s15463_s1 + $0x118] sm:$0xff] }
 0x850   :  { %8966 = vmatprep.mubr.msk.f32.mxu0 %vm10826_vm2, %v15509_v10 }
 0x853   :  { %8967 = vmatmul.mubr.msk.f32.gmra.mrb[234].mxu0 %vm141_vm0, %v12800_v21  ;;  %v13161_v21 = vld [vmem:[%s15463_s1 + $0x120] sm:$0xff] }
 0x854   :  { %8969 = vmatprep.mubr.msk.f32.mxu0 %vm10826_vm2, %v15509_v10 }
 0x857   :  { %8970 = vmatmul.mubr.msk.f32.gmra.mrb[236].mxu0 %vm141_vm0, %v12809_v41  ;;  %v13169_v41 = vld [vmem:[%s15463_s1 + $0x128] sm:$0xff] }
 0x858   :  { %8972 = vmatprep.mubr.msk.f32.mxu0 %vm10826_vm2, %v15509_v10 }
 0x85b   :  { %8973 = vmatmul.mubr.msk.f32.gmra.mrb[238].mxu0 %vm141_vm0, %v12818_v7  ;;  %v13177_v7 = vld [vmem:[%s15463_s1 + $0x130] sm:$0xff] }
 0x85c   :  { %8975 = vmatprep.mubr.msk.f32.mxu0 %vm10826_vm2, %v15509_v10 }
 0x85f   :  { %8976 = vmatmul.mubr.msk.f32.gmra.mrb[240].mxu0 %vm141_vm0, %v12827_v28  ;;  %v13185_v28 = vld [vmem:[%s15463_s1 + $0x138] sm:$0xff] }
 0x860   :  { %8978 = vmatprep.mubr.msk.f32.mxu0 %vm10826_vm2, %v15509_v10 }
 0x863   :  { %8979 = vmatmul.mubr.msk.f32.gmra.mrb[242].mxu0 %vm141_vm0, %v12836_v15  ;;  %v13193_v15 = vld [vmem:[%s15463_s1 + $0x140] sm:$0xff] }
 0x864   :  { %8981 = vmatprep.mubr.msk.f32.mxu0 %vm10826_vm2, %v15509_v10 }
 0x867   :  { %8982 = vmatmul.mubr.msk.f32.gmra.mrb[244].mxu0 %vm141_vm0, %v12845_v55  ;;  %v13201_v55 = vld [vmem:[%s15463_s1 + $0x148] sm:$0xff] }
 0x868   :  { %8984 = vmatprep.mubr.msk.f32.mxu0 %vm10826_vm2, %v15509_v10 }
 0x86b   :  { %8985 = vmatmul.mubr.msk.f32.gmra.mrb[246].mxu0 %vm141_vm0, %v12854_v40  ;;  %v15738_v40 = vmov 1.0  }
 0x86c   :  { %8987 = vmatprep.mubr.msk.f32.mxu0 %vm10826_vm2, %v15509_v10 }
 0x86f   :  { %8988 = vmatmul.mubr.msk.f32.gmra.mrb[248].mxu0 %vm141_vm0, %v12863_v8 }
 0x870   :  { %8990 = vmatprep.mubr.msk.f32.mxu0 %vm10826_vm2, %v15509_v10 }
 0x873   :  { %8991 = vmatmul.mubr.msk.f32.gmra.mrb[250].mxu0 %vm141_vm0, %v12872_v38 }
 0x874   :  { %3907 = vmatprep.mubr.f32.mxu0 %v15509_v10 }
 0x877   :  { %7738 = vmatmul.mubr.msk.f32.vlgmr.msra.gmra.mrb[252].mxu0 %vm141_vm0, %v13033_v26 }
 0x878   :  { %9850 = vmatpush1.bf16.msra.mxu0 %v12671_v63  ;;  %3913 = vmatprep.mubr.f32.mxu0 %v15509_v10  ;;  %v13052_v63 = vld [vmem:[%s15463_s1 + $0xb8] sm:$0xff] }
 0x879   :  { %9852 = vmatprep.subr.bf16.mxu0 %v12920_v31 }
 0x87b   :  { %7739 = vmatmul.mubr.msk.f32.gmra.mrb[254].mxu0 %vm141_vm0, %v13042_v30 }
 0x87c   :  { %9854 = vmatpush1.bf16.msra.mxu0 %v12684_v33  ;;  %3919 = vmatprep.mubr.f32.mxu0 %v15509_v10  ;;  %v13062_v33 = vld [vmem:[%s15463_s1 + $0xc0] sm:$0xff] }
 0x87d   :  { %9856 = vmatprep.subr.bf16.mxu0 %v12932_v29  ;;  %v15745_v29 = vld [vmem:[#allocation107_spill] sm:$0xff] }
 0x87f   :  { %7740 = vmatmul.mubr.msk.f32.gmra.mrb[0].mxu0 %vm141_vm0, %v13052_v63 }
 0x880   :  { %9858 = vmatpush1.bf16.msra.mxu0 %v12696_v27  ;;  %3925 = vmatprep.mubr.f32.mxu0 %v15509_v10  ;;  %v13072_v27 = vld [vmem:[%s15463_s1 + $0xc8] sm:$0xff] }
 0x881   :  { %4237 = vmatprep.subr.mxu0 %v12935_v36 }
 0x883   :  { %7741 = vmatmul.mubr.msk.f32.gmra.mrb[2].mxu0 %vm141_vm0, %v13062_v33 }
 0x884   :  { %4238 = vmatpush1.msra.mxu0 %v12699_v48  ;;  %3931 = vmatprep.mubr.f32.mxu0 %v15509_v10  ;;  %v13089_v48 = vld [vmem:[%s15463_s1 + $0xd8] sm:$0xff] }
 0x885   :  { %9871 = vmatprep.subr.bf16.mxu0 %v15512_v6 }
 0x887   :  { %7742 = vmatmul.mubr.msk.f32.gmra.mrb[4].mxu0 %vm141_vm0, %v13072_v27 }
 0x888   :  { %3937 = vmatprep.mubr.f32.mxu0 %v15509_v10 }
 0x88b   :  { %7743 = vmatmul.mubr.msk.f32.gmra.mrb[6].mxu0 %vm141_vm0, %v13081_v22 }
 0x88c   :  { %3943 = vmatprep.mubr.f32.mxu0 %v15509_v10 }
 0x88f   :  { %7744 = vmatmul.mubr.msk.f32.gmra.mrb[8].mxu0 %vm141_vm0, %v13089_v48 }
 0x890   :  { %3949 = vmatprep.mubr.f32.mxu0 %v15509_v10 }
 0x893   :  { %7745 = vmatmul.mubr.msk.f32.gmra.mrb[10].mxu0 %vm141_vm0, %v13097_v37 }
 0x894   :  { %3955 = vmatprep.mubr.f32.mxu0 %v15509_v10 }
 0x897   :  { %7746 = vmatmul.mubr.msk.f32.gmra.mrb[12].mxu0 %vm141_vm0, %v13105_v24 }
 0x898   :  { %3961 = vmatprep.mubr.f32.mxu0 %v15509_v10 }
 0x89b   :  { %7747 = vmatmul.mubr.msk.f32.gmra.mrb[14].mxu0 %vm141_vm0, %v13113_v13 }
 0x89c   :  { %3967 = vmatprep.mubr.f32.mxu0 %v15509_v10 }
 0x89f   :  { %7748 = vmatmul.mubr.msk.f32.gmra.mrb[16].mxu0 %vm141_vm0, %v13121_v2 }
 0x8a0   :  { %3973 = vmatprep.mubr.f32.mxu0 %v15509_v10 }
 0x8a3   :  { %7749 = vmatmul.mubr.msk.f32.gmra.mrb[18].mxu0 %vm141_vm0, %v13129_v11 }
 0x8a4   :  { %3979 = vmatprep.mubr.f32.mxu0 %v15509_v10 }
 0x8a7   :  { %7750 = vmatmul.mubr.msk.f32.gmra.mrb[20].mxu0 %vm141_vm0, %v13137_v1 }
 0x8a8   :  { %3985 = vmatprep.mubr.f32.mxu0 %v15509_v10 }
 0x8ab   :  { %7751 = vmatmul.mubr.msk.f32.gmra.mrb[22].mxu0 %vm141_vm0, %v13145_v50 }
 0x8ac   :  { %3991 = vmatprep.mubr.f32.mxu0 %v15509_v10 }
 0x8af   :  { %7752 = vmatmul.mubr.msk.f32.gmra.mrb[24].mxu0 %vm141_vm0, %v13153_v39 }
 0x8b0   :  { %3997 = vmatprep.mubr.f32.mxu0 %v15509_v10 }
 0x8b3   :  { %7753 = vmatmul.mubr.msk.f32.gmra.mrb[26].mxu0 %vm141_vm0, %v13161_v21 }
 0x8b4   :  { %4003 = vmatprep.mubr.f32.mxu0 %v15509_v10 }
 0x8b7   :  { %7754 = vmatmul.mubr.msk.f32.gmra.mrb[28].mxu0 %vm141_vm0, %v13169_v41 }
 0x8b8   :  { %4009 = vmatprep.mubr.f32.mxu0 %v15509_v10 }
 0x8bb   :  { %7755 = vmatmul.mubr.msk.f32.gmra.mrb[30].mxu0 %vm141_vm0, %v13177_v7 }
 0x8bc   :  { %4015 = vmatprep.mubr.f32.mxu0 %v15509_v10 }
 0x8bf   :  { %7756 = vmatmul.mubr.msk.f32.gmra.mrb[32].mxu0 %vm141_vm0, %v13185_v28 }
 0x8c0   :  { %4021 = vmatprep.mubr.f32.mxu0 %v15509_v10 }
 0x8c3   :  { %7757 = vmatmul.mubr.msk.f32.gmra.mrb[34].mxu0 %vm141_vm0, %v13193_v15 }
 0x8c4   :  { %4027 = vmatprep.mubr.f32.mxu0 %v15509_v10 }
 0x8c7   :  { %7758 = vmatmul.mubr.msk.f32.gmra.mrb[36].mxu0 %vm141_vm0, %v13201_v55 }
 0x8c8   :  { %4289 = vmatprep.mubr.f32.mxu0 %v15509_v10 }
 0x8cb   :  { %7780 = vmatmul.mubr.msk.f32.vlgmr.msra.gmra.mrb[38].mxu0 %vm141_vm0, %v13033_v26 }
 0x8cc   :  { %4295 = vmatprep.mubr.f32.mxu0 %v15509_v10  ;;  %9872 = vmatpush3.bf16.msra.mxu0 %v15512_v6 }
 0x8cd   :  { %9873 = vmatprep.subr.bf16.mxu0 %v15512_v6 }
 0x8cf   :  { %7781 = vmatmul.mubr.msk.f32.gmra.mrb[40].mxu0 %vm141_vm0, %v13042_v30 }
 0x8d0   :  { %4301 = vmatprep.mubr.f32.mxu0 %v15509_v10  ;;  %9874 = vmatpush3.bf16.msra.mxu0 %v15512_v6 }
 0x8d1   :  { %9875 = vmatprep.subr.bf16.mxu0 %v15512_v6 }
 0x8d3   :  { %7782 = vmatmul.mubr.msk.f32.gmra.mrb[42].mxu0 %vm141_vm0, %v13052_v63 }
 0x8d4   :  { %4307 = vmatprep.mubr.f32.mxu0 %v15509_v10  ;;  %9876 = vmatpush3.bf16.msra.mxu0 %v15512_v6 }
 0x8d5   :  { %9082 = vmatprep.subr.mxu0 %v15509_v10 }
 0x8d7   :  { %7783 = vmatmul.mubr.msk.f32.gmra.mrb[44].mxu0 %vm141_vm0, %v13062_v33 }
 0x8d8   :  { %4313 = vmatprep.mubr.f32.mxu0 %v15509_v10  ;;  %9083 = vmatpush3.msk.msra.mxu0 %vm35_vm1, %v15738_v40 }
 0x8d9   :  { %9886 = vmatprep.subr.bf16.mxu0 %v15512_v6 }
 0x8db   :  { %7784 = vmatmul.mubr.msk.f32.gmra.mrb[46].mxu0 %vm141_vm0, %v13072_v27 }
 0x8dc   :  { %4319 = vmatprep.mubr.f32.mxu0 %v15509_v10 }
 0x8df   :  { %7785 = vmatmul.mubr.msk.f32.gmra.mrb[48].mxu0 %vm141_vm0, %v13081_v22 }
 0x8e0   :  { %4325 = vmatprep.mubr.f32.mxu0 %v15509_v10 }
 0x8e3   :  { %7786 = vmatmul.mubr.msk.f32.gmra.mrb[50].mxu0 %vm141_vm0, %v13089_v48 }
 0x8e4   :  { %4331 = vmatprep.mubr.f32.mxu0 %v15509_v10 }
 0x8e7   :  { %7787 = vmatmul.mubr.msk.f32.gmra.mrb[52].mxu0 %vm141_vm0, %v13097_v37 }
 0x8e8   :  { %4337 = vmatprep.mubr.f32.mxu0 %v15509_v10 }
 0x8eb   :  { %7788 = vmatmul.mubr.msk.f32.gmra.mrb[54].mxu0 %vm141_vm0, %v13105_v24 }
 0x8ec   :  { %4343 = vmatprep.mubr.f32.mxu0 %v15509_v10 }
 0x8ef   :  { %7789 = vmatmul.mubr.msk.f32.gmra.mrb[56].mxu0 %vm141_vm0, %v13113_v13 }
 0x8f0   :  { %4349 = vmatprep.mubr.f32.mxu0 %v15509_v10 }
 0x8f3   :  { %7790 = vmatmul.mubr.msk.f32.gmra.mrb[58].mxu0 %vm141_vm0, %v13121_v2 }
 0x8f4   :  { %4355 = vmatprep.mubr.f32.mxu0 %v15509_v10 }
 0x8f6   :  { %v3126_v38 = vpop.f32.mrb[210].mxu0 }
 0x8f7   :  { %v3237_v20 = vadd.f32 %v3126_v38, %v15740_v54  ;;  %v8932_v3 = vpop.f32.mrb[211].mxu0  ;;  %7791 = vmatmul.mubr.msk.f32.gmra.mrb[60].mxu0 %vm141_vm0, %v13129_v11  ;;  %v15748_v54 = vld [vmem:[#allocation113_spill] sm:$0xff] }
 0x8f8   :  { %4361 = vmatprep.mubr.f32.mxu0 %v15509_v10 }
 0x8fa   :  { %v3131_v12 = vpop.f32.mrb[212].mxu0 }
 0x8fb   :  { %v3238_v5 = vadd.f32 %v3131_v12, %v15741_v42  ;;  %v8935_v56 = vpop.f32.mrb[213].mxu0  ;;  %7792 = vmatmul.mubr.msk.f32.gmra.mrb[62].mxu0 %vm141_vm0, %v13137_v1  ;;  %v3244_v42 = vmul.f32 0.5, %v3237_v20  ;;  %v15750_v20 = vld [vmem:[#allocation117_spill] sm:$0xff] }
 0x8fc   :  { %4367 = vmatprep.mubr.f32.mxu0 %v15509_v10 }
 0x8fd   :  { %10222 = vtanh.f32 %v3244_v42 }
 0x8fe   :  { %v3136_v9 = vpop.f32.mrb[214].mxu0 }
 0x8ff   :  { %v3239_v51 = vadd.f32 %v3136_v9, %v15742_v58  ;;  %v8938_v31 = vpop.f32.mrb[215].mxu0  ;;  %7793 = vmatmul.mubr.msk.f32.gmra.mrb[64].mxu0 %vm141_vm0, %v13145_v50  ;;  %v3245_v9 = vmul.f32 0.5, %v3238_v5  ;;  %v15749_v58 = vld [vmem:[#allocation115_spill] sm:$0xff] }
 0x900   :  { %4373 = vmatprep.mubr.f32.mxu0 %v15509_v10 }
 0x901   :  { %10224 = vtanh.f32 %v3245_v9  ;;  %v3246_v5 = vmul.f32 0.5, %v3239_v51  ;;  %v7719_v51 = vld [vmem:[%s15464_s2 + $0xb8] sm:$0xff] }
 0x902   :  { %v3141_v43 = vpop.f32.mrb[216].mxu0 }
 0x903   :  { %v3240_v59 = vadd.f32 %v3141_v43, %v15743_v25  ;;  %v8941_v61 = vpop.f32.mrb[217].mxu0  ;;  %7794 = vmatmul.mubr.msk.f32.gmra.mrb[66].mxu0 %vm141_vm0, %v13153_v39  ;;  %v7717_v25 = vld [vmem:[%s15464_s2 + $0xa8] sm:$0xff]  ;;  %10226 = vtanh.f32 %v3246_v5 }
 0x904   :  { %4379 = vmatprep.mubr.f32.mxu0 %v15509_v10 }
 0x906   :  { %v3146_v18 = vpop.f32.mrb[218].mxu0 }
 0x907   :  { %v3241_v23 = vadd.f32 %v3146_v18, %v15744_v35  ;;  %v8944_v60 = vpop.f32.mrb[219].mxu0  ;;  %7795 = vmatmul.mubr.msk.f32.gmra.mrb[68].mxu0 %vm141_vm0, %v13161_v21 }
 0x908   :  { %4385 = vmatprep.mubr.f32.mxu0 %v15509_v10  ;;  %v7718_v60 = vld [vmem:[%s15464_s2 + $0xb0] sm:$0xff] }
 0x90a   :  { %v3151_v14 = vpop.f32.mrb[220].mxu0 }
 0x90b   :  { %v3242_v44 = vadd.f32 %v3151_v14, %v15745_v29  ;;  %v8947_v34 = vpop.f32.mrb[221].mxu0  ;;  %7796 = vmatmul.mubr.msk.f32.gmra.mrb[70].mxu0 %vm141_vm0, %v13169_v41  ;;  %v3247_v29 = vmul.f32 0.5, %v3240_v59 }
 0x90c   :  { %4391 = vmatprep.mubr.f32.mxu0 %v15509_v10  ;;  %v15751_v34 = vld [vmem:[#allocation119_spill] sm:$0xff] }
 0x90d   :  { %10228 = vtanh.f32 %v3247_v29 }
 0x90e   :  { %v3156_v4 = vpop.f32.mrb[222].mxu0 }
 0x90f   :  { %v13274_v49 = vadd.f32 %v3156_v4, %v15746_v62  ;;  %v8950_v19 = vpop.f32.mrb[223].mxu0  ;;  %7797 = vmatmul.mubr.msk.f32.gmra.mrb[72].mxu0 %vm141_vm0, %v13177_v7 }
 0x910   :  { %4397 = vmatprep.mubr.f32.mxu0 %v15509_v10  ;;  %v10223_v19 = vpop.eup %10222 }
 0x911   :  { %v3250_v29 = vmul.f32 0.5, %v13274_v49  ;;  %v7723_v49 = vld [vmem:[%s15464_s2 + $0xd8] sm:$0xff] }
 0x912   :  { %v3161_v52 = vpop.f32.mrb[224].mxu0 }
 0x913   :  { %v3279_v40 = vadd.f32 %v3161_v52, %v15747_v53  ;;  %v8953_v8 = vpop.f32.mrb[225].mxu0  ;;  %7798 = vmatmul.mubr.msk.f32.gmra.mrb[74].mxu0 %vm141_vm0, %v13185_v28  ;;  %v15752_v53 = vld [vmem:[#allocation121_spill] sm:$0xff] }
 0x914   :  { %4403 = vmatprep.mubr.f32.mxu0 %v15509_v10 }
 0x915   :  { %v3286_v42 = vmul.f32 0.5, %v3279_v40 }
 0x916   :  { %v3166_v38 = vpop.f32.mrb[226].mxu0 }
 0x917   :  { %v3280_v3 = vadd.f32 %v3166_v38, %v15748_v54  ;;  %v8956_v12 = vpop.f32.mrb[227].mxu0  ;;  %7799 = vmatmul.mubr.msk.f32.gmra.mrb[76].mxu0 %vm141_vm0, %v13193_v15  ;;  %v3248_v38 = vmul.f32 0.5, %v3241_v23  ;;  %v7720_v54 = vld [vmem:[%s15464_s2 + $0xc0] sm:$0xff]  ;;  %v7721_v23 = vld [vmem:[%s15464_s2 + $0xc8] sm:$0xff] }
 0x918   :  { %4409 = vmatprep.mubr.f32.mxu0 %v15509_v10  ;;  %v10225_v12 = vpop.eup %10224 }
 0x919   :  { %10230 = vtanh.f32 %v3248_v38  ;;  %v3287_v40 = vmul.f32 0.5, %v3280_v3  ;;  %v10227_v5 = vpop.eup %10226 }
 0x91a   :  { %v3171_v56 = vpop.f32.mrb[228].mxu0  ;;  %10232 = vtanh.f32 %v3286_v42  ;;  %v15755_v42 = vld [vmem:[#allocation127_spill] sm:$0xff] }
 0x91b   :  { %v3281_v31 = vadd.f32 %v3171_v56, %v15749_v58  ;;  %v8959_v43 = vpop.f32.mrb[229].mxu0  ;;  %7800 = vmatmul.mubr.msk.f32.gmra.mrb[78].mxu0 %vm141_vm0, %v13201_v55  ;;  %v3258_v56 = vmul.f32 0.5, %v10223_v19  ;;  %v3249_v58 = vmul.f32 0.5, %v3242_v44  ;;  %v15754_v19 = vld [vmem:[#allocation125_spill] sm:$0xff] }
 0x91c   :  { %9084 = vmatprep.mubr.msk.f32.mxu0 %vm10826_vm2, %v15509_v10  ;;  %v15753_v43 = vld [vmem:[#allocation123_spill] sm:$0xff] }
 0x91d   :  { %10234 = vtanh.f32 %v3249_v58  ;;  %v3288_v3 = vmul.f32 0.5, %v3281_v31 }
 0x91e   :  { %v3176_v61 = vpop.f32.mrb[230].mxu0  ;;  %10236 = vtanh.f32 %v3287_v40 }
 0x91f   :  { %v3282_v18 = vadd.f32 %v3176_v61, %v15750_v20  ;;  %v8962_v35 = vpop.f32.mrb[231].mxu0  ;;  %9085 = vmatmul.mubr.msk.f32.vlgmr.msra.gmra.mrb[80].mxu0 %vm141_vm0, %v7717_v25  ;;  %v3259_v20 = vmul.f32 0.5, %v10225_v12 }
 0x920   :  { %9087 = vmatprep.mubr.msk.f32.mxu0 %vm10826_vm2, %v15509_v10  ;;  %v3265_v35 = vadd.f32 0.5, %v3258_v56 }
 0x921   :  { %v3289_v31 = vmul.f32 0.5, %v3282_v18 }
 0x922   :  { %v3181_v14 = vpop.f32.mrb[232].mxu0 }
 0x923   :  { %v13303_v4 = vadd.f32 %v3181_v14, %v15751_v34  ;;  %v8965_v62 = vpop.f32.mrb[233].mxu0  ;;  %9088 = vmatmul.mubr.msk.f32.gmra.mrb[82].mxu0 %vm141_vm0, %v7718_v60  ;;  %v3266_v34 = vadd.f32 0.5, %v3259_v20 }
 0x924   :  { %9090 = vmatprep.mubr.msk.f32.mxu0 %vm10826_vm2, %v15509_v10  ;;  %v7722_v62 = vld [vmem:[%s15464_s2 + $0xd0] sm:$0xff] }
 0x926   :  { %v3186_v52 = vpop.f32.mrb[234].mxu0 }
 0x927   :  { %v13312_v8 = vadd.f32 %v3186_v52, %v15752_v53  ;;  %v8968_v59 = vpop.f32.mrb[235].mxu0  ;;  %9091 = vmatmul.mubr.msk.f32.gmra.mrb[84].mxu0 %vm141_vm0, %v7719_v51  ;;  %v10229_v51 = vpop.eup %10228  ;;  %v3260_v53 = vmul.f32 0.5, %v10227_v5  ;;  %v3290_v5 = vmul.f32 0.5, %v13303_v4 }
 0x928   :  { %9093 = vmatprep.mubr.msk.f32.mxu0 %vm10826_vm2, %v15509_v10  ;;  %v3261_v12 = vmul.f32 0.5, %v10229_v51  ;;  %v10231_v58 = vpop.eup %10230 }
 0x92a   :  { %v3191_v9 = vpop.f32.mrb[236].mxu0  ;;  %v3268_v40 = vadd.f32 0.5, %v3261_v12 }
 0x92b   :  { %v13321_v25 = vadd.f32 %v3191_v9, %v15753_v43  ;;  %v8971_v61 = vpop.f32.mrb[237].mxu0  ;;  %9094 = vmatmul.mubr.msk.f32.gmra.mrb[86].mxu0 %vm141_vm0, %v7720_v54  ;;  %v3267_v9 = vadd.f32 0.5, %v3260_v53  ;;  %v3291_v53 = vmul.f32 0.5, %v13312_v8  ;;  %v7726_v8 = vld [vmem:[%s15464_s2 + $0xf0] sm:$0xff] }
 0x92c   :  { %9096 = vmatprep.mubr.msk.f32.mxu0 %vm10826_vm2, %v15509_v10  ;;  %v10233_v61 = vpop.eup %10232 }
 0x92d   :  { %v10235_v18 = vpop.eup %10234 }
 0x92e   :  { %v3196_v44 = vpop.f32.mrb[238].mxu0 }
 0x92f   :  { %v3321_v60 = vmul.f32 %v3265_v35, %v3196_v44  ;;  %v8974_v14 = vpop.f32.mrb[239].mxu0  ;;  %9097 = vmatmul.mubr.msk.f32.gmra.mrb[88].mxu0 %vm141_vm0, %v7721_v23  ;;  %v7724_v35 = vld [vmem:[%s15464_s2 + $0xe0] sm:$0xff]  ;;  %v15756_v44 = vld [vmem:[#allocation129_spill] sm:$0xff] }
 0x930   :  { %9099 = vmatprep.mubr.msk.f32.mxu0 %vm10826_vm2, %v15509_v10  ;;  %v3262_v14 = vmul.f32 0.5, %v10231_v58 }
 0x931   :  { %v3328_v52 = vadd.f32 %v3321_v60, %v15754_v19  ;;  %v7725_v19 = vld [vmem:[%s15464_s2 + $0xe8] sm:$0xff] }
 0x932   :  { %v3201_v59 = vpop.f32.mrb[240].mxu0 }
 0x933   :  { %10238 = vtanh.f32 %v3328_v52  ;;  %v3322_v38 = vmul.f32 %v3266_v34, %v3201_v59  ;;  %v8977_v54 = vpop.f32.mrb[241].mxu0  ;;  %9100 = vmatmul.mubr.msk.f32.gmra.mrb[90].mxu0 %vm141_vm0, %v7722_v62  ;;  %v10237_v62 = vpop.eup %10236  ;;  %v3263_v52 = vmul.f32 0.5, %v10235_v18  ;;  %v15757_v59 = vld [vmem:[#allocation131_spill] sm:$0xff] }
 0x934   :  { %10240 = vtanh.f32 %v3250_v29  ;;  %9102 = vmatprep.mubr.msk.f32.mxu0 %vm10826_vm2, %v15509_v10  ;;  %v3300_v29 = vmul.f32 0.5, %v10233_v61  ;;  %v3269_v54 = vadd.f32 0.5, %v3262_v14 }
 0x935   :  { %10242 = vtanh.f32 %v3288_v3  ;;  %v3329_v56 = vadd.f32 %v3322_v38, %v15755_v42  ;;  %v3270_v61 = vadd.f32 0.5, %v3263_v52  ;;  %v15759_v52 = vld [vmem:[#allocation135_spill] sm:$0xff] }
 0x936   :  { %v3206_v43 = vpop.f32.mrb[242].mxu0  ;;  %v3307_v12 = vadd.f32 0.5, %v3300_v29 }
 0x937   :  { %10244 = vtanh.f32 %v3329_v56  ;;  %v3323_v23 = vmul.f32 %v3267_v9, %v3206_v43  ;;  %v8980_v20 = vpop.f32.mrb[243].mxu0  ;;  %9103 = vmatmul.mubr.msk.f32.gmra.mrb[92].mxu0 %vm141_vm0, %v7723_v49 }
 0x938   :  { %9105 = vmatprep.mubr.msk.f32.mxu0 %vm10826_vm2, %v15509_v10  ;;  %10246 = vtanh.f32 %v3289_v31  ;;  %v3301_v31 = vmul.f32 0.5, %v10237_v62 }
 0x939   :  { %v3330_v60 = vadd.f32 %v3323_v23, %v15756_v44 }
 0x93a   :  { %v3211_v34 = vpop.f32.mrb[244].mxu0 }
 0x93b   :  { %10248 = vtanh.f32 %v3330_v60  ;;  %v3324_v51 = vmul.f32 %v3268_v40, %v3211_v34  ;;  %v8983_v3 = vpop.f32.mrb[245].mxu0  ;;  %9106 = vmatmul.mubr.msk.f32.gmra.mrb[94].mxu0 %vm141_vm0, %v7724_v35  ;;  %v3292_v40 = vmul.f32 0.5, %v13321_v25  ;;  %v7727_v25 = vld [vmem:[%s15464_s2 + $0xf8] sm:$0xff] }
 0x93c   :  { %9108 = vmatprep.mubr.msk.f32.mxu0 %vm10826_vm2, %v15509_v10  ;;  %10250 = vtanh.f32 %v3290_v5  ;;  %v3308_v5 = vadd.f32 0.5, %v3301_v31 }
 0x93d   :  { %v10239_v4 = vpop.eup %10238  ;;  %v3331_v38 = vadd.f32 %v3324_v51, %v15757_v59 }
 0x93e   :  { %v10241_v49 = vpop.eup %10240  ;;  %v3216_v42 = vpop.f32.mrb[246].mxu0  ;;  %v3342_v56 = vsub.f32 %v12902_v0, %v10239_v4  ;;  %v15758_v0 = vld [vmem:[#allocation133_spill] sm:$0xff] }
 0x93f   :  { %v10243_v9 = vpop.eup %10242  ;;  %10252 = vtanh.f32 %v3331_v38  ;;  %v3325_v58 = vmul.f32 %v3269_v54, %v3216_v42  ;;  %v8986_v43 = vpop.f32.mrb[247].mxu0  ;;  %9109 = vmatmul.mubr.msk.f32.gmra.mrb[96].mxu0 %vm141_vm0, %v7725_v19  ;;  %v3264_v18 = vmul.f32 0.5, %v10241_v49 }
 0x940   :  { %9111 = vmatprep.mubr.msk.f32.mxu0 %vm10826_vm2, %v15509_v10  ;;  %v3349_v23 = vmul.f32 %v3342_v56, %v3307_v12  ;;  %10254 = vtanh.f32 %v3291_v53  ;;  %v3302_v44 = vmul.f32 0.5, %v10243_v9  ;;  %v7728_v9 = vld [vmem:[%s15464_s2 + $0x100] sm:$0xff] }
 0x941   :  { %v10245_v20 = vpop.eup %10244  ;;  %v3332_v35 = vadd.f32 %v3325_v58, %v15758_v0 }
 0x942   :  { %v3221_v60 = vpop.f32.mrb[248].mxu0  ;;  %v3343_v14 = vsub.f32 %v12905_v46, %v10245_v20  ;;  %v13370_v29 = vadd.f32 %v10239_v4, %v3349_v23  ;;  %v10247_v34 = vpop.eup %10246  ;;  %v3271_v4 = vadd.f32 0.5, %v3264_v18  ;;  %v3309_v53 = vadd.f32 0.5, %v3302_v44 }
 0x943   :  { %10256 = vtanh.f32 %v3332_v35  ;;  %v3326_v62 = vmul.f32 %v3270_v61, %v3221_v60  ;;  %v8989_v51 = vpop.f32.mrb[249].mxu0  ;;  %9112 = vmatmul.mubr.msk.f32.gmra.mrb[98].mxu0 %vm141_vm0, %v7726_v8  ;;  %v3303_v59 = vmul.f32 0.5, %v10247_v34 }
 0x944   :  { %9114 = vmatprep.mubr.msk.f32.mxu0 %vm10826_vm2, %v15509_v10  ;;  %v3350_v3 = vmul.f32 %v3343_v14, %v3308_v5  ;;  %10258 = vtanh.f32 %v3292_v40  ;;  %v7729_v5 = vld [vmem:[%s15464_s2 + $0x108] sm:$0xff] }
 0x945   :  { %v10249_v19 = vpop.eup %10248  ;;  %v3333_v46 = vadd.f32 %v3326_v62, %v15759_v52  ;;  %v3310_v8 = vadd.f32 0.5, %v3303_v59  ;;  %v7730_v52 = vld [vmem:[%s15464_s2 + $0x110] sm:$0xff] }
 0x946   :  { %v3226_v38 = vpop.f32.mrb[250].mxu0  ;;  %v13379_v54 = vadd.f32 %v10245_v20, %v3350_v3  ;;  %v3344_v49 = vsub.f32 %v12912_v57, %v10249_v19  ;;  %v10251_v12 = vpop.eup %10250  ;;  %v15760_v57 = vld [vmem:[#allocation137_spill] sm:$0xff] }
 0x947   :  { %10260 = vtanh.f32 %v3333_v46  ;;  %v3327_v31 = vmul.f32 %v3271_v4, %v3226_v38  ;;  %9115 = vmatmul.mubr.msk.f32.gmra.mrb[100].mxu0 %vm141_vm0, %v7727_v25  ;;  %v8992_v42 = vpop.f32.mrb[251].mxu0  ;;  %v3304_v23 = vmul.f32 0.5, %v10251_v12 }
 0x948   :  { %v13385_v56 = vpack.c.bf16 %v13379_v54, %v13370_v29  ;;  %9117 = vmatprep.mubr.msk.f32.mxu0 %vm10826_vm2, %v15509_v10  ;;  %v3351_v58 = vmul.f32 %v3344_v49, %v3309_v53 }
 0x949   :  { %v10253_v43 = vpop.eup %10252  ;;  %v3334_v61 = vadd.f32 %v3327_v31, %v15760_v57  ;;  %v3311_v60 = vadd.f32 0.5, %v3304_v23  ;;  %v7731_v31 = vld [vmem:[%s15464_s2 + $0x118] sm:$0xff]  ;;  %v7732_v23 = vld [vmem:[%s15464_s2 + $0x120] sm:$0xff] }
 0x94a   :  { %9816 = vmatpush3.bf16.msra.mxu1 %v13385_v56  ;;  %v3345_v20 = vsub.f32 %v12915_v17, %v10253_v43  ;;  %v13395_v40 = vadd.f32 %v10249_v19, %v3351_v58  ;;  %v13397_v0 = vpop.f32.mrb[252].mxu0  ;;  %v10255_v35 = vpop.eup %10254 }
 0x94b   :  { %10262 = vtanh.f32 %v3334_v61  ;;  %9118 = vmatmul.mubr.msk.f32.gmra.mrb[102].mxu0 %vm141_vm0, %v7728_v9  ;;  %9817 = vmatprep.subr.bf16.mxu1 %v15512_v6  ;;  %v13401_v18 = vpop.f32.mrb[253].mxu0  ;;  %v3305_v14 = vmul.f32 0.5, %v10255_v35 }
 0x94c   :  { %9120 = vmatprep.mubr.msk.f32.mxu0 %vm10826_vm2, %v15509_v10  ;;  %v3352_v17 = vmul.f32 %v3345_v20, %v3310_v8 }
 0x94d   :  { %v10257_v44 = vpop.eup %10256  ;;  %v3312_v4 = vadd.f32 0.5, %v3305_v14 }
 0x94e   :  { %v13408_v34 = vadd.f32 %v10253_v43, %v3352_v17  ;;  %v3346_v62 = vsub.f32 %v12924_v45, %v10257_v44  ;;  %v13411_v51 = vpop.f32.mrb[254].mxu0  ;;  %v10259_v25 = vpop.eup %10258  ;;  %v7733_v17 = vld [vmem:[%s15464_s2 + $0x128] sm:$0xff] }
 0x94f   :  { %9121 = vmatmul.mubr.msk.f32.gmra.mrb[104].mxu0 %vm141_vm0, %v7729_v5  ;;  %v13414_v3 = vpop.f32.mrb[255].mxu0  ;;  %v3306_v53 = vmul.f32 0.5, %v10259_v25  ;;  %v7734_v25 = vld [vmem:[%s15464_s2 + $0x130] sm:$0xff] }
 0x950   :  { %v13418_v19 = vpack.c.bf16 %v13408_v34, %v13395_v40  ;;  %9123 = vmatprep.mubr.msk.f32.mxu0 %vm10826_vm2, %v15509_v10  ;;  %v3353_v46 = vmul.f32 %v3346_v62, %v3311_v60  ;;  %v10694_v60 = vld [vmem:[%s15464_s2] sm:$0xff]  ;;  %v15763_v62 = vld [vmem:[#allocation18_spill] sm:$0xff] }
 0x951   :  { %v10261_v45 = vpop.eup %10260 }
 0x952   :  { %9819 = vmatpush3.bf16.msra.mxu1 %v13418_v19  ;;  %v3347_v59 = vsub.f32 %v12927_v47, %v10261_v45  ;;  %v13427_v38 = vadd.f32 %v10257_v44, %v3353_v46  ;;  %v13429_v49 = vpop.f32.mrb[0].mxu0  ;;  %v3313_v47 = vadd.f32 0.5, %v3306_v53  ;;  %v15765_v46 = vld [vmem:[#allocation15_spill] sm:$0xff] }
 0x953   :  { %9124 = vmatmul.mubr.msk.f32.gmra.mrb[106].mxu0 %vm141_vm0, %v7730_v52  ;;  %9820 = vmatprep.subr.bf16.mxu1 %v15512_v6  ;;  %v13433_v12 = vpop.f32.mrb[1].mxu0 }
 0x954   :  { %9126 = vmatprep.mubr.msk.f32.mxu0 %vm10826_vm2, %v15509_v10  ;;  %v3354_v42 = vmul.f32 %v3347_v59, %v3312_v4  ;;  %v7735_v4 = vld [vmem:[%s15464_s2 + $0x138] sm:$0xff]  ;;  %v10696_v59 = vld [vmem:[%s15464_s2 + $0x10] sm:$0xff] }
 0x955   :  { %v10263_v9 = vpop.eup %10262 }
 0x956   :  { %v13440_v58 = vadd.f32 %v10261_v45, %v3354_v42  ;;  %v3348_v43 = vsub.f32 %v12935_v36, %v10263_v9  ;;  %v13443_v57 = vpop.f32.mrb[2].mxu0  ;;  %v15766_v45 = vld [vmem:[#allocation19_spill] sm:$0xff]  ;;  %v15768_v42 = vld [vmem:[#allocation16_spill] sm:$0xff] }
 0x957   :  { %9127 = vmatmul.mubr.msk.f32.gmra.mrb[108].mxu0 %vm141_vm0, %v7731_v31  ;;  %v13446_v61 = vpop.f32.mrb[3].mxu0 }
 0x958   :  { %v13450_v8 = vpack.c.bf16 %v13440_v58, %v13427_v38  ;;  %9129 = vmatprep.mubr.msk.f32.mxu0 %vm10826_vm2, %v15509_v10  ;;  %v3355_v20 = vmul.f32 %v3348_v43, %v3313_v47  ;;  %v7736_v47 = vld [vmem:[%s15464_s2 + $0x140] sm:$0xff] }
 0x95a   :  { %9822 = vmatpush3.bf16.msra.mxu1 %v13450_v8  ;;  %v13458_v36 = vadd.f32 %v10263_v9, %v3355_v20  ;;  %v13460_v35 = vpop.f32.mrb[4].mxu0  ;;  %v15769_v9 = vld [vmem:[#allocation20_spill] sm:$0xff] }
 0x95b   :  { %9130 = vmatmul.mubr.msk.f32.gmra.mrb[110].mxu0 %vm141_vm0, %v7732_v23  ;;  %9005 = vmatprep.subr.mxu1 %v15509_v10  ;;  %v13464_v5 = vpop.f32.mrb[5].mxu0  ;;  %v10697_v23 = vld [vmem:[%s15464_s2 + $0x18] sm:$0xff] }
 0x95c   :  { %15761 = vst [vmem:[#allocation21_spill] sm:$0xff] %v13464_v5  ;;  %9132 = vmatprep.mubr.msk.f32.mxu0 %vm10826_vm2, %v15509_v10 }
 0x95e   :  { %9006 = vmatpush3.msra.mxu1 %v13458_v36  ;;  %v13472_v44 = vpop.f32.mrb[6].mxu0 }
 0x95f   :  { %9008 = vmatmul.mubr.msk.f32.vlgmr.msra.gmra.mrb[210].mxu1 %vm141_vm0, %v10694_v60  ;;  %9836 = vmatprep.subr.bf16.mxu1 %v12507_v16  ;;  %v13479_v14 = vpop.f32.mrb[7].mxu0  ;;  %v10695_v16 = vld [vmem:[%s15464_s2 + $0x8] sm:$0xff] }
 0x960   :  { %15762 = vst [vmem:[#allocation22_spill] sm:$0xff] %v13479_v14  ;;  %9133 = vmatmul.mubr.msk.f32.gmra.mrb[112].mxu0 %vm141_vm0, %v7733_v17  ;;  %9838 = vmatpush1.bf16.msra.mxu1 %v12358_v32  ;;  %v15771_v17 = vld [vmem:[#allocation17_spill] sm:$0xff]  ;;  %v7737_v60 = vld [vmem:[%s15464_s2 + $0x148] sm:$0xff] }
 0x961   :  { %9840 = vmatprep.subr.bf16.mxu1 %v15763_v62  ;;  %9010 = vmatprep.mubr.msk.f32.mxu1 %vm10826_vm2, %v15509_v10 }
 0x962   :  { %9135 = vmatprep.mubr.msk.f32.mxu0 %vm10826_vm2, %v15509_v10  ;;  %v13491_v52 = vpop.f32.mrb[8].mxu0 }
 0x963   :  { %9011 = vmatmul.mubr.msk.f32.gmra.mrb[212].mxu1 %vm141_vm0, %v10695_v16  ;;  %v13497_v32 = vpop.f32.mrb[9].mxu0 }
 0x964   :  { %15764 = vst [vmem:[#allocation23_spill] sm:$0xff] %v13497_v32  ;;  %9136 = vmatmul.mubr.msk.f32.gmra.mrb[114].mxu0 %vm141_vm0, %v7734_v25  ;;  %9842 = vmatpush1.bf16.msra.mxu1 %v15765_v46  ;;  %v10698_v25 = vld [vmem:[%s15464_s2 + $0x20] sm:$0xff] }
 0x965   :  { %9844 = vmatprep.subr.bf16.mxu1 %v15766_v45  ;;  %9013 = vmatprep.mubr.msk.f32.mxu1 %vm10826_vm2, %v15509_v10  ;;  %v10699_v45 = vld [vmem:[%s15464_s2 + $0x28] sm:$0xff] }
 0x966   :  { %9138 = vmatprep.mubr.msk.f32.mxu0 %vm10826_vm2, %v15509_v10  ;;  %v13509_v53 = vpop.f32.mrb[10].mxu0 }
 0x967   :  { %9014 = vmatmul.mubr.msk.f32.gmra.mrb[214].mxu1 %vm141_vm0, %v10696_v59  ;;  %v13515_v31 = vpop.f32.mrb[11].mxu0 }
 0x968   :  { %15767 = vst [vmem:[#allocation24_spill] sm:$0xff] %v13515_v31  ;;  %9139 = vmatmul.mubr.msk.f32.gmra.mrb[116].mxu0 %vm141_vm0, %v7735_v4  ;;  %9846 = vmatpush1.bf16.msra.mxu1 %v15768_v42  ;;  %v10700_v42 = vld [vmem:[%s15464_s2 + $0x30] sm:$0xff] }
 0x969   :  { %4046 = vmatprep.subr.mxu1 %v15769_v9  ;;  %9016 = vmatprep.mubr.msk.f32.mxu1 %vm10826_vm2, %v15509_v10 }
 0x96a   :  { %9141 = vmatprep.mubr.msk.f32.mxu0 %vm10826_vm2, %v15509_v10  ;;  %v13527_v43 = vpop.f32.mrb[12].mxu0 }
 0x96b   :  { %9017 = vmatmul.mubr.msk.f32.gmra.mrb[216].mxu1 %vm141_vm0, %v10697_v23  ;;  %v13533_v20 = vpop.f32.mrb[13].mxu0  ;;  %v10701_v23 = vld [vmem:[%s15464_s2 + $0x38] sm:$0xff] }
 0x96c   :  { %15770 = vst [vmem:[#allocation25_spill] sm:$0xff] %v13533_v20  ;;  %9142 = vmatmul.mubr.msk.f32.gmra.mrb[118].mxu0 %vm141_vm0, %v7736_v47  ;;  %4047 = vmatpush1.msra.mxu1 %v15771_v17 }
 0x96d   :  { %9019 = vmatprep.mubr.msk.f32.mxu1 %vm10826_vm2, %v15509_v10  ;;  %9144 = vmatprep.mubr.msk.f32.mxu0 %vm10826_vm2, %v15509_v10 }
 0x96e   :  { %v13544_v62 = vpop.f32.mrb[14].mxu0 }
 0x96f   :  { %9020 = vmatmul.mubr.msk.f32.gmra.mrb[218].mxu1 %vm141_vm0, %v10698_v25  ;;  %v13550_v16 = vpop.f32.mrb[15].mxu0  ;;  %v10702_v25 = vld [vmem:[%s15464_s2 + $0x40] sm:$0xff] }
 0x970   :  { %15772 = vst [vmem:[#allocation26_spill] sm:$0xff] %v13550_v16  ;;  %9145 = vmatmul.mubr.msk.f32.gmra.mrb[120].mxu0 %vm141_vm0, %v7737_v60  ;;  %9022 = vmatprep.mubr.msk.f32.mxu1 %vm10826_vm2, %v15509_v10 }
 0x971   :  { %9238 = vmatprep.mubr.msk.f32.mxu0 %vm10826_vm2, %v15509_v10 }
 0x972   :  { %v13557_v46 = vpop.f32.mrb[16].mxu0 }
 0x973   :  { %9023 = vmatmul.mubr.msk.f32.gmra.mrb[220].mxu1 %vm141_vm0, %v10699_v45  ;;  %v13563_v4 = vpop.f32.mrb[17].mxu0 }
 0x974   :  { %15773 = vst [vmem:[#allocation76_spill] sm:$0xff] %v13563_v4  ;;  %9025 = vmatprep.mubr.msk.f32.mxu1 %vm10826_vm2, %v15509_v10 }
 0x976   :  { %v13567_v59 = vpop.f32.mrb[18].mxu0 }
 0x977   :  { %9026 = vmatmul.mubr.msk.f32.gmra.mrb[222].mxu1 %vm141_vm0, %v10700_v42  ;;  %v13573_v9 = vpop.f32.mrb[19].mxu0 }
 0x978   :  { %15774 = vst [vmem:[#allocation78_spill] sm:$0xff] %v13573_v9  ;;  %9028 = vmatprep.mubr.msk.f32.mxu1 %vm10826_vm2, %v15509_v10 }
 0x97a   :  { %v13577_v47 = vpop.f32.mrb[20].mxu0 }
 0x97b   :  { %9029 = vmatmul.mubr.msk.f32.gmra.mrb[224].mxu1 %vm141_vm0, %v10701_v23  ;;  %v13583_v17 = vpop.f32.mrb[21].mxu0  ;;  %v10703_v23 = vld [vmem:[%s15464_s2 + $0x48] sm:$0xff] }
 0x97c   :  { %15775 = vst [vmem:[#allocation11_spill] sm:$0xff] %v13583_v17  ;;  %9031 = vmatprep.mubr.msk.f32.mxu1 %vm10826_vm2, %v15509_v10 }
 0x97e   :  { %v13587_v60 = vpop.f32.mrb[22].mxu0 }
 0x97f   :  { %9032 = vmatmul.mubr.msk.f32.gmra.mrb[226].mxu1 %vm141_vm0, %v10702_v25  ;;  %v13593_v45 = vpop.f32.mrb[23].mxu0  ;;  %v10704_v25 = vld [vmem:[%s15464_s2 + $0x50] sm:$0xff] }
 0x980   :  { %15776 = vst [vmem:[#allocation12_spill] sm:$0xff] %v13593_v45  ;;  %9034 = vmatprep.mubr.msk.f32.mxu1 %vm10826_vm2, %v15509_v10 }
 0x982   :  { %v13597_v42 = vpop.f32.mrb[24].mxu0 }
 0x983   :  { %9035 = vmatmul.mubr.msk.f32.gmra.mrb[228].mxu1 %vm141_vm0, %v10703_v23  ;;  %v13603_v17 = vpop.f32.mrb[25].mxu0  ;;  %v10705_v23 = vld [vmem:[%s15464_s2 + $0x58] sm:$0xff] }
 0x984   :  { %15777 = vst [vmem:[#allocation13_spill] sm:$0xff] %v13603_v17  ;;  %9037 = vmatprep.mubr.msk.f32.mxu1 %vm10826_vm2, %v15509_v10 }
 0x986   :  { %v13607_v9 = vpop.f32.mrb[26].mxu0 }
 0x987   :  { %9038 = vmatmul.mubr.msk.f32.gmra.mrb[230].mxu1 %vm141_vm0, %v10704_v25  ;;  %v13613_v45 = vpop.f32.mrb[27].mxu0  ;;  %v10706_v25 = vld [vmem:[%s15464_s2 + $0x60] sm:$0xff] }
 0x988   :  { %15778 = vst [vmem:[#allocation14_spill] sm:$0xff] %v13613_v45  ;;  %9040 = vmatprep.mubr.msk.f32.mxu1 %vm10826_vm2, %v15509_v10 }
 0x98a   :  { %v13617_v4 = vpop.f32.mrb[28].mxu0 }
 0x98b   :  { %9041 = vmatmul.mubr.msk.f32.gmra.mrb[232].mxu1 %vm141_vm0, %v10705_v23  ;;  %v13623_v17 = vpop.f32.mrb[29].mxu0  ;;  %v10707_v23 = vld [vmem:[%s15464_s2 + $0x68] sm:$0xff] }
 0x98c   :  { %15779 = vst [vmem:[#allocation69_spill] sm:$0xff] %v13623_v17  ;;  %9043 = vmatprep.mubr.msk.f32.mxu1 %vm10826_vm2, %v15509_v10 }
 0x98e   :  { %v13627_v16 = vpop.f32.mrb[30].mxu0 }
 0x98f   :  { %9044 = vmatmul.mubr.msk.f32.gmra.mrb[234].mxu1 %vm141_vm0, %v10706_v25  ;;  %v13633_v45 = vpop.f32.mrb[31].mxu0  ;;  %v10708_v25 = vld [vmem:[%s15464_s2 + $0x70] sm:$0xff] }
 0x990   :  { %15780 = vst [vmem:[#allocation70_spill] sm:$0xff] %v13633_v45  ;;  %9046 = vmatprep.mubr.msk.f32.mxu1 %vm10826_vm2, %v15509_v10 }
 0x992   :  { %v13637_v20 = vpop.f32.mrb[32].mxu0 }
 0x993   :  { %9047 = vmatmul.mubr.msk.f32.gmra.mrb[236].mxu1 %vm141_vm0, %v10707_v23  ;;  %v13643_v17 = vpop.f32.mrb[33].mxu0  ;;  %v10709_v23 = vld [vmem:[%s15464_s2 + $0x78] sm:$0xff] }
 0x994   :  { %15781 = vst [vmem:[#allocation71_spill] sm:$0xff] %v13643_v17  ;;  %9049 = vmatprep.mubr.msk.f32.mxu1 %vm10826_vm2, %v15509_v10 }
 0x996   :  { %v13647_v31 = vpop.f32.mrb[34].mxu0 }
 0x997   :  { %9050 = vmatmul.mubr.msk.f32.gmra.mrb[238].mxu1 %vm141_vm0, %v10708_v25  ;;  %v13653_v45 = vpop.f32.mrb[35].mxu0  ;;  %v10710_v25 = vld [vmem:[%s15464_s2 + $0x80] sm:$0xff] }
 0x998   :  { %15782 = vst [vmem:[#allocation72_spill] sm:$0xff] %v13653_v45  ;;  %9052 = vmatprep.mubr.msk.f32.mxu1 %vm10826_vm2, %v15509_v10 }
 0x99a   :  { %v13657_v32 = vpop.f32.mrb[36].mxu0 }
 0x99b   :  { %9053 = vmatmul.mubr.msk.f32.gmra.mrb[240].mxu1 %vm141_vm0, %v10709_v23  ;;  %v13663_v17 = vpop.f32.mrb[37].mxu0  ;;  %v10711_v23 = vld [vmem:[%s15464_s2 + $0x88] sm:$0xff] }
 0x99c   :  { %15783 = vst [vmem:[#allocation73_spill] sm:$0xff] %v13663_v17  ;;  %9055 = vmatprep.mubr.msk.f32.mxu1 %vm10826_vm2, %v15509_v10 }
 0x99e   :  { %v13667_v14 = vpop.f32.mrb[38].mxu0 }
 0x99f   :  { %15784 = vst [vmem:[#allocation74_spill] sm:$0xff] %v13667_v14  ;;  %9056 = vmatmul.mubr.msk.f32.gmra.mrb[242].mxu1 %vm141_vm0, %v10710_v25  ;;  %v13673_v45 = vpop.f32.mrb[39].mxu0  ;;  %v10712_v25 = vld [vmem:[%s15464_s2 + $0x90] sm:$0xff] }
 0x9a0   :  { %15785 = vst [vmem:[#allocation75_spill] sm:$0xff] %v13673_v45  ;;  %9058 = vmatprep.mubr.msk.f32.mxu1 %vm10826_vm2, %v15509_v10 }
 0x9a2   :  { %v13677_v5 = vpop.f32.mrb[40].mxu0 }
 0x9a3   :  { %15786 = vst [vmem:[#allocation77_spill] sm:$0xff] %v13677_v5  ;;  %9059 = vmatmul.mubr.msk.f32.gmra.mrb[244].mxu1 %vm141_vm0, %v10711_v23  ;;  %v13683_v14 = vpop.f32.mrb[41].mxu0  ;;  %v10713_v23 = vld [vmem:[%s15464_s2 + $0x98] sm:$0xff] }
 0x9a4   :  { %15787 = vst [vmem:[#allocation79_spill] sm:$0xff] %v13683_v14  ;;  %9061 = vmatprep.mubr.msk.f32.mxu1 %vm10826_vm2, %v15509_v10 }
 0x9a6   :  { %v13687_v17 = vpop.f32.mrb[42].mxu0 }
 0x9a7   :  { %15788 = vst [vmem:[#allocation80_spill] sm:$0xff] %v13687_v17  ;;  %9062 = vmatmul.mubr.msk.f32.gmra.mrb[246].mxu1 %vm141_vm0, %v10712_v25  ;;  %v13693_v45 = vpop.f32.mrb[43].mxu0  ;;  %v10714_v25 = vld [vmem:[%s15464_s2 + $0xa0] sm:$0xff] }
 0x9a8   :  { %15789 = vst [vmem:[#allocation81_spill] sm:$0xff] %v13693_v45  ;;  %9064 = vmatprep.mubr.msk.f32.mxu1 %vm10826_vm2, %v15509_v10 }
 0x9aa   :  { %v13697_v5 = vpop.f32.mrb[44].mxu0 }
 0x9ab   :  { %15790 = vst [vmem:[#allocation82_spill] sm:$0xff] %v13697_v5  ;;  %9065 = vmatmul.mubr.msk.f32.gmra.mrb[248].mxu1 %vm141_vm0, %v10713_v23  ;;  %v13703_v14 = vpop.f32.mrb[45].mxu0 }
 0x9ac   :  { %15791 = vst [vmem:[#allocation83_spill] sm:$0xff] %v13703_v14  ;;  %9067 = vmatprep.mubr.msk.f32.mxu1 %vm10826_vm2, %v15509_v10 }
 0x9ae   :  { %v13707_v17 = vpop.f32.mrb[46].mxu0 }
 0x9af   :  { %15792 = vst [vmem:[#allocation84_spill] sm:$0xff] %v13707_v17  ;;  %9068 = vmatmul.mubr.msk.f32.gmra.mrb[250].mxu1 %vm141_vm0, %v10714_v25  ;;  %v13713_v45 = vpop.f32.mrb[47].mxu0 }
 0x9b0   :  { %15793 = vst [vmem:[#allocation85_spill] sm:$0xff] %v13713_v45  ;;  %4098 = vmatprep.mubr.f32.mxu1 %v15509_v10 }
 0x9b2   :  { %v13716_v5 = vpop.f32.mrb[48].mxu0 }
 0x9b3   :  { %15794 = vst [vmem:[#allocation86_spill] sm:$0xff] %v13716_v5  ;;  %v13718_v23 = vpop.f32.mrb[49].mxu0  ;;  %7759 = vmatmul.mubr.msk.f32.vlgmr.msra.gmra.mrb[252].mxu1 %vm141_vm0, %v13033_v26  ;;  %v14212_v5 = vld [vmem:[%s15464_s2 + $0xe8] sm:$0xff] }
 0x9b4   :  { %15795 = vst [vmem:[#allocation88_spill] sm:$0xff] %v13718_v23  ;;  %4104 = vmatprep.mubr.f32.mxu1 %v15509_v10 }
 0x9b6   :  { %v13723_v14 = vpop.f32.mrb[50].mxu0 }
 0x9b7   :  { %15796 = vst [vmem:[#allocation89_spill] sm:$0xff] %v13723_v14  ;;  %v13725_v17 = vpop.f32.mrb[51].mxu0  ;;  %7760 = vmatmul.mubr.msk.f32.gmra.mrb[254].mxu1 %vm141_vm0, %v13042_v30  ;;  %v14203_v14 = vld [vmem:[%s15464_s2 + $0xe0] sm:$0xff] }
 0x9b8   :  { %15797 = vst [vmem:[#allocation91_spill] sm:$0xff] %v13725_v17  ;;  %4110 = vmatprep.mubr.f32.mxu1 %v15509_v10 }
 0x9ba   :  { %v13730_v25 = vpop.f32.mrb[52].mxu0 }
 0x9bb   :  { %15798 = vst [vmem:[#allocation93_spill] sm:$0xff] %v13730_v25  ;;  %v13732_v45 = vpop.f32.mrb[53].mxu0  ;;  %7761 = vmatmul.mubr.msk.f32.gmra.mrb[0].mxu1 %vm141_vm0, %v13052_v63  ;;  %v14194_v25 = vld [vmem:[%s15464_s2 + $0xd8] sm:$0xff] }
 0x9bc   :  { %15799 = vst [vmem:[#allocation96_spill] sm:$0xff] %v13732_v45  ;;  %4116 = vmatprep.mubr.f32.mxu1 %v15509_v10 }
 0x9be   :  { %v13737_v26 = vpop.f32.mrb[54].mxu0 }
 0x9bf   :  { %15800 = vst [vmem:[#allocation27_spill] sm:$0xff] %v13737_v26  ;;  %v13739_v23 = vpop.f32.mrb[55].mxu0  ;;  %7762 = vmatmul.mubr.msk.f32.gmra.mrb[2].mxu1 %vm141_vm0, %v13062_v33  ;;  %v14185_v26 = vld [vmem:[%s15464_s2 + $0xd0] sm:$0xff] }
 0x9c0   :  { %15801 = vst [vmem:[#allocation29_spill] sm:$0xff] %v13739_v23  ;;  %4122 = vmatprep.mubr.f32.mxu1 %v15509_v10 }
 0x9c2   :  { %v13744_v30 = vpop.f32.mrb[56].mxu0 }
 0x9c3   :  { %15802 = vst [vmem:[#allocation31_spill] sm:$0xff] %v13744_v30  ;;  %v13746_v17 = vpop.f32.mrb[57].mxu0  ;;  %7763 = vmatmul.mubr.msk.f32.gmra.mrb[4].mxu1 %vm141_vm0, %v13072_v27  ;;  %v14176_v30 = vld [vmem:[%s15464_s2 + $0xc8] sm:$0xff] }
 0x9c4   :  { %15803 = vst [vmem:[#allocation33_spill] sm:$0xff] %v13746_v17  ;;  %4128 = vmatprep.mubr.f32.mxu1 %v15509_v10 }
 0x9c6   :  { %v13751_v63 = vpop.f32.mrb[58].mxu0 }
 0x9c7   :  { %15804 = vst [vmem:[#allocation35_spill] sm:$0xff] %v13751_v63  ;;  %v13753_v45 = vpop.f32.mrb[59].mxu0  ;;  %7764 = vmatmul.mubr.msk.f32.gmra.mrb[6].mxu1 %vm141_vm0, %v13081_v22  ;;  %v14167_v63 = vld [vmem:[%s15464_s2 + $0xc0] sm:$0xff] }
 0x9c8   :  { %15805 = vst [vmem:[#allocation37_spill] sm:$0xff] %v13753_v45  ;;  %4134 = vmatprep.mubr.f32.mxu1 %v15509_v10 }
 0x9ca   :  { %v13758_v33 = vpop.f32.mrb[60].mxu0 }
 0x9cb   :  { %15806 = vst [vmem:[#allocation39_spill] sm:$0xff] %v13758_v33  ;;  %v13760_v23 = vpop.f32.mrb[61].mxu0  ;;  %7765 = vmatmul.mubr.msk.f32.gmra.mrb[8].mxu1 %vm141_vm0, %v13089_v48  ;;  %v10731_v33 = vld [vmem:[%s15463_s1 + $0x128] sm:$0xff] }
 0x9cc   :  { %15807 = vst [vmem:[#allocation41_spill] sm:$0xff] %v13760_v23  ;;  %4140 = vmatprep.mubr.f32.mxu1 %v15509_v10 }
 0x9ce   :  { %v13765_v27 = vpop.f32.mrb[62].mxu0 }
 0x9cf   :  { %15808 = vst [vmem:[#allocation43_spill] sm:$0xff] %v13765_v27  ;;  %v13767_v17 = vpop.f32.mrb[63].mxu0  ;;  %7766 = vmatmul.mubr.msk.f32.gmra.mrb[10].mxu1 %vm141_vm0, %v13097_v37  ;;  %v10730_v27 = vld [vmem:[%s15463_s1 + $0x120] sm:$0xff] }
 0x9d0   :  { %15809 = vst [vmem:[#allocation45_spill] sm:$0xff] %v13767_v17  ;;  %4146 = vmatprep.mubr.f32.mxu1 %v15509_v10 }
 0x9d2   :  { %v13772_v22 = vpop.f32.mrb[64].mxu0 }
 0x9d3   :  { %15810 = vst [vmem:[#allocation47_spill] sm:$0xff] %v13772_v22  ;;  %v13774_v45 = vpop.f32.mrb[65].mxu0  ;;  %7767 = vmatmul.mubr.msk.f32.gmra.mrb[12].mxu1 %vm141_vm0, %v13105_v24 }
 0x9d4   :  { %15811 = vst [vmem:[#allocation49_spill] sm:$0xff] %v13774_v45  ;;  %4152 = vmatprep.mubr.f32.mxu1 %v15509_v10 }
 0x9d6   :  { %v13779_v48 = vpop.f32.mrb[66].mxu0 }
 0x9d7   :  { %15812 = vst [vmem:[#allocation51_spill] sm:$0xff] %v13779_v48  ;;  %v13781_v23 = vpop.f32.mrb[67].mxu0  ;;  %7768 = vmatmul.mubr.msk.f32.gmra.mrb[14].mxu1 %vm141_vm0, %v13113_v13  ;;  %v10729_v48 = vld [vmem:[%s15463_s1 + $0x118] sm:$0xff] }
 0x9d8   :  { %15813 = vst [vmem:[#allocation53_spill] sm:$0xff] %v13781_v23  ;;  %4158 = vmatprep.mubr.f32.mxu1 %v15509_v10 }
 0x9da   :  { %v13786_v37 = vpop.f32.mrb[68].mxu0 }
 0x9db   :  { %15814 = vst [vmem:[#allocation55_spill] sm:$0xff] %v13786_v37  ;;  %v13788_v17 = vpop.f32.mrb[69].mxu0  ;;  %7769 = vmatmul.mubr.msk.f32.gmra.mrb[16].mxu1 %vm141_vm0, %v13121_v2 }
 0x9dc   :  { %15815 = vst [vmem:[#allocation57_spill] sm:$0xff] %v13788_v17  ;;  %4164 = vmatprep.mubr.f32.mxu1 %v15509_v10 }
 0x9de   :  { %v13793_v24 = vpop.f32.mrb[70].mxu0 }
 0x9df   :  { %15816 = vst [vmem:[#allocation59_spill] sm:$0xff] %v13793_v24  ;;  %v13795_v45 = vpop.f32.mrb[71].mxu0  ;;  %7770 = vmatmul.mubr.msk.f32.gmra.mrb[18].mxu1 %vm141_vm0, %v13129_v11 }
 0x9e0   :  { %15817 = vst [vmem:[#allocation61_spill] sm:$0xff] %v13795_v45  ;;  %4170 = vmatprep.mubr.f32.mxu1 %v15509_v10 }
 0x9e2   :  { %v13800_v13 = vpop.f32.mrb[72].mxu0 }
 0x9e3   :  { %15818 = vst [vmem:[#allocation63_spill] sm:$0xff] %v13800_v13  ;;  %v13802_v23 = vpop.f32.mrb[73].mxu0  ;;  %7771 = vmatmul.mubr.msk.f32.gmra.mrb[20].mxu1 %vm141_vm0, %v13137_v1 }
 0x9e4   :  { %15819 = vst [vmem:[#allocation65_spill] sm:$0xff] %v13802_v23  ;;  %4176 = vmatprep.mubr.f32.mxu1 %v15509_v10 }
 0x9e6   :  { %v13807_v2 = vpop.f32.mrb[74].mxu0 }
 0x9e7   :  { %15820 = vst [vmem:[#allocation67_spill] sm:$0xff] %v13807_v2  ;;  %v13809_v17 = vpop.f32.mrb[75].mxu0  ;;  %7772 = vmatmul.mubr.msk.f32.gmra.mrb[22].mxu1 %vm141_vm0, %v13145_v50 }
 0x9e8   :  { %15821 = vst [vmem:[#allocation28_spill] sm:$0xff] %v13809_v17  ;;  %4182 = vmatprep.mubr.f32.mxu1 %v15509_v10 }
 0x9ea   :  { %v13814_v11 = vpop.f32.mrb[76].mxu0 }
 0x9eb   :  { %15822 = vst [vmem:[#allocation30_spill] sm:$0xff] %v13814_v11  ;;  %v13816_v45 = vpop.f32.mrb[77].mxu0  ;;  %7773 = vmatmul.mubr.msk.f32.gmra.mrb[24].mxu1 %vm141_vm0, %v13153_v39 }
 0x9ec   :  { %15823 = vst [vmem:[#allocation32_spill] sm:$0xff] %v13816_v45  ;;  %4188 = vmatprep.mubr.f32.mxu1 %v15509_v10 }
 0x9ee   :  { %v13821_v1 = vpop.f32.mrb[78].mxu0 }
 0x9ef   :  { %15824 = vst [vmem:[#allocation34_spill] sm:$0xff] %v13821_v1  ;;  %v13823_v23 = vpop.f32.mrb[79].mxu0  ;;  %7774 = vmatmul.mubr.msk.f32.gmra.mrb[26].mxu1 %vm141_vm0, %v13161_v21 }
 0x9f0   :  { %15825 = vst [vmem:[#allocation36_spill] sm:$0xff] %v13823_v23  ;;  %4194 = vmatprep.mubr.f32.mxu1 %v15509_v10 }
 0x9f2   :  { %v4904_v50 = vpop.f32.mrb[80].mxu0 }
 0x9f3   :  { %v5015_v17 = vadd.f32 %v4904_v50, %v13397_v0  ;;  %v9086_v11 = vpop.f32.mrb[81].mxu0  ;;  %7775 = vmatmul.mubr.msk.f32.gmra.mrb[28].mxu1 %vm141_vm0, %v13169_v41 }
 0x9f4   :  { %4200 = vmatprep.mubr.f32.mxu1 %v15509_v10 }
 0x9f6   :  { %v4909_v39 = vpop.f32.mrb[82].mxu0 }
 0x9f7   :  { %v5016_v45 = vadd.f32 %v4909_v39, %v13411_v51  ;;  %v9089_v1 = vpop.f32.mrb[83].mxu0  ;;  %7776 = vmatmul.mubr.msk.f32.gmra.mrb[30].mxu1 %vm141_vm0, %v13177_v7 }
 0x9f8   :  { %4206 = vmatprep.mubr.f32.mxu1 %v15509_v10 }
 0x9fa   :  { %v4914_v21 = vpop.f32.mrb[84].mxu0 }
 0x9fb   :  { %v5017_v23 = vadd.f32 %v4914_v21, %v13429_v49  ;;  %v9092_v2 = vpop.f32.mrb[85].mxu0  ;;  %7777 = vmatmul.mubr.msk.f32.gmra.mrb[32].mxu1 %vm141_vm0, %v13185_v28 }
 0x9fc   :  { %4212 = vmatprep.mubr.f32.mxu1 %v15509_v10 }
 0x9fe   :  { %v4919_v41 = vpop.f32.mrb[86].mxu0 }
 0x9ff   :  { %v5018_v0 = vadd.f32 %v4919_v41, %v13443_v57  ;;  %v9095_v11 = vpop.f32.mrb[87].mxu0  ;;  %7778 = vmatmul.mubr.msk.f32.gmra.mrb[34].mxu1 %vm141_vm0, %v13193_v15 }
 0xa00   :  { %4218 = vmatprep.mubr.f32.mxu1 %v15509_v10 }
 0xa02   :  { %v4924_v7 = vpop.f32.mrb[88].mxu0 }
 0xa03   :  { %v5019_v51 = vadd.f32 %v4924_v7, %v13460_v35  ;;  %v9098_v1 = vpop.f32.mrb[89].mxu0  ;;  %7779 = vmatmul.mubr.msk.f32.gmra.mrb[36].mxu1 %vm141_vm0, %v13201_v55 }
 0xa04   :  { %4480 = vmatprep.mubr.f32.mxu1 %v15509_v10  ;;  %v5022_v1 = vmul.f32 0.5, %v5015_v17 }
 0xa06   :  { %v4929_v28 = vpop.f32.mrb[90].mxu0  ;;  %10264 = vtanh.f32 %v5022_v1 }
 0xa07   :  { %v5020_v49 = vadd.f32 %v4929_v28, %v13472_v44  ;;  %v9101_v2 = vpop.f32.mrb[91].mxu0  ;;  %v5023_v44 = vmul.f32 0.5, %v5016_v45 }
 0xa09   :  { %10266 = vtanh.f32 %v5023_v44 }
 0xa0a   :  { %v4934_v57 = vpop.f32.mrb[92].mxu0 }
 0xa0b   :  { %v5021_v50 = vadd.f32 %v4934_v57, %v13491_v52  ;;  %v9104_v39 = vpop.f32.mrb[93].mxu0  ;;  %v5024_v57 = vmul.f32 0.5, %v5017_v23 }
 0xa0d   :  { %10268 = vtanh.f32 %v5024_v57 }
 0xa0e   :  { %v4939_v15 = vpop.f32.mrb[94].mxu0 }
 0xa0f   :  { %v5057_v21 = vadd.f32 %v4939_v15, %v13509_v53  ;;  %v9107_v41 = vpop.f32.mrb[95].mxu0 }
 0xa10   :  { %v10265_v41 = vpop.eup %10264 }
 0xa11   :  { %v5064_v45 = vmul.f32 0.5, %v5057_v21 }
 0xa12   :  { %v4944_v11 = vpop.f32.mrb[96].mxu0 }
 0xa13   :  { %v5058_v35 = vadd.f32 %v4944_v11, %v13527_v43  ;;  %v9110_v7 = vpop.f32.mrb[97].mxu0  ;;  %v5025_v43 = vmul.f32 0.5, %v5018_v0 }
 0xa14   :  { %v5036_v7 = vmul.f32 0.5, %v10265_v41 }
 0xa15   :  { %10270 = vtanh.f32 %v5025_v43  ;;  %v5065_v44 = vmul.f32 0.5, %v5058_v35 }
 0xa16   :  { %v4949_v55 = vpop.f32.mrb[98].mxu0  ;;  %v5043_v0 = vadd.f32 0.5, %v5036_v7 }
 0xa17   :  { %v5059_v13 = vadd.f32 %v4949_v55, %v13544_v62  ;;  %v9113_v24 = vpop.f32.mrb[99].mxu0  ;;  %v5027_v55 = vmul.f32 0.5, %v5020_v49 }
 0xa18   :  { %v5026_v24 = vmul.f32 0.5, %v5019_v51 }
 0xa19   :  { %v5066_v49 = vmul.f32 0.5, %v5059_v13 }
 0xa1a   :  { %v4954_v28 = vpop.f32.mrb[100].mxu0  ;;  %10272 = vtanh.f32 %v5026_v24 }
 0xa1b   :  { %v5060_v2 = vadd.f32 %v4954_v28, %v13557_v46  ;;  %v9116_v52 = vpop.f32.mrb[101].mxu0  ;;  %v10267_v46 = vpop.eup %10266  ;;  %10274 = vtanh.f32 %v5064_v45 }
 0xa1c   :  { %v5037_v28 = vmul.f32 0.5, %v10267_v46  ;;  %10276 = vtanh.f32 %v5027_v55 }
 0xa1d   :  { %10278 = vtanh.f32 %v5065_v44 }
 0xa1e   :  { %v4959_v39 = vpop.f32.mrb[102].mxu0 }
 0xa1f   :  { %v5061_v53 = vadd.f32 %v4959_v39, %v13567_v59  ;;  %v9119_v15 = vpop.f32.mrb[103].mxu0  ;;  %v5028_v39 = vmul.f32 0.5, %v5021_v50 }
 0xa20   :  { %v5044_v15 = vadd.f32 0.5, %v5037_v28 }
 0xa22   :  { %v4964_v17 = vpop.f32.mrb[104].mxu0 }
 0xa23   :  { %v13856_v11 = vadd.f32 %v4964_v17, %v13577_v47  ;;  %v9122_v62 = vpop.f32.mrb[105].mxu0  ;;  %v10269_v47 = vpop.eup %10268 }
 0xa24   :  { %v10271_v41 = vpop.eup %10270  ;;  %v5067_v62 = vmul.f32 0.5, %v5060_v2 }
 0xa25   :  { %v10273_v45 = vpop.eup %10272  ;;  %v5039_v50 = vmul.f32 0.5, %v10271_v41 }
 0xa26   :  { %v4969_v1 = vpop.f32.mrb[106].mxu0 }
 0xa27   :  { %v13859_v23 = vadd.f32 %v4969_v1, %v13587_v60  ;;  %v9125_v59 = vpop.f32.mrb[107].mxu0  ;;  %v5038_v60 = vmul.f32 0.5, %v10269_v47  ;;  %v10275_v1 = vpop.eup %10274 }
 0xa28   :  { %v10277_v28 = vpop.eup %10276  ;;  %v5078_v47 = vmul.f32 0.5, %v10275_v1  ;;  %v15828_v1 = vld [vmem:[#allocation102_spill] sm:$0xff] }
 0xa29   :  { %v5045_v46 = vadd.f32 0.5, %v5038_v60  ;;  %v10279_v2 = vpop.eup %10278 }
 0xa2a   :  { %v4974_v52 = vpop.f32.mrb[108].mxu0 }
 0xa2b   :  { %v5099_v57 = vmul.f32 %v5043_v0, %v4974_v52  ;;  %v9128_v51 = vpop.f32.mrb[109].mxu0  ;;  %v5040_v52 = vmul.f32 0.5, %v10273_v45  ;;  %v5041_v45 = vmul.f32 0.5, %v10277_v28 }
 0xa2d   :  { %v5106_v21 = vadd.f32 %v5099_v57, %v13597_v42  ;;  %v15826_v42 = vld [vmem:[#allocation98_spill] sm:$0xff]  ;;  %v5048_v28 = vadd.f32 0.5, %v5041_v45 }
 0xa2e   :  { %v4979_v43 = vpop.f32.mrb[110].mxu0 }
 0xa2f   :  { %10280 = vtanh.f32 %v5106_v21  ;;  %v5100_v17 = vmul.f32 %v5044_v15, %v4979_v43  ;;  %v9131_v35 = vpop.f32.mrb[111].mxu0  ;;  %v15827_v21 = vld [vmem:[#allocation100_spill] sm:$0xff] }
 0xa30   :  { %10282 = vtanh.f32 %v5028_v39  ;;  %v5046_v39 = vadd.f32 0.5, %v5039_v50  ;;  %v5079_v35 = vmul.f32 0.5, %v10279_v2 }
 0xa31   :  { %v5107_v24 = vadd.f32 %v5100_v17, %v13607_v9  ;;  %10284 = vtanh.f32 %v5066_v49  ;;  %v5068_v9 = vmul.f32 0.5, %v5061_v53  ;;  %v5085_v53 = vadd.f32 0.5, %v5078_v47 }
 0xa32   :  { %v3436_v7 = vpop.f32.mrb[210].mxu1 }
 0xa33   :  { %10286 = vtanh.f32 %v5107_v24  ;;  %v13864_v55 = vadd.f32 %v3436_v7, %v15826_v42  ;;  %v4984_v13 = vpop.f32.mrb[112].mxu0  ;;  %v9009_v59 = vpop.f32.mrb[211].mxu1  ;;  %v5047_v24 = vadd.f32 0.5, %v5040_v52  ;;  %v5086_v52 = vadd.f32 0.5, %v5079_v35 }
 0xa34   :  { %v5101_v44 = vmul.f32 %v5045_v46, %v4984_v13  ;;  %v9134_v0 = vpop.f32.mrb[113].mxu0  ;;  %10288 = vtanh.f32 %v5067_v62  ;;  %v5069_v62 = vmul.f32 0.5, %v13856_v11 }
 0xa36   :  { %v5108_v57 = vadd.f32 %v5101_v44, %v13617_v4  ;;  %v3441_v51 = vpop.f32.mrb[212].mxu1 }
 0xa37   :  { %v13868_v15 = vadd.f32 %v3441_v51, %v15827_v21  ;;  %v4989_v49 = vpop.f32.mrb[114].mxu0  ;;  %v9012_v43 = vpop.f32.mrb[213].mxu1 }
 0xa38   :  { %10290 = vtanh.f32 %v5108_v57  ;;  %v5102_v60 = vmul.f32 %v5046_v39, %v4989_v49  ;;  %v9137_v41 = vpop.f32.mrb[115].mxu0 }
 0xa39   :  { %v10281_v17 = vpop.eup %10280  ;;  %10292 = vtanh.f32 %v5068_v9  ;;  %v5070_v9 = vmul.f32 0.5, %v13859_v23 }
 0xa3a   :  { %v10283_v7 = vpop.eup %10282  ;;  %v5109_v4 = vadd.f32 %v5102_v60, %v13627_v16  ;;  %v3446_v46 = vpop.f32.mrb[214].mxu1  ;;  %v5120_v50 = vsub.f32 0.0, %v10281_v17  ;;  %v15829_v60 = vld [vmem:[#allocation104_spill] sm:$0xff] }
 0xa3b   :  { %v13873_v42 = vadd.f32 %v3446_v46, %v15828_v1  ;;  %v4994_v13 = vpop.f32.mrb[116].mxu0  ;;  %v9015_v59 = vpop.f32.mrb[215].mxu1  ;;  %v5042_v47 = vmul.f32 0.5, %v10283_v7  ;;  %v15830_v1 = vld [vmem:[#allocation106_spill] sm:$0xff] }
 0xa3c   :  { %v10285_v44 = vpop.eup %10284  ;;  %10294 = vtanh.f32 %v5109_v4  ;;  %v5103_v0 = vmul.f32 %v5047_v24, %v4994_v13  ;;  %v9140_v2 = vpop.f32.mrb[117].mxu0  ;;  %v5127_v57 = vmul.f32 %v5120_v50, %v5085_v53 }
 0xa3d   :  { %v10287_v11 = vpop.eup %10286  ;;  %10296 = vtanh.f32 %v5069_v62  ;;  %v5080_v43 = vmul.f32 0.5, %v10285_v44  ;;  %v5049_v7 = vadd.f32 0.5, %v5042_v47 }
 0xa3e   :  { %v5110_v16 = vadd.f32 %v5103_v0, %v13637_v20  ;;  %v3451_v51 = vpop.f32.mrb[216].mxu1  ;;  %v5121_v39 = vsub.f32 0.0, %v10287_v11  ;;  %v13877_v21 = vadd.f32 %v10281_v17, %v5127_v57  ;;  %v10289_v49 = vpop.eup %10288 }
 0xa3f   :  { %v13880_v41 = vadd.f32 %v3451_v51, %v15829_v60  ;;  %v4999_v24 = vpop.f32.mrb[118].mxu0  ;;  %v9018_v53 = vpop.f32.mrb[217].mxu1  ;;  %v5081_v23 = vmul.f32 0.5, %v10289_v49  ;;  %v5087_v50 = vadd.f32 0.5, %v5080_v43 }
 0xa40   :  { %10298 = vtanh.f32 %v5110_v16  ;;  %v5104_v35 = vmul.f32 %v5048_v28, %v4999_v24  ;;  %v9143_v62 = vpop.f32.mrb[119].mxu0  ;;  %v5128_v45 = vmul.f32 %v5121_v39, %v5086_v52  ;;  %v15831_v39 = vld [vmem:[#allocation108_spill] sm:$0xff] }
 0xa41   :  { %10300 = vtanh.f32 %v5070_v9  ;;  %v5088_v16 = vadd.f32 0.5, %v5081_v23 }
 0xa42   :  { %v10291_v4 = vpop.eup %10290  ;;  %v5111_v20 = vadd.f32 %v5104_v35, %v13647_v31  ;;  %v3456_v46 = vpop.f32.mrb[218].mxu1  ;;  %v13883_v17 = vadd.f32 %v10287_v11, %v5128_v45 }
 0xa43   :  { %v13886_v13 = vadd.f32 %v3456_v46, %v15830_v1  ;;  %v5004_v59 = vpop.f32.mrb[120].mxu0  ;;  %v9021_v44 = vpop.f32.mrb[219].mxu1  ;;  %v5122_v0 = vsub.f32 0.0, %v10291_v4 }
 0xa44   :  { %v10293_v2 = vpop.eup %10292  ;;  %10302 = vtanh.f32 %v5111_v20  ;;  %v5105_v57 = vmul.f32 %v5049_v7, %v5004_v59  ;;  %v9146_v52 = vpop.f32.mrb[121].mxu0  ;;  %v15832_v20 = vld [vmem:[#allocation110_spill] sm:$0xff] }
 0xa45   :  { %v5129_v28 = vmul.f32 %v5122_v0, %v5087_v50  ;;  %v5082_v11 = vmul.f32 0.5, %v10293_v2 }
 0xa46   :  { %v10295_v47 = vpop.eup %10294  ;;  %v5112_v9 = vadd.f32 %v5105_v57, %v13657_v32  ;;  %v3461_v31 = vpop.f32.mrb[220].mxu1 }
 0xa47   :  { %v10297_v51 = vpop.eup %10296  ;;  %v3552_v49 = vadd.f32 %v3461_v31, %v15831_v39  ;;  %v9024_v43 = vpop.f32.mrb[221].mxu1  ;;  %v5123_v60 = vsub.f32 0.0, %v10295_v47  ;;  %v13890_v24 = vadd.f32 %v10291_v4, %v5129_v28  ;;  %v5089_v7 = vadd.f32 0.5, %v5082_v11  ;;  %v15833_v4 = vld [vmem:[#allocation112_spill] sm:$0xff] }
 0xa48   :  { %10304 = vtanh.f32 %v5112_v9  ;;  %v5083_v62 = vmul.f32 0.5, %v10297_v51  ;;  %v15834_v43 = vld [vmem:[#allocation114_spill] sm:$0xff] }
 0xa49   :  { %v5130_v53 = vmul.f32 %v5123_v60, %v5088_v16 }
 0xa4a   :  { %v10299_v35 = vpop.eup %10298  ;;  %v3466_v45 = vpop.f32.mrb[222].mxu1  ;;  %v5090_v0 = vadd.f32 0.5, %v5083_v62  ;;  %v3554_v62 = vmul.f32 0.5, %v13864_v55  ;;  %v3557_v55 = vmul.f32 0.5, %v13880_v41 }
 0xa4b   :  { %v3553_v46 = vadd.f32 %v3466_v45, %v15832_v20  ;;  %v9027_v23 = vpop.f32.mrb[223].mxu1  ;;  %v13893_v50 = vadd.f32 %v10295_v47, %v5130_v53  ;;  %v5124_v32 = vsub.f32 0.0, %v10299_v35  ;;  %v10301_v1 = vpop.eup %10300  ;;  %v15835_v45 = vld [vmem:[#allocation92_spill] sm:$0xff] }
 0xa4c   :  { %v5084_v57 = vmul.f32 0.5, %v10301_v1  ;;  %v15836_v1 = vld [vmem:[#allocation116_spill] sm:$0xff]  ;;  %10306 = vtanh.f32 %v3554_v62 }
 0xa4d   :  { %v5131_v59 = vmul.f32 %v5124_v32, %v5089_v7  ;;  %v3555_v32 = vmul.f32 0.5, %v13868_v15 }
 0xa4e   :  { %v10303_v44 = vpop.eup %10302  ;;  %v3471_v2 = vpop.f32.mrb[224].mxu1  ;;  %v5091_v39 = vadd.f32 0.5, %v5084_v57  ;;  %v15837_v57 = vld [vmem:[#allocation118_spill] sm:$0xff] }
 0xa4f   :  { %v3589_v52 = vadd.f32 %v3471_v2, %v15833_v4  ;;  %v9030_v28 = vpop.f32.mrb[225].mxu1  ;;  %v5125_v16 = vsub.f32 0.0, %v10303_v44  ;;  %v13896_v9 = vadd.f32 %v10299_v35, %v5131_v59  ;;  %10308 = vtanh.f32 %v3555_v32 }
 0xa50   :  { %v3556_v28 = vmul.f32 0.5, %v13873_v42  ;;  %v3559_v42 = vmul.f32 0.5, %v3552_v49  ;;  %v15841_v49 = vld [vmem:[#allocation126_spill] sm:$0xff] }
 0xa51   :  { %v5132_v31 = vmul.f32 %v5125_v16, %v5090_v0 }
 0xa52   :  { %v10305_v51 = vpop.eup %10304  ;;  %v3476_v11 = vpop.f32.mrb[226].mxu1  ;;  %10310 = vtanh.f32 %v3556_v28 }
 0xa53   :  { %v3590_v47 = vadd.f32 %v3476_v11, %v15834_v43  ;;  %v9033_v60 = vpop.f32.mrb[227].mxu1  ;;  %v13899_v53 = vadd.f32 %v10303_v44, %v5132_v31  ;;  %v5126_v7 = vsub.f32 %v15835_v45, %v10305_v51  ;;  %v15838_v31 = vld [vmem:[#allocation120_spill] sm:$0xff]  ;;  %10312 = vtanh.f32 %v3557_v55 }
 0xa55   :  { %v5133_v20 = vmul.f32 %v5126_v7, %v5091_v39  ;;  %v3558_v7 = vmul.f32 0.5, %v13886_v13  ;;  %v3560_v13 = vmul.f32 0.5, %v3553_v46 }
 0xa56   :  { %v3481_v23 = vpop.f32.mrb[228].mxu1  ;;  %v10307_v15 = vpop.eup %10306 }
 0xa57   :  { %v3591_v35 = vadd.f32 %v3481_v23, %v15836_v1  ;;  %v9036_v59 = vpop.f32.mrb[229].mxu1  ;;  %v13905_v0 = vadd.f32 %v10305_v51, %v5133_v20  ;;  %v15839_v51 = vld [vmem:[#allocation122_spill] sm:$0xff]  ;;  %v3596_v20 = vmul.f32 0.5, %v3589_v52  ;;  %v3568_v23 = vmul.f32 0.5, %v10307_v15  ;;  %v15840_v1 = vld [vmem:[#allocation124_spill] sm:$0xff] }
 0xa58   :  { %10314 = vtanh.f32 %v3558_v7 }
 0xa59   :  { %v10309_v62 = vpop.eup %10308  ;;  %10316 = vtanh.f32 %v3596_v20  ;;  %v3598_v15 = vmul.f32 0.5, %v3591_v35 }
 0xa5a   :  { %v3486_v2 = vpop.f32.mrb[230].mxu1  ;;  %10318 = vtanh.f32 %v3559_v42 }
 0xa5b   :  { %v3592_v4 = vadd.f32 %v3486_v2, %v15837_v57  ;;  %v9039_v44 = vpop.f32.mrb[231].mxu1  ;;  %v3569_v2 = vmul.f32 0.5, %v10309_v62  ;;  %v3597_v57 = vmul.f32 0.5, %v3590_v47 }
 0xa5c   :  { %v3575_v44 = vadd.f32 0.5, %v3568_v23  ;;  %v10311_v28 = vpop.eup %10310  ;;  %v15842_v23 = vld [vmem:[#allocation128_spill] sm:$0xff] }
 0xa5d   :  { %v10313_v52 = vpop.eup %10312  ;;  %10320 = vtanh.f32 %v3597_v57  ;;  %v3599_v20 = vmul.f32 0.5, %v3592_v4 }
 0xa5e   :  { %v3491_v16 = vpop.f32.mrb[232].mxu1  ;;  %v3571_v47 = vmul.f32 0.5, %v10313_v52 }
 0xa5f   :  { %v3593_v11 = vadd.f32 %v3491_v16, %v15838_v31  ;;  %v9042_v39 = vpop.f32.mrb[233].mxu1 }
 0xa60   :  { %v3576_v39 = vadd.f32 0.5, %v3569_v2  ;;  %v3578_v57 = vadd.f32 0.5, %v3571_v47 }
 0xa62   :  { %v3496_v43 = vpop.f32.mrb[234].mxu1 }
 0xa63   :  { %v3594_v60 = vadd.f32 %v3496_v43, %v15839_v51  ;;  %v9045_v45 = vpop.f32.mrb[235].mxu1  ;;  %v3570_v51 = vmul.f32 0.5, %v10311_v28  ;;  %v3600_v28 = vmul.f32 0.5, %v3593_v11 }
 0xa65   :  { %v3577_v42 = vadd.f32 0.5, %v3570_v51  ;;  %v3601_v51 = vmul.f32 0.5, %v3594_v60  ;;  %v15845_v60 = vld [vmem:[#allocation134_spill] sm:$0xff] }
 0xa66   :  { %v3501_v32 = vpop.f32.mrb[236].mxu1 }
 0xa67   :  { %v13914_v59 = vadd.f32 %v3501_v32, %v15840_v1  ;;  %v9048_v41 = vpop.f32.mrb[237].mxu1  ;;  %v10315_v1 = vpop.eup %10314 }
 0xa68   :  { %v10317_v41 = vpop.eup %10316 }
 0xa6a   :  { %v3506_v16 = vpop.f32.mrb[238].mxu1 }
 0xa6b   :  { %v3631_v55 = vmul.f32 %v3575_v44, %v3506_v16  ;;  %v9051_v31 = vpop.f32.mrb[239].mxu1  ;;  %v10319_v44 = vpop.eup %10318  ;;  %v15843_v16 = vld [vmem:[#allocation130_spill] sm:$0xff] }
 0xa6c   :  { %v3572_v31 = vmul.f32 0.5, %v10315_v1  ;;  %v10321_v52 = vpop.eup %10320 }
 0xa6d   :  { %v3638_v43 = vadd.f32 %v3631_v55, %v15841_v49  ;;  %v3573_v49 = vmul.f32 0.5, %v10319_v44 }
 0xa6e   :  { %v3511_v45 = vpop.f32.mrb[240].mxu1 }
 0xa6f   :  { %10322 = vtanh.f32 %v3638_v43  ;;  %v3632_v7 = vmul.f32 %v3576_v39, %v3511_v45  ;;  %v9054_v62 = vpop.f32.mrb[241].mxu1  ;;  %v15844_v45 = vld [vmem:[#allocation132_spill] sm:$0xff] }
 0xa70   :  { %10324 = vtanh.f32 %v3560_v13  ;;  %v3610_v13 = vmul.f32 0.5, %v10317_v41  ;;  %v3579_v62 = vadd.f32 0.5, %v3572_v31  ;;  %v3580_v41 = vadd.f32 0.5, %v3573_v49 }
 0xa71   :  { %10326 = vtanh.f32 %v3598_v15  ;;  %v3639_v32 = vadd.f32 %v3632_v7, %v15842_v23 }
 0xa72   :  { %v3516_v46 = vpop.f32.mrb[242].mxu1  ;;  %v3617_v23 = vadd.f32 0.5, %v3610_v13 }
 0xa73   :  { %10328 = vtanh.f32 %v3639_v32  ;;  %v3633_v2 = vmul.f32 %v3577_v42, %v3516_v46  ;;  %v9057_v35 = vpop.f32.mrb[243].mxu1 }
 0xa74   :  { %10330 = vtanh.f32 %v3599_v20  ;;  %v3611_v20 = vmul.f32 0.5, %v10321_v52 }
 0xa75   :  { %v3640_v55 = vadd.f32 %v3633_v2, %v15843_v16 }
 0xa76   :  { %v3521_v39 = vpop.f32.mrb[244].mxu1  ;;  %v3618_v16 = vadd.f32 0.5, %v3611_v20 }
 0xa77   :  { %10332 = vtanh.f32 %v3640_v55  ;;  %v3634_v4 = vmul.f32 %v3578_v57, %v3521_v39  ;;  %v9060_v15 = vpop.f32.mrb[245].mxu1  ;;  %v3602_v57 = vmul.f32 0.5, %v13914_v59 }
 0xa78   :  { %10334 = vtanh.f32 %v3600_v28 }
 0xa79   :  { %v10323_v43 = vpop.eup %10322  ;;  %v3641_v7 = vadd.f32 %v3634_v4, %v15844_v45  ;;  %v15846_v45 = vld [vmem:[#allocation136_spill] sm:$0xff] }
 0xa7a   :  { %v10325_v47 = vpop.eup %10324  ;;  %v3526_v11 = vpop.f32.mrb[246].mxu1  ;;  %v3652_v32 = vsub.f32 %v13370_v29, %v10323_v43 }
 0xa7b   :  { %v10327_v42 = vpop.eup %10326  ;;  %10336 = vtanh.f32 %v3641_v7  ;;  %v3635_v1 = vmul.f32 %v3579_v62, %v3526_v11  ;;  %v9063_v46 = vpop.f32.mrb[247].mxu1  ;;  %v3574_v28 = vmul.f32 0.5, %v10325_v47 }
 0xa7c   :  { %v3659_v2 = vmul.f32 %v3652_v32, %v3617_v23  ;;  %10338 = vtanh.f32 %v3601_v51  ;;  %v3612_v55 = vmul.f32 0.5, %v10327_v42  ;;  %v15847_v46 = vld [vmem:[#allocation138_spill] sm:$0xff] }
 0xa7d   :  { %v10329_v35 = vpop.eup %10328  ;;  %v3642_v44 = vadd.f32 %v3635_v1, %v15845_v60  ;;  %v3581_v7 = vadd.f32 0.5, %v3574_v28 }
 0xa7e   :  { %v3531_v31 = vpop.f32.mrb[248].mxu1  ;;  %v3653_v13 = vsub.f32 %v13379_v54, %v10329_v35  ;;  %v3666_v39 = vadd.f32 %v10323_v43, %v3659_v2  ;;  %v10331_v29 = vpop.eup %10330  ;;  %v3619_v59 = vadd.f32 0.5, %v3612_v55 }
 0xa7f   :  { %10340 = vtanh.f32 %v3642_v44  ;;  %v3636_v52 = vmul.f32 %v3580_v41, %v3531_v31  ;;  %v9066_v4 = vpop.f32.mrb[249].mxu1  ;;  %v3613_v62 = vmul.f32 0.5, %v10331_v29 }
 0xa80   :  { %v3660_v15 = vmul.f32 %v3653_v13, %v3618_v16  ;;  %10342 = vtanh.f32 %v3602_v57 }
 0xa81   :  { %v10333_v49 = vpop.eup %10332  ;;  %v3643_v51 = vadd.f32 %v3636_v52, %v15846_v45  ;;  %v3620_v2 = vadd.f32 0.5, %v3613_v62 }
 0xa82   :  { %v3536_v23 = vpop.f32.mrb[250].mxu1  ;;  %v3667_v47 = vadd.f32 %v10329_v35, %v3660_v15  ;;  %v3654_v20 = vsub.f32 %v13395_v40, %v10333_v49  ;;  %v10335_v11 = vpop.eup %10334 }
 0xa83   :  { %10344 = vtanh.f32 %v3643_v51  ;;  %v3637_v54 = vmul.f32 %v3581_v7, %v3536_v23  ;;  %v9069_v43 = vpop.f32.mrb[251].mxu1  ;;  %v3614_v57 = vmul.f32 0.5, %v10335_v11 }
 0xa84   :  { %v9859_v32 = vpack.c.bf16 %v3667_v47, %v3666_v39  ;;  %v3661_v42 = vmul.f32 %v3654_v20, %v3619_v59  ;;  %v10716_v43 = vld [vmem:[%s15463_s1 + $0xb0] sm:$0xff] }
 0xa85   :  { %v10337_v1 = vpop.eup %10336  ;;  %v3644_v41 = vadd.f32 %v3637_v54, %v15847_v46  ;;  %v3621_v16 = vadd.f32 0.5, %v3614_v57  ;;  %v10717_v46 = vld [vmem:[%s15463_s1 + $0xb8] sm:$0xff]  ;;  %v10718_v57 = vld [vmem:[%s15463_s1 + $0xc0] sm:$0xff] }
 0xa86   :  { %9860 = vmatprep.subr.bf16.mxu1 %v9859_v32  ;;  %v3655_v60 = vsub.f32 %v13408_v34, %v10337_v1  ;;  %v3668_v44 = vadd.f32 %v10333_v49, %v3661_v42  ;;  %v10339_v28 = vpop.eup %10338  ;;  %v13934_v20 = vpop.f32.mrb[252].mxu1 }
 0xa87   :  { %10346 = vtanh.f32 %v3644_v41  ;;  %9862 = vmatpush1.bf16.msra.mxu1 %v13385_v56  ;;  %v3615_v55 = vmul.f32 0.5, %v10339_v28  ;;  %v13936_v11 = vpop.f32.mrb[253].mxu1  ;;  %v10719_v28 = vld [vmem:[%s15463_s1 + $0xc8] sm:$0xff] }
 0xa88   :  { %v3662_v40 = vmul.f32 %v3655_v60, %v3620_v2  ;;  %15848 = vst [vmem:[#allocation38_spill] sm:$0xff] %v13936_v11 }
 0xa89   :  { %v10341_v35 = vpop.eup %10340  ;;  %v3622_v15 = vadd.f32 0.5, %v3615_v55 }
 0xa8a   :  { %v3669_v31 = vadd.f32 %v10337_v1, %v3662_v40  ;;  %v3656_v13 = vsub.f32 %v13427_v38, %v10341_v35  ;;  %v10343_v39 = vpop.eup %10342  ;;  %v13946_v54 = vpop.f32.mrb[254].mxu1  ;;  %v9884_v1 = vpack.c.bf16 %v13899_v53, %v13896_v9 }
 0xa8b   :  { %v3616_v45 = vmul.f32 0.5, %v10343_v39 }
 0xa8c   :  { %v9863_v29 = vpack.c.bf16 %v3669_v31, %v3668_v44  ;;  %v3663_v52 = vmul.f32 %v3656_v13, %v3621_v16  ;;  %v10720_v16 = vld [vmem:[%s15463_s1 + $0xd0] sm:$0xff]  ;;  %v10721_v13 = vld [vmem:[%s15463_s1 + $0xd8] sm:$0xff] }
 0xa8d   :  { %v10345_v4 = vpop.eup %10344  ;;  %v3623_v7 = vadd.f32 0.5, %v3616_v45  ;;  %v10723_v45 = vld [vmem:[%s15463_s1 + $0xe8] sm:$0xff] }
 0xa8e   :  { %9864 = vmatprep.subr.bf16.mxu1 %v9863_v29  ;;  %v3657_v34 = vsub.f32 %v13440_v58, %v10345_v4  ;;  %v3670_v49 = vadd.f32 %v10341_v35, %v3663_v52  ;;  %v10715_v58 = vld [vmem:[%s15463_s1 + $0xa8] sm:$0xff]  ;;  %v10722_v52 = vld [vmem:[%s15463_s1 + $0xe0] sm:$0xff] }
 0xa8f   :  { %9866 = vmatpush1.bf16.msra.mxu1 %v13418_v19  ;;  %v9878_v19 = vpack.c.bf16 %v13883_v17, %v13877_v21 }
 0xa90   :  { %v3664_v56 = vmul.f32 %v3657_v34, %v3622_v15 }
 0xa91   :  { %v10347_v51 = vpop.eup %10346 }
 0xa92   :  { %v3671_v59 = vadd.f32 %v10345_v4, %v3664_v56  ;;  %v3658_v62 = vsub.f32 %v13458_v36, %v10347_v51  ;;  %v10724_v56 = vld [vmem:[%s15463_s1 + $0xf0] sm:$0xff] }
 0xa94   :  { %v9867_v23 = vpack.c.bf16 %v3671_v59, %v3670_v49  ;;  %v3665_v38 = vmul.f32 %v3658_v62, %v3623_v7 }
 0xa96   :  { %9868 = vmatprep.subr.bf16.mxu1 %v9867_v23  ;;  %v3672_v47 = vadd.f32 %v10347_v51, %v3665_v38  ;;  %v10725_v23 = vld [vmem:[%s15463_s1 + $0xf8] sm:$0xff] }
 0xa97   :  { %9870 = vmatpush1.bf16.msra.mxu1 %v13450_v8  ;;  %v13949_v8 = vpop.f32.mrb[255].mxu1 }
 0xa98   :  { %4428 = vmatprep.subr.mxu1 %v3672_v47  ;;  %15849 = vst [vmem:[#allocation40_spill] sm:$0xff] %v13949_v8  ;;  %v13958_v32 = vpop.f32.mrb[0].mxu1 }
 0xa99   :  { %v13961_v42 = vpop.f32.mrb[1].mxu1 }
 0xa9a   :  { %15850 = vst [vmem:[#allocation42_spill] sm:$0xff] %v13961_v42  ;;  %v13970_v41 = vpop.f32.mrb[2].mxu1 }
 0xa9b   :  { %4429 = vmatpush1.msra.mxu1 %v13458_v36  ;;  %v9881_v36 = vpack.c.bf16 %v13893_v50, %v13890_v24  ;;  %v13973_v2 = vpop.f32.mrb[3].mxu1 }
 0xa9c   :  { %7801 = vmatmul.mubr.msk.f32.vlgmr.msra.gmra.mrb[38].mxu1 %vm141_vm0, %v10715_v58  ;;  %9877 = vmatprep.subr.bf16.mxu1 %v15512_v6  ;;  %15851 = vst [vmem:[#allocation44_spill] sm:$0xff] %v13973_v2  ;;  %v13980_v60 = vpop.f32.mrb[4].mxu1 }
 0xa9d   :  { %9879 = vmatpush3.bf16.msra.mxu1 %v9878_v19  ;;  %4486 = vmatprep.mubr.f32.mxu1 %v15509_v10  ;;  %v13984_v44 = vpop.f32.mrb[5].mxu1 }
 0xa9e   :  { %9880 = vmatprep.subr.bf16.mxu1 %v15512_v6  ;;  %15852 = vst [vmem:[#allocation46_spill] sm:$0xff] %v13984_v44  ;;  %v13991_v40 = vpop.f32.mrb[6].mxu1 }
 0xa9f   :  { %v13994_v35 = vpop.f32.mrb[7].mxu1 }
 0xaa0   :  { %7802 = vmatmul.mubr.msk.f32.gmra.mrb[40].mxu1 %vm141_vm0, %v10716_v43  ;;  %15853 = vst [vmem:[#allocation48_spill] sm:$0xff] %v13994_v35  ;;  %v14000_v55 = vpop.f32.mrb[8].mxu1 }
 0xaa1   :  { %9882 = vmatpush3.bf16.msra.mxu1 %v9881_v36  ;;  %4492 = vmatprep.mubr.f32.mxu1 %v15509_v10  ;;  %15854 = vst [vmem:[#allocation50_spill] sm:$0xff] %v14000_v55  ;;  %v14003_v31 = vpop.f32.mrb[9].mxu1  ;;  %v10726_v36 = vld [vmem:[%s15463_s1 + $0x100] sm:$0xff] }
 0xaa2   :  { %9883 = vmatprep.subr.bf16.mxu1 %v15512_v6  ;;  %15855 = vst [vmem:[#allocation52_spill] sm:$0xff] %v14003_v31  ;;  %v14009_v39 = vpop.f32.mrb[10].mxu1 }
 0xaa3   :  { %15856 = vst [vmem:[#allocation54_spill] sm:$0xff] %v14009_v39  ;;  %v14012_v29 = vpop.f32.mrb[11].mxu1 }
 0xaa4   :  { %7803 = vmatmul.mubr.msk.f32.gmra.mrb[42].mxu1 %vm141_vm0, %v10717_v46  ;;  %15857 = vst [vmem:[#allocation56_spill] sm:$0xff] %v14012_v29 }
 0xaa5   :  { %9885 = vmatpush3.bf16.msra.mxu1 %v9884_v1  ;;  %4498 = vmatprep.mubr.f32.mxu1 %v15509_v10 }
 0xaa6   :  { %9159 = vmatprep.subr.mxu1 %v15509_v10  ;;  %v14018_v4 = vpop.f32.mrb[12].mxu1 }
 0xaa7   :  { %15858 = vst [vmem:[#allocation58_spill] sm:$0xff] %v14018_v4  ;;  %v14021_v15 = vpop.f32.mrb[13].mxu1 }
 0xaa8   :  { %7804 = vmatmul.mubr.msk.f32.gmra.mrb[44].mxu1 %vm141_vm0, %v10718_v57  ;;  %15859 = vst [vmem:[#allocation60_spill] sm:$0xff] %v14021_v15 }
 0xaa9   :  { %9160 = vmatpush3.msra.mxu1 %v13905_v0  ;;  %4504 = vmatprep.mubr.f32.mxu1 %v15509_v10 }
 0xaaa   :  { %9895 = vmatprep.subr.bf16.mxu1 %v15512_v6  ;;  %v14027_v34 = vpop.f32.mrb[14].mxu1 }
 0xaab   :  { %15860 = vst [vmem:[#allocation62_spill] sm:$0xff] %v14027_v34  ;;  %v14030_v49 = vpop.f32.mrb[15].mxu1  ;;  %v15930_v34 = vld [vmem:[#allocation25_spill] sm:$0xff] }
 0xaac   :  { %7805 = vmatmul.mubr.msk.f32.gmra.mrb[46].mxu1 %vm141_vm0, %v10719_v28  ;;  %15861 = vst [vmem:[#allocation64_spill] sm:$0xff] %v14030_v49  ;;  %v10727_v28 = vld [vmem:[%s15463_s1 + $0x108] sm:$0xff] }
 0xaad   :  { %4510 = vmatprep.mubr.f32.mxu1 %v15509_v10  ;;  %v14320_v49 = vld [vmem:[%s15464_s2 + $0x148] sm:$0xff] }
 0xaae   :  { %v14036_v51 = vpop.f32.mrb[16].mxu1 }
 0xaaf   :  { %15862 = vst [vmem:[#allocation66_spill] sm:$0xff] %v14036_v51  ;;  %v14039_v7 = vpop.f32.mrb[17].mxu1  ;;  %v15929_v51 = vld [vmem:[#allocation24_spill] sm:$0xff] }
 0xab0   :  { %7806 = vmatmul.mubr.msk.f32.gmra.mrb[48].mxu1 %vm141_vm0, %v10720_v16  ;;  %15863 = vst [vmem:[#allocation68_spill] sm:$0xff] %v14039_v7  ;;  %v14311_v7 = vld [vmem:[%s15464_s2 + $0x140] sm:$0xff] }
 0xab1   :  { %4516 = vmatprep.mubr.f32.mxu1 %v15509_v10 }
 0xab2   :  { %v14041_v59 = vpop.f32.mrb[18].mxu1 }
 0xab3   :  { %15864 = vst [vmem:[#allocation8_spill] sm:$0xff] %v14041_v59  ;;  %v14043_v62 = vpop.f32.mrb[19].mxu1  ;;  %v15928_v59 = vld [vmem:[#allocation23_spill] sm:$0xff] }
 0xab4   :  { %7807 = vmatmul.mubr.msk.f32.gmra.mrb[50].mxu1 %vm141_vm0, %v10721_v13  ;;  %15865 = vst [vmem:[#allocation87_spill] sm:$0xff] %v14043_v62  ;;  %v14302_v62 = vld [vmem:[%s15464_s2 + $0x138] sm:$0xff] }
 0xab5   :  { %4522 = vmatprep.mubr.f32.mxu1 %v15509_v10 }
 0xab6   :  { %v14049_v38 = vpop.f32.mrb[20].mxu1 }
 0xab7   :  { %15866 = vst [vmem:[#allocation9_spill] sm:$0xff] %v14049_v38  ;;  %v14052_v47 = vpop.f32.mrb[21].mxu1  ;;  %v15927_v38 = vld [vmem:[#allocation22_spill] sm:$0xff] }
 0xab8   :  { %7808 = vmatmul.mubr.msk.f32.gmra.mrb[52].mxu1 %vm141_vm0, %v10722_v52  ;;  %15867 = vst [vmem:[#allocation90_spill] sm:$0xff] %v14052_v47  ;;  %v14293_v47 = vld [vmem:[%s15464_s2 + $0x130] sm:$0xff] }
 0xab9   :  { %4528 = vmatprep.mubr.f32.mxu1 %v15509_v10 }
 0xaba   :  { %v14054_v19 = vpop.f32.mrb[22].mxu1 }
 0xabb   :  { %15868 = vst [vmem:[#allocation10_spill] sm:$0xff] %v14054_v19  ;;  %v14056_v58 = vpop.f32.mrb[23].mxu1 }
 0xabc   :  { %7809 = vmatmul.mubr.msk.f32.gmra.mrb[54].mxu1 %vm141_vm0, %v10723_v45  ;;  %15869 = vst [vmem:[#allocation94_spill] sm:$0xff] %v14056_v58  ;;  %v14284_v58 = vld [vmem:[%s15464_s2 + $0x128] sm:$0xff] }
 0xabd   :  { %4534 = vmatprep.mubr.f32.mxu1 %v15509_v10 }
 0xabe   :  { %v14062_v43 = vpop.f32.mrb[24].mxu1 }
 0xabf   :  { %15870 = vst [vmem:[#allocation95_spill] sm:$0xff] %v14062_v43  ;;  %v14065_v1 = vpop.f32.mrb[25].mxu1 }
 0xac0   :  { %7810 = vmatmul.mubr.msk.f32.gmra.mrb[56].mxu1 %vm141_vm0, %v10724_v56  ;;  %15871 = vst [vmem:[#allocation7_spill] sm:$0xff] %v14065_v1  ;;  %v10728_v56 = vld [vmem:[%s15463_s1 + $0x110] sm:$0xff]  ;;  %v14275_v1 = vld [vmem:[%s15464_s2 + $0x120] sm:$0xff] }
 0xac1   :  { %4540 = vmatprep.mubr.f32.mxu1 %v15509_v10 }
 0xac2   :  { %v14067_v46 = vpop.f32.mrb[26].mxu1 }
 0xac3   :  { %15872 = vst [vmem:[#allocation97_spill] sm:$0xff] %v14067_v46  ;;  %v14069_v57 = vpop.f32.mrb[27].mxu1 }
 0xac4   :  { %7811 = vmatmul.mubr.msk.f32.gmra.mrb[58].mxu1 %vm141_vm0, %v10725_v23  ;;  %15873 = vst [vmem:[#allocation99_spill] sm:$0xff] %v14069_v57  ;;  %v14266_v57 = vld [vmem:[%s15464_s2 + $0x118] sm:$0xff] }
 0xac5   :  { %4546 = vmatprep.mubr.f32.mxu1 %v15509_v10 }
 0xac6   :  { %v14075_v16 = vpop.f32.mrb[28].mxu1 }
 0xac7   :  { %15874 = vst [vmem:[#allocation101_spill] sm:$0xff] %v14075_v16  ;;  %v14078_v13 = vpop.f32.mrb[29].mxu1 }
 0xac8   :  { %7812 = vmatmul.mubr.msk.f32.gmra.mrb[60].mxu1 %vm141_vm0, %v10726_v36  ;;  %15875 = vst [vmem:[#allocation103_spill] sm:$0xff] %v14078_v13  ;;  %v14257_v13 = vld [vmem:[%s15464_s2 + $0x110] sm:$0xff] }
 0xac9   :  { %4552 = vmatprep.mubr.f32.mxu1 %v15509_v10 }
 0xaca   :  { %v14080_v52 = vpop.f32.mrb[30].mxu1 }
 0xacb   :  { %15876 = vst [vmem:[#allocation105_spill] sm:$0xff] %v14080_v52  ;;  %v14082_v45 = vpop.f32.mrb[31].mxu1 }
 0xacc   :  { %7813 = vmatmul.mubr.msk.f32.gmra.mrb[62].mxu1 %vm141_vm0, %v10727_v28  ;;  %15877 = vst [vmem:[#allocation107_spill] sm:$0xff] %v14082_v45  ;;  %v14248_v45 = vld [vmem:[%s15464_s2 + $0x108] sm:$0xff] }
 0xacd   :  { %4558 = vmatprep.mubr.f32.mxu1 %v15509_v10 }
 0xace   :  { %v14088_v23 = vpop.f32.mrb[32].mxu1 }
 0xacf   :  { %15878 = vst [vmem:[#allocation109_spill] sm:$0xff] %v14088_v23  ;;  %v14091_v36 = vpop.f32.mrb[33].mxu1 }
 0xad0   :  { %7814 = vmatmul.mubr.msk.f32.gmra.mrb[64].mxu1 %vm141_vm0, %v10728_v56  ;;  %15879 = vst [vmem:[#allocation111_spill] sm:$0xff] %v14091_v36  ;;  %v14239_v36 = vld [vmem:[%s15464_s2 + $0x100] sm:$0xff] }
 0xad1   :  { %4564 = vmatprep.mubr.f32.mxu1 %v15509_v10 }
 0xad2   :  { %v14093_v28 = vpop.f32.mrb[34].mxu1 }
 0xad3   :  { %15880 = vst [vmem:[#allocation113_spill] sm:$0xff] %v14093_v28  ;;  %v14095_v37 = vpop.f32.mrb[35].mxu1 }
 0xad4   :  { %15881 = vst [vmem:[#allocation115_spill] sm:$0xff] %v14095_v37  ;;  %7815 = vmatmul.mubr.msk.f32.gmra.mrb[66].mxu1 %vm141_vm0, %v10729_v48  ;;  %v10732_v48 = vld [vmem:[%s15463_s1 + $0x130] sm:$0xff]  ;;  %v14230_v37 = vld [vmem:[%s15464_s2 + $0xf8] sm:$0xff] }
 0xad5   :  { %4570 = vmatprep.mubr.f32.mxu1 %v15509_v10 }
 0xad6   :  { %v14102_v22 = vpop.f32.mrb[36].mxu1 }
 0xad7   :  { %15882 = vst [vmem:[#allocation117_spill] sm:$0xff] %v14102_v22  ;;  %v14104_v56 = vpop.f32.mrb[37].mxu1 }
 0xad8   :  { %15883 = vst [vmem:[#allocation119_spill] sm:$0xff] %v14104_v56  ;;  %7816 = vmatmul.mubr.msk.f32.gmra.mrb[68].mxu1 %vm141_vm0, %v10730_v27  ;;  %v10733_v27 = vld [vmem:[%s15463_s1 + $0x138] sm:$0xff]  ;;  %v14221_v56 = vld [vmem:[%s15464_s2 + $0xf0] sm:$0xff] }
 0xad9   :  { %4576 = vmatprep.mubr.f32.mxu1 %v15509_v10 }
 0xadc   :  { %7817 = vmatmul.mubr.msk.f32.gmra.mrb[70].mxu1 %vm141_vm0, %v10731_v33  ;;  %v10734_v33 = vld [vmem:[%s15463_s1 + $0x140] sm:$0xff] }
 0xadd   :  { %4582 = vmatprep.mubr.f32.mxu1 %v15509_v10 }
 0xae0   :  { %7818 = vmatmul.mubr.msk.f32.gmra.mrb[72].mxu1 %vm141_vm0, %v10732_v48  ;;  %v10735_v48 = vld [vmem:[%s15463_s1 + $0x148] sm:$0xff] }
 0xae1   :  { %4588 = vmatprep.mubr.f32.mxu1 %v15509_v10 }
 0xae4   :  { %7819 = vmatmul.mubr.msk.f32.gmra.mrb[74].mxu1 %vm141_vm0, %v10733_v27  ;;  %v14140_v27 = vld [vmem:[%s15464_s2 + $0xa8] sm:$0xff] }
 0xae5   :  { %4594 = vmatprep.mubr.f32.mxu1 %v15509_v10 }
 0xae8   :  { %7820 = vmatmul.mubr.msk.f32.gmra.mrb[76].mxu1 %vm141_vm0, %v10734_v33  ;;  %v14149_v33 = vld [vmem:[%s15464_s2 + $0xb0] sm:$0xff] }
 0xae9   :  { %4600 = vmatprep.mubr.f32.mxu1 %v15509_v10 }
 0xaec   :  { %7821 = vmatmul.mubr.msk.f32.gmra.mrb[78].mxu1 %vm141_vm0, %v10735_v48  ;;  %v14158_v48 = vld [vmem:[%s15464_s2 + $0xb8] sm:$0xff] }
 0xaed   :  { %9161 = vmatprep.mubr.msk.f32.mxu1 %vm10826_vm2, %v15509_v10 }
 0xaf0   :  { %9162 = vmatmul.mubr.msk.f32.vlgmr.msra.gmra.mrb[80].mxu1 %vm141_vm0, %v14140_v27 }
 0xaf1   :  { %9164 = vmatprep.mubr.msk.f32.mxu1 %vm10826_vm2, %v15509_v10 }
 0xaf4   :  { %9165 = vmatmul.mubr.msk.f32.gmra.mrb[82].mxu1 %vm141_vm0, %v14149_v33 }
 0xaf5   :  { %9167 = vmatprep.mubr.msk.f32.mxu1 %vm10826_vm2, %v15509_v10 }
 0xaf8   :  { %9168 = vmatmul.mubr.msk.f32.gmra.mrb[84].mxu1 %vm141_vm0, %v14158_v48 }
 0xaf9   :  { %9170 = vmatprep.mubr.msk.f32.mxu1 %vm10826_vm2, %v15509_v10 }
 0xafc   :  { %9171 = vmatmul.mubr.msk.f32.gmra.mrb[86].mxu1 %vm141_vm0, %v14167_v63 }
 0xafd   :  { %9173 = vmatprep.mubr.msk.f32.mxu1 %vm10826_vm2, %v15509_v10 }
 0xb00   :  { %9174 = vmatmul.mubr.msk.f32.gmra.mrb[88].mxu1 %vm141_vm0, %v14176_v30 }
 0xb01   :  { %9176 = vmatprep.mubr.msk.f32.mxu1 %vm10826_vm2, %v15509_v10 }
 0xb04   :  { %9177 = vmatmul.mubr.msk.f32.gmra.mrb[90].mxu1 %vm141_vm0, %v14185_v26 }
 0xb05   :  { %9179 = vmatprep.mubr.msk.f32.mxu1 %vm10826_vm2, %v15509_v10 }
 0xb08   :  { %9180 = vmatmul.mubr.msk.f32.gmra.mrb[92].mxu1 %vm141_vm0, %v14194_v25 }
 0xb09   :  { %9182 = vmatprep.mubr.msk.f32.mxu1 %vm10826_vm2, %v15509_v10 }
 0xb0c   :  { %9183 = vmatmul.mubr.msk.f32.gmra.mrb[94].mxu1 %vm141_vm0, %v14203_v14 }
 0xb0d   :  { %9185 = vmatprep.mubr.msk.f32.mxu1 %vm10826_vm2, %v15509_v10 }
 0xb10   :  { %9186 = vmatmul.mubr.msk.f32.gmra.mrb[96].mxu1 %vm141_vm0, %v14212_v5 }
 0xb11   :  { %9188 = vmatprep.mubr.msk.f32.mxu1 %vm10826_vm2, %v15509_v10 }
 0xb14   :  { %9189 = vmatmul.mubr.msk.f32.gmra.mrb[98].mxu1 %vm141_vm0, %v14221_v56 }
 0xb15   :  { %9191 = vmatprep.mubr.msk.f32.mxu1 %vm10826_vm2, %v15509_v10 }
 0xb18   :  { %9192 = vmatmul.mubr.msk.f32.gmra.mrb[100].mxu1 %vm141_vm0, %v14230_v37 }
 0xb19   :  { %9194 = vmatprep.mubr.msk.f32.mxu1 %vm10826_vm2, %v15509_v10 }
 0xb1c   :  { %9195 = vmatmul.mubr.msk.f32.gmra.mrb[102].mxu1 %vm141_vm0, %v14239_v36 }
 0xb1d   :  { %9197 = vmatprep.mubr.msk.f32.mxu1 %vm10826_vm2, %v15509_v10 }
 0xb20   :  { %9198 = vmatmul.mubr.msk.f32.gmra.mrb[104].mxu1 %vm141_vm0, %v14248_v45 }
 0xb21   :  { %9200 = vmatprep.mubr.msk.f32.mxu1 %vm10826_vm2, %v15509_v10 }
 0xb24   :  { %9201 = vmatmul.mubr.msk.f32.gmra.mrb[106].mxu1 %vm141_vm0, %v14257_v13 }
 0xb25   :  { %9203 = vmatprep.mubr.msk.f32.mxu1 %vm10826_vm2, %v15509_v10 }
 0xb28   :  { %9204 = vmatmul.mubr.msk.f32.gmra.mrb[108].mxu1 %vm141_vm0, %v14266_v57 }
 0xb29   :  { %9206 = vmatprep.mubr.msk.f32.mxu1 %vm10826_vm2, %v15509_v10 }
 0xb2c   :  { %9207 = vmatmul.mubr.msk.f32.gmra.mrb[110].mxu1 %vm141_vm0, %v14275_v1 }
 0xb2d   :  { %9209 = vmatprep.mubr.msk.f32.mxu1 %vm10826_vm2, %v15509_v10 }
 0xb30   :  { %9210 = vmatmul.mubr.msk.f32.gmra.mrb[112].mxu1 %vm141_vm0, %v14284_v58 }
 0xb31   :  { %9212 = vmatprep.mubr.msk.f32.mxu1 %vm10826_vm2, %v15509_v10 }
 0xb34   :  { %9213 = vmatmul.mubr.msk.f32.gmra.mrb[114].mxu1 %vm141_vm0, %v14293_v47 }
 0xb35   :  { %9215 = vmatprep.mubr.msk.f32.mxu1 %vm10826_vm2, %v15509_v10 }
 0xb38   :  { %9216 = vmatmul.mubr.msk.f32.gmra.mrb[116].mxu1 %vm141_vm0, %v14302_v62 }
 0xb39   :  { %9218 = vmatprep.mubr.msk.f32.mxu1 %vm10826_vm2, %v15509_v10 }
 0xb3c   :  { %9219 = vmatmul.mubr.msk.f32.gmra.mrb[118].mxu1 %vm141_vm0, %v14311_v7 }
 0xb3d   :  { %9221 = vmatprep.mubr.msk.f32.mxu1 %vm10826_vm2, %v15509_v10 }
 0xb40   :  { %9222 = vmatmul.mubr.msk.f32.gmra.mrb[120].mxu1 %vm141_vm0, %v14320_v49 }
 0xb41   :  { %9315 = vmatprep.mubr.msk.f32.mxu1 %vm10826_vm2, %v15509_v10 }
 0xb6f   :  { %v14326_v15 = vpop.f32.mrb[38].mxu1 }
 0xb70   :  { %15884 = vst [vmem:[#allocation121_spill] sm:$0xff] %v14326_v15  ;;  %v14328_v29 = vpop.f32.mrb[39].mxu1 }
 0xb71   :  { %15885 = vst [vmem:[#allocation123_spill] sm:$0xff] %v14328_v29 }
 0xb73   :  { %v14330_v31 = vpop.f32.mrb[40].mxu1 }
 0xb74   :  { %15886 = vst [vmem:[#allocation125_spill] sm:$0xff] %v14330_v31  ;;  %v14332_v35 = vpop.f32.mrb[41].mxu1 }
 0xb75   :  { %15887 = vst [vmem:[#allocation127_spill] sm:$0xff] %v14332_v35 }
 0xb77   :  { %v14334_v44 = vpop.f32.mrb[42].mxu1 }
 0xb78   :  { %15888 = vst [vmem:[#allocation129_spill] sm:$0xff] %v14334_v44  ;;  %v14336_v2 = vpop.f32.mrb[43].mxu1 }
 0xb79   :  { %15889 = vst [vmem:[#allocation131_spill] sm:$0xff] %v14336_v2 }
 0xb7b   :  { %v14338_v42 = vpop.f32.mrb[44].mxu1 }
 0xb7c   :  { %15890 = vst [vmem:[#allocation133_spill] sm:$0xff] %v14338_v42  ;;  %v14340_v8 = vpop.f32.mrb[45].mxu1 }
 0xb7d   :  { %15891 = vst [vmem:[#allocation135_spill] sm:$0xff] %v14340_v8 }
 0xb7f   :  { %v14342_v11 = vpop.f32.mrb[46].mxu1 }
 0xb80   :  { %15892 = vst [vmem:[#allocation137_spill] sm:$0xff] %v14342_v11  ;;  %v14344_v22 = vpop.f32.mrb[47].mxu1 }
 0xb81   :  { %15893 = vst [vmem:[#allocation18_spill] sm:$0xff] %v14344_v22 }
 0xb83   :  { %v14346_v28 = vpop.f32.mrb[48].mxu1 }
 0xb84   :  { %15894 = vst [vmem:[#allocation15_spill] sm:$0xff] %v14346_v28  ;;  %v14348_v15 = vpop.f32.mrb[49].mxu1 }
 0xb85   :  { %15895 = vst [vmem:[#allocation19_spill] sm:$0xff] %v14348_v15 }
 0xb87   :  { %v14350_v29 = vpop.f32.mrb[50].mxu1 }
 0xb88   :  { %15896 = vst [vmem:[#allocation16_spill] sm:$0xff] %v14350_v29  ;;  %v14352_v31 = vpop.f32.mrb[51].mxu1 }
 0xb89   :  { %15897 = vst [vmem:[#allocation20_spill] sm:$0xff] %v14352_v31 }
 0xb8b   :  { %v14354_v35 = vpop.f32.mrb[52].mxu1 }
 0xb8c   :  { %15898 = vst [vmem:[#allocation17_spill] sm:$0xff] %v14354_v35  ;;  %v14356_v44 = vpop.f32.mrb[53].mxu1 }
 0xb8d   :  { %15899 = vst [vmem:[#allocation98_spill] sm:$0xff] %v14356_v44 }
 0xb8f   :  { %v14358_v2 = vpop.f32.mrb[54].mxu1 }
 0xb90   :  { %15900 = vst [vmem:[#allocation100_spill] sm:$0xff] %v14358_v2  ;;  %v14360_v42 = vpop.f32.mrb[55].mxu1 }
 0xb91   :  { %15901 = vst [vmem:[#allocation102_spill] sm:$0xff] %v14360_v42 }
 0xb93   :  { %v14362_v8 = vpop.f32.mrb[56].mxu1 }
 0xb94   :  { %15902 = vst [vmem:[#allocation104_spill] sm:$0xff] %v14362_v8  ;;  %v14364_v11 = vpop.f32.mrb[57].mxu1 }
 0xb95   :  { %15903 = vst [vmem:[#allocation106_spill] sm:$0xff] %v14364_v11 }
 0xb97   :  { %v14366_v22 = vpop.f32.mrb[58].mxu1 }
 0xb98   :  { %15904 = vst [vmem:[#allocation108_spill] sm:$0xff] %v14366_v22  ;;  %v14368_v28 = vpop.f32.mrb[59].mxu1 }
 0xb99   :  { %15905 = vst [vmem:[#allocation110_spill] sm:$0xff] %v14368_v28 }
 0xb9b   :  { %v14370_v15 = vpop.f32.mrb[60].mxu1 }
 0xb9c   :  { %15906 = vst [vmem:[#allocation112_spill] sm:$0xff] %v14370_v15  ;;  %v14372_v29 = vpop.f32.mrb[61].mxu1 }
 0xb9d   :  { %15907 = vst [vmem:[#allocation114_spill] sm:$0xff] %v14372_v29 }
 0xb9f   :  { %v14374_v31 = vpop.f32.mrb[62].mxu1 }
 0xba0   :  { %15908 = vst [vmem:[#allocation92_spill] sm:$0xff] %v14374_v31  ;;  %v14376_v35 = vpop.f32.mrb[63].mxu1 }
 0xba1   :  { %15909 = vst [vmem:[#allocation116_spill] sm:$0xff] %v14376_v35 }
 0xba3   :  { %v14378_v44 = vpop.f32.mrb[64].mxu1 }
 0xba4   :  { %15910 = vst [vmem:[#allocation118_spill] sm:$0xff] %v14378_v44  ;;  %v14380_v2 = vpop.f32.mrb[65].mxu1 }
 0xba5   :  { %15911 = vst [vmem:[#allocation120_spill] sm:$0xff] %v14380_v2 }
 0xba7   :  { %v14382_v42 = vpop.f32.mrb[66].mxu1 }
 0xba8   :  { %15912 = vst [vmem:[#allocation122_spill] sm:$0xff] %v14382_v42  ;;  %v14384_v8 = vpop.f32.mrb[67].mxu1 }
 0xba9   :  { %15913 = vst [vmem:[#allocation124_spill] sm:$0xff] %v14384_v8 }
 0xbab   :  { %v14386_v11 = vpop.f32.mrb[68].mxu1 }
 0xbac   :  { %15914 = vst [vmem:[#allocation126_spill] sm:$0xff] %v14386_v11  ;;  %v14388_v22 = vpop.f32.mrb[69].mxu1 }
 0xbad   :  { %15915 = vst [vmem:[#allocation128_spill] sm:$0xff] %v14388_v22 }
 0xbaf   :  { %v14390_v28 = vpop.f32.mrb[70].mxu1 }
 0xbb0   :  { %15916 = vst [vmem:[#allocation130_spill] sm:$0xff] %v14390_v28  ;;  %v14392_v15 = vpop.f32.mrb[71].mxu1 }
 0xbb1   :  { %15917 = vst [vmem:[#allocation132_spill] sm:$0xff] %v14392_v15 }
 0xbb3   :  { %v14394_v29 = vpop.f32.mrb[72].mxu1 }
 0xbb4   :  { %15918 = vst [vmem:[#allocation134_spill] sm:$0xff] %v14394_v29  ;;  %v14396_v31 = vpop.f32.mrb[73].mxu1 }
 0xbb5   :  { %15919 = vst [vmem:[#allocation136_spill] sm:$0xff] %v14396_v31 }
 0xbb7   :  { %v14398_v35 = vpop.f32.mrb[74].mxu1 }
 0xbb8   :  { %15920 = vst [vmem:[#allocation138_spill] sm:$0xff] %v14398_v35  ;;  %v14400_v44 = vpop.f32.mrb[75].mxu1 }
 0xbb9   :  { %15921 = vst [vmem:[#allocation139_spill] sm:$0xff] %v14400_v44 }
 0xbbb   :  { %v14402_v2 = vpop.f32.mrb[76].mxu1 }
 0xbbc   :  { %15922 = vst [vmem:[#allocation140_spill] sm:$0xff] %v14402_v2  ;;  %v14404_v42 = vpop.f32.mrb[77].mxu1 }
 0xbbd   :  { %15923 = vst [vmem:[#allocation141_spill] sm:$0xff] %v14404_v42 }
 0xbbf   :  { %v14406_v8 = vpop.f32.mrb[78].mxu1 }
 0xbc0   :  { %15924 = vst [vmem:[#allocation142_spill] sm:$0xff] %v14406_v8  ;;  %v14408_v11 = vpop.f32.mrb[79].mxu1  ;;  %v15926_v8 = vld [vmem:[#allocation21_spill] sm:$0xff] }
 0xbc1   :  { %15925 = vst [vmem:[#allocation143_spill] sm:$0xff] %v14408_v11 }
 0xbc3   :  { %v5207_v22 = vpop.f32.mrb[80].mxu1 }
 0xbc4   :  { %v5318_v28 = vadd.f32 %v5207_v22, %v13401_v18  ;;  %v9163_v15 = vpop.f32.mrb[81].mxu1 }
 0xbc7   :  { %v5212_v23 = vpop.f32.mrb[82].mxu1 }
 0xbc8   :  { %v5319_v29 = vadd.f32 %v5212_v23, %v13414_v3  ;;  %v9166_v31 = vpop.f32.mrb[83].mxu1 }
 0xbcb   :  { %v5217_v52 = vpop.f32.mrb[84].mxu1 }
 0xbcc   :  { %v5320_v35 = vadd.f32 %v5217_v52, %v13433_v12  ;;  %v9169_v44 = vpop.f32.mrb[85].mxu1 }
 0xbcf   :  { %v5222_v16 = vpop.f32.mrb[86].mxu1 }
 0xbd0   :  { %v5321_v2 = vadd.f32 %v5222_v16, %v13446_v61  ;;  %v9172_v42 = vpop.f32.mrb[87].mxu1  ;;  %v5325_v16 = vmul.f32 0.5, %v5318_v28 }
 0xbd2   :  { %10348 = vtanh.f32 %v5325_v16 }
 0xbd3   :  { %v5227_v46 = vpop.f32.mrb[88].mxu1 }
 0xbd4   :  { %v5322_v43 = vadd.f32 %v5227_v46, %v15926_v8  ;;  %v9175_v11 = vpop.f32.mrb[89].mxu1  ;;  %v5326_v8 = vmul.f32 0.5, %v5319_v29  ;;  %v15934_v29 = vld [vmem:[#allocation11_spill] sm:$0xff] }
 0xbd5   :  { %v15931_v11 = vld [vmem:[#allocation26_spill] sm:$0xff] }
 0xbd6   :  { %10350 = vtanh.f32 %v5326_v8 }
 0xbd7   :  { %v5232_v19 = vpop.f32.mrb[90].mxu1 }
 0xbd8   :  { %v5323_v18 = vadd.f32 %v5232_v19, %v15927_v38  ;;  %v9178_v22 = vpop.f32.mrb[91].mxu1  ;;  %v15932_v19 = vld [vmem:[#allocation76_spill] sm:$0xff] }
 0xbdb   :  { %v5237_v15 = vpop.f32.mrb[92].mxu1 }
 0xbdc   :  { %v5324_v3 = vadd.f32 %v5237_v15, %v15928_v59  ;;  %v9181_v31 = vpop.f32.mrb[93].mxu1  ;;  %v5327_v15 = vmul.f32 0.5, %v5320_v35 }
 0xbde   :  { %10352 = vtanh.f32 %v5327_v15 }
 0xbdf   :  { %v5242_v23 = vpop.f32.mrb[94].mxu1 }
 0xbe0   :  { %v5360_v12 = vadd.f32 %v5242_v23, %v15929_v51  ;;  %v9184_v44 = vpop.f32.mrb[95].mxu1  ;;  %v5328_v51 = vmul.f32 0.5, %v5321_v2  ;;  %v15933_v23 = vld [vmem:[#allocation78_spill] sm:$0xff] }
 0xbe2   :  { %10354 = vtanh.f32 %v5328_v51  ;;  %v5367_v16 = vmul.f32 0.5, %v5360_v12 }
 0xbe3   :  { %v5247_v52 = vpop.f32.mrb[96].mxu1 }
 0xbe4   :  { %v5361_v61 = vadd.f32 %v5247_v52, %v15930_v34  ;;  %v9187_v42 = vpop.f32.mrb[97].mxu1  ;;  %v10349_v34 = vpop.eup %10348 }
 0xbe5   :  { %v10351_v42 = vpop.eup %10350  ;;  %v5339_v8 = vmul.f32 0.5, %v10349_v34 }
 0xbe7   :  { %v5252_v4 = vpop.f32.mrb[98].mxu1  ;;  %v5346_v15 = vadd.f32 0.5, %v5339_v8  ;;  %v15937_v8 = vld [vmem:[#allocation14_spill] sm:$0xff] }
 0xbe8   :  { %v5362_v46 = vadd.f32 %v5252_v4, %v15931_v11  ;;  %v9190_v39 = vpop.f32.mrb[99].mxu1 }
 0xbe9   :  { %v5329_v39 = vmul.f32 0.5, %v5322_v43  ;;  %v5331_v43 = vmul.f32 0.5, %v5324_v3 }
 0xbea   :  { %v5369_v34 = vmul.f32 0.5, %v5362_v46 }
 0xbeb   :  { %v5257_v38 = vpop.f32.mrb[100].mxu1  ;;  %10356 = vtanh.f32 %v5329_v39 }
 0xbec   :  { %v5363_v59 = vadd.f32 %v5257_v38, %v15932_v19  ;;  %v9193_v22 = vpop.f32.mrb[101].mxu1  ;;  %v5330_v38 = vmul.f32 0.5, %v5323_v18  ;;  %v15935_v19 = vld [vmem:[#allocation12_spill] sm:$0xff]  ;;  %10358 = vtanh.f32 %v5367_v16  ;;  %v15936_v18 = vld [vmem:[#allocation13_spill] sm:$0xff] }
 0xbed   :  { %v5340_v22 = vmul.f32 0.5, %v10351_v42 }
 0xbee   :  { %10360 = vtanh.f32 %v5330_v38  ;;  %v5370_v16 = vmul.f32 0.5, %v5363_v59 }
 0xbef   :  { %v5262_v31 = vpop.f32.mrb[102].mxu1 }
 0xbf0   :  { %v5364_v44 = vadd.f32 %v5262_v31, %v15933_v23  ;;  %v9196_v55 = vpop.f32.mrb[103].mxu1  ;;  %v10353_v31 = vpop.eup %10352 }
 0xbf1   :  { %v5368_v55 = vmul.f32 0.5, %v5361_v61  ;;  %v10355_v12 = vpop.eup %10354 }
 0xbf2   :  { %v5342_v61 = vmul.f32 0.5, %v10355_v12 }
 0xbf3   :  { %v5267_v28 = vpop.f32.mrb[104].mxu1  ;;  %10362 = vtanh.f32 %v5368_v55 }
 0xbf4   :  { %v5365_v52 = vadd.f32 %v5267_v28, %v15934_v29  ;;  %v9199_v4 = vpop.f32.mrb[105].mxu1  ;;  %v5347_v29 = vadd.f32 0.5, %v5340_v22 }
 0xbf7   :  { %v5272_v11 = vpop.f32.mrb[106].mxu1 }
 0xbf8   :  { %v14424_v35 = vadd.f32 %v5272_v11, %v15935_v19  ;;  %v9202_v2 = vpop.f32.mrb[107].mxu1  ;;  %v5341_v11 = vmul.f32 0.5, %v10353_v31  ;;  %v5371_v31 = vmul.f32 0.5, %v5364_v44 }
 0xbfa   :  { %v5348_v2 = vadd.f32 0.5, %v5341_v11 }
 0xbfb   :  { %v5277_v51 = vpop.f32.mrb[108].mxu1 }
 0xbfc   :  { %v5402_v23 = vmul.f32 %v5346_v15, %v5277_v51  ;;  %v9205_v28 = vpop.f32.mrb[109].mxu1  ;;  %v10357_v15 = vpop.eup %10356  ;;  %v5349_v51 = vadd.f32 0.5, %v5342_v61 }
 0xbfd   :  { %v10359_v22 = vpop.eup %10358  ;;  %v15938_v28 = vld [vmem:[#allocation69_spill] sm:$0xff] }
 0xbfe   :  { %v5409_v4 = vadd.f32 %v5402_v23, %v15936_v18  ;;  %v10361_v23 = vpop.eup %10360  ;;  %v5343_v18 = vmul.f32 0.5, %v10357_v15 }
 0xbff   :  { %v5282_v19 = vpop.f32.mrb[110].mxu1  ;;  %v5344_v11 = vmul.f32 0.5, %v10361_v23  ;;  %v5373_v23 = vmul.f32 0.5, %v14424_v35 }
 0xc00   :  { %10364 = vtanh.f32 %v5409_v4  ;;  %v5403_v39 = vmul.f32 %v5347_v29, %v5282_v19  ;;  %v9208_v42 = vpop.f32.mrb[111].mxu1 }
 0xc01   :  { %10366 = vtanh.f32 %v5331_v43  ;;  %v5381_v43 = vmul.f32 0.5, %v10359_v22  ;;  %v15939_v42 = vld [vmem:[#allocation70_spill] sm:$0xff] }
 0xc02   :  { %10368 = vtanh.f32 %v5369_v34  ;;  %v5410_v38 = vadd.f32 %v5403_v39, %v15937_v8  ;;  %v10363_v34 = vpop.eup %10362  ;;  %v5372_v39 = vmul.f32 0.5, %v5365_v52  ;;  %v15940_v52 = vld [vmem:[#allocation71_spill] sm:$0xff] }
 0xc03   :  { %v5287_v3 = vpop.f32.mrb[112].mxu1 }
 0xc04   :  { %10370 = vtanh.f32 %v5410_v38  ;;  %v5404_v55 = vmul.f32 %v5348_v2, %v5287_v3  ;;  %v9211_v46 = vpop.f32.mrb[113].mxu1  ;;  %v5350_v38 = vadd.f32 0.5, %v5343_v18  ;;  %v5388_v2 = vadd.f32 0.5, %v5381_v43 }
 0xc05   :  { %10372 = vtanh.f32 %v5370_v16  ;;  %v5382_v16 = vmul.f32 0.5, %v10363_v34  ;;  %v5351_v46 = vadd.f32 0.5, %v5344_v11 }
 0xc06   :  { %v5411_v29 = vadd.f32 %v5404_v55, %v15938_v28 }
 0xc07   :  { %v5292_v12 = vpop.f32.mrb[114].mxu1  ;;  %v5389_v18 = vadd.f32 0.5, %v5382_v16 }
 0xc08   :  { %10374 = vtanh.f32 %v5411_v29  ;;  %v5405_v59 = vmul.f32 %v5349_v51, %v5292_v12  ;;  %v9214_v4 = vpop.f32.mrb[115].mxu1 }
 0xc09   :  { %10376 = vtanh.f32 %v5371_v31 }
 0xc0a   :  { %v10365_v19 = vpop.eup %10364  ;;  %v5412_v8 = vadd.f32 %v5405_v59, %v15939_v42 }
 0xc0b   :  { %v10367_v61 = vpop.eup %10366  ;;  %v5297_v44 = vpop.f32.mrb[116].mxu1  ;;  %v5423_v3 = vsub.f32 %v13877_v21, %v10365_v19 }
 0xc0c   :  { %v10369_v15 = vpop.eup %10368  ;;  %10378 = vtanh.f32 %v5412_v8  ;;  %v5406_v22 = vmul.f32 %v5350_v38, %v5297_v44  ;;  %v9217_v55 = vpop.f32.mrb[117].mxu1  ;;  %v5345_v29 = vmul.f32 0.5, %v10367_v61 }
 0xc0d   :  { %v5430_v51 = vmul.f32 %v5423_v3, %v5388_v2  ;;  %10380 = vtanh.f32 %v5372_v39  ;;  %v5383_v12 = vmul.f32 0.5, %v10369_v15  ;;  %v15941_v39 = vld [vmem:[#allocation72_spill] sm:$0xff] }
 0xc0e   :  { %v10371_v28 = vpop.eup %10370  ;;  %v5413_v31 = vadd.f32 %v5406_v22, %v15940_v52  ;;  %v5352_v35 = vadd.f32 0.5, %v5345_v29 }
 0xc0f   :  { %v5302_v43 = vpop.f32.mrb[118].mxu1  ;;  %v5424_v34 = vsub.f32 %v13883_v17, %v10371_v28  ;;  %v14434_v59 = vadd.f32 %v10365_v19, %v5430_v51  ;;  %v10373_v21 = vpop.eup %10372  ;;  %v5390_v2 = vadd.f32 0.5, %v5383_v12  ;;  %v15942_v51 = vld [vmem:[#allocation73_spill] sm:$0xff] }
 0xc10   :  { %10382 = vtanh.f32 %v5413_v31  ;;  %v5407_v4 = vmul.f32 %v5351_v46, %v5302_v43  ;;  %v9220_v42 = vpop.f32.mrb[119].mxu1  ;;  %v5384_v44 = vmul.f32 0.5, %v10373_v21 }
 0xc11   :  { %v5431_v11 = vmul.f32 %v5424_v34, %v5389_v18  ;;  %10384 = vtanh.f32 %v5373_v23 }
 0xc12   :  { %v10375_v8 = vpop.eup %10374  ;;  %v5414_v38 = vadd.f32 %v5407_v4, %v15941_v39  ;;  %v5391_v52 = vadd.f32 0.5, %v5384_v44 }
 0xc13   :  { %v5307_v61 = vpop.f32.mrb[120].mxu1  ;;  %v14437_v16 = vadd.f32 %v10371_v28, %v5431_v11  ;;  %v5425_v3 = vsub.f32 %v13890_v24, %v10375_v8  ;;  %v10377_v17 = vpop.eup %10376 }
 0xc14   :  { %10386 = vtanh.f32 %v5414_v38  ;;  %v5408_v19 = vmul.f32 %v5352_v35, %v5307_v61  ;;  %v9223_v15 = vpop.f32.mrb[121].mxu1  ;;  %v5385_v31 = vmul.f32 0.5, %v10377_v17 }
 0xc15   :  { %v9887_v22 = vpack.c.bf16 %v14437_v16, %v14434_v59  ;;  %v5432_v55 = vmul.f32 %v5425_v3, %v5390_v2 }
 0xc16   :  { %v10379_v46 = vpop.eup %10378  ;;  %v5415_v23 = vadd.f32 %v5408_v19, %v15942_v51  ;;  %v5392_v43 = vadd.f32 0.5, %v5385_v31 }
 0xc17   :  { %9888 = vmatpush3.bf16.msra.mxu0 %v9887_v22  ;;  %v5426_v29 = vsub.f32 %v13893_v50, %v10379_v46  ;;  %v14444_v28 = vadd.f32 %v10375_v8, %v5432_v55  ;;  %v10381_v18 = vpop.eup %10380 }
 0xc18   :  { %10388 = vtanh.f32 %v5415_v23  ;;  %9889 = vmatprep.subr.bf16.mxu0 %v15512_v6  ;;  %v5386_v34 = vmul.f32 0.5, %v10381_v18 }
 0xc19   :  { %v5433_v24 = vmul.f32 %v5426_v29, %v5391_v52 }
 0xc1a   :  { %v10383_v12 = vpop.eup %10382  ;;  %v5393_v8 = vadd.f32 0.5, %v5386_v34 }
 0xc1b   :  { %v14447_v21 = vadd.f32 %v10379_v46, %v5433_v24  ;;  %v5427_v4 = vsub.f32 %v13896_v9, %v10383_v12  ;;  %v10385_v42 = vpop.eup %10384 }
 0xc1c   :  { %v5387_v38 = vmul.f32 0.5, %v10385_v42 }
 0xc1d   :  { %v9890_v11 = vpack.c.bf16 %v14447_v21, %v14444_v28  ;;  %v5434_v39 = vmul.f32 %v5427_v4, %v5392_v43 }
 0xc1e   :  { %v10387_v50 = vpop.eup %10386  ;;  %v5394_v3 = vadd.f32 0.5, %v5387_v38 }
 0xc1f   :  { %9891 = vmatpush3.bf16.msra.mxu0 %v9890_v11  ;;  %v5428_v35 = vsub.f32 %v13899_v53, %v10387_v50  ;;  %v14453_v2 = vadd.f32 %v10383_v12, %v5434_v39 }
 0xc20   :  { %9892 = vmatprep.subr.bf16.mxu0 %v15512_v6 }
 0xc21   :  { %v5435_v44 = vmul.f32 %v5428_v35, %v5393_v8  ;;  %v15944_v35 = vld [vmem:[#allocation54_spill] sm:$0xff] }
 0xc22   :  { %v10389_v61 = vpop.eup %10388 }
 0xc23   :  { %v14456_v17 = vadd.f32 %v10387_v50, %v5435_v44  ;;  %v5429_v9 = vsub.f32 %v13905_v0, %v10389_v61  ;;  %v15943_v50 = vld [vmem:[#allocation50_spill] sm:$0xff] }
 0xc25   :  { %v9893_v19 = vpack.c.bf16 %v14456_v17, %v14453_v2  ;;  %v5436_v15 = vmul.f32 %v5429_v9, %v5394_v3  ;;  %v15945_v3 = vld [vmem:[#allocation58_spill] sm:$0xff] }
 0xc27   :  { %9894 = vmatpush3.bf16.msra.mxu0 %v9893_v19  ;;  %v14461_v22 = vadd.f32 %v10389_v61, %v5436_v15 }
 0xc28   :  { %9236 = vmatprep.subr.mxu0 %v15509_v10 }
 0xc2b   :  { %9237 = vmatpush3.msra.mxu0 %v14461_v22 }
 0xc2c   :  { %9239 = vmatmul.mubr.msk.f32.vlgmr.msra.gmra.mrb[122].mxu0 %vm141_vm0, %v14140_v27  ;;  %9904 = vmatprep.subr.bf16.mxu0 %v15512_v6 }
 0xc2d   :  { %9241 = vmatprep.mubr.msk.f32.mxu0 %vm10826_vm2, %v15509_v10 }
 0xc30   :  { %9242 = vmatmul.mubr.msk.f32.gmra.mrb[124].mxu0 %vm141_vm0, %v14149_v33 }
 0xc31   :  { %9244 = vmatprep.mubr.msk.f32.mxu0 %vm10826_vm2, %v15509_v10 }
 0xc34   :  { %9245 = vmatmul.mubr.msk.f32.gmra.mrb[126].mxu0 %vm141_vm0, %v14158_v48 }
 0xc35   :  { %9247 = vmatprep.mubr.msk.f32.mxu0 %vm10826_vm2, %v15509_v10 }
 0xc38   :  { %9248 = vmatmul.mubr.msk.f32.gmra.mrb[128].mxu0 %vm141_vm0, %v14167_v63 }
 0xc39   :  { %9250 = vmatprep.mubr.msk.f32.mxu0 %vm10826_vm2, %v15509_v10 }
 0xc3c   :  { %9251 = vmatmul.mubr.msk.f32.gmra.mrb[130].mxu0 %vm141_vm0, %v14176_v30 }
 0xc3d   :  { %9253 = vmatprep.mubr.msk.f32.mxu0 %vm10826_vm2, %v15509_v10 }
 0xc40   :  { %9254 = vmatmul.mubr.msk.f32.gmra.mrb[132].mxu0 %vm141_vm0, %v14185_v26 }
 0xc41   :  { %9256 = vmatprep.mubr.msk.f32.mxu0 %vm10826_vm2, %v15509_v10 }
 0xc44   :  { %9257 = vmatmul.mubr.msk.f32.gmra.mrb[134].mxu0 %vm141_vm0, %v14194_v25 }
 0xc45   :  { %9259 = vmatprep.mubr.msk.f32.mxu0 %vm10826_vm2, %v15509_v10 }
 0xc48   :  { %9260 = vmatmul.mubr.msk.f32.gmra.mrb[136].mxu0 %vm141_vm0, %v14203_v14 }
 0xc49   :  { %9262 = vmatprep.mubr.msk.f32.mxu0 %vm10826_vm2, %v15509_v10 }
 0xc4c   :  { %9263 = vmatmul.mubr.msk.f32.gmra.mrb[138].mxu0 %vm141_vm0, %v14212_v5 }
 0xc4d   :  { %9265 = vmatprep.mubr.msk.f32.mxu0 %vm10826_vm2, %v15509_v10 }
 0xc50   :  { %9266 = vmatmul.mubr.msk.f32.gmra.mrb[140].mxu0 %vm141_vm0, %v14221_v56 }
 0xc51   :  { %9268 = vmatprep.mubr.msk.f32.mxu0 %vm10826_vm2, %v15509_v10 }
 0xc54   :  { %9269 = vmatmul.mubr.msk.f32.gmra.mrb[142].mxu0 %vm141_vm0, %v14230_v37 }
 0xc55   :  { %9271 = vmatprep.mubr.msk.f32.mxu0 %vm10826_vm2, %v15509_v10 }
 0xc58   :  { %9272 = vmatmul.mubr.msk.f32.gmra.mrb[144].mxu0 %vm141_vm0, %v14239_v36 }
 0xc59   :  { %9274 = vmatprep.mubr.msk.f32.mxu0 %vm10826_vm2, %v15509_v10 }
 0xc5c   :  { %9275 = vmatmul.mubr.msk.f32.gmra.mrb[146].mxu0 %vm141_vm0, %v14248_v45 }
 0xc5d   :  { %9277 = vmatprep.mubr.msk.f32.mxu0 %vm10826_vm2, %v15509_v10 }
 0xc60   :  { %9278 = vmatmul.mubr.msk.f32.gmra.mrb[148].mxu0 %vm141_vm0, %v14257_v13 }
 0xc61   :  { %9280 = vmatprep.mubr.msk.f32.mxu0 %vm10826_vm2, %v15509_v10 }
 0xc64   :  { %9281 = vmatmul.mubr.msk.f32.gmra.mrb[150].mxu0 %vm141_vm0, %v14266_v57 }
 0xc65   :  { %9283 = vmatprep.mubr.msk.f32.mxu0 %vm10826_vm2, %v15509_v10 }
 0xc68   :  { %9284 = vmatmul.mubr.msk.f32.gmra.mrb[152].mxu0 %vm141_vm0, %v14275_v1 }
 0xc69   :  { %9286 = vmatprep.mubr.msk.f32.mxu0 %vm10826_vm2, %v15509_v10 }
 0xc6c   :  { %9287 = vmatmul.mubr.msk.f32.gmra.mrb[154].mxu0 %vm141_vm0, %v14284_v58 }
 0xc6d   :  { %9289 = vmatprep.mubr.msk.f32.mxu0 %vm10826_vm2, %v15509_v10 }
 0xc70   :  { %9290 = vmatmul.mubr.msk.f32.gmra.mrb[156].mxu0 %vm141_vm0, %v14293_v47 }
 0xc71   :  { %9292 = vmatprep.mubr.msk.f32.mxu0 %vm10826_vm2, %v15509_v10 }
 0xc74   :  { %9293 = vmatmul.mubr.msk.f32.gmra.mrb[158].mxu0 %vm141_vm0, %v14302_v62 }
 0xc75   :  { %9295 = vmatprep.mubr.msk.f32.mxu0 %vm10826_vm2, %v15509_v10 }
 0xc78   :  { %9296 = vmatmul.mubr.msk.f32.gmra.mrb[160].mxu0 %vm141_vm0, %v14311_v7 }
 0xc79   :  { %9298 = vmatprep.mubr.msk.f32.mxu0 %vm10826_vm2, %v15509_v10 }
 0xc7c   :  { %9299 = vmatmul.mubr.msk.f32.gmra.mrb[162].mxu0 %vm141_vm0, %v14320_v49 }
 0xc7d   :  { %9392 = vmatprep.mubr.msk.f32.mxu0 %vm10826_vm2, %v15509_v10 }
 0xcff   :  { %v5510_v53 = vpop.f32.mrb[122].mxu0 }
 0xd00   :  { %v5621_v0 = vadd.f32 %v5510_v53, %v13934_v20  ;;  %v9240_v55 = vpop.f32.mrb[123].mxu0  ;;  %v15946_v53 = vld [vmem:[#allocation62_spill] sm:$0xff] }
 0xd02   :  { %v5628_v19 = vmul.f32 0.5, %v5621_v0 }
 0xd03   :  { %v5515_v46 = vpop.f32.mrb[124].mxu0 }
 0xd04   :  { %v5622_v51 = vadd.f32 %v5515_v46, %v13946_v54  ;;  %v9243_v23 = vpop.f32.mrb[125].mxu0  ;;  %10390 = vtanh.f32 %v5628_v19  ;;  %v15950_v19 = vld [vmem:[#allocation10_spill] sm:$0xff] }
 0xd05   :  { %v15947_v23 = vld [vmem:[#allocation66_spill] sm:$0xff] }
 0xd07   :  { %v5520_v52 = vpop.f32.mrb[126].mxu0 }
 0xd08   :  { %v5623_v31 = vadd.f32 %v5520_v52, %v13958_v32  ;;  %v9246_v29 = vpop.f32.mrb[127].mxu0 }
 0xd0b   :  { %v5525_v18 = vpop.f32.mrb[128].mxu0 }
 0xd0c   :  { %v5624_v24 = vadd.f32 %v5525_v18, %v13970_v41  ;;  %v9249_v12 = vpop.f32.mrb[129].mxu0  ;;  %v5630_v18 = vmul.f32 0.5, %v5623_v31 }
 0xd0f   :  { %v5530_v43 = vpop.f32.mrb[130].mxu0 }
 0xd10   :  { %v5625_v34 = vadd.f32 %v5530_v43, %v13980_v60  ;;  %v9252_v4 = vpop.f32.mrb[131].mxu0  ;;  %v5629_v60 = vmul.f32 0.5, %v5622_v51  ;;  %v5631_v43 = vmul.f32 0.5, %v5624_v24  ;;  %v15949_v51 = vld [vmem:[#allocation9_spill] sm:$0xff] }
 0xd11   :  { %v15948_v4 = vld [vmem:[#allocation8_spill] sm:$0xff] }
 0xd12   :  { %10392 = vtanh.f32 %v5629_v60 }
 0xd13   :  { %v5535_v42 = vpop.f32.mrb[132].mxu0  ;;  %10394 = vtanh.f32 %v5630_v18 }
 0xd14   :  { %v5626_v20 = vadd.f32 %v5535_v42, %v13991_v40  ;;  %v9255_v11 = vpop.f32.mrb[133].mxu0  ;;  %10396 = vtanh.f32 %v5631_v43 }
 0xd17   :  { %v5540_v39 = vpop.f32.mrb[134].mxu0 }
 0xd18   :  { %v5627_v54 = vadd.f32 %v5540_v39, %v15943_v50  ;;  %v9258_v8 = vpop.f32.mrb[135].mxu0  ;;  %v10391_v39 = vpop.eup %10390 }
 0xd1b   :  { %v5545_v38 = vpop.f32.mrb[136].mxu0 }
 0xd1c   :  { %v5663_v32 = vadd.f32 %v5545_v38, %v15944_v35  ;;  %v9261_v44 = vpop.f32.mrb[137].mxu0  ;;  %v5632_v38 = vmul.f32 0.5, %v5625_v34  ;;  %v10393_v35 = vpop.eup %10392  ;;  %v5634_v34 = vmul.f32 0.5, %v5627_v54 }
 0xd1e   :  { %v5670_v44 = vmul.f32 0.5, %v5663_v32  ;;  %10398 = vtanh.f32 %v5632_v38 }
 0xd1f   :  { %v5550_v61 = vpop.f32.mrb[138].mxu0 }
 0xd20   :  { %v5664_v41 = vadd.f32 %v5550_v61, %v15945_v3  ;;  %v9264_v9 = vpop.f32.mrb[139].mxu0  ;;  %v5642_v61 = vmul.f32 0.5, %v10391_v39  ;;  %10400 = vtanh.f32 %v5670_v44 }
 0xd21   :  { %v5633_v9 = vmul.f32 0.5, %v5626_v20  ;;  %v15951_v20 = vld [vmem:[#allocation95_spill] sm:$0xff] }
 0xd22   :  { %v5671_v60 = vmul.f32 0.5, %v5664_v41 }
 0xd23   :  { %v5555_v15 = vpop.f32.mrb[140].mxu0  ;;  %10402 = vtanh.f32 %v5633_v9 }
 0xd24   :  { %v5665_v55 = vadd.f32 %v5555_v15, %v15946_v53  ;;  %v9267_v46 = vpop.f32.mrb[141].mxu0  ;;  %v5643_v15 = vmul.f32 0.5, %v10393_v35  ;;  %v5649_v53 = vadd.f32 0.5, %v5642_v61  ;;  %10404 = vtanh.f32 %v5671_v60 }
 0xd25   :  { %v10395_v46 = vpop.eup %10394 }
 0xd26   :  { %v5650_v18 = vadd.f32 0.5, %v5643_v15  ;;  %v10397_v32 = vpop.eup %10396  ;;  %v15953_v15 = vld [vmem:[#allocation101_spill] sm:$0xff] }
 0xd27   :  { %v5560_v40 = vpop.f32.mrb[142].mxu0  ;;  %v5645_v41 = vmul.f32 0.5, %v10397_v32 }
 0xd28   :  { %v5666_v52 = vadd.f32 %v5560_v40, %v15947_v23  ;;  %v9270_v29 = vpop.f32.mrb[143].mxu0  ;;  %v10399_v44 = vpop.eup %10398 }
 0xd29   :  { %v5652_v9 = vadd.f32 0.5, %v5645_v41 }
 0xd2a   :  { %v10401_v61 = vpop.eup %10400 }
 0xd2b   :  { %v5565_v12 = vpop.f32.mrb[144].mxu0 }
 0xd2c   :  { %v5667_v42 = vadd.f32 %v5565_v12, %v15948_v4  ;;  %v9273_v11 = vpop.f32.mrb[145].mxu0  ;;  %v5672_v12 = vmul.f32 0.5, %v5665_v55  ;;  %v5644_v4 = vmul.f32 0.5, %v10395_v46  ;;  %v5684_v46 = vmul.f32 0.5, %v10401_v61 }
 0xd2e   :  { %v5651_v35 = vadd.f32 0.5, %v5644_v4 }
 0xd2f   :  { %v5570_v0 = vpop.f32.mrb[146].mxu0 }
 0xd30   :  { %v5668_v50 = vadd.f32 %v5570_v0, %v15949_v51  ;;  %v9276_v8 = vpop.f32.mrb[147].mxu0  ;;  %v5673_v51 = vmul.f32 0.5, %v5666_v52 }
 0xd31   :  { %v15952_v8 = vld [vmem:[#allocation97_spill] sm:$0xff] }
 0xd32   :  { %v5675_v32 = vmul.f32 0.5, %v5668_v50  ;;  %v15955_v50 = vld [vmem:[#allocation109_spill] sm:$0xff] }
 0xd33   :  { %v5575_v3 = vpop.f32.mrb[148].mxu0 }
 0xd34   :  { %v14564_v31 = vadd.f32 %v5575_v3, %v15950_v19  ;;  %v9279_v24 = vpop.f32.mrb[149].mxu0  ;;  %v10403_v19 = vpop.eup %10402 }
 0xd35   :  { %v5674_v24 = vmul.f32 0.5, %v5667_v42 }
 0xd37   :  { %v5580_v40 = vpop.f32.mrb[150].mxu0 }
 0xd38   :  { %v5705_v23 = vmul.f32 %v5649_v53, %v5580_v40  ;;  %v9282_v29 = vpop.f32.mrb[151].mxu0  ;;  %v5646_v53 = vmul.f32 0.5, %v10399_v44 }
 0xd3a   :  { %v5712_v43 = vadd.f32 %v5705_v23, %v15951_v20  ;;  %v10405_v23 = vpop.eup %10404 }
 0xd3b   :  { %v5585_v11 = vpop.f32.mrb[152].mxu0 }
 0xd3c   :  { %10406 = vtanh.f32 %v5712_v43  ;;  %v5706_v39 = vmul.f32 %v5650_v18, %v5585_v11  ;;  %v9285_v0 = vpop.f32.mrb[153].mxu0  ;;  %v5653_v43 = vadd.f32 0.5, %v5646_v53  ;;  %v5691_v11 = vadd.f32 0.5, %v5684_v46 }
 0xd3d   :  { %10408 = vtanh.f32 %v5634_v34  ;;  %v5647_v34 = vmul.f32 0.5, %v10403_v19 }
 0xd3e   :  { %10410 = vtanh.f32 %v5672_v12  ;;  %v5713_v38 = vadd.f32 %v5706_v39, %v15952_v8  ;;  %v15954_v12 = vld [vmem:[#allocation105_spill] sm:$0xff]  ;;  %v5685_v39 = vmul.f32 0.5, %v10405_v23 }
 0xd3f   :  { %v5590_v54 = vpop.f32.mrb[154].mxu0  ;;  %v15956_v23 = vld [vmem:[#allocation113_spill] sm:$0xff] }
 0xd40   :  { %10412 = vtanh.f32 %v5713_v38  ;;  %v5707_v3 = vmul.f32 %v5651_v35, %v5590_v54  ;;  %v9288_v55 = vpop.f32.mrb[155].mxu0  ;;  %v5654_v38 = vadd.f32 0.5, %v5647_v34  ;;  %v5676_v54 = vmul.f32 0.5, %v14564_v31 }
 0xd41   :  { %10414 = vtanh.f32 %v5673_v51  ;;  %v5692_v55 = vadd.f32 0.5, %v5685_v39 }
 0xd42   :  { %v5714_v60 = vadd.f32 %v5707_v3, %v15953_v15 }
 0xd43   :  { %v5595_v40 = vpop.f32.mrb[156].mxu0 }
 0xd44   :  { %10416 = vtanh.f32 %v5714_v60  ;;  %v5708_v52 = vmul.f32 %v5652_v9, %v5595_v40  ;;  %v9291_v29 = vpop.f32.mrb[157].mxu0 }
 0xd45   :  { %10418 = vtanh.f32 %v5674_v24 }
 0xd46   :  { %v10407_v18 = vpop.eup %10406  ;;  %v5715_v20 = vadd.f32 %v5708_v52, %v15954_v12 }
 0xd47   :  { %v10409_v4 = vpop.eup %10408  ;;  %v5600_v42 = vpop.f32.mrb[158].mxu0  ;;  %v5726_v0 = vsub.f32 %v14434_v59, %v10407_v18 }
 0xd48   :  { %v10411_v41 = vpop.eup %10410  ;;  %10420 = vtanh.f32 %v5715_v20  ;;  %v5709_v51 = vmul.f32 %v5653_v43, %v5600_v42  ;;  %v9294_v8 = vpop.f32.mrb[159].mxu0  ;;  %v5648_v3 = vmul.f32 0.5, %v10409_v4  ;;  %v15957_v42 = vld [vmem:[#allocation117_spill] sm:$0xff] }
 0xd49   :  { %v5733_v35 = vmul.f32 %v5726_v0, %v5691_v11  ;;  %10422 = vtanh.f32 %v5675_v32  ;;  %v5686_v9 = vmul.f32 0.5, %v10411_v41 }
 0xd4a   :  { %v10413_v44 = vpop.eup %10412  ;;  %v5716_v61 = vadd.f32 %v5709_v51, %v15955_v50  ;;  %v5655_v31 = vadd.f32 0.5, %v5648_v3 }
 0xd4b   :  { %v5605_v19 = vpop.f32.mrb[160].mxu0  ;;  %v5727_v24 = vsub.f32 %v14437_v16, %v10413_v44  ;;  %v14574_v15 = vadd.f32 %v10407_v18, %v5733_v35  ;;  %v10415_v59 = vpop.eup %10414  ;;  %v5693_v29 = vadd.f32 0.5, %v5686_v9 }
 0xd4c   :  { %10424 = vtanh.f32 %v5716_v61  ;;  %v5710_v60 = vmul.f32 %v5654_v38, %v5605_v19  ;;  %v9297_v53 = vpop.f32.mrb[161].mxu0  ;;  %v5687_v34 = vmul.f32 0.5, %v10415_v59 }
 0xd4d   :  { %v5734_v46 = vmul.f32 %v5727_v24, %v5692_v55  ;;  %10426 = vtanh.f32 %v5676_v54 }
 0xd4e   :  { %v10417_v40 = vpop.eup %10416  ;;  %v5717_v52 = vadd.f32 %v5710_v60, %v15956_v23  ;;  %v5694_v41 = vadd.f32 0.5, %v5687_v34 }
 0xd4f   :  { %v5610_v32 = vpop.f32.mrb[162].mxu0  ;;  %v14577_v12 = vadd.f32 %v10413_v44, %v5734_v46  ;;  %v5728_v20 = vsub.f32 %v14444_v28, %v10417_v40  ;;  %v10419_v16 = vpop.eup %10418 }
 0xd50   :  { %10428 = vtanh.f32 %v5717_v52  ;;  %v5711_v18 = vmul.f32 %v5655_v31, %v5610_v32  ;;  %v9300_v43 = vpop.f32.mrb[163].mxu0  ;;  %v5688_v51 = vmul.f32 0.5, %v10419_v16  ;;  %v15964_v16 = vld [vmem:[#allocation52_spill] sm:$0xff] }
 0xd51   :  { %v9896_v4 = vpack.c.bf16 %v14577_v12, %v14574_v15  ;;  %v5735_v11 = vmul.f32 %v5728_v20, %v5693_v29 }
 0xd52   :  { %v10421_v39 = vpop.eup %10420  ;;  %v5718_v0 = vadd.f32 %v5711_v18, %v15957_v42  ;;  %v5695_v54 = vadd.f32 0.5, %v5688_v51 }
 0xd53   :  { %9897 = vmatpush3.bf16.msra.mxu1 %v9896_v4  ;;  %v5729_v8 = vsub.f32 %v14447_v21, %v10421_v39  ;;  %v14584_v38 = vadd.f32 %v10417_v40, %v5735_v11  ;;  %v10423_v35 = vpop.eup %10422  ;;  %v15965_v11 = vld [vmem:[#allocation56_spill] sm:$0xff] }
 0xd54   :  { %10430 = vtanh.f32 %v5718_v0  ;;  %9898 = vmatprep.subr.bf16.mxu1 %v15512_v6  ;;  %v5689_v50 = vmul.f32 0.5, %v10423_v35 }
 0xd55   :  { %v5736_v28 = vmul.f32 %v5729_v8, %v5694_v41  ;;  %v15966_v41 = vld [vmem:[#allocation60_spill] sm:$0xff] }
 0xd56   :  { %v10425_v44 = vpop.eup %10424  ;;  %v5696_v24 = vadd.f32 0.5, %v5689_v50 }
 0xd57   :  { %v14587_v61 = vadd.f32 %v10421_v39, %v5736_v28  ;;  %v5730_v3 = vsub.f32 %v14453_v2, %v10425_v44  ;;  %v10427_v55 = vpop.eup %10426 }
 0xd58   :  { %v5690_v59 = vmul.f32 0.5, %v10427_v55 }
 0xd59   :  { %v9899_v9 = vpack.c.bf16 %v14587_v61, %v14584_v38  ;;  %v5737_v19 = vmul.f32 %v5730_v3, %v5695_v54  ;;  %v15967_v54 = vld [vmem:[#allocation64_spill] sm:$0xff] }
 0xd5a   :  { %v10429_v21 = vpop.eup %10428  ;;  %v5697_v23 = vadd.f32 0.5, %v5690_v59 }
 0xd5b   :  { %9900 = vmatpush3.bf16.msra.mxu1 %v9899_v9  ;;  %v5731_v60 = vsub.f32 %v14456_v17, %v10429_v21  ;;  %v14593_v53 = vadd.f32 %v10425_v44, %v5737_v19  ;;  %v15963_v17 = vld [vmem:[#allocation48_spill] sm:$0xff] }
 0xd5c   :  { %9901 = vmatprep.subr.bf16.mxu1 %v15512_v6  ;;  %v15968_v9 = vld [vmem:[#allocation68_spill] sm:$0xff] }
 0xd5d   :  { %v5738_v46 = vmul.f32 %v5731_v60, %v5696_v24 }
 0xd5e   :  { %v10431_v40 = vpop.eup %10430 }
 0xd5f   :  { %v14596_v52 = vadd.f32 %v10429_v21, %v5738_v46  ;;  %v5732_v2 = vsub.f32 %v14461_v22, %v10431_v40  ;;  %v15969_v46 = vld [vmem:[#allocation87_spill] sm:$0xff] }
 0xd61   :  { %v9902_v31 = vpack.c.bf16 %v14596_v52, %v14593_v53  ;;  %v5739_v29 = vmul.f32 %v5732_v2, %v5697_v23 }
 0xd63   :  { %9903 = vmatpush3.bf16.msra.mxu1 %v9902_v31  ;;  %v14601_v34 = vadd.f32 %v10431_v40, %v5739_v29  ;;  %v15970_v29 = vld [vmem:[#allocation90_spill] sm:$0xff] }
 0xd64   :  { %9313 = vmatprep.subr.mxu1 %v15509_v10 }
 0xd67   :  { %9314 = vmatpush3.msra.mxu1 %v14601_v34 }
 0xd68   :  { %9316 = vmatmul.mubr.msk.f32.vlgmr.msra.gmra.mrb[122].mxu1 %vm141_vm0, %v14140_v27  ;;  %9913 = vmatprep.subr.bf16.mxu1 %v15512_v6 }
 0xd69   :  { %9318 = vmatprep.mubr.msk.f32.mxu1 %vm10826_vm2, %v15509_v10 }
 0xd6c   :  { %9319 = vmatmul.mubr.msk.f32.gmra.mrb[124].mxu1 %vm141_vm0, %v14149_v33 }
 0xd6d   :  { %9321 = vmatprep.mubr.msk.f32.mxu1 %vm10826_vm2, %v15509_v10 }
 0xd70   :  { %9322 = vmatmul.mubr.msk.f32.gmra.mrb[126].mxu1 %vm141_vm0, %v14158_v48 }
 0xd71   :  { %9324 = vmatprep.mubr.msk.f32.mxu1 %vm10826_vm2, %v15509_v10 }
 0xd74   :  { %9325 = vmatmul.mubr.msk.f32.gmra.mrb[128].mxu1 %vm141_vm0, %v14167_v63  ;;  %v15959_v63 = vld [vmem:[#allocation40_spill] sm:$0xff] }
 0xd75   :  { %9327 = vmatprep.mubr.msk.f32.mxu1 %vm10826_vm2, %v15509_v10 }
 0xd78   :  { %9328 = vmatmul.mubr.msk.f32.gmra.mrb[130].mxu1 %vm141_vm0, %v14176_v30 }
 0xd79   :  { %9330 = vmatprep.mubr.msk.f32.mxu1 %vm10826_vm2, %v15509_v10 }
 0xd7c   :  { %9331 = vmatmul.mubr.msk.f32.gmra.mrb[132].mxu1 %vm141_vm0, %v14185_v26 }
 0xd7d   :  { %9333 = vmatprep.mubr.msk.f32.mxu1 %vm10826_vm2, %v15509_v10 }
 0xd80   :  { %9334 = vmatmul.mubr.msk.f32.gmra.mrb[134].mxu1 %vm141_vm0, %v14194_v25 }
 0xd81   :  { %9336 = vmatprep.mubr.msk.f32.mxu1 %vm10826_vm2, %v15509_v10 }
 0xd84   :  { %9337 = vmatmul.mubr.msk.f32.gmra.mrb[136].mxu1 %vm141_vm0, %v14203_v14  ;;  %v15958_v14 = vld [vmem:[#allocation38_spill] sm:$0xff] }
 0xd85   :  { %9339 = vmatprep.mubr.msk.f32.mxu1 %vm10826_vm2, %v15509_v10 }
 0xd88   :  { %9340 = vmatmul.mubr.msk.f32.gmra.mrb[138].mxu1 %vm141_vm0, %v14212_v5 }
 0xd89   :  { %9342 = vmatprep.mubr.msk.f32.mxu1 %vm10826_vm2, %v15509_v10 }
 0xd8c   :  { %9343 = vmatmul.mubr.msk.f32.gmra.mrb[140].mxu1 %vm141_vm0, %v14221_v56  ;;  %v15962_v56 = vld [vmem:[#allocation46_spill] sm:$0xff] }
 0xd8d   :  { %9345 = vmatprep.mubr.msk.f32.mxu1 %vm10826_vm2, %v15509_v10 }
 0xd90   :  { %9346 = vmatmul.mubr.msk.f32.gmra.mrb[142].mxu1 %vm141_vm0, %v14230_v37 }
 0xd91   :  { %9348 = vmatprep.mubr.msk.f32.mxu1 %vm10826_vm2, %v15509_v10 }
 0xd94   :  { %9349 = vmatmul.mubr.msk.f32.gmra.mrb[144].mxu1 %vm141_vm0, %v14239_v36 }
 0xd95   :  { %9351 = vmatprep.mubr.msk.f32.mxu1 %vm10826_vm2, %v15509_v10 }
 0xd98   :  { %9352 = vmatmul.mubr.msk.f32.gmra.mrb[146].mxu1 %vm141_vm0, %v14248_v45 }
 0xd99   :  { %9354 = vmatprep.mubr.msk.f32.mxu1 %vm10826_vm2, %v15509_v10 }
 0xd9c   :  { %9355 = vmatmul.mubr.msk.f32.gmra.mrb[148].mxu1 %vm141_vm0, %v14257_v13  ;;  %v15961_v13 = vld [vmem:[#allocation44_spill] sm:$0xff] }
 0xd9d   :  { %9357 = vmatprep.mubr.msk.f32.mxu1 %vm10826_vm2, %v15509_v10 }
 0xda0   :  { %9358 = vmatmul.mubr.msk.f32.gmra.mrb[150].mxu1 %vm141_vm0, %v14266_v57 }
 0xda1   :  { %9360 = vmatprep.mubr.msk.f32.mxu1 %vm10826_vm2, %v15509_v10 }
 0xda4   :  { %9361 = vmatmul.mubr.msk.f32.gmra.mrb[152].mxu1 %vm141_vm0, %v14275_v1 }
 0xda5   :  { %9363 = vmatprep.mubr.msk.f32.mxu1 %vm10826_vm2, %v15509_v10 }
 0xda8   :  { %9364 = vmatmul.mubr.msk.f32.gmra.mrb[154].mxu1 %vm141_vm0, %v14284_v58  ;;  %v15960_v58 = vld [vmem:[#allocation42_spill] sm:$0xff] }
 0xda9   :  { %9366 = vmatprep.mubr.msk.f32.mxu1 %vm10826_vm2, %v15509_v10 }
 0xdac   :  { %9367 = vmatmul.mubr.msk.f32.gmra.mrb[156].mxu1 %vm141_vm0, %v14293_v47 }
 0xdad   :  { %9369 = vmatprep.mubr.msk.f32.mxu1 %vm10826_vm2, %v15509_v10 }
 0xdb0   :  { %9370 = vmatmul.mubr.msk.f32.gmra.mrb[158].mxu1 %vm141_vm0, %v14302_v62 }
 0xdb1   :  { %9372 = vmatprep.mubr.msk.f32.mxu1 %vm10826_vm2, %v15509_v10 }
 0xdb4   :  { %9373 = vmatmul.mubr.msk.f32.gmra.mrb[160].mxu1 %vm141_vm0, %v14311_v7 }
 0xdb5   :  { %9375 = vmatprep.mubr.msk.f32.mxu1 %vm10826_vm2, %v15509_v10 }
 0xdb8   :  { %9376 = vmatmul.mubr.msk.f32.gmra.mrb[162].mxu1 %vm141_vm0, %v14320_v49 }
 0xdb9   :  { %9469 = vmatprep.mubr.msk.f32.mxu1 %vm10826_vm2, %v15509_v10 }
 0xe3b   :  { %v5813_v5 = vpop.f32.mrb[122].mxu1 }
 0xe3c   :  { %v5924_v25 = vadd.f32 %v5813_v5, %v15958_v14  ;;  %v9317_v26 = vpop.f32.mrb[123].mxu1 }
 0xe3e   :  { %v5931_v35 = vmul.f32 0.5, %v5924_v25 }
 0xe3f   :  { %v5818_v30 = vpop.f32.mrb[124].mxu1 }
 0xe40   :  { %v5925_v37 = vadd.f32 %v5818_v30, %v15959_v63  ;;  %v9320_v62 = vpop.f32.mrb[125].mxu1  ;;  %10432 = vtanh.f32 %v5931_v35 }
 0xe42   :  { %v5932_v44 = vmul.f32 0.5, %v5925_v37 }
 0xe43   :  { %v5823_v47 = vpop.f32.mrb[126].mxu1 }
 0xe44   :  { %v5926_v7 = vadd.f32 %v5823_v47, %v15960_v58  ;;  %v9323_v1 = vpop.f32.mrb[127].mxu1  ;;  %10434 = vtanh.f32 %v5932_v44  ;;  %v15971_v47 = vld [vmem:[#allocation94_spill] sm:$0xff] }
 0xe46   :  { %v5933_v24 = vmul.f32 0.5, %v5926_v7 }
 0xe47   :  { %v5828_v57 = vpop.f32.mrb[128].mxu1 }
 0xe48   :  { %v5927_v45 = vadd.f32 %v5828_v57, %v15961_v13  ;;  %v9326_v36 = vpop.f32.mrb[129].mxu1  ;;  %10436 = vtanh.f32 %v5933_v24 }
 0xe4a   :  { %v5934_v60 = vmul.f32 0.5, %v5927_v45  ;;  %v10433_v2 = vpop.eup %10432 }
 0xe4b   :  { %v5833_v49 = vpop.f32.mrb[130].mxu1  ;;  %v5945_v63 = vmul.f32 0.5, %v10433_v2 }
 0xe4c   :  { %v5928_v27 = vadd.f32 %v5833_v49, %v15962_v56  ;;  %v9329_v33 = vpop.f32.mrb[131].mxu1  ;;  %10438 = vtanh.f32 %v5934_v60 }
 0xe4d   :  { %v5952_v13 = vadd.f32 0.5, %v5945_v63 }
 0xe4e   :  { %v5935_v25 = vmul.f32 0.5, %v5928_v27  ;;  %v10435_v26 = vpop.eup %10434 }
 0xe4f   :  { %v5838_v48 = vpop.f32.mrb[132].mxu1  ;;  %v5946_v1 = vmul.f32 0.5, %v10435_v26 }
 0xe50   :  { %v5929_v22 = vadd.f32 %v5838_v48, %v15963_v17  ;;  %v9332_v32 = vpop.f32.mrb[133].mxu1  ;;  %10440 = vtanh.f32 %v5935_v25 }
 0xe51   :  { %v5953_v33 = vadd.f32 0.5, %v5946_v1 }
 0xe52   :  { %v5936_v62 = vmul.f32 0.5, %v5929_v22  ;;  %v10437_v45 = vpop.eup %10436  ;;  %v15972_v22 = vld [vmem:[#allocation7_spill] sm:$0xff] }
 0xe53   :  { %v5843_v20 = vpop.f32.mrb[134].mxu1 }
 0xe54   :  { %v5930_v18 = vadd.f32 %v5843_v20, %v15964_v16  ;;  %v9335_v43 = vpop.f32.mrb[135].mxu1  ;;  %v5947_v20 = vmul.f32 0.5, %v10437_v45 }
 0xe56   :  { %v5937_v27 = vmul.f32 0.5, %v5930_v18  ;;  %v10439_v48 = vpop.eup %10438 }
 0xe57   :  { %v5848_v4 = vpop.f32.mrb[136].mxu1 }
 0xe58   :  { %v5966_v39 = vadd.f32 %v5848_v4, %v15965_v11  ;;  %v9338_v42 = vpop.f32.mrb[137].mxu1  ;;  %v5948_v11 = vmul.f32 0.5, %v10439_v48 }
 0xe59   :  { %v15973_v42 = vld [vmem:[#allocation99_spill] sm:$0xff] }
 0xe5a   :  { %v5973_v30 = vmul.f32 0.5, %v5966_v39  ;;  %v5955_v44 = vadd.f32 0.5, %v5948_v11 }
 0xe5b   :  { %v5853_v0 = vpop.f32.mrb[138].mxu1 }
 0xe5c   :  { %v5967_v51 = vadd.f32 %v5853_v0, %v15966_v41  ;;  %v9341_v8 = vpop.f32.mrb[139].mxu1  ;;  %10442 = vtanh.f32 %v5973_v30  ;;  %v5954_v41 = vadd.f32 0.5, %v5947_v20 }
 0xe5d   :  { %10444 = vtanh.f32 %v5936_v62 }
 0xe5e   :  { %v5974_v57 = vmul.f32 0.5, %v5967_v51  ;;  %v10441_v51 = vpop.eup %10440 }
 0xe5f   :  { %v5858_v28 = vpop.f32.mrb[140].mxu1 }
 0xe60   :  { %v5968_v50 = vadd.f32 %v5858_v28, %v15967_v54  ;;  %v9344_v3 = vpop.f32.mrb[141].mxu1  ;;  %10446 = vtanh.f32 %v5974_v57 }
 0xe61   :  { %v15974_v3 = vld [vmem:[#allocation103_spill] sm:$0xff] }
 0xe62   :  { %v5975_v17 = vmul.f32 0.5, %v5968_v50 }
 0xe63   :  { %v5863_v55 = vpop.f32.mrb[142].mxu1 }
 0xe64   :  { %v5969_v19 = vadd.f32 %v5863_v55, %v15968_v9  ;;  %v9347_v21 = vpop.f32.mrb[143].mxu1  ;;  %v5949_v9 = vmul.f32 0.5, %v10441_v51 }
 0xe66   :  { %v5976_v39 = vmul.f32 0.5, %v5969_v19  ;;  %v10443_v8 = vpop.eup %10442 }
 0xe67   :  { %v5868_v59 = vpop.f32.mrb[144].mxu1  ;;  %v10445_v54 = vpop.eup %10444  ;;  %v5987_v21 = vmul.f32 0.5, %v10443_v8 }
 0xe68   :  { %v5970_v40 = vadd.f32 %v5868_v59, %v15969_v46  ;;  %v9350_v23 = vpop.f32.mrb[145].mxu1  ;;  %v5950_v46 = vmul.f32 0.5, %v10445_v54 }
 0xe69   :  { %v5994_v26 = vadd.f32 0.5, %v5987_v21 }
 0xe6a   :  { %v5977_v50 = vmul.f32 0.5, %v5970_v40  ;;  %v10447_v59 = vpop.eup %10446 }
 0xe6b   :  { %v5873_v31 = vpop.f32.mrb[146].mxu1  ;;  %v5988_v30 = vmul.f32 0.5, %v10447_v59 }
 0xe6c   :  { %v5971_v5 = vadd.f32 %v5873_v31, %v15970_v29  ;;  %v9353_v14 = vpop.f32.mrb[147].mxu1  ;;  %v15975_v31 = vld [vmem:[#allocation107_spill] sm:$0xff] }
 0xe6d   :  { %v5956_v14 = vadd.f32 0.5, %v5949_v9 }
 0xe6e   :  { %v5978_v2 = vmul.f32 0.5, %v5971_v5  ;;  %v15976_v5 = vld [vmem:[#allocation111_spill] sm:$0xff] }
 0xe6f   :  { %v5878_v37 = vpop.f32.mrb[148].mxu1 }
 0xe70   :  { %v14704_v58 = vadd.f32 %v5878_v37, %v15971_v47  ;;  %v9356_v7 = vpop.f32.mrb[149].mxu1 }
 0xe71   :  { %v5957_v7 = vadd.f32 0.5, %v5950_v46 }
 0xe73   :  { %v5883_v36 = vpop.f32.mrb[150].mxu1 }
 0xe74   :  { %v6008_v49 = vmul.f32 %v5952_v13, %v5883_v36  ;;  %v9359_v56 = vpop.f32.mrb[151].mxu1  ;;  %v5979_v13 = vmul.f32 0.5, %v14704_v58 }
 0xe76   :  { %v6015_v32 = vadd.f32 %v6008_v49, %v15972_v22  ;;  %v5995_v49 = vadd.f32 0.5, %v5988_v30 }
 0xe77   :  { %v5888_v16 = vpop.f32.mrb[152].mxu1 }
 0xe78   :  { %10448 = vtanh.f32 %v6015_v32  ;;  %v6009_v43 = vmul.f32 %v5953_v33, %v5888_v16  ;;  %v9362_v4 = vpop.f32.mrb[153].mxu1  ;;  %v15977_v16 = vld [vmem:[#allocation115_spill] sm:$0xff] }
 0xe79   :  { %10450 = vtanh.f32 %v5937_v27 }
 0xe7a   :  { %10452 = vtanh.f32 %v5975_v17  ;;  %v6016_v0 = vadd.f32 %v6009_v43, %v15973_v42 }
 0xe7b   :  { %v5893_v18 = vpop.f32.mrb[154].mxu1 }
 0xe7c   :  { %10454 = vtanh.f32 %v6016_v0  ;;  %v6010_v35 = vmul.f32 %v5954_v41, %v5893_v18  ;;  %v9365_v28 = vpop.f32.mrb[155].mxu1 }
 0xe7d   :  { %10456 = vtanh.f32 %v5976_v39  ;;  %v15978_v28 = vld [vmem:[#allocation119_spill] sm:$0xff] }
 0xe7e   :  { %v6017_v55 = vadd.f32 %v6010_v35, %v15974_v3 }
 0xe7f   :  { %v5898_v24 = vpop.f32.mrb[156].mxu1 }
 0xe80   :  { %10458 = vtanh.f32 %v6017_v55  ;;  %v6011_v19 = vmul.f32 %v5955_v44, %v5898_v24  ;;  %v9368_v60 = vpop.f32.mrb[157].mxu1 }
 0xe81   :  { %10460 = vtanh.f32 %v5977_v50 }
 0xe82   :  { %v10449_v23 = vpop.eup %10448  ;;  %v6018_v29 = vadd.f32 %v6011_v19, %v15975_v31 }
 0xe83   :  { %v10451_v25 = vpop.eup %10450  ;;  %v5903_v40 = vpop.f32.mrb[158].mxu1  ;;  %v6029_v63 = vsub.f32 %v14574_v15, %v10449_v23 }
 0xe84   :  { %v10453_v37 = vpop.eup %10452  ;;  %10462 = vtanh.f32 %v6018_v29  ;;  %v6012_v62 = vmul.f32 %v5956_v14, %v5903_v40  ;;  %v9371_v47 = vpop.f32.mrb[159].mxu1  ;;  %v5951_v36 = vmul.f32 0.5, %v10451_v25 }
 0xe85   :  { %v6036_v1 = vmul.f32 %v6029_v63, %v5994_v26  ;;  %10464 = vtanh.f32 %v5978_v2  ;;  %v5989_v56 = vmul.f32 0.5, %v10453_v37 }
 0xe86   :  { %v10455_v57 = vpop.eup %10454  ;;  %v6019_v45 = vadd.f32 %v6012_v62, %v15976_v5  ;;  %v5958_v58 = vadd.f32 0.5, %v5951_v36  ;;  %v14803_v5 = vld [vmem:[%s15464_s2 + $0xd8] sm:$0xff]  ;;  %v14821_v36 = vld [vmem:[%s15464_s2 + $0xe8] sm:$0xff] }
 0xe87   :  { %v5908_v27 = vpop.f32.mrb[160].mxu1  ;;  %v6030_v33 = vsub.f32 %v14577_v12, %v10455_v57  ;;  %v14714_v48 = vadd.f32 %v10449_v23, %v6036_v1  ;;  %v10457_v15 = vpop.eup %10456  ;;  %v5996_v4 = vadd.f32 0.5, %v5989_v56  ;;  %v14776_v1 = vld [vmem:[%s15464_s2 + $0xc0] sm:$0xff]  ;;  %v14839_v56 = vld [vmem:[%s15464_s2 + $0xf8] sm:$0xff] }
 0xe88   :  { %10466 = vtanh.f32 %v6019_v45  ;;  %v6013_v17 = vmul.f32 %v5957_v7, %v5908_v27  ;;  %v9374_v22 = vpop.f32.mrb[161].mxu1  ;;  %v5990_v11 = vmul.f32 0.5, %v10457_v15  ;;  %v14767_v7 = vld [vmem:[%s15464_s2 + $0xb8] sm:$0xff]  ;;  %v14812_v45 = vld [vmem:[%s15464_s2 + $0xe0] sm:$0xff]  ;;  %v14866_v15 = vld [vmem:[%s15464_s2 + $0x110] sm:$0xff] }
 0xe89   :  { %v6037_v32 = vmul.f32 %v6030_v33, %v5995_v49  ;;  %10468 = vtanh.f32 %v5979_v13  ;;  %v14794_v13 = vld [vmem:[%s15464_s2 + $0xd0] sm:$0xff]  ;;  %v14848_v27 = vld [vmem:[%s15464_s2 + $0x100] sm:$0xff]  ;;  %v14857_v33 = vld [vmem:[%s15464_s2 + $0x108] sm:$0xff] }
 0xe8a   :  { %v10459_v20 = vpop.eup %10458  ;;  %v6020_v43 = vadd.f32 %v6013_v17, %v15977_v16  ;;  %v5997_v54 = vadd.f32 0.5, %v5990_v11  ;;  %v14830_v49 = vld [vmem:[%s15464_s2 + $0xf0] sm:$0xff]  ;;  %v14875_v17 = vld [vmem:[%s15464_s2 + $0x118] sm:$0xff]  ;;  %v14884_v22 = vld [vmem:[%s15464_s2 + $0x120] sm:$0xff] }
 0xe8b   :  { %v5913_v39 = vpop.f32.mrb[162].mxu1  ;;  %v14717_v42 = vadd.f32 %v10455_v57, %v6037_v32  ;;  %v6031_v0 = vsub.f32 %v14584_v38, %v10459_v20  ;;  %v10461_v12 = vpop.eup %10460  ;;  %v14785_v57 = vld [vmem:[%s15464_s2 + $0xc8] sm:$0xff]  ;;  %v14911_v16 = vld [vmem:[%s15464_s2 + $0x138] sm:$0xff] }
 0xe8c   :  { %10470 = vtanh.f32 %v6020_v43  ;;  %v6014_v41 = vmul.f32 %v5958_v58, %v5913_v39  ;;  %v9377_v51 = vpop.f32.mrb[163].mxu1  ;;  %v5991_v50 = vmul.f32 0.5, %v10461_v12  ;;  %v14893_v32 = vld [vmem:[%s15464_s2 + $0x128] sm:$0xff]  ;;  %v14920_v43 = vld [vmem:[%s15464_s2 + $0x140] sm:$0xff]  ;;  %v15979_v11 = vld [vmem:[#allocation74_spill] sm:$0xff] }
 0xe8d   :  { %v9905_v18 = vpack.c.bf16 %v14717_v42, %v14714_v48  ;;  %v6038_v8 = vmul.f32 %v6031_v0, %v5996_v4  ;;  %v14929_v58 = vld [vmem:[%s15464_s2 + $0x148] sm:$0xff] }
 0xe8e   :  { %v10463_v35 = vpop.eup %10462  ;;  %v6021_v44 = vadd.f32 %v6014_v41, %v15978_v28  ;;  %v5998_v24 = vadd.f32 0.5, %v5991_v50  ;;  %v15980_v41 = vld [vmem:[#allocation77_spill] sm:$0xff]  ;;  %v15982_v50 = vld [vmem:[#allocation82_spill] sm:$0xff] }
 0xe8f   :  { %9906 = vmatpush3.bf16.msra.mxu0 %v9905_v18  ;;  %v6032_v3 = vsub.f32 %v14587_v61, %v10463_v35  ;;  %v14724_v55 = vadd.f32 %v10459_v20, %v6038_v8  ;;  %v10465_v9 = vpop.eup %10464  ;;  %v14902_v20 = vld [vmem:[%s15464_s2 + $0x130] sm:$0xff] }
 0xe90   :  { %10472 = vtanh.f32 %v6021_v44  ;;  %9907 = vmatprep.subr.bf16.mxu0 %v15512_v6  ;;  %v5992_v59 = vmul.f32 0.5, %v10465_v9 }
 0xe91   :  { %v6039_v38 = vmul.f32 %v6032_v3, %v5997_v54 }
 0xe92   :  { %v10467_v21 = vpop.eup %10466  ;;  %v5999_v31 = vadd.f32 0.5, %v5992_v59 }
 0xe93   :  { %v14727_v19 = vadd.f32 %v10463_v35, %v6039_v38  ;;  %v6033_v60 = vsub.f32 %v14593_v53, %v10467_v21  ;;  %v10469_v46 = vpop.eup %10468  ;;  %v15981_v35 = vld [vmem:[#allocation80_spill] sm:$0xff] }
 0xe94   :  { %v5993_v29 = vmul.f32 0.5, %v10469_v46  ;;  %v15984_v46 = vld [vmem:[#allocation86_spill] sm:$0xff] }
 0xe95   :  { %v9908_v23 = vpack.c.bf16 %v14727_v19, %v14724_v55  ;;  %v6040_v2 = vmul.f32 %v6033_v60, %v5998_v24 }
 0xe96   :  { %v10471_v61 = vpop.eup %10470  ;;  %v6000_v40 = vadd.f32 0.5, %v5993_v29 }
 0xe97   :  { %9909 = vmatpush3.bf16.msra.mxu0 %v9908_v23  ;;  %v6034_v14 = vsub.f32 %v14596_v52, %v10471_v61  ;;  %v14733_v25 = vadd.f32 %v10467_v21, %v6040_v2  ;;  %v14748_v52 = vld [vmem:[%s15464_s2 + $0xa8] sm:$0xff] }
 0xe98   :  { %9910 = vmatprep.subr.bf16.mxu0 %v15512_v6  ;;  %v15983_v21 = vld [vmem:[#allocation84_spill] sm:$0xff] }
 0xe99   :  { %v6041_v26 = vmul.f32 %v6034_v14, %v5999_v31  ;;  %v15985_v31 = vld [vmem:[#allocation89_spill] sm:$0xff] }
 0xe9a   :  { %v10473_v30 = vpop.eup %10472 }
 0xe9b   :  { %v14736_v63 = vadd.f32 %v10471_v61, %v6041_v26  ;;  %v6035_v53 = vsub.f32 %v14601_v34, %v10473_v30  ;;  %v14758_v34 = vld [vmem:[%s15464_s2 + $0xb0] sm:$0xff] }
 0xe9d   :  { %v9911_v37 = vpack.c.bf16 %v14736_v63, %v14733_v25  ;;  %v6042_v62 = vmul.f32 %v6035_v53, %v6000_v40 }
 0xe9f   :  { %9912 = vmatpush3.bf16.msra.mxu0 %v9911_v37  ;;  %v14741_v47 = vadd.f32 %v10473_v30, %v6042_v62  ;;  %v15986_v30 = vld [vmem:[#allocation93_spill] sm:$0xff]  ;;  %v15987_v62 = vld [vmem:[#allocation27_spill] sm:$0xff] }
 0xea0   :  { %9390 = vmatprep.subr.mxu0 %v15509_v10 }
 0xea3   :  { %9391 = vmatpush3.msra.mxu0 %v14741_v47 }
 0xea4   :  { %9393 = vmatmul.mubr.msk.f32.vlgmr.msra.gmra.mrb[164].mxu0 %vm141_vm0, %v14748_v52  ;;  %9922 = vmatprep.subr.bf16.mxu0 %v15512_v6 }
 0xea5   :  { %9395 = vmatprep.mubr.msk.f32.mxu0 %vm10826_vm2, %v15509_v10 }
 0xea8   :  { %9396 = vmatmul.mubr.msk.f32.gmra.mrb[166].mxu0 %vm141_vm0, %v14758_v34 }
 0xea9   :  { %9398 = vmatprep.mubr.msk.f32.mxu0 %vm10826_vm2, %v15509_v10 }
 0xeac   :  { %9399 = vmatmul.mubr.msk.f32.gmra.mrb[168].mxu0 %vm141_vm0, %v14767_v7 }
 0xead   :  { %9401 = vmatprep.mubr.msk.f32.mxu0 %vm10826_vm2, %v15509_v10 }
 0xeb0   :  { %9402 = vmatmul.mubr.msk.f32.gmra.mrb[170].mxu0 %vm141_vm0, %v14776_v1 }
 0xeb1   :  { %9404 = vmatprep.mubr.msk.f32.mxu0 %vm10826_vm2, %v15509_v10 }
 0xeb4   :  { %9405 = vmatmul.mubr.msk.f32.gmra.mrb[172].mxu0 %vm141_vm0, %v14785_v57 }
 0xeb5   :  { %9407 = vmatprep.mubr.msk.f32.mxu0 %vm10826_vm2, %v15509_v10 }
 0xeb8   :  { %9408 = vmatmul.mubr.msk.f32.gmra.mrb[174].mxu0 %vm141_vm0, %v14794_v13 }
 0xeb9   :  { %9410 = vmatprep.mubr.msk.f32.mxu0 %vm10826_vm2, %v15509_v10 }
 0xebc   :  { %9411 = vmatmul.mubr.msk.f32.gmra.mrb[176].mxu0 %vm141_vm0, %v14803_v5 }
 0xebd   :  { %9413 = vmatprep.mubr.msk.f32.mxu0 %vm10826_vm2, %v15509_v10 }
 0xec0   :  { %9414 = vmatmul.mubr.msk.f32.gmra.mrb[178].mxu0 %vm141_vm0, %v14812_v45 }
 0xec1   :  { %9416 = vmatprep.mubr.msk.f32.mxu0 %vm10826_vm2, %v15509_v10 }
 0xec4   :  { %9417 = vmatmul.mubr.msk.f32.gmra.mrb[180].mxu0 %vm141_vm0, %v14821_v36 }
 0xec5   :  { %9419 = vmatprep.mubr.msk.f32.mxu0 %vm10826_vm2, %v15509_v10 }
 0xec8   :  { %9420 = vmatmul.mubr.msk.f32.gmra.mrb[182].mxu0 %vm141_vm0, %v14830_v49 }
 0xec9   :  { %9422 = vmatprep.mubr.msk.f32.mxu0 %vm10826_vm2, %v15509_v10 }
 0xecc   :  { %9423 = vmatmul.mubr.msk.f32.gmra.mrb[184].mxu0 %vm141_vm0, %v14839_v56 }
 0xecd   :  { %9425 = vmatprep.mubr.msk.f32.mxu0 %vm10826_vm2, %v15509_v10 }
 0xed0   :  { %9426 = vmatmul.mubr.msk.f32.gmra.mrb[186].mxu0 %vm141_vm0, %v14848_v27 }
 0xed1   :  { %9428 = vmatprep.mubr.msk.f32.mxu0 %vm10826_vm2, %v15509_v10 }
 0xed4   :  { %9429 = vmatmul.mubr.msk.f32.gmra.mrb[188].mxu0 %vm141_vm0, %v14857_v33 }
 0xed5   :  { %9431 = vmatprep.mubr.msk.f32.mxu0 %vm10826_vm2, %v15509_v10 }
 0xed8   :  { %9432 = vmatmul.mubr.msk.f32.gmra.mrb[190].mxu0 %vm141_vm0, %v14866_v15 }
 0xed9   :  { %9434 = vmatprep.mubr.msk.f32.mxu0 %vm10826_vm2, %v15509_v10 }
 0xedc   :  { %9435 = vmatmul.mubr.msk.f32.gmra.mrb[192].mxu0 %vm141_vm0, %v14875_v17 }
 0xedd   :  { %9437 = vmatprep.mubr.msk.f32.mxu0 %vm10826_vm2, %v15509_v10 }
 0xee0   :  { %9438 = vmatmul.mubr.msk.f32.gmra.mrb[194].mxu0 %vm141_vm0, %v14884_v22 }
 0xee1   :  { %9440 = vmatprep.mubr.msk.f32.mxu0 %vm10826_vm2, %v15509_v10 }
 0xee4   :  { %9441 = vmatmul.mubr.msk.f32.gmra.mrb[196].mxu0 %vm141_vm0, %v14893_v32 }
 0xee5   :  { %9443 = vmatprep.mubr.msk.f32.mxu0 %vm10826_vm2, %v15509_v10 }
 0xee8   :  { %9444 = vmatmul.mubr.msk.f32.gmra.mrb[198].mxu0 %vm141_vm0, %v14902_v20 }
 0xee9   :  { %9446 = vmatprep.mubr.msk.f32.mxu0 %vm10826_vm2, %v15509_v10 }
 0xeec   :  { %9447 = vmatmul.mubr.msk.f32.gmra.mrb[200].mxu0 %vm141_vm0, %v14911_v16 }
 0xeed   :  { %9449 = vmatprep.mubr.msk.f32.mxu0 %vm10826_vm2, %v15509_v10 }
 0xef0   :  { %9450 = vmatmul.mubr.msk.f32.gmra.mrb[202].mxu0 %vm141_vm0, %v14920_v43 }
 0xef1   :  { %9452 = vmatprep.mubr.msk.f32.mxu0 %vm10826_vm2, %v15509_v10 }
 0xef4   :  { %9453 = vmatmul.mubr.msk.f32.gmra.mrb[204].mxu0 %vm141_vm0, %v14929_v58 }
 0xef5   :  { %9546 = vmatprep.mubr.msk.f32.mxu0 %vm10826_vm2, %v15509_v10 }
 0xf77   :  { %v6116_v4 = vpop.f32.mrb[164].mxu0 }
 0xf78   :  { %v6227_v39 = vadd.f32 %v6116_v4, %v15979_v11  ;;  %v9394_v0 = vpop.f32.mrb[165].mxu0 }
 0xf7a   :  { %v6234_v0 = vmul.f32 0.5, %v6227_v39 }
 0xf7b   :  { %v6121_v12 = vpop.f32.mrb[166].mxu0 }
 0xf7c   :  { %v6228_v51 = vadd.f32 %v6121_v12, %v15980_v41  ;;  %v9397_v18 = vpop.f32.mrb[167].mxu0  ;;  %10474 = vtanh.f32 %v6234_v0  ;;  %v15992_v0 = vld [vmem:[#allocation47_spill] sm:$0xff] }
 0xf7d   :  { %v15988_v18 = vld [vmem:[#allocation31_spill] sm:$0xff] }
 0xf7e   :  { %v6235_v41 = vmul.f32 0.5, %v6228_v51  ;;  %v15991_v51 = vld [vmem:[#allocation43_spill] sm:$0xff] }
 0xf7f   :  { %v6126_v8 = vpop.f32.mrb[168].mxu0 }
 0xf80   :  { %v6229_v28 = vadd.f32 %v6126_v8, %v15981_v35  ;;  %v9400_v44 = vpop.f32.mrb[169].mxu0  ;;  %10476 = vtanh.f32 %v6235_v41 }
 0xf83   :  { %v6131_v54 = vpop.f32.mrb[170].mxu0 }
 0xf84   :  { %v6230_v3 = vadd.f32 %v6131_v54, %v15982_v50  ;;  %v9403_v9 = vpop.f32.mrb[171].mxu0  ;;  %v15989_v54 = vld [vmem:[#allocation35_spill] sm:$0xff] }
 0xf87   :  { %v6136_v38 = vpop.f32.mrb[172].mxu0 }
 0xf88   :  { %v6231_v24 = vadd.f32 %v6136_v38, %v15983_v21  ;;  %v9406_v59 = vpop.f32.mrb[173].mxu0  ;;  %v6236_v38 = vmul.f32 0.5, %v6229_v28 }
 0xf89   :  { %v6237_v59 = vmul.f32 0.5, %v6230_v3 }
 0xf8a   :  { %10478 = vtanh.f32 %v6236_v38 }
 0xf8b   :  { %v6141_v60 = vpop.f32.mrb[174].mxu0  ;;  %10480 = vtanh.f32 %v6237_v59 }
 0xf8c   :  { %v6232_v23 = vadd.f32 %v6141_v60, %v15984_v46  ;;  %v9409_v2 = vpop.f32.mrb[175].mxu0  ;;  %v15990_v60 = vld [vmem:[#allocation39_spill] sm:$0xff] }
 0xf8f   :  { %v6146_v61 = vpop.f32.mrb[176].mxu0 }
 0xf90   :  { %v6233_v29 = vadd.f32 %v6146_v61, %v15985_v31  ;;  %v9412_v14 = vpop.f32.mrb[177].mxu0  ;;  %v10475_v61 = vpop.eup %10474 }
 0xf93   :  { %v6151_v26 = vpop.f32.mrb[178].mxu0 }
 0xf94   :  { %v6269_v40 = vadd.f32 %v6151_v26, %v15986_v30  ;;  %v9415_v53 = vpop.f32.mrb[179].mxu0  ;;  %v6238_v26 = vmul.f32 0.5, %v6231_v24  ;;  %v10477_v30 = vpop.eup %10476  ;;  %v6240_v24 = vmul.f32 0.5, %v6233_v29 }
 0xf96   :  { %v6276_v53 = vmul.f32 0.5, %v6269_v40  ;;  %10482 = vtanh.f32 %v6238_v26 }
 0xf97   :  { %v6156_v37 = vpop.f32.mrb[180].mxu0 }
 0xf98   :  { %v6270_v4 = vadd.f32 %v6156_v37, %v15987_v62  ;;  %v9418_v11 = vpop.f32.mrb[181].mxu0  ;;  %v6248_v37 = vmul.f32 0.5, %v10475_v61  ;;  %10484 = vtanh.f32 %v6276_v53 }
 0xf99   :  { %v6239_v11 = vmul.f32 0.5, %v6232_v23  ;;  %v15993_v23 = vld [vmem:[#allocation51_spill] sm:$0xff] }
 0xf9a   :  { %v6277_v41 = vmul.f32 0.5, %v6270_v4 }
 0xf9b   :  { %v6161_v12 = vpop.f32.mrb[182].mxu0  ;;  %10486 = vtanh.f32 %v6239_v11 }
 0xf9c   :  { %v6271_v8 = vadd.f32 %v6161_v12, %v15988_v18  ;;  %v9421_v35 = vpop.f32.mrb[183].mxu0  ;;  %v6249_v12 = vmul.f32 0.5, %v10477_v30  ;;  %v6255_v18 = vadd.f32 0.5, %v6248_v37  ;;  %10488 = vtanh.f32 %v6277_v41 }
 0xf9d   :  { %v10479_v35 = vpop.eup %10478 }
 0xf9e   :  { %v6256_v38 = vadd.f32 0.5, %v6249_v12  ;;  %v10481_v40 = vpop.eup %10480  ;;  %v15995_v12 = vld [vmem:[#allocation59_spill] sm:$0xff] }
 0xf9f   :  { %v6166_v44 = vpop.f32.mrb[184].mxu0  ;;  %v6251_v4 = vmul.f32 0.5, %v10481_v40 }
 0xfa0   :  { %v6272_v50 = vadd.f32 %v6166_v44, %v15989_v54  ;;  %v9424_v9 = vpop.f32.mrb[185].mxu0  ;;  %v10483_v53 = vpop.eup %10482 }
 0xfa1   :  { %v6258_v11 = vadd.f32 0.5, %v6251_v4 }
 0xfa2   :  { %v10485_v37 = vpop.eup %10484 }
 0xfa3   :  { %v6171_v21 = vpop.f32.mrb[186].mxu0 }
 0xfa4   :  { %v6273_v46 = vadd.f32 %v6171_v21, %v15990_v60  ;;  %v9427_v2 = vpop.f32.mrb[187].mxu0  ;;  %v6278_v21 = vmul.f32 0.5, %v6271_v8  ;;  %v6250_v60 = vmul.f32 0.5, %v10479_v35  ;;  %v6290_v35 = vmul.f32 0.5, %v10485_v37 }
 0xfa6   :  { %v6257_v30 = vadd.f32 0.5, %v6250_v60 }
 0xfa7   :  { %v6176_v39 = vpop.f32.mrb[188].mxu0 }
 0xfa8   :  { %v6274_v31 = vadd.f32 %v6176_v39, %v15991_v51  ;;  %v9430_v14 = vpop.f32.mrb[189].mxu0  ;;  %v6279_v51 = vmul.f32 0.5, %v6272_v50 }
 0xfa9   :  { %v15994_v14 = vld [vmem:[#allocation55_spill] sm:$0xff] }
 0xfaa   :  { %v6281_v40 = vmul.f32 0.5, %v6274_v31  ;;  %v15997_v31 = vld [vmem:[#allocation67_spill] sm:$0xff] }
 0xfab   :  { %v6181_v62 = vpop.f32.mrb[190].mxu0 }
 0xfac   :  { %v14949_v28 = vadd.f32 %v6181_v62, %v15992_v0  ;;  %v9433_v3 = vpop.f32.mrb[191].mxu0  ;;  %v10487_v0 = vpop.eup %10486 }
 0xfad   :  { %v6280_v3 = vmul.f32 0.5, %v6273_v46 }
 0xfaf   :  { %v6186_v44 = vpop.f32.mrb[192].mxu0 }
 0xfb0   :  { %v6311_v54 = vmul.f32 %v6255_v18, %v6186_v44  ;;  %v9436_v9 = vpop.f32.mrb[193].mxu0  ;;  %v6252_v18 = vmul.f32 0.5, %v10483_v53 }
 0xfb2   :  { %v6318_v59 = vadd.f32 %v6311_v54, %v15993_v23  ;;  %v10489_v54 = vpop.eup %10488 }
 0xfb3   :  { %v6191_v2 = vpop.f32.mrb[194].mxu0 }
 0xfb4   :  { %10490 = vtanh.f32 %v6318_v59  ;;  %v6312_v61 = vmul.f32 %v6256_v38, %v6191_v2  ;;  %v9439_v39 = vpop.f32.mrb[195].mxu0  ;;  %v6259_v59 = vadd.f32 0.5, %v6252_v18  ;;  %v6297_v2 = vadd.f32 0.5, %v6290_v35 }
 0xfb5   :  { %10492 = vtanh.f32 %v6240_v24  ;;  %v6253_v24 = vmul.f32 0.5, %v10487_v0 }
 0xfb6   :  { %10494 = vtanh.f32 %v6278_v21  ;;  %v6319_v26 = vadd.f32 %v6312_v61, %v15994_v14  ;;  %v15996_v21 = vld [vmem:[#allocation63_spill] sm:$0xff]  ;;  %v6291_v61 = vmul.f32 0.5, %v10489_v54  ;;  %v15998_v54 = vld [vmem:[#allocation30_spill] sm:$0xff] }
 0xfb7   :  { %v6196_v29 = vpop.f32.mrb[196].mxu0 }
 0xfb8   :  { %10496 = vtanh.f32 %v6319_v26  ;;  %v6313_v62 = vmul.f32 %v6257_v30, %v6196_v29  ;;  %v9442_v8 = vpop.f32.mrb[197].mxu0  ;;  %v6260_v26 = vadd.f32 0.5, %v6253_v24  ;;  %v6282_v29 = vmul.f32 0.5, %v14949_v28 }
 0xfb9   :  { %10498 = vtanh.f32 %v6279_v51  ;;  %v6298_v8 = vadd.f32 0.5, %v6291_v61 }
 0xfba   :  { %v6320_v41 = vadd.f32 %v6313_v62, %v15995_v12 }
 0xfbb   :  { %v6201_v44 = vpop.f32.mrb[198].mxu0 }
 0xfbc   :  { %10500 = vtanh.f32 %v6320_v41  ;;  %v6314_v50 = vmul.f32 %v6258_v11, %v6201_v44  ;;  %v9445_v9 = vpop.f32.mrb[199].mxu0 }
 0xfbd   :  { %10502 = vtanh.f32 %v6280_v3 }
 0xfbe   :  { %v10491_v38 = vpop.eup %10490  ;;  %v6321_v23 = vadd.f32 %v6314_v50, %v15996_v21 }
 0xfbf   :  { %v10493_v60 = vpop.eup %10492  ;;  %v6206_v46 = vpop.f32.mrb[200].mxu0  ;;  %v6332_v39 = vsub.f32 %v14714_v48, %v10491_v38 }
 0xfc0   :  { %v10495_v4 = vpop.eup %10494  ;;  %10504 = vtanh.f32 %v6321_v23  ;;  %v6315_v51 = vmul.f32 %v6259_v59, %v6206_v46  ;;  %v9448_v14 = vpop.f32.mrb[201].mxu0  ;;  %v6254_v62 = vmul.f32 0.5, %v10493_v60  ;;  %v15999_v46 = vld [vmem:[#allocation34_spill] sm:$0xff] }
 0xfc1   :  { %v6339_v30 = vmul.f32 %v6332_v39, %v6297_v2  ;;  %10506 = vtanh.f32 %v6281_v40  ;;  %v6292_v11 = vmul.f32 0.5, %v10495_v4 }
 0xfc2   :  { %v10497_v53 = vpop.eup %10496  ;;  %v6322_v37 = vadd.f32 %v6315_v51, %v15997_v31  ;;  %v6261_v28 = vadd.f32 0.5, %v6254_v62 }
 0xfc3   :  { %v6211_v0 = vpop.f32.mrb[202].mxu0  ;;  %v6333_v3 = vsub.f32 %v14717_v42, %v10497_v53  ;;  %v14959_v12 = vadd.f32 %v10491_v38, %v6339_v30  ;;  %v10499_v48 = vpop.eup %10498  ;;  %v6299_v9 = vadd.f32 0.5, %v6292_v11 }
 0xfc4   :  { %10508 = vtanh.f32 %v6322_v37  ;;  %v6316_v41 = vmul.f32 %v6260_v26, %v6211_v0  ;;  %v9451_v18 = vpop.f32.mrb[203].mxu0  ;;  %v6293_v24 = vmul.f32 0.5, %v10499_v48 }
 0xfc5   :  { %v6340_v35 = vmul.f32 %v6333_v3, %v6298_v8  ;;  %10510 = vtanh.f32 %v6282_v29 }
 0xfc6   :  { %v10501_v44 = vpop.eup %10500  ;;  %v6323_v50 = vadd.f32 %v6316_v41, %v15998_v54  ;;  %v6300_v4 = vadd.f32 0.5, %v6293_v24 }
 0xfc7   :  { %v6216_v40 = vpop.f32.mrb[204].mxu0  ;;  %v14962_v21 = vadd.f32 %v10497_v53, %v6340_v35  ;;  %v6334_v23 = vsub.f32 %v14724_v55, %v10501_v44  ;;  %v10503_v42 = vpop.eup %10502 }
 0xfc8   :  { %10512 = vtanh.f32 %v6323_v50  ;;  %v6317_v38 = vmul.f32 %v6261_v28, %v6216_v40  ;;  %v9454_v59 = vpop.f32.mrb[205].mxu0  ;;  %v6294_v51 = vmul.f32 0.5, %v10503_v42 }
 0xfc9   :  { %v9914_v60 = vpack.c.bf16 %v14962_v21, %v14959_v12  ;;  %v6341_v2 = vmul.f32 %v6334_v23, %v6299_v9 }
 0xfca   :  { %v10505_v61 = vpop.eup %10504  ;;  %v6324_v39 = vadd.f32 %v6317_v38, %v15999_v46  ;;  %v6301_v29 = vadd.f32 0.5, %v6294_v51  ;;  %v16001_v38 = vld [vmem:[#allocation79_spill] sm:$0xff] }
 0xfcb   :  { %9915 = vmatpush3.bf16.msra.mxu1 %v9914_v60  ;;  %v6335_v14 = vsub.f32 %v14727_v19, %v10505_v61  ;;  %v14969_v26 = vadd.f32 %v10501_v44, %v6341_v2  ;;  %v10507_v30 = vpop.eup %10506  ;;  %v16003_v51 = vld [vmem:[#allocation83_spill] sm:$0xff] }
 0xfcc   :  { %10514 = vtanh.f32 %v6324_v39  ;;  %9916 = vmatprep.subr.bf16.mxu1 %v15512_v6  ;;  %v6295_v31 = vmul.f32 0.5, %v10507_v30 }
 0xfcd   :  { %v6342_v55 = vmul.f32 %v6335_v14, %v6300_v4 }
 0xfce   :  { %v10509_v53 = vpop.eup %10508  ;;  %v6302_v3 = vadd.f32 0.5, %v6295_v31 }
 0xfcf   :  { %v14972_v37 = vadd.f32 %v10505_v61, %v6342_v55  ;;  %v6336_v62 = vsub.f32 %v14733_v25, %v10509_v53  ;;  %v10511_v8 = vpop.eup %10510  ;;  %v16002_v61 = vld [vmem:[#allocation81_spill] sm:$0xff] }
 0xfd0   :  { %v6296_v48 = vmul.f32 0.5, %v10511_v8  ;;  %v16005_v8 = vld [vmem:[#allocation88_spill] sm:$0xff] }
 0xfd1   :  { %v9917_v11 = vpack.c.bf16 %v14972_v37, %v14969_v26  ;;  %v6343_v0 = vmul.f32 %v6336_v62, %v6301_v29 }
 0xfd2   :  { %v10513_v19 = vpop.eup %10512  ;;  %v6303_v54 = vadd.f32 0.5, %v6296_v48 }
 0xfd3   :  { %9918 = vmatpush3.bf16.msra.mxu1 %v9917_v11  ;;  %v6337_v41 = vsub.f32 %v14736_v63, %v10513_v19  ;;  %v14978_v18 = vadd.f32 %v10509_v53, %v6343_v0  ;;  %v16004_v53 = vld [vmem:[#allocation85_spill] sm:$0xff] }
 0xfd4   :  { %9919 = vmatprep.subr.bf16.mxu1 %v15512_v6 }
 0xfd5   :  { %v6344_v35 = vmul.f32 %v6337_v41, %v6302_v3  ;;  %v16006_v3 = vld [vmem:[#allocation91_spill] sm:$0xff] }
 0xfd6   :  { %v10515_v44 = vpop.eup %10514 }
 0xfd7   :  { %v14981_v50 = vadd.f32 %v10513_v19, %v6344_v35  ;;  %v6338_v25 = vsub.f32 %v14741_v47, %v10515_v44  ;;  %v16000_v47 = vld [vmem:[#allocation75_spill] sm:$0xff] }
 0xfd9   :  { %v9920_v28 = vpack.c.bf16 %v14981_v50, %v14978_v18  ;;  %v6345_v9 = vmul.f32 %v6338_v25, %v6303_v54 }
 0xfdb   :  { %9921 = vmatpush3.bf16.msra.mxu1 %v9920_v28  ;;  %v14986_v24 = vadd.f32 %v10515_v44, %v6345_v9  ;;  %v16007_v44 = vld [vmem:[#allocation96_spill] sm:$0xff]  ;;  %v16008_v9 = vld [vmem:[#allocation29_spill] sm:$0xff] }
 0xfdc   :  { %9467 = vmatprep.subr.mxu1 %v15509_v10 }
 0xfdf   :  { %9468 = vmatpush3.msra.mxu1 %v14986_v24 }
 0xfe0   :  { %9470 = vmatmul.mubr.msk.f32.vlgmr.msra.gmra.mrb[164].mxu1 %vm141_vm0, %v14748_v52  ;;  %9931 = vmatprep.subr.bf16.mxu1 %v15512_v6 }
 0xfe1   :  { %9472 = vmatprep.mubr.msk.f32.mxu1 %vm10826_vm2, %v15509_v10 }
 0xfe4   :  { %9473 = vmatmul.mubr.msk.f32.gmra.mrb[166].mxu1 %vm141_vm0, %v14758_v34 }
 0xfe5   :  { %9475 = vmatprep.mubr.msk.f32.mxu1 %vm10826_vm2, %v15509_v10 }
 0xfe8   :  { %9476 = vmatmul.mubr.msk.f32.gmra.mrb[168].mxu1 %vm141_vm0, %v14767_v7 }
 0xfe9   :  { %9478 = vmatprep.mubr.msk.f32.mxu1 %vm10826_vm2, %v15509_v10 }
 0xfec   :  { %9479 = vmatmul.mubr.msk.f32.gmra.mrb[170].mxu1 %vm141_vm0, %v14776_v1 }
 0xfed   :  { %9481 = vmatprep.mubr.msk.f32.mxu1 %vm10826_vm2, %v15509_v10 }
 0xff0   :  { %9482 = vmatmul.mubr.msk.f32.gmra.mrb[172].mxu1 %vm141_vm0, %v14785_v57 }
 0xff1   :  { %9484 = vmatprep.mubr.msk.f32.mxu1 %vm10826_vm2, %v15509_v10 }
 0xff4   :  { %9485 = vmatmul.mubr.msk.f32.gmra.mrb[174].mxu1 %vm141_vm0, %v14794_v13 }
 0xff5   :  { %9487 = vmatprep.mubr.msk.f32.mxu1 %vm10826_vm2, %v15509_v10 }
 0xff8   :  { %9488 = vmatmul.mubr.msk.f32.gmra.mrb[176].mxu1 %vm141_vm0, %v14803_v5 }
 0xff9   :  { %9490 = vmatprep.mubr.msk.f32.mxu1 %vm10826_vm2, %v15509_v10 }
 0xffc   :  { %9491 = vmatmul.mubr.msk.f32.gmra.mrb[178].mxu1 %vm141_vm0, %v14812_v45 }
 0xffd   :  { %9493 = vmatprep.mubr.msk.f32.mxu1 %vm10826_vm2, %v15509_v10 }
0x1000   :  { %9494 = vmatmul.mubr.msk.f32.gmra.mrb[180].mxu1 %vm141_vm0, %v14821_v36 }
0x1001   :  { %9496 = vmatprep.mubr.msk.f32.mxu1 %vm10826_vm2, %v15509_v10 }
0x1004   :  { %9497 = vmatmul.mubr.msk.f32.gmra.mrb[182].mxu1 %vm141_vm0, %v14830_v49 }
0x1005   :  { %9499 = vmatprep.mubr.msk.f32.mxu1 %vm10826_vm2, %v15509_v10 }
0x1008   :  { %9500 = vmatmul.mubr.msk.f32.gmra.mrb[184].mxu1 %vm141_vm0, %v14839_v56 }
0x1009   :  { %9502 = vmatprep.mubr.msk.f32.mxu1 %vm10826_vm2, %v15509_v10 }
0x100c   :  { %9503 = vmatmul.mubr.msk.f32.gmra.mrb[186].mxu1 %vm141_vm0, %v14848_v27 }
0x100d   :  { %9505 = vmatprep.mubr.msk.f32.mxu1 %vm10826_vm2, %v15509_v10 }
0x1010   :  { %9506 = vmatmul.mubr.msk.f32.gmra.mrb[188].mxu1 %vm141_vm0, %v14857_v33 }
0x1011   :  { %9508 = vmatprep.mubr.msk.f32.mxu1 %vm10826_vm2, %v15509_v10 }
0x1014   :  { %9509 = vmatmul.mubr.msk.f32.gmra.mrb[190].mxu1 %vm141_vm0, %v14866_v15 }
0x1015   :  { %9511 = vmatprep.mubr.msk.f32.mxu1 %vm10826_vm2, %v15509_v10 }
0x1018   :  { %9512 = vmatmul.mubr.msk.f32.gmra.mrb[192].mxu1 %vm141_vm0, %v14875_v17 }
0x1019   :  { %9514 = vmatprep.mubr.msk.f32.mxu1 %vm10826_vm2, %v15509_v10 }
0x101c   :  { %9515 = vmatmul.mubr.msk.f32.gmra.mrb[194].mxu1 %vm141_vm0, %v14884_v22 }
0x101d   :  { %9517 = vmatprep.mubr.msk.f32.mxu1 %vm10826_vm2, %v15509_v10 }
0x1020   :  { %9518 = vmatmul.mubr.msk.f32.gmra.mrb[196].mxu1 %vm141_vm0, %v14893_v32 }
0x1021   :  { %9520 = vmatprep.mubr.msk.f32.mxu1 %vm10826_vm2, %v15509_v10 }
0x1024   :  { %9521 = vmatmul.mubr.msk.f32.gmra.mrb[198].mxu1 %vm141_vm0, %v14902_v20 }
0x1025   :  { %9523 = vmatprep.mubr.msk.f32.mxu1 %vm10826_vm2, %v15509_v10 }
0x1028   :  { %9524 = vmatmul.mubr.msk.f32.gmra.mrb[200].mxu1 %vm141_vm0, %v14911_v16 }
0x1029   :  { %9526 = vmatprep.mubr.msk.f32.mxu1 %vm10826_vm2, %v15509_v10 }
0x102c   :  { %9527 = vmatmul.mubr.msk.f32.gmra.mrb[202].mxu1 %vm141_vm0, %v14920_v43 }
0x102d   :  { %9529 = vmatprep.mubr.msk.f32.mxu1 %vm10826_vm2, %v15509_v10 }
0x1030   :  { %9530 = vmatmul.mubr.msk.f32.gmra.mrb[204].mxu1 %vm141_vm0, %v14929_v58 }
0x1031   :  { %9623 = vmatprep.mubr.msk.f32.mxu1 %vm10826_vm2, %v15509_v10 }
0x10b3   :  { %v6419_v63 = vpop.f32.mrb[164].mxu1 }
0x10b4   :  { %v6530_v40 = vadd.f32 %v6419_v63, %v16000_v47  ;;  %v9471_v23 = vpop.f32.mrb[165].mxu1 }
0x10b6   :  { %v6537_v23 = vmul.f32 0.5, %v6530_v40 }
0x10b7   :  { %v6424_v42 = vpop.f32.mrb[166].mxu1 }
0x10b8   :  { %v6531_v59 = vadd.f32 %v6424_v42, %v16001_v38  ;;  %v9474_v60 = vpop.f32.mrb[167].mxu1  ;;  %10516 = vtanh.f32 %v6537_v23  ;;  %v16013_v23 = vld [vmem:[#allocation49_spill] sm:$0xff] }
0x10b9   :  { %v16009_v60 = vld [vmem:[#allocation33_spill] sm:$0xff] }
0x10ba   :  { %v6538_v38 = vmul.f32 0.5, %v6531_v59  ;;  %v16012_v59 = vld [vmem:[#allocation45_spill] sm:$0xff] }
0x10bb   :  { %v6429_v2 = vpop.f32.mrb[168].mxu1 }
0x10bc   :  { %v6532_v46 = vadd.f32 %v6429_v2, %v16002_v61  ;;  %v9477_v39 = vpop.f32.mrb[169].mxu1  ;;  %10518 = vtanh.f32 %v6538_v38 }
0x10bf   :  { %v6434_v4 = vpop.f32.mrb[170].mxu1 }
0x10c0   :  { %v6533_v14 = vadd.f32 %v6434_v4, %v16003_v51  ;;  %v9480_v30 = vpop.f32.mrb[171].mxu1  ;;  %v16010_v4 = vld [vmem:[#allocation37_spill] sm:$0xff] }
0x10c3   :  { %v6439_v55 = vpop.f32.mrb[172].mxu1 }
0x10c4   :  { %v6534_v29 = vadd.f32 %v6439_v55, %v16004_v53  ;;  %v9483_v31 = vpop.f32.mrb[173].mxu1  ;;  %v6539_v55 = vmul.f32 0.5, %v6532_v46 }
0x10c5   :  { %v6540_v31 = vmul.f32 0.5, %v6533_v14 }
0x10c6   :  { %10520 = vtanh.f32 %v6539_v55 }
0x10c7   :  { %v6444_v62 = vpop.f32.mrb[174].mxu1  ;;  %10522 = vtanh.f32 %v6540_v31 }
0x10c8   :  { %v6535_v11 = vadd.f32 %v6444_v62, %v16005_v8  ;;  %v9486_v0 = vpop.f32.mrb[175].mxu1  ;;  %v16011_v62 = vld [vmem:[#allocation41_spill] sm:$0xff] }
0x10cb   :  { %v6449_v19 = vpop.f32.mrb[176].mxu1 }
0x10cc   :  { %v6536_v48 = vadd.f32 %v6449_v19, %v16006_v3  ;;  %v9489_v41 = vpop.f32.mrb[177].mxu1  ;;  %v10517_v19 = vpop.eup %10516 }
0x10cf   :  { %v6454_v35 = vpop.f32.mrb[178].mxu1 }
0x10d0   :  { %v6572_v54 = vadd.f32 %v6454_v35, %v16007_v44  ;;  %v9492_v25 = vpop.f32.mrb[179].mxu1  ;;  %v6541_v35 = vmul.f32 0.5, %v6534_v29  ;;  %v10519_v44 = vpop.eup %10518  ;;  %v6543_v29 = vmul.f32 0.5, %v6536_v48 }
0x10d2   :  { %v6579_v25 = vmul.f32 0.5, %v6572_v54  ;;  %10524 = vtanh.f32 %v6541_v35 }
0x10d3   :  { %v6459_v28 = vpop.f32.mrb[180].mxu1 }
0x10d4   :  { %v6573_v63 = vadd.f32 %v6459_v28, %v16008_v9  ;;  %v9495_v47 = vpop.f32.mrb[181].mxu1  ;;  %v6551_v28 = vmul.f32 0.5, %v10517_v19  ;;  %10526 = vtanh.f32 %v6579_v25 }
0x10d5   :  { %v6542_v47 = vmul.f32 0.5, %v6535_v11  ;;  %v16014_v11 = vld [vmem:[#allocation53_spill] sm:$0xff] }
0x10d6   :  { %v6580_v38 = vmul.f32 0.5, %v6573_v63 }
0x10d7   :  { %v6464_v42 = vpop.f32.mrb[182].mxu1  ;;  %10528 = vtanh.f32 %v6542_v47 }
0x10d8   :  { %v6574_v2 = vadd.f32 %v6464_v42, %v16009_v60  ;;  %v9498_v61 = vpop.f32.mrb[183].mxu1  ;;  %v6552_v42 = vmul.f32 0.5, %v10519_v44  ;;  %v6558_v60 = vadd.f32 0.5, %v6551_v28  ;;  %10530 = vtanh.f32 %v6580_v38 }
0x10d9   :  { %v10521_v61 = vpop.eup %10520 }
0x10da   :  { %v6559_v55 = vadd.f32 0.5, %v6552_v42  ;;  %v10523_v54 = vpop.eup %10522  ;;  %v16016_v42 = vld [vmem:[#allocation61_spill] sm:$0xff] }
0x10db   :  { %v6469_v39 = vpop.f32.mrb[184].mxu1  ;;  %v6554_v63 = vmul.f32 0.5, %v10523_v54 }
0x10dc   :  { %v6575_v51 = vadd.f32 %v6469_v39, %v16010_v4  ;;  %v9501_v30 = vpop.f32.mrb[185].mxu1  ;;  %v10525_v25 = vpop.eup %10524 }
0x10dd   :  { %v6561_v47 = vadd.f32 0.5, %v6554_v63 }
0x10de   :  { %v10527_v28 = vpop.eup %10526 }
0x10df   :  { %v6474_v53 = vpop.f32.mrb[186].mxu1 }
0x10e0   :  { %v6576_v8 = vadd.f32 %v6474_v53, %v16011_v62  ;;  %v9504_v0 = vpop.f32.mrb[187].mxu1  ;;  %v6581_v53 = vmul.f32 0.5, %v6574_v2  ;;  %v6553_v62 = vmul.f32 0.5, %v10521_v61  ;;  %v6593_v61 = vmul.f32 0.5, %v10527_v28 }
0x10e2   :  { %v6560_v44 = vadd.f32 0.5, %v6553_v62 }
0x10e3   :  { %v6479_v40 = vpop.f32.mrb[188].mxu1 }
0x10e4   :  { %v6577_v3 = vadd.f32 %v6479_v40, %v16012_v59  ;;  %v9507_v41 = vpop.f32.mrb[189].mxu1  ;;  %v6582_v59 = vmul.f32 0.5, %v6575_v51 }
0x10e5   :  { %v16015_v41 = vld [vmem:[#allocation57_spill] sm:$0xff] }
0x10e6   :  { %v6584_v54 = vmul.f32 0.5, %v6577_v3  ;;  %v16018_v3 = vld [vmem:[#allocation28_spill] sm:$0xff] }
0x10e7   :  { %v6484_v9 = vpop.f32.mrb[190].mxu1 }
0x10e8   :  { %v15089_v46 = vadd.f32 %v6484_v9, %v16013_v23  ;;  %v9510_v14 = vpop.f32.mrb[191].mxu1  ;;  %v10529_v23 = vpop.eup %10528 }
0x10e9   :  { %v6583_v14 = vmul.f32 0.5, %v6576_v8 }
0x10eb   :  { %v6489_v39 = vpop.f32.mrb[192].mxu1 }
0x10ec   :  { %v6614_v4 = vmul.f32 %v6558_v60, %v6489_v39  ;;  %v9513_v30 = vpop.f32.mrb[193].mxu1  ;;  %v6555_v60 = vmul.f32 0.5, %v10525_v25 }
0x10ee   :  { %v6621_v31 = vadd.f32 %v6614_v4, %v16014_v11  ;;  %v10531_v4 = vpop.eup %10530 }
0x10ef   :  { %v6494_v0 = vpop.f32.mrb[194].mxu1 }
0x10f0   :  { %10532 = vtanh.f32 %v6621_v31  ;;  %v6615_v19 = vmul.f32 %v6559_v55, %v6494_v0  ;;  %v9516_v40 = vpop.f32.mrb[195].mxu1  ;;  %v6562_v31 = vadd.f32 0.5, %v6555_v60  ;;  %v6600_v0 = vadd.f32 0.5, %v6593_v61 }
0x10f1   :  { %10534 = vtanh.f32 %v6543_v29  ;;  %v6556_v29 = vmul.f32 0.5, %v10529_v23 }
0x10f2   :  { %10536 = vtanh.f32 %v6581_v53  ;;  %v6622_v35 = vadd.f32 %v6615_v19, %v16015_v41  ;;  %v16017_v53 = vld [vmem:[#allocation65_spill] sm:$0xff]  ;;  %v6594_v19 = vmul.f32 0.5, %v10531_v4  ;;  %v16019_v4 = vld [vmem:[#allocation32_spill] sm:$0xff] }
0x10f3   :  { %v6499_v48 = vpop.f32.mrb[196].mxu1 }
0x10f4   :  { %10538 = vtanh.f32 %v6622_v35  ;;  %v6616_v9 = vmul.f32 %v6560_v44, %v6499_v48  ;;  %v9519_v2 = vpop.f32.mrb[197].mxu1  ;;  %v6563_v35 = vadd.f32 0.5, %v6556_v29  ;;  %v6585_v48 = vmul.f32 0.5, %v15089_v46 }
0x10f5   :  { %10540 = vtanh.f32 %v6582_v59  ;;  %v6601_v2 = vadd.f32 0.5, %v6594_v19 }
0x10f6   :  { %v6623_v38 = vadd.f32 %v6616_v9, %v16016_v42 }
0x10f7   :  { %v6504_v39 = vpop.f32.mrb[198].mxu1 }
0x10f8   :  { %10542 = vtanh.f32 %v6623_v38  ;;  %v6617_v51 = vmul.f32 %v6561_v47, %v6504_v39  ;;  %v9522_v30 = vpop.f32.mrb[199].mxu1 }
0x10f9   :  { %10544 = vtanh.f32 %v6583_v14 }
0x10fa   :  { %v10533_v55 = vpop.eup %10532  ;;  %v6624_v11 = vadd.f32 %v6617_v51, %v16017_v53 }
0x10fb   :  { %v10535_v62 = vpop.eup %10534  ;;  %v6509_v8 = vpop.f32.mrb[200].mxu1  ;;  %v6635_v40 = vsub.f32 %v14959_v12, %v10533_v55 }
0x10fc   :  { %v10537_v63 = vpop.eup %10536  ;;  %10546 = vtanh.f32 %v6624_v11  ;;  %v6618_v59 = vmul.f32 %v6562_v31, %v6509_v8  ;;  %v9525_v41 = vpop.f32.mrb[201].mxu1  ;;  %v6557_v9 = vmul.f32 0.5, %v10535_v62  ;;  %v16020_v8 = vld [vmem:[#allocation36_spill] sm:$0xff] }
0x10fd   :  { %v6642_v44 = vmul.f32 %v6635_v40, %v6600_v0  ;;  %10548 = vtanh.f32 %v6584_v54  ;;  %v6595_v47 = vmul.f32 0.5, %v10537_v63 }
0x10fe   :  { %v10539_v25 = vpop.eup %10538  ;;  %v6625_v28 = vadd.f32 %v6618_v59, %v16018_v3  ;;  %v6564_v46 = vadd.f32 0.5, %v6557_v9 }
0x10ff   :  { %v6514_v23 = vpop.f32.mrb[202].mxu1  ;;  %v6636_v14 = vsub.f32 %v14962_v21, %v10539_v25  ;;  %v15099_v42 = vadd.f32 %v10533_v55, %v6642_v44  ;;  %v10541_v12 = vpop.eup %10540  ;;  %v6602_v30 = vadd.f32 0.5, %v6595_v47 }
0x1100   :  { %10550 = vtanh.f32 %v6625_v28  ;;  %v6619_v38 = vmul.f32 %v6563_v35, %v6514_v23  ;;  %v9528_v60 = vpop.f32.mrb[203].mxu1  ;;  %v6596_v29 = vmul.f32 0.5, %v10541_v12 }
0x1101   :  { %v6643_v61 = vmul.f32 %v6636_v14, %v6601_v2  ;;  %10552 = vtanh.f32 %v6585_v48 }
0x1102   :  { %v10543_v39 = vpop.eup %10542  ;;  %v6626_v51 = vadd.f32 %v6619_v38, %v16019_v4  ;;  %v6603_v63 = vadd.f32 0.5, %v6596_v29 }
0x1103   :  { %v6519_v54 = vpop.f32.mrb[204].mxu1  ;;  %v15102_v53 = vadd.f32 %v10539_v25, %v6643_v61  ;;  %v6637_v11 = vsub.f32 %v14969_v26, %v10543_v39  ;;  %v10545_v21 = vpop.eup %10544 }
0x1104   :  { %10554 = vtanh.f32 %v6626_v51  ;;  %v6620_v55 = vmul.f32 %v6564_v46, %v6519_v54  ;;  %v9531_v31 = vpop.f32.mrb[205].mxu1  ;;  %v6597_v59 = vmul.f32 0.5, %v10545_v21  ;;  %v16027_v21 = vld [vmem:[#allocation16_spill] sm:$0xff] }
0x1105   :  { %v9923_v62 = vpack.c.bf16 %v15102_v53, %v15099_v42  ;;  %v6644_v0 = vmul.f32 %v6637_v11, %v6602_v30 }
0x1106   :  { %v10547_v19 = vpop.eup %10546  ;;  %v6627_v40 = vadd.f32 %v6620_v55, %v16020_v8  ;;  %v6604_v48 = vadd.f32 0.5, %v6597_v59 }
0x1107   :  { %9924 = vmatpush3.bf16.msra.mxu0 %v9923_v62  ;;  %v6638_v41 = vsub.f32 %v14972_v37, %v10547_v19  ;;  %v15109_v35 = vadd.f32 %v10543_v39, %v6644_v0  ;;  %v10549_v44 = vpop.eup %10548  ;;  %v16028_v0 = vld [vmem:[#allocation17_spill] sm:$0xff] }
0x1108   :  { %10556 = vtanh.f32 %v6627_v40  ;;  %9925 = vmatprep.subr.bf16.mxu0 %v15512_v6  ;;  %v6598_v3 = vmul.f32 0.5, %v10549_v44 }
0x1109   :  { %v6645_v26 = vmul.f32 %v6638_v41, %v6603_v63  ;;  %v16029_v63 = vld [vmem:[#allocation100_spill] sm:$0xff] }
0x110a   :  { %v10551_v25 = vpop.eup %10550  ;;  %v6605_v14 = vadd.f32 0.5, %v6598_v3 }
0x110b   :  { %v15112_v28 = vadd.f32 %v10547_v19, %v6645_v26  ;;  %v6639_v9 = vsub.f32 %v14978_v18, %v10551_v25  ;;  %v10553_v2 = vpop.eup %10552 }
0x110c   :  { %v6599_v12 = vmul.f32 0.5, %v10553_v2 }
0x110d   :  { %v9926_v47 = vpack.c.bf16 %v15112_v28, %v15109_v35  ;;  %v6646_v23 = vmul.f32 %v6639_v9, %v6604_v48  ;;  %v16030_v48 = vld [vmem:[#allocation104_spill] sm:$0xff] }
0x110e   :  { %v10555_v37 = vpop.eup %10554  ;;  %v6606_v4 = vadd.f32 0.5, %v6599_v12 }
0x110f   :  { %9927 = vmatpush3.bf16.msra.mxu0 %v9926_v47  ;;  %v6640_v38 = vsub.f32 %v14981_v50, %v10555_v37  ;;  %v15118_v60 = vadd.f32 %v10551_v25, %v6646_v23  ;;  %v16026_v50 = vld [vmem:[#allocation15_spill] sm:$0xff]  ;;  %v16031_v47 = vld [vmem:[#allocation108_spill] sm:$0xff] }
0x1110   :  { %9928 = vmatprep.subr.bf16.mxu0 %v15512_v6 }
0x1111   :  { %v6647_v61 = vmul.f32 %v6640_v38, %v6605_v14 }
0x1112   :  { %v10557_v39 = vpop.eup %10556 }
0x1113   :  { %v15121_v51 = vadd.f32 %v10555_v37, %v6647_v61  ;;  %v6641_v18 = vsub.f32 %v14986_v24, %v10557_v39  ;;  %v16032_v61 = vld [vmem:[#allocation112_spill] sm:$0xff] }
0x1115   :  { %v9929_v46 = vpack.c.bf16 %v15121_v51, %v15118_v60  ;;  %v6648_v30 = vmul.f32 %v6641_v18, %v6606_v4 }
0x1117   :  { %9930 = vmatpush3.bf16.msra.mxu0 %v9929_v46  ;;  %v15126_v29 = vadd.f32 %v10557_v39, %v6648_v30  ;;  %v16033_v30 = vld [vmem:[#allocation92_spill] sm:$0xff] }
0x1118   :  { %9544 = vmatprep.subr.mxu0 %v15509_v10 }
0x111b   :  { %9545 = vmatpush3.msra.mxu0 %v15126_v29 }
0x111c   :  { %9547 = vmatmul.mubr.msk.f32.vlgmr.msra.gmra.mrb[206].mxu0 %vm141_vm0, %v14748_v52 }
0x111d   :  { %9549 = vmatprep.mubr.msk.f32.mxu0 %vm10826_vm2, %v15509_v10 }
0x1120   :  { %9550 = vmatmul.mubr.msk.f32.gmra.mrb[208].mxu0 %vm141_vm0, %v14758_v34  ;;  %v16021_v34 = vld [vmem:[#allocation121_spill] sm:$0xff] }
0x1121   :  { %9552 = vmatprep.mubr.msk.f32.mxu0 %vm10826_vm2, %v15509_v10 }
0x1124   :  { %9553 = vmatmul.mubr.msk.f32.gmra.mrb[210].mxu0 %vm141_vm0, %v14767_v7 }
0x1125   :  { %9555 = vmatprep.mubr.msk.f32.mxu0 %vm10826_vm2, %v15509_v10 }
0x1128   :  { %9556 = vmatmul.mubr.msk.f32.gmra.mrb[212].mxu0 %vm141_vm0, %v14776_v1 }
0x1129   :  { %9558 = vmatprep.mubr.msk.f32.mxu0 %vm10826_vm2, %v15509_v10 }
0x112c   :  { %9559 = vmatmul.mubr.msk.f32.gmra.mrb[214].mxu0 %vm141_vm0, %v14785_v57 }
0x112d   :  { %9561 = vmatprep.mubr.msk.f32.mxu0 %vm10826_vm2, %v15509_v10 }
0x1130   :  { %9562 = vmatmul.mubr.msk.f32.gmra.mrb[216].mxu0 %vm141_vm0, %v14794_v13  ;;  %v16022_v13 = vld [vmem:[#allocation125_spill] sm:$0xff] }
0x1131   :  { %9564 = vmatprep.mubr.msk.f32.mxu0 %vm10826_vm2, %v15509_v10 }
0x1134   :  { %9565 = vmatmul.mubr.msk.f32.gmra.mrb[218].mxu0 %vm141_vm0, %v14803_v5 }
0x1135   :  { %9567 = vmatprep.mubr.msk.f32.mxu0 %vm10826_vm2, %v15509_v10 }
0x1138   :  { %9568 = vmatmul.mubr.msk.f32.gmra.mrb[220].mxu0 %vm141_vm0, %v14812_v45 }
0x1139   :  { %9570 = vmatprep.mubr.msk.f32.mxu0 %vm10826_vm2, %v15509_v10 }
0x113c   :  { %9571 = vmatmul.mubr.msk.f32.gmra.mrb[222].mxu0 %vm141_vm0, %v14821_v36 }
0x113d   :  { %9573 = vmatprep.mubr.msk.f32.mxu0 %vm10826_vm2, %v15509_v10 }
0x1140   :  { %9574 = vmatmul.mubr.msk.f32.gmra.mrb[224].mxu0 %vm141_vm0, %v14830_v49  ;;  %v16023_v49 = vld [vmem:[#allocation129_spill] sm:$0xff] }
0x1141   :  { %9576 = vmatprep.mubr.msk.f32.mxu0 %vm10826_vm2, %v15509_v10 }
0x1144   :  { %9577 = vmatmul.mubr.msk.f32.gmra.mrb[226].mxu0 %vm141_vm0, %v14839_v56 }
0x1145   :  { %9579 = vmatprep.mubr.msk.f32.mxu0 %vm10826_vm2, %v15509_v10 }
0x1148   :  { %9580 = vmatmul.mubr.msk.f32.gmra.mrb[228].mxu0 %vm141_vm0, %v14848_v27 }
0x1149   :  { %9582 = vmatprep.mubr.msk.f32.mxu0 %vm10826_vm2, %v15509_v10 }
0x114c   :  { %9583 = vmatmul.mubr.msk.f32.gmra.mrb[230].mxu0 %vm141_vm0, %v14857_v33 }
0x114d   :  { %9585 = vmatprep.mubr.msk.f32.mxu0 %vm10826_vm2, %v15509_v10 }
0x1150   :  { %9586 = vmatmul.mubr.msk.f32.gmra.mrb[232].mxu0 %vm141_vm0, %v14866_v15  ;;  %v16024_v15 = vld [vmem:[#allocation133_spill] sm:$0xff] }
0x1151   :  { %9588 = vmatprep.mubr.msk.f32.mxu0 %vm10826_vm2, %v15509_v10 }
0x1154   :  { %9589 = vmatmul.mubr.msk.f32.gmra.mrb[234].mxu0 %vm141_vm0, %v14875_v17 }
0x1155   :  { %9591 = vmatprep.mubr.msk.f32.mxu0 %vm10826_vm2, %v15509_v10 }
0x1158   :  { %9592 = vmatmul.mubr.msk.f32.gmra.mrb[236].mxu0 %vm141_vm0, %v14884_v22 }
0x1159   :  { %9594 = vmatprep.mubr.msk.f32.mxu0 %vm10826_vm2, %v15509_v10 }
0x115c   :  { %9595 = vmatmul.mubr.msk.f32.gmra.mrb[238].mxu0 %vm141_vm0, %v14893_v32 }
0x115d   :  { %9597 = vmatprep.mubr.msk.f32.mxu0 %vm10826_vm2, %v15509_v10 }
0x1160   :  { %9598 = vmatmul.mubr.msk.f32.gmra.mrb[240].mxu0 %vm141_vm0, %v14902_v20  ;;  %v16025_v20 = vld [vmem:[#allocation137_spill] sm:$0xff] }
0x1161   :  { %9600 = vmatprep.mubr.msk.f32.mxu0 %vm10826_vm2, %v15509_v10 }
0x1164   :  { %9601 = vmatmul.mubr.msk.f32.gmra.mrb[242].mxu0 %vm141_vm0, %v14911_v16 }
0x1165   :  { %9603 = vmatprep.mubr.msk.f32.mxu0 %vm10826_vm2, %v15509_v10 }
0x1168   :  { %9604 = vmatmul.mubr.msk.f32.gmra.mrb[244].mxu0 %vm141_vm0, %v14920_v43 }
0x1169   :  { %9606 = vmatprep.mubr.msk.f32.mxu0 %vm10826_vm2, %v15509_v10 }
0x116c   :  { %9607 = vmatmul.mubr.msk.f32.gmra.mrb[246].mxu0 %vm141_vm0, %v14929_v58 }
0x11ef   :  { %v6722_v52 = vpop.f32.mrb[206].mxu0 }
0x11f0   :  { %v6833_v7 = vadd.f32 %v6722_v52, %v16021_v34  ;;  %v9548_v1 = vpop.f32.mrb[207].mxu0 }
0x11f2   :  { %v6840_v44 = vmul.f32 0.5, %v6833_v7 }
0x11f3   :  { %v6727_v57 = vpop.f32.mrb[208].mxu0 }
0x11f4   :  { %v6834_v5 = vadd.f32 %v6727_v57, %v16022_v13  ;;  %v9551_v45 = vpop.f32.mrb[209].mxu0  ;;  %10558 = vtanh.f32 %v6840_v44 }
0x11f6   :  { %v6841_v25 = vmul.f32 0.5, %v6834_v5 }
0x11f7   :  { %v6732_v36 = vpop.f32.mrb[210].mxu0 }
0x11f8   :  { %v6835_v56 = vadd.f32 %v6732_v36, %v16023_v49  ;;  %v9554_v27 = vpop.f32.mrb[211].mxu0  ;;  %10560 = vtanh.f32 %v6841_v25  ;;  %v16034_v36 = vld [vmem:[#allocation118_spill] sm:$0xff] }
0x11fa   :  { %v6842_v14 = vmul.f32 0.5, %v6835_v56 }
0x11fb   :  { %v6737_v33 = vpop.f32.mrb[212].mxu0 }
0x11fc   :  { %v6836_v17 = vadd.f32 %v6737_v33, %v16024_v15  ;;  %v9557_v22 = vpop.f32.mrb[213].mxu0  ;;  %10562 = vtanh.f32 %v6842_v14 }
0x11fe   :  { %v6843_v38 = vmul.f32 0.5, %v6836_v17  ;;  %v10559_v18 = vpop.eup %10558 }
0x11ff   :  { %v6742_v32 = vpop.f32.mrb[214].mxu0  ;;  %v6854_v13 = vmul.f32 0.5, %v10559_v18 }
0x1200   :  { %v6837_v16 = vadd.f32 %v6742_v32, %v16025_v20  ;;  %v9560_v43 = vpop.f32.mrb[215].mxu0  ;;  %10564 = vtanh.f32 %v6843_v38 }
0x1201   :  { %v6861_v15 = vadd.f32 0.5, %v6854_v13 }
0x1202   :  { %v6844_v7 = vmul.f32 0.5, %v6837_v16  ;;  %v10561_v1 = vpop.eup %10560 }
0x1203   :  { %v6747_v58 = vpop.f32.mrb[216].mxu0  ;;  %v6855_v27 = vmul.f32 0.5, %v10561_v1 }
0x1204   :  { %v6838_v24 = vadd.f32 %v6747_v58, %v16026_v50  ;;  %v9563_v54 = vpop.f32.mrb[217].mxu0  ;;  %10566 = vtanh.f32 %v6844_v7 }
0x1205   :  { %v6862_v43 = vadd.f32 0.5, %v6855_v27 }
0x1206   :  { %v6845_v45 = vmul.f32 0.5, %v6838_v24  ;;  %v10563_v17 = vpop.eup %10562  ;;  %v16035_v24 = vld [vmem:[#allocation122_spill] sm:$0xff] }
0x1207   :  { %v6752_v11 = vpop.f32.mrb[218].mxu0 }
0x1208   :  { %v6839_v55 = vadd.f32 %v6752_v11, %v16027_v21  ;;  %v9566_v31 = vpop.f32.mrb[219].mxu0  ;;  %v6856_v11 = vmul.f32 0.5, %v10563_v17 }
0x120a   :  { %v6846_v16 = vmul.f32 0.5, %v6839_v55  ;;  %v10565_v58 = vpop.eup %10564 }
0x120b   :  { %v6757_v62 = vpop.f32.mrb[220].mxu0 }
0x120c   :  { %v6875_v19 = vadd.f32 %v6757_v62, %v16028_v0  ;;  %v9569_v8 = vpop.f32.mrb[221].mxu0  ;;  %v6857_v0 = vmul.f32 0.5, %v10565_v58 }
0x120d   :  { %v16036_v8 = vld [vmem:[#allocation126_spill] sm:$0xff] }
0x120e   :  { %v6882_v57 = vmul.f32 0.5, %v6875_v19  ;;  %v6864_v25 = vadd.f32 0.5, %v6857_v0 }
0x120f   :  { %v6762_v40 = vpop.f32.mrb[222].mxu0 }
0x1210   :  { %v6876_v59 = vadd.f32 %v6762_v40, %v16029_v63  ;;  %v9572_v41 = vpop.f32.mrb[223].mxu0  ;;  %10568 = vtanh.f32 %v6882_v57  ;;  %v6863_v63 = vadd.f32 0.5, %v6856_v11 }
0x1211   :  { %10570 = vtanh.f32 %v6845_v45 }
0x1212   :  { %v6883_v33 = vmul.f32 0.5, %v6876_v59  ;;  %v10567_v59 = vpop.eup %10566 }
0x1213   :  { %v6767_v26 = vpop.f32.mrb[224].mxu0 }
0x1214   :  { %v6877_v3 = vadd.f32 %v6767_v26, %v16030_v48  ;;  %v9575_v9 = vpop.f32.mrb[225].mxu0  ;;  %10572 = vtanh.f32 %v6883_v33 }
0x1215   :  { %v16037_v9 = vld [vmem:[#allocation130_spill] sm:$0xff] }
0x1216   :  { %v6884_v50 = vmul.f32 0.5, %v6877_v3 }
0x1217   :  { %v6772_v2 = vpop.f32.mrb[226].mxu0 }
0x1218   :  { %v6878_v23 = vadd.f32 %v6772_v2, %v16031_v47  ;;  %v9578_v37 = vpop.f32.mrb[227].mxu0  ;;  %v6858_v47 = vmul.f32 0.5, %v10567_v59 }
0x121a   :  { %v6885_v19 = vmul.f32 0.5, %v6878_v23  ;;  %v10569_v41 = vpop.eup %10568 }
0x121b   :  { %v6777_v12 = vpop.f32.mrb[228].mxu0  ;;  %v10571_v48 = vpop.eup %10570  ;;  %v6896_v37 = vmul.f32 0.5, %v10569_v41 }
0x121c   :  { %v6879_v39 = vadd.f32 %v6777_v12, %v16032_v61  ;;  %v9581_v4 = vpop.f32.mrb[229].mxu0  ;;  %v6859_v61 = vmul.f32 0.5, %v10571_v48 }
0x121d   :  { %v6903_v1 = vadd.f32 0.5, %v6896_v37 }
0x121e   :  { %v6886_v3 = vmul.f32 0.5, %v6879_v39  ;;  %v10573_v12 = vpop.eup %10572 }
0x121f   :  { %v6782_v46 = vpop.f32.mrb[230].mxu0  ;;  %v6897_v57 = vmul.f32 0.5, %v10573_v12 }
0x1220   :  { %v6880_v52 = vadd.f32 %v6782_v46, %v16033_v30  ;;  %v9584_v34 = vpop.f32.mrb[231].mxu0  ;;  %v16038_v46 = vld [vmem:[#allocation134_spill] sm:$0xff] }
0x1221   :  { %v6865_v34 = vadd.f32 0.5, %v6858_v47 }
0x1222   :  { %v6887_v18 = vmul.f32 0.5, %v6880_v52  ;;  %v16039_v52 = vld [vmem:[#allocation138_spill] sm:$0xff] }
0x1223   :  { %v6787_v5 = vpop.f32.mrb[232].mxu0 }
0x1224   :  { %v15226_v49 = vadd.f32 %v6787_v5, %v16034_v36  ;;  %v9587_v56 = vpop.f32.mrb[233].mxu0 }
0x1225   :  { %v6866_v56 = vadd.f32 0.5, %v6859_v61 }
0x1227   :  { %v6792_v22 = vpop.f32.mrb[234].mxu0 }
0x1228   :  { %v6917_v32 = vmul.f32 %v6861_v15, %v6792_v22  ;;  %v9590_v20 = vpop.f32.mrb[235].mxu0  ;;  %v6888_v15 = vmul.f32 0.5, %v15226_v49 }
0x122a   :  { %v6924_v54 = vadd.f32 %v6917_v32, %v16035_v24  ;;  %v6904_v32 = vadd.f32 0.5, %v6897_v57 }
0x122b   :  { %v6797_v21 = vpop.f32.mrb[236].mxu0 }
0x122c   :  { %10574 = vtanh.f32 %v6924_v54  ;;  %v6918_v31 = vmul.f32 %v6862_v43, %v6797_v21  ;;  %v9593_v62 = vpop.f32.mrb[237].mxu0  ;;  %v16040_v21 = vld [vmem:[#allocation140_spill] sm:$0xff] }
0x122d   :  { %10576 = vtanh.f32 %v6846_v16 }
0x122e   :  { %10578 = vtanh.f32 %v6884_v50  ;;  %v6925_v40 = vadd.f32 %v6918_v31, %v16036_v8 }
0x122f   :  { %v6802_v55 = vpop.f32.mrb[238].mxu0 }
0x1230   :  { %10580 = vtanh.f32 %v6925_v40  ;;  %v6919_v44 = vmul.f32 %v6863_v63, %v6802_v55  ;;  %v9596_v26 = vpop.f32.mrb[239].mxu0 }
0x1231   :  { %10582 = vtanh.f32 %v6885_v19  ;;  %v16041_v26 = vld [vmem:[#allocation142_spill] sm:$0xff] }
0x1232   :  { %v6926_v2 = vadd.f32 %v6919_v44, %v16037_v9 }
0x1233   :  { %v6807_v14 = vpop.f32.mrb[240].mxu0 }
0x1234   :  { %10584 = vtanh.f32 %v6926_v2  ;;  %v6920_v23 = vmul.f32 %v6864_v25, %v6807_v14  ;;  %v9599_v38 = vpop.f32.mrb[241].mxu0 }
0x1235   :  { %10586 = vtanh.f32 %v6886_v3 }
0x1236   :  { %v10575_v4 = vpop.eup %10574  ;;  %v6927_v30 = vadd.f32 %v6920_v23, %v16038_v46 }
0x1237   :  { %v10577_v7 = vpop.eup %10576  ;;  %v6812_v39 = vpop.f32.mrb[242].mxu0  ;;  %v6938_v13 = vsub.f32 %v15099_v42, %v10575_v4 }
0x1238   :  { %v10579_v5 = vpop.eup %10578  ;;  %10588 = vtanh.f32 %v6927_v30  ;;  %v6921_v45 = vmul.f32 %v6865_v34, %v6812_v39  ;;  %v9602_v36 = vpop.f32.mrb[243].mxu0  ;;  %v6860_v22 = vmul.f32 0.5, %v10577_v7 }
0x1239   :  { %v6945_v27 = vmul.f32 %v6938_v13, %v6903_v1  ;;  %10590 = vtanh.f32 %v6887_v18  ;;  %v6898_v20 = vmul.f32 0.5, %v10579_v5 }
0x123a   :  { %v10581_v33 = vpop.eup %10580  ;;  %v6928_v17 = vadd.f32 %v6921_v45, %v16039_v52  ;;  %v6867_v49 = vadd.f32 0.5, %v6860_v22  ;;  %v10785_v52 = vld [vmem:[%s15464_s2 + $0xe0] sm:$0xff]  ;;  %v10787_v22 = vld [vmem:[%s15464_s2 + $0xf0] sm:$0xff] }
0x123b   :  { %v6817_v16 = vpop.f32.mrb[244].mxu0  ;;  %v6939_v43 = vsub.f32 %v15102_v53, %v10581_v33  ;;  %v15236_v58 = vadd.f32 %v10575_v4, %v6945_v27  ;;  %v10583_v42 = vpop.eup %10582  ;;  %v6905_v62 = vadd.f32 0.5, %v6898_v20  ;;  %v10782_v27 = vld [vmem:[%s15464_s2 + $0xc8] sm:$0xff]  ;;  %v10789_v20 = vld [vmem:[%s15464_s2 + $0x100] sm:$0xff] }
0x123c   :  { %10592 = vtanh.f32 %v6928_v17  ;;  %v6922_v50 = vmul.f32 %v6866_v56, %v6817_v16  ;;  %v9605_v24 = vpop.f32.mrb[245].mxu0  ;;  %v6899_v0 = vmul.f32 0.5, %v10583_v42  ;;  %v10781_v56 = vld [vmem:[%s15464_s2 + $0xc0] sm:$0xff]  ;;  %v10786_v17 = vld [vmem:[%s15464_s2 + $0xe8] sm:$0xff]  ;;  %v10792_v42 = vld [vmem:[%s15464_s2 + $0x118] sm:$0xff] }
0x123d   :  { %v6946_v54 = vmul.f32 %v6939_v43, %v6904_v32  ;;  %10594 = vtanh.f32 %v6888_v15  ;;  %v10784_v15 = vld [vmem:[%s15464_s2 + $0xd8] sm:$0xff]  ;;  %v10790_v16 = vld [vmem:[%s15464_s2 + $0x108] sm:$0xff]  ;;  %v10791_v43 = vld [vmem:[%s15464_s2 + $0x110] sm:$0xff] }
0x123e   :  { %v10585_v11 = vpop.eup %10584  ;;  %v6929_v31 = vadd.f32 %v6922_v50, %v16040_v21  ;;  %v6906_v48 = vadd.f32 0.5, %v6899_v0  ;;  %v10788_v32 = vld [vmem:[%s15464_s2 + $0xf8] sm:$0xff]  ;;  %v10793_v50 = vld [vmem:[%s15464_s2 + $0x120] sm:$0xff]  ;;  %v10794_v24 = vld [vmem:[%s15464_s2 + $0x128] sm:$0xff] }
0x123f   :  { %v6822_v19 = vpop.f32.mrb[246].mxu0  ;;  %v15239_v8 = vadd.f32 %v10581_v33, %v6946_v54  ;;  %v6940_v40 = vsub.f32 %v15109_v35, %v10585_v11  ;;  %v10587_v53 = vpop.eup %10586  ;;  %v10783_v33 = vld [vmem:[%s15464_s2 + $0xd0] sm:$0xff]  ;;  %v10797_v21 = vld [vmem:[%s15464_s2 + $0x140] sm:$0xff] }
0x1240   :  { %10596 = vtanh.f32 %v6929_v31  ;;  %v6923_v63 = vmul.f32 %v6867_v49, %v6822_v19  ;;  %v9608_v59 = vpop.f32.mrb[247].mxu0  ;;  %v6900_v3 = vmul.f32 0.5, %v10587_v53  ;;  %v10795_v54 = vld [vmem:[%s15464_s2 + $0x130] sm:$0xff]  ;;  %v10798_v31 = vld [vmem:[%s15464_s2 + $0x148] sm:$0xff]  ;;  %v7262_v49 = vld [vmem:[%s15465_s3] sm:$0xff]  ;;  %v10827_v19 = vmov 0  }
0x1241   :  { %v9932_v55 = vpack.c.bf16 %v15239_v8, %v15236_v58  ;;  %v6947_v41 = vmul.f32 %v6940_v40, %v6905_v62  ;;  %v7264_v62 = vld [vmem:[%s15465_s3 + $0x10] sm:$0xff]  ;;  %9700 = vmatprep.mubr.msk.f32.mxu0 %vm141_vm0, %v7262_v49  ;;  %v7266_v0 = vld [vmem:[%s15466_s4] sm:$0xff]  ;;  %9969 = vset.pattern.permute.xlu1 %v10827_v19  ;;  %v7269_v40 = vld [vmem:[%s15466_s4 + $0x18] sm:$0xff] }
0x1242   :  { %v10589_v44 = vpop.eup %10588  ;;  %v6930_v25 = vadd.f32 %v6923_v63, %v16041_v26  ;;  %v6907_v14 = vadd.f32 0.5, %v6900_v3  ;;  %9968 = vset.pattern.permute.xlu0 %v10827_v19  ;;  %v7267_v53 = vld [vmem:[%s15466_s4 + $0x8] sm:$0xff]  ;;  %v16042_v59 = vld [vmem:[#allocation123_spill] sm:$0xff] }
0x1243   :  { %9933 = vmatpush3.bf16.msra.mxu1 %v9932_v55  ;;  %v6941_v9 = vsub.f32 %v15112_v28, %v10589_v44  ;;  %v15246_v2 = vadd.f32 %v10585_v11, %v6947_v41  ;;  %v10591_v47 = vpop.eup %10590  ;;  %v10796_v11 = vld [vmem:[%s15464_s2 + $0x138] sm:$0xff]  ;;  %7272 = vperm.xlu0 %9968, %v7266_v0   ;;  %v16043_v26 = vld [vmem:[#allocation127_spill] sm:$0xff]  ;;  %v16054_v19 = vld [vmem:[#allocation116_spill] sm:$0xff] }
0x1244   :  { %10598 = vtanh.f32 %v6930_v25  ;;  %9934 = vmatprep.subr.bf16.mxu1 %v15512_v6  ;;  %v6901_v12 = vmul.f32 0.5, %v10591_v47 }
0x1245   :  { %v6948_v35 = vmul.f32 %v6941_v9, %v6906_v48  ;;  %v16044_v9 = vld [vmem:[#allocation131_spill] sm:$0xff] }
0x1246   :  { %v10593_v37 = vpop.eup %10592  ;;  %v6908_v46 = vadd.f32 0.5, %v6901_v12 }
0x1247   :  { %v15249_v23 = vadd.f32 %v10589_v44, %v6948_v35  ;;  %v6942_v38 = vsub.f32 %v15118_v60, %v10593_v37  ;;  %v10595_v61 = vpop.eup %10594  ;;  %7277 = vperm.xlu0 %9968, %v7267_v53  }
0x1248   :  { %v6902_v30 = vmul.f32 0.5, %v10595_v61 }
0x1249   :  { %v9935_v4 = vpack.c.bf16 %v15249_v23, %v15246_v2  ;;  %v6949_v18 = vmul.f32 %v6942_v38, %v6907_v14  ;;  %v16045_v14 = vld [vmem:[#allocation135_spill] sm:$0xff] }
0x124a   :  { %v10597_v28 = vpop.eup %10596  ;;  %v6909_v39 = vadd.f32 0.5, %v6902_v30  ;;  %v16047_v30 = vld [vmem:[#allocation19_spill] sm:$0xff] }
0x124b   :  { %9936 = vmatpush3.bf16.msra.mxu1 %v9935_v4  ;;  %v6943_v34 = vsub.f32 %v15121_v51, %v10597_v28  ;;  %v15255_v7 = vadd.f32 %v10593_v37, %v6949_v18  ;;  %v10779_v51 = vld [vmem:[%s15464_s2 + $0xb0] sm:$0xff]  ;;  %v16046_v4 = vld [vmem:[#allocation18_spill] sm:$0xff] }
0x124c   :  { %9937 = vmatprep.subr.bf16.mxu1 %v15512_v6  ;;  %v10778_v6 = vld [vmem:[%s15464_s2 + $0xa8] sm:$0xff] }
0x124d   :  { %v6950_v1 = vmul.f32 %v6943_v34, %v6908_v46 }
0x124e   :  { %v10599_v57 = vpop.eup %10598 }
0x124f   :  { %v15258_v13 = vadd.f32 %v10597_v28, %v6950_v1  ;;  %v6944_v60 = vsub.f32 %v15126_v29, %v10599_v57  ;;  %v10780_v29 = vld [vmem:[%s15464_s2 + $0xb8] sm:$0xff] }
0x1251   :  { %v9938_v5 = vpack.c.bf16 %v15258_v13, %v15255_v7  ;;  %v6951_v45 = vmul.f32 %v6944_v60, %v6909_v39  ;;  %v16048_v39 = vld [vmem:[#allocation20_spill] sm:$0xff] }
0x1253   :  { %9939 = vmatpush3.bf16.msra.mxu1 %v9938_v5  ;;  %v15263_v36 = vadd.f32 %v10599_v57, %v6951_v45 }
0x1254   :  { %9621 = vmatprep.subr.mxu1 %v15509_v10 }
0x1257   :  { %9622 = vmatpush3.msra.mxu1 %v15263_v36 }
0x1258   :  { %9624 = vmatmul.mubr.msk.f32.vlgmr.msra.gmra.mrb[206].mxu1 %vm141_vm0, %v10778_v6  ;;  %v16049_v6 = vld [vmem:[#allocation98_spill] sm:$0xff] }
0x1259   :  { %9626 = vmatprep.mubr.msk.f32.mxu1 %vm10826_vm2, %v15509_v10 }
0x125c   :  { %9627 = vmatmul.mubr.msk.f32.gmra.mrb[208].mxu1 %vm141_vm0, %v10779_v51 }
0x125d   :  { %9629 = vmatprep.mubr.msk.f32.mxu1 %vm10826_vm2, %v15509_v10 }
0x1260   :  { %9630 = vmatmul.mubr.msk.f32.gmra.mrb[210].mxu1 %vm141_vm0, %v10780_v29 }
0x1261   :  { %9632 = vmatprep.mubr.msk.f32.mxu1 %vm10826_vm2, %v15509_v10 }
0x1264   :  { %9633 = vmatmul.mubr.msk.f32.gmra.mrb[212].mxu1 %vm141_vm0, %v10781_v56 }
0x1265   :  { %9635 = vmatprep.mubr.msk.f32.mxu1 %vm10826_vm2, %v15509_v10 }
0x1268   :  { %9636 = vmatmul.mubr.msk.f32.gmra.mrb[214].mxu1 %vm141_vm0, %v10782_v27  ;;  %v16050_v27 = vld [vmem:[#allocation102_spill] sm:$0xff] }
0x1269   :  { %9638 = vmatprep.mubr.msk.f32.mxu1 %vm10826_vm2, %v15509_v10 }
0x126c   :  { %9639 = vmatmul.mubr.msk.f32.gmra.mrb[216].mxu1 %vm141_vm0, %v10783_v33 }
0x126d   :  { %9641 = vmatprep.mubr.msk.f32.mxu1 %vm10826_vm2, %v15509_v10 }
0x1270   :  { %9642 = vmatmul.mubr.msk.f32.gmra.mrb[218].mxu1 %vm141_vm0, %v10784_v15 }
0x1271   :  { %9644 = vmatprep.mubr.msk.f32.mxu1 %vm10826_vm2, %v15509_v10 }
0x1274   :  { %9645 = vmatmul.mubr.msk.f32.gmra.mrb[220].mxu1 %vm141_vm0, %v10785_v52 }
0x1275   :  { %9647 = vmatprep.mubr.msk.f32.mxu1 %vm10826_vm2, %v15509_v10 }
0x1278   :  { %9648 = vmatmul.mubr.msk.f32.gmra.mrb[222].mxu1 %vm141_vm0, %v10786_v17 }
0x1279   :  { %9650 = vmatprep.mubr.msk.f32.mxu1 %vm10826_vm2, %v15509_v10 }
0x127c   :  { %9651 = vmatmul.mubr.msk.f32.gmra.mrb[224].mxu1 %vm141_vm0, %v10787_v22 }
0x127d   :  { %9653 = vmatprep.mubr.msk.f32.mxu1 %vm10826_vm2, %v15509_v10 }
0x1280   :  { %9654 = vmatmul.mubr.msk.f32.gmra.mrb[226].mxu1 %vm141_vm0, %v10788_v32  ;;  %v16051_v32 = vld [vmem:[#allocation106_spill] sm:$0xff] }
0x1281   :  { %9656 = vmatprep.mubr.msk.f32.mxu1 %vm10826_vm2, %v15509_v10 }
0x1284   :  { %9657 = vmatmul.mubr.msk.f32.gmra.mrb[228].mxu1 %vm141_vm0, %v10789_v20 }
0x1285   :  { %9659 = vmatprep.mubr.msk.f32.mxu1 %vm10826_vm2, %v15509_v10 }
0x1288   :  { %9660 = vmatmul.mubr.msk.f32.gmra.mrb[230].mxu1 %vm141_vm0, %v10790_v16 }
0x1289   :  { %9662 = vmatprep.mubr.msk.f32.mxu1 %vm10826_vm2, %v15509_v10 }
0x128c   :  { %9663 = vmatmul.mubr.msk.f32.gmra.mrb[232].mxu1 %vm141_vm0, %v10791_v43 }
0x128d   :  { %9665 = vmatprep.mubr.msk.f32.mxu1 %vm10826_vm2, %v15509_v10 }
0x1290   :  { %9666 = vmatmul.mubr.msk.f32.gmra.mrb[234].mxu1 %vm141_vm0, %v10792_v42  ;;  %v16052_v42 = vld [vmem:[#allocation110_spill] sm:$0xff] }
0x1291   :  { %9668 = vmatprep.mubr.msk.f32.mxu1 %vm10826_vm2, %v15509_v10 }
0x1294   :  { %9669 = vmatmul.mubr.msk.f32.gmra.mrb[236].mxu1 %vm141_vm0, %v10793_v50 }
0x1295   :  { %9671 = vmatprep.mubr.msk.f32.mxu1 %vm10826_vm2, %v15509_v10 }
0x1298   :  { %9672 = vmatmul.mubr.msk.f32.gmra.mrb[238].mxu1 %vm141_vm0, %v10794_v24 }
0x1299   :  { %9674 = vmatprep.mubr.msk.f32.mxu1 %vm10826_vm2, %v15509_v10 }
0x129c   :  { %9675 = vmatmul.mubr.msk.f32.gmra.mrb[240].mxu1 %vm141_vm0, %v10795_v54 }
0x129d   :  { %9677 = vmatprep.mubr.msk.f32.mxu1 %vm10826_vm2, %v15509_v10 }
0x12a0   :  { %9678 = vmatmul.mubr.msk.f32.gmra.mrb[242].mxu1 %vm141_vm0, %v10796_v11 }
0x12a1   :  { %9680 = vmatprep.mubr.msk.f32.mxu1 %vm10826_vm2, %v15509_v10 }
0x12a4   :  { %9681 = vmatmul.mubr.msk.f32.gmra.mrb[244].mxu1 %vm141_vm0, %v10797_v21 }
0x12a5   :  { %9683 = vmatprep.mubr.msk.f32.mxu1 %vm10826_vm2, %v15509_v10  ;;  %v7268_v10 = vld [vmem:[%s15466_s4 + $0x10] sm:$0xff] }
0x12a6   :  { %7282 = vperm.xlu1 %9969, %v7268_v10  }
0x12a8   :  { %9684 = vmatmul.mubr.msk.f32.gmra.mrb[246].mxu1 %vm141_vm0, %v10798_v31  ;;  %v16053_v31 = vld [vmem:[#allocation114_spill] sm:$0xff] }
0x12a9   :  { %9703 = vmatprep.mubr.msk.f32.mxu1 %vm141_vm0, %v7264_v62 }
0x12aa   :  { %7287 = vperm.xlu1 %9969, %v7269_v40  }
0x132b   :  { %v7025_v63 = vpop.f32.mrb[206].mxu1 }
0x132c   :  { %v7136_v55 = vadd.f32 %v7025_v63, %v16042_v59  ;;  %v9625_v41 = vpop.f32.mrb[207].mxu1 }
0x132e   :  { %v7143_v52 = vmul.f32 0.5, %v7136_v55 }
0x132f   :  { %v7030_v44 = vpop.f32.mrb[208].mxu1 }
0x1330   :  { %v7137_v25 = vadd.f32 %v7030_v44, %v16043_v26  ;;  %v9628_v48 = vpop.f32.mrb[209].mxu1  ;;  %10600 = vtanh.f32 %v7143_v52 }
0x1332   :  { %v7144_v22 = vmul.f32 0.5, %v7137_v25  ;;  %v16055_v25 = vld [vmem:[#allocation120_spill] sm:$0xff] }
0x1333   :  { %v7035_v3 = vpop.f32.mrb[210].mxu1 }
0x1334   :  { %v7138_v47 = vadd.f32 %v7035_v3, %v16044_v9  ;;  %v9631_v35 = vpop.f32.mrb[211].mxu1  ;;  %10602 = vtanh.f32 %v7144_v22 }
0x1336   :  { %v7145_v54 = vmul.f32 0.5, %v7138_v47 }
0x1337   :  { %v7040_v37 = vpop.f32.mrb[212].mxu1 }
0x1338   :  { %v7139_v12 = vadd.f32 %v7040_v37, %v16045_v14  ;;  %v9634_v38 = vpop.f32.mrb[213].mxu1  ;;  %10604 = vtanh.f32 %v7145_v54 }
0x133a   :  { %v7146_v21 = vmul.f32 0.5, %v7139_v12  ;;  %v10601_v10 = vpop.eup %10600 }
0x133b   :  { %v7045_v61 = vpop.f32.mrb[214].mxu1  ;;  %v7157_v41 = vmul.f32 0.5, %v10601_v10 }
0x133c   :  { %v7140_v18 = vadd.f32 %v7045_v61, %v16046_v4  ;;  %v9637_v28 = vpop.f32.mrb[215].mxu1  ;;  %10606 = vtanh.f32 %v7146_v21 }
0x133d   :  { %v7164_v35 = vadd.f32 0.5, %v7157_v41 }
0x133e   :  { %v7147_v63 = vmul.f32 0.5, %v7140_v18  ;;  %v10603_v59 = vpop.eup %10602 }
0x133f   :  { %v7050_v46 = vpop.f32.mrb[216].mxu1  ;;  %v7158_v9 = vmul.f32 0.5, %v10603_v59 }
0x1340   :  { %v7141_v34 = vadd.f32 %v7050_v46, %v16047_v30  ;;  %v9640_v1 = vpop.f32.mrb[217].mxu1  ;;  %10608 = vtanh.f32 %v7147_v63  ;;  %v16056_v46 = vld [vmem:[#allocation124_spill] sm:$0xff] }
0x1341   :  { %v7165_v4 = vadd.f32 0.5, %v7158_v9 }
0x1342   :  { %v7148_v26 = vmul.f32 0.5, %v7141_v34  ;;  %v10605_v37 = vpop.eup %10604 }
0x1343   :  { %v7055_v57 = vpop.f32.mrb[218].mxu1  ;;  %v7159_v34 = vmul.f32 0.5, %v10605_v37 }
0x1344   :  { %v7142_v60 = vadd.f32 %v7055_v57, %v16048_v39  ;;  %v9643_v5 = vpop.f32.mrb[219].mxu1 }
0x1346   :  { %v7149_v61 = vmul.f32 0.5, %v7142_v60  ;;  %v10607_v18 = vpop.eup %10606 }
0x1347   :  { %v7060_v45 = vpop.f32.mrb[220].mxu1  ;;  %v7160_v5 = vmul.f32 0.5, %v10607_v18 }
0x1348   :  { %v7178_v51 = vadd.f32 %v7060_v45, %v16049_v6  ;;  %v9646_v29 = vpop.f32.mrb[221].mxu1  ;;  %v16057_v6 = vld [vmem:[#allocation128_spill] sm:$0xff] }
0x1349   :  { %v7166_v29 = vadd.f32 0.5, %v7159_v34  ;;  %v7167_v52 = vadd.f32 0.5, %v7160_v5 }
0x134a   :  { %v7185_v55 = vmul.f32 0.5, %v7178_v51 }
0x134b   :  { %v7065_v56 = vpop.f32.mrb[222].mxu1 }
0x134c   :  { %v7179_v33 = vadd.f32 %v7065_v56, %v16050_v27  ;;  %v9649_v15 = vpop.f32.mrb[223].mxu1  ;;  %10610 = vtanh.f32 %v7185_v55  ;;  %v10609_v56 = vpop.eup %10608 }
0x134d   :  { %10612 = vtanh.f32 %v7148_v26 }
0x134e   :  { %v7186_v47 = vmul.f32 0.5, %v7179_v33 }
0x134f   :  { %v7070_v17 = vpop.f32.mrb[224].mxu1 }
0x1350   :  { %v7180_v20 = vadd.f32 %v7070_v17, %v16051_v32  ;;  %v9652_v16 = vpop.f32.mrb[225].mxu1  ;;  %10614 = vtanh.f32 %v7186_v47  ;;  %v16058_v32 = vld [vmem:[#allocation132_spill] sm:$0xff] }
0x1351   :  { %v7161_v16 = vmul.f32 0.5, %v10609_v56 }
0x1352   :  { %v7187_v28 = vmul.f32 0.5, %v7180_v20 }
0x1353   :  { %v7075_v43 = vpop.f32.mrb[226].mxu1 }
0x1354   :  { %v7181_v50 = vadd.f32 %v7075_v43, %v16052_v42  ;;  %v9655_v24 = vpop.f32.mrb[227].mxu1 }
0x1356   :  { %v7188_v45 = vmul.f32 0.5, %v7181_v50  ;;  %v10611_v27 = vpop.eup %10610 }
0x1357   :  { %v7080_v11 = vpop.f32.mrb[228].mxu1  ;;  %v10613_v17 = vpop.eup %10612  ;;  %v7199_v43 = vmul.f32 0.5, %v10611_v27  ;;  %v16062_v27 = vld [vmem:[#allocation143_spill] sm:$0xff] }
0x1358   :  { %v7182_v49 = vadd.f32 %v7080_v11, %v16053_v31  ;;  %v9658_v62 = vpop.f32.mrb[229].mxu1  ;;  %v7162_v11 = vmul.f32 0.5, %v10613_v17 }
0x1359   :  { %v16059_v62 = vld [vmem:[#allocation136_spill] sm:$0xff] }
0x135a   :  { %v7189_v22 = vmul.f32 0.5, %v7182_v49  ;;  %v10615_v24 = vpop.eup %10614  ;;  %v7169_v26 = vadd.f32 0.5, %v7162_v11 }
0x135b   :  { %v7085_v0 = vpop.f32.mrb[230].mxu1  ;;  %v7200_v63 = vmul.f32 0.5, %v10615_v24 }
0x135c   :  { %v7183_v40 = vadd.f32 %v7085_v0, %v16054_v19  ;;  %v9661_v53 = vpop.f32.mrb[231].mxu1  ;;  %v7168_v0 = vadd.f32 0.5, %v7161_v16 }
0x135d   :  { %v7206_v53 = vadd.f32 0.5, %v7199_v43  ;;  %v7207_v37 = vadd.f32 0.5, %v7200_v63 }
0x135e   :  { %v7190_v31 = vmul.f32 0.5, %v7183_v40  ;;  %v16060_v40 = vld [vmem:[#allocation139_spill] sm:$0xff] }
0x135f   :  { %v7090_v44 = vpop.f32.mrb[232].mxu1 }
0x1360   :  { %v15425_v48 = vadd.f32 %v7090_v44, %v16055_v25  ;;  %v9664_v3 = vpop.f32.mrb[233].mxu1 }
0x1362   :  { %v7191_v9 = vmul.f32 0.5, %v15425_v48 }
0x1363   :  { %v7095_v14 = vpop.f32.mrb[234].mxu1 }
0x1364   :  { %v7220_v12 = vmul.f32 %v7164_v35, %v7095_v14  ;;  %v9667_v38 = vpop.f32.mrb[235].mxu1 }
0x1366   :  { %v7227_v30 = vadd.f32 %v7220_v12, %v16056_v46 }
0x1367   :  { %v7100_v1 = vpop.f32.mrb[236].mxu1 }
0x1368   :  { %10616 = vtanh.f32 %v7227_v30  ;;  %v7221_v57 = vmul.f32 %v7165_v4, %v7100_v1  ;;  %v9670_v39 = vpop.f32.mrb[237].mxu1  ;;  %v16061_v30 = vld [vmem:[#allocation141_spill] sm:$0xff] }
0x1369   :  { %10618 = vtanh.f32 %v7149_v61 }
0x136a   :  { %10620 = vtanh.f32 %v7187_v28  ;;  %v7228_v51 = vadd.f32 %v7221_v57, %v16057_v6 }
0x136b   :  { %v7105_v60 = vpop.f32.mrb[238].mxu1 }
0x136c   :  { %10622 = vtanh.f32 %v7228_v51  ;;  %v7222_v33 = vmul.f32 %v7166_v29, %v7105_v60  ;;  %v9673_v15 = vpop.f32.mrb[239].mxu1 }
0x136d   :  { %10624 = vtanh.f32 %v7188_v45 }
0x136e   :  { %v7229_v20 = vadd.f32 %v7222_v33, %v16058_v32 }
0x136f   :  { %v7110_v42 = vpop.f32.mrb[240].mxu1 }
0x1370   :  { %10626 = vtanh.f32 %v7229_v20  ;;  %v7223_v50 = vmul.f32 %v7167_v52, %v7110_v42  ;;  %v9676_v54 = vpop.f32.mrb[241].mxu1 }
0x1371   :  { %10628 = vtanh.f32 %v7189_v22 }
0x1372   :  { %v10617_v21 = vpop.eup %10616  ;;  %v7230_v10 = vadd.f32 %v7223_v50, %v16059_v62 }
0x1373   :  { %v10619_v19 = vpop.eup %10618  ;;  %v7115_v49 = vpop.f32.mrb[242].mxu1  ;;  %v7241_v59 = vsub.f32 %v15236_v58, %v10617_v21 }
0x1374   :  { %v10621_v55 = vpop.eup %10620  ;;  %10630 = vtanh.f32 %v7230_v10  ;;  %v7224_v41 = vmul.f32 %v7168_v0, %v7115_v49  ;;  %v9679_v44 = vpop.f32.mrb[243].mxu1  ;;  %v7163_v35 = vmul.f32 0.5, %v10619_v19 }
0x1375   :  { %v7248_v25 = vmul.f32 %v7241_v59, %v7206_v53  ;;  %10632 = vtanh.f32 %v7190_v31  ;;  %v7201_v14 = vmul.f32 0.5, %v10621_v55  ;;  %v7273_v44 = vpop.permute.xlu0 %7272 }
0x1376   :  { %v10623_v3 = vpop.eup %10622  ;;  %v7231_v47 = vadd.f32 %v7224_v41, %v16060_v40  ;;  %v7170_v1 = vadd.f32 0.5, %v7163_v35  ;;  %v7265_v41 = vld [vmem:[%s15465_s3 + $0x18] sm:$0xff] }
0x1377   :  { %v7120_v12 = vpop.f32.mrb[244].mxu1  ;;  %v7242_v38 = vsub.f32 %v15239_v8, %v10623_v3  ;;  %v7255_v61 = vadd.f32 %v10617_v21, %v7248_v25  ;;  %v10625_v58 = vpop.eup %10624  ;;  %v7208_v48 = vadd.f32 0.5, %v7201_v14 }
0x1378   :  { %10634 = vtanh.f32 %v7231_v47  ;;  %v7225_v4 = vmul.f32 %v7169_v26, %v7120_v12  ;;  %v9682_v18 = vpop.f32.mrb[245].mxu1  ;;  %v7202_v57 = vmul.f32 0.5, %v10625_v58 }
0x1379   :  { %v7249_v28 = vmul.f32 %v7242_v38, %v7207_v37  ;;  %10636 = vtanh.f32 %v7191_v9  ;;  %v7278_v25 = vpop.permute.xlu0 %7277 }
0x137a   :  { %v10627_v46 = vpop.eup %10626  ;;  %v7232_v34 = vadd.f32 %v7225_v4, %v16061_v30  ;;  %v7209_v15 = vadd.f32 0.5, %v7202_v57 }
0x137b   :  { %v7125_v39 = vpop.f32.mrb[246].mxu1  ;;  %v7256_v5 = vadd.f32 %v10623_v3, %v7249_v28  ;;  %v7243_v45 = vsub.f32 %v15246_v2, %v10627_v46  ;;  %v10629_v6 = vpop.eup %10628 }
0x137c   :  { %10638 = vtanh.f32 %v7232_v34  ;;  %v7226_v8 = vmul.f32 %v7170_v1, %v7125_v39  ;;  %v9685_v51 = vpop.f32.mrb[247].mxu1  ;;  %v7203_v52 = vmul.f32 0.5, %v10629_v6 }
0x137d   :  { %v9940_v29 = vpack.c.bf16 %v7256_v5, %v7255_v61  ;;  %v7250_v56 = vmul.f32 %v7243_v45, %v7208_v48 }
0x137e   :  { %v10631_v60 = vpop.eup %10630  ;;  %v7233_v33 = vadd.f32 %v7226_v8, %v16062_v27  ;;  %v7210_v16 = vadd.f32 0.5, %v7203_v52 }
0x137f   :  { %9941 = vmatprep.subr.bf16.mxu0 %v9940_v29  ;;  %9952 = vmatprep.subr.bf16.mxu1 %v9940_v29  ;;  %v7244_v17 = vsub.f32 %v15249_v23, %v10631_v60  ;;  %v7257_v22 = vadd.f32 %v10627_v46, %v7250_v56  ;;  %v10633_v32 = vpop.eup %10632 }
0x1380   :  { %10640 = vtanh.f32 %v7233_v33  ;;  %9943 = vmatpush3.bf16.msra.mxu0 %v9940_v29  ;;  %9956 = vmatpush3.bf16.msra.mxu1 %v9940_v29  ;;  %v7204_v43 = vmul.f32 0.5, %v10633_v32 }
0x1381   :  { %v7251_v2 = vmul.f32 %v7244_v17, %v7209_v15 }
0x1382   :  { %v10635_v20 = vpop.eup %10634  ;;  %v7211_v31 = vadd.f32 0.5, %v7204_v43 }
0x1383   :  { %v7258_v42 = vadd.f32 %v10631_v60, %v7251_v2  ;;  %v7245_v24 = vsub.f32 %v15255_v7, %v10635_v20  ;;  %v10637_v50 = vpop.eup %10636 }
0x1384   :  { %v7205_v62 = vmul.f32 0.5, %v10637_v50 }
0x1385   :  { %v9944_v54 = vpack.c.bf16 %v7258_v42, %v7257_v22  ;;  %v7252_v11 = vmul.f32 %v7245_v24, %v7210_v16 }
0x1386   :  { %v10639_v21 = vpop.eup %10638  ;;  %v7212_v53 = vadd.f32 0.5, %v7205_v62 }
0x1387   :  { %9945 = vmatprep.subr.bf16.mxu0 %v9944_v54  ;;  %9953 = vmatprep.subr.bf16.mxu1 %v9944_v54  ;;  %v7246_v23 = vsub.f32 %v15258_v13, %v10639_v21  ;;  %v7259_v10 = vadd.f32 %v10635_v20, %v7252_v11  ;;  %v7263_v13 = vld [vmem:[%s15465_s3 + $0x8] sm:$0xff]  ;;  %s10828_s3 = smov [#allocation4]  }
0x1388   :  { %9947 = vmatpush3.bf16.msra.mxu0 %v9944_v54  ;;  %9957 = vmatpush3.bf16.msra.mxu1 %v9944_v54  ;;  %s7432_s10 = sshll.u32 %s10828_s3, 4  ;;  %s7433_s10 = int_to_ptr.vmem [resolvable:$true] %s7432_s10 }
0x1389   :  { %v7253_v0 = vmul.f32 %v7246_v23, %v7211_v31  ;;  %s10799_s11 = scalar_lea.vmem %s7433_s10, 512  ;;  %p10804_p1 = scmp.lt.s32.totalorder %s7433_s10, %s7433_s10 }
0x138a   :  { %v10641_v19 = vpop.eup %10640  ;;  %p10800_p0 = scmp.ne.s32.totalorder %s7433_s10, %s10799_s11  ;;  %p10805_p2 = scmp.lt.s32.totalorder %s10799_s11, %s10799_s11 }
0x138b   :  { %v7260_v63 = vadd.f32 %v10639_v21, %v7253_v0  ;;  %v7247_v49 = vsub.f32 %v15263_v36, %v10641_v19  ;;  %v7283_v36 = vpop.permute.xlu1 %7282 }
0x138c   :  { %p10806_p3 = por %p10805_p2, %p10804_p1 }
0x138d   :  { %v9948_v7 = vpack.c.bf16 %v7260_v63, %v7259_v10  ;;  %v7254_v59 = vmul.f32 %v7247_v49, %v7212_v53 }
0x138e   :  { %p10807_p4 = pnand %p10806_p3, %p10800_p0 }
0x138f   :  { %9949 = vmatprep.subr.bf16.mxu0 %v9948_v7  ;;  %9954 = vmatprep.subr.bf16.mxu1 %v9948_v7  ;;  %v7261_v55 = vadd.f32 %v10641_v19, %v7254_v59  ;;  %v7288_v26 = vpop.permute.xlu1 %7287 }
0x1390   :  { %9951 = vmatpush3.bf16.msra.mxu0 %v9948_v7  ;;  %9958 = vmatpush3.bf16.msra.mxu1 %v9948_v7 }
0x1391   :  { %9698 = vmatprep.subr.mxu0 %v7261_v55  ;;  %9955 = vmatprep.subr.mxu1 %v7261_v55 }
0x1394   :  { %9699 = vmatpush3.msra.mxu0 %v7261_v55  ;;  %9959 = vmatpush3.msra.mxu1 %v7261_v55 }
0x1395   :  { %9701 = vmatmul.mubr.msk.f32.vlgmr.msra.gmra.mrb[248].mxu0 %vm141_vm0, %v7263_v13  ;;  %9704 = vmatmul.mubr.msk.f32.vlgmr.msra.gmra.mrb[248].mxu1 %vm141_vm0, %v7265_v41 }
0x1468   :  { %v9702_v3 = vpop.f32.mrb[248].mxu0  ;;  %v9705_v9 = vpop.f32.mrb[248].mxu1 }
0x1469   :  { %v7384_v40 = vadd.f32 %v9705_v9, %v7288_v26  ;;  %v7374_v47 = vadd.f32 %v9702_v3, %v7278_v25  ;;  %v7368_v35 = vpop.f32.mrb[249].mxu0  ;;  %v7378_v37 = vpop.f32.mrb[249].mxu1 }
0x146a   :  { %v7369_v14 = vadd.f32 %v7368_v35, %v7273_v44  ;;  %v7379_v12 = vadd.f32 %v7378_v37, %v7283_v36 }
0x146c   :  { %v7387_v38 = vmax.f32 %v7369_v14, %v7374_v47  ;;  %v7388_v61 = vmax.f32 %v7379_v12, %v7384_v40 }
0x146e   :  { %v7389_v58 = vmax.f32 %v7387_v38, %v7388_v61 }
0x1470   :  { %v7390_v4 = vrot.slane %v7389_v58, 4 }
0x1472   :  { %v7391_v18 = vmax.f32 %v7389_v58, %v7390_v4 }
0x1474   :  { %v7392_v28 = vrot.slane %v7391_v18, 2 }
0x1476   :  { %v7393_v46 = vmax.f32 %v7391_v18, %v7392_v28 }
0x1478   :  { %v7394_v30 = vrot.slane %v7393_v46, 1 }
0x147a   :  { %v7395_v34 = vmax.f32 %v7393_v46, %v7394_v30 }
0x147c   :  { %v7396_v1 = vsub.f32 %v7369_v14, %v7395_v34  ;;  %v7397_v48 = vsub.f32 %v7374_v47, %v7395_v34  ;;  %v7398_v57 = vsub.f32 %v7379_v12, %v7395_v34  ;;  %v7399_v39 = vsub.f32 %v7384_v40, %v7395_v34 }
0x147e   :  { %v7400_v5 = vmul.f32 1.442695, %v7396_v1  ;;  %v7402_v45 = vmul.f32 1.442695, %v7397_v48  ;;  %v7404_v6 = vmul.f32 1.442695, %v7398_v57 }
0x147f   :  { %v7406_v8 = vmul.f32 1.442695, %v7399_v39 }
0x1480   :  { %10642 = vpow2.f32 %v7400_v5 }
0x1481   :  { %10644 = vpow2.f32 %v7402_v45 }
0x1482   :  { %10646 = vpow2.f32 %v7404_v6 }
0x1483   :  { %10648 = vpow2.f32 %v7406_v8 }
0x148a   :  { %v10643_v51 = vpop.eup %10642 }
0x148b   :  { %v10645_v29 = vpop.eup %10644 }
0x148c   :  { %v7408_v56 = vadd.f32 %v10645_v29, %v10643_v51  ;;  %v10647_v60 = vpop.eup %10646 }
0x148d   :  { %v10649_v33 = vpop.eup %10648 }
0x148e   :  { %v7409_v27 = vadd.f32 %v10647_v60, %v7408_v56 }
0x1490   :  { %v7410_v15 = vadd.f32 %v10649_v33, %v7409_v27 }
0x1492   :  { %v7411_v52 = vrot.slane %v7410_v15, 4 }
0x1494   :  { %v7412_v17 = vadd.f32 %v7411_v52, %v7410_v15 }
0x1496   :  { %v7413_v22 = vrot.slane %v7412_v17, 2 }
0x1498   :  { %v7414_v32 = vadd.f32 %v7413_v22, %v7412_v17 }
0x149a   :  { %v7415_v2 = vrot.slane %v7414_v32, 1 }
0x149c   :  { %v7416_v20 = vadd.f32 %v7415_v2, %v7414_v32 }
0x149e   :  { %10650 = vlog2.f32 %v7416_v20 }
0x14a8   :  { %v10651_v16 = vpop.eup %10650 }
0x14a9   :  { %v7418_v43 = vmul.f32 0.6931472, %v10651_v16 }
0x14ab   :  { %v7421_v42 = vsub.f32 %v7398_v57, %v7418_v43  ;;  %v7419_v24 = vsub.f32 %v7396_v1, %v7418_v43  ;;  %v7420_v50 = vsub.f32 %v7397_v48, %v7418_v43  ;;  %v7422_v54 = vsub.f32 %v7399_v39, %v7418_v43 }
0x14ad   :  { %7425 = vst [vmem:[#allocation4 + $0x10] sm:$0xff] %v7421_v42  ;;  %7423 = vst [vmem:[#allocation4] sm:$0xff] %v7419_v24 }
0x14ae   :  { %7424 = vst [vmem:[#allocation4 + $0x8] sm:$0xff] %v7420_v50  ;;  %7426 = vst [vmem:[#allocation4 + $0x18] sm:$0xff] %v7422_v54 }
0x14af   :  { %10810 = shalt.err (!%p10807_p4)
}
0x14b0   :  { %s10811_s0 = scalar_lea.hbm %s15467_s5, 512 }
0x14b1   :  { %p10812_p5 = scmp.ne.s32.totalorder %s15467_s5, %s10811_s0  ;;  %p10815_p6 = scmp.lt.u32.totalorder %s10811_s0, %s15467_s5 }
0x14b3   :  { %p10817_p7 = pnand %p10815_p6, %p10812_p5 }
0x14b5   :  { %10820 = shalt.err (!%p10817_p7)
}
0x14b6   :  { %s10829_s18 = smov 128   ;;  %s10830_s19 = smov 8  }
0x14b7   :  { %7438 = dma.vmem_to_hbm [thread:$0]  %s7433_s10, 512, %s15467_s5, [#allocation5], %s10829_s18, %s10829_s18, %s10830_s19  }
0x14b8   :  { %10821 = dma.done.wait [#allocation5], 512  }
0x14b9   :  { %10822 = vsyncadd [#allocation5], 4294966784 }
0x14ba   :  { %7442 = vsyncpa [#allocation5], 1 }

</bundles_post_ra>
